<compile_context>
chip_gen: v7x
topology: tpu7x:2x2x1
jax: 0.10.0
libtpu: 0.0.40
codegen_flags: <defaults>
</compile_context>

<pallas_src>
import numpy as np

import jax
import jax.numpy as jnp
from jax.experimental import pallas as pl
from jax.experimental.pallas import tpu as pltpu


# ---------------------------------------------------------------------------
# Pallas kernels
# ---------------------------------------------------------------------------

def _conv_relu_pool_kernel(xp_ref, bands_ref, bias_ref,
                           rsel_a_ref, rsel_b_ref, csel_a_ref, csel_b_ref,
                           o_ref):
    """Fused 5x5 conv (pad=2) + bias + ReLU + 2x2 max-pool, one image per step.

    Layouts:
      xp_ref    : (1, H+4, (W+4)*Cin)   zero-padded input, lanes = wp*Cin + ci
      bands_ref : (5, (W+4)*Cin, W*Cout)  band matrix per kernel row dh
      bias_ref  : (1, W*Cout)           bias tiled over w
      rsel_*    : (Rout, H)             0/1 row selectors (even / odd pool row)
      csel_*    : (W*Cout, Cols)        0/1 col selectors (even / odd pool col),
                                        also repack + zero-pad for the next layer
      o_ref     : (1, Rout, Cols)       pooled output, already padded/packed
    """
    H = xp_ref.shape[1] - 4

    # conv as 5 MXU matmuls: Y[h, w*Cout+co] = sum_dh Xp[h+dh, :] @ band[dh]
    acc = jnp.dot(xp_ref[0, 0:H, :], bands_ref[0],
                  preferred_element_type=jnp.float32)
    for dh in range(1, 5):
        acc = acc + jnp.dot(xp_ref[0, dh:dh + H, :], bands_ref[dh],
                            preferred_element_type=jnp.float32)
    y = jnp.maximum(acc + bias_ref[...], 0.0)            # bias + ReLU, (H, W*Cout)

    # 2x2 max-pool via 0/1 selection matmuls (MXU) + elementwise max (VPU).
    pc = jnp.maximum(
        jnp.dot(y, csel_a_ref[...], preferred_element_type=jnp.float32),
        jnp.dot(y, csel_b_ref[...], preferred_element_type=jnp.float32))
    pooled = jnp.maximum(
        jnp.dot(rsel_a_ref[...], pc, preferred_element_type=jnp.float32),
        jnp.dot(rsel_b_ref[...], pc, preferred_element_type=jnp.float32))
    o_ref[0] = pooled


def conv_relu_pool(xp, bands, bias_row, rsel_a, rsel_b, csel_a, csel_b):
    B, Hp, K = xp.shape
    rows_out = rsel_a.shape[0]
    cols_out = csel_a.shape[1]
    return pl.pallas_call(
        _conv_relu_pool_kernel,
        out_shape=jax.ShapeDtypeStruct((B, rows_out, cols_out), jnp.float32),
        grid_spec=pltpu.PrefetchScalarGridSpec(
            num_scalar_prefetch=0,
            grid=(B,),
            in_specs=[
                pl.BlockSpec((1, Hp, K), lambda b: (b, 0, 0)),
                pl.BlockSpec(bands.shape, lambda b: (0, 0, 0)),
                pl.BlockSpec(bias_row.shape, lambda b: (0, 0)),
                pl.BlockSpec(rsel_a.shape, lambda b: (0, 0)),
                pl.BlockSpec(rsel_b.shape, lambda b: (0, 0)),
                pl.BlockSpec(csel_a.shape, lambda b: (0, 0)),
                pl.BlockSpec(csel_b.shape, lambda b: (0, 0)),
            ],
            out_specs=pl.BlockSpec((1, rows_out, cols_out), lambda b: (b, 0, 0)),
        ),
        compiler_params=pltpu.CompilerParams(
            dimension_semantics=("parallel",),    # one image per TensorCore on v7x
            vmem_limit_bytes=32 << 20,
        ),
    )(xp, bands, bias_row, rsel_a, rsel_b, csel_a, csel_b)


def _fc_stack_kernel(x_ref, w1_ref, b1_ref, w2_ref, b2_ref, w3_ref, b3_ref,
                     w4_ref, b4_ref, o_ref):
    h = jnp.dot(x_ref[...], w1_ref[...], preferred_element_type=jnp.float32) + b1_ref[...]
    # TODO(synk): dropout1 is identity (eval mode); training-mode masking not reproduced.
    h = jnp.dot(h, w2_ref[...], preferred_element_type=jnp.float32) + b2_ref[...]
    # TODO(synk): dropout2 is identity (eval mode).
    h = jnp.dot(h, w3_ref[...], preferred_element_type=jnp.float32) + b3_ref[...]
    o_ref[...] = jnp.dot(h, w4_ref[...], preferred_element_type=jnp.float32) + b4_ref[...]


def fc_stack(x, w1, b1, w2, b2, w3, b3, w4, b4):
    """Fused fc1->fc2->fc3->fc4; all weights VMEM-resident, no HBM intermediates."""
    B = x.shape[0]
    n_out = w4.shape[1]
    args = (x, w1, b1, w2, b2, w3, b3, w4, b4)

    def full_spec(a):
        return pl.BlockSpec(a.shape, lambda i: (0, 0))

    return pl.pallas_call(
        _fc_stack_kernel,
        out_shape=jax.ShapeDtypeStruct((B, n_out), jnp.float32),
        grid_spec=pltpu.PrefetchScalarGridSpec(
            num_scalar_prefetch=0,
            grid=(1,),
            in_specs=[full_spec(a) for a in args],
            out_specs=pl.BlockSpec((B, n_out), lambda i: (0, 0)),
        ),
        compiler_params=pltpu.CompilerParams(
            dimension_semantics=("arbitrary",),
            vmem_limit_bytes=32 << 20,
        ),
    )(*args)


# ---------------------------------------------------------------------------
# Parameters (PyTorch-style uniform init) and one-time weight preprocessing
# ---------------------------------------------------------------------------

def init_params(key):
    ks = jax.random.split(key, 12)

    def u(kw, kb, fan_in, shape_w, shape_b):
        bound = float(fan_in) ** -0.5
        w = jax.random.uniform(kw, shape_w, jnp.float32, -bound, bound)
        b = jax.random.uniform(kb, shape_b, jnp.float32, -bound, bound)
        return w, b

    p = {}
    # conv weights in PyTorch layout (out_ch, in_ch, kh, kw); fc weights as (in, out)
    p["conv1_w"], p["conv1_b"] = u(ks[0], ks[1], 1 * 25, (8, 1, 5, 5), (8,))
    p["conv2_w"], p["conv2_b"] = u(ks[2], ks[3], 8 * 25, (16, 8, 5, 5), (16,))
    p["fc1_w"], p["fc1_b"] = u(ks[4], ks[5], 16 * 25 * 12, (16 * 25 * 12, 256), (256,))
    p["fc2_w"], p["fc2_b"] = u(ks[6], ks[7], 256, (256, 128), (128,))
    p["fc3_w"], p["fc3_b"] = u(ks[8], ks[9], 128, (128, 64), (64,))
    p["fc4_w"], p["fc4_b"] = u(ks[10], ks[11], 64, (64, 2), (2,))
    return p


def _band_matrices(w5, w_out):
    """bands[dh, wp*Cin+ci, w*Cout+co] = w5[co, ci, dh, wp-w] for 0 <= wp-w < 5."""
    cout, cin, kh, kw = w5.shape
    wp_tot = w_out + kw - 1
    bands = np.zeros((kh, wp_tot * cin, w_out * cout), np.float32)
    for dh in range(kh):
        for dw in range(kw):
            blk = np.transpose(w5[:, :, dh, dw])          # (Cin, Cout)
            for w in range(w_out):
                wp = w + dw
                bands[dh, wp * cin:(wp + 1) * cin, w * cout:(w + 1) * cout] = blk
    return bands


def _pool_row_selects(h_conv, pad):
    ho = h_conv // 2
    ra = np.zeros((ho + 2 * pad, h_conv), np.float32)
    rb = np.zeros((ho + 2 * pad, h_conv), np.float32)
    for i in range(ho):
        ra[pad + i, 2 * i] = 1.0
        rb[pad + i, 2 * i + 1] = 1.0
    return ra, rb


def _pool_col_selects(w_conv, c, pad):
    wo = w_conv // 2
    sa = np.zeros((w_conv * c, (wo + 2 * pad) * c), np.float32)
    sb = np.zeros((w_conv * c, (wo + 2 * pad) * c), np.float32)
    for i in range(wo):
        for j in range(c):
            sa[(2 * i) * c + j, (pad + i) * c + j] = 1.0
            sb[(2 * i + 1) * c + j, (pad + i) * c + j] = 1.0
    return sa, sb


def prepare_params(params):
    """One-time (offline) repacking of the PyTorch-layout weights."""
    w1 = np.asarray(params["conv1_w"])
    w2 = np.asarray(params["conv2_w"])

    l1_ra, l1_rb = _pool_row_selects(100, pad=2)          # (54, 100)
    l1_ca, l1_cb = _pool_col_selects(48, 8, pad=2)        # (384, 224)
    l2_ra, l2_rb = _pool_row_selects(50, pad=0)           # (25, 50)
    l2_ca, l2_cb = _pool_col_selects(24, 16, pad=0)       # (384, 192)

    prep = {
        # layer1: H=100, W=48, Cin=1, Cout=8; output pre-padded/packed for layer2
        "l1_bands": jnp.asarray(_band_matrices(w1, 48)),                 # (5, 52, 384)
        "l1_bias": jnp.asarray(np.tile(np.asarray(params["conv1_b"]), 48)[None, :]),
        "l1_rsel_a": jnp.asarray(l1_ra), "l1_rsel_b": jnp.asarray(l1_rb),
        "l1_csel_a": jnp.asarray(l1_ca), "l1_csel_b": jnp.asarray(l1_cb),
        # layer2: H=50, W=24, Cin=8, Cout=16; output packed (25, 12*16) for fc
        "l2_bands": jnp.asarray(_band_matrices(w2, 24)),                 # (5, 224, 384)
        "l2_bias": jnp.asarray(np.tile(np.asarray(params["conv2_b"]), 24)[None, :]),
        "l2_rsel_a": jnp.asarray(l2_ra), "l2_rsel_b": jnp.asarray(l2_rb),
        "l2_csel_a": jnp.asarray(l2_ca), "l2_csel_b": jnp.asarray(l2_cb),
    }

    # fc1: permute weight rows once so it consumes the kernel's (h, w, c) packed
    # flatten order instead of PyTorch's NCHW (c, h, w) order (offline reindex).
    ho, wo, co = np.meshgrid(np.arange(25), np.arange(12), np.arange(16),
                             indexing="ij")
    perm = (co * (25 * 12) + ho * 12 + wo).reshape(-1)                   # (4800,)
    prep["fc1_w"] = jnp.asarray(np.asarray(params["fc1_w"])[perm, :])
    prep["fc1_b"] = params["fc1_b"].reshape(1, -1)
    for name in ("fc2", "fc3", "fc4"):
        prep[name + "_w"] = params[name + "_w"]
        prep[name + "_b"] = params[name + "_b"].reshape(1, -1)
    return prep


# ---------------------------------------------------------------------------
# Forward pass
# ---------------------------------------------------------------------------

@jax.jit
def eye_tracking_forward(prep, x_nchw):
    """x_nchw: (B, 1, 100, 48) float32 -> (B, 2)."""
    B = x_nchw.shape[0]
    x = x_nchw.reshape(B, 100, 48)                       # Cin = 1
    xp = jnp.pad(x, ((0, 0), (2, 2), (2, 2)))            # (B, 104, 52), zero borders

    h1 = conv_relu_pool(xp, prep["l1_bands"], prep["l1_bias"],
                        prep["l1_rsel_a"], prep["l1_rsel_b"],
                        prep["l1_csel_a"], prep["l1_csel_b"])   # (B, 54, 224)
    h2 = conv_relu_pool(h1, prep["l2_bands"], prep["l2_bias"],
                        prep["l2_rsel_a"], prep["l2_rsel_b"],
                        prep["l2_csel_a"], prep["l2_csel_b"])   # (B, 25, 192)

    feats = h2.reshape(B, 25 * 192)                      # packed (h, w, c) flatten
    return fc_stack(feats,
                    prep["fc1_w"], prep["fc1_b"],
                    prep["fc2_w"], prep["fc2_b"],
                    prep["fc3_w"], prep["fc3_b"],
                    prep["fc4_w"], prep["fc4_b"])


# ---------------------------------------------------------------------------
# Pure-JAX reference (PyTorch semantics) for a numerical sanity check
# ---------------------------------------------------------------------------

def reference_forward(params, x):
    hp = jax.lax.Precision.HIGHEST

    def conv_block(z, w, b):
        z = jax.lax.conv_general_dilated(
            z, w, window_strides=(1, 1), padding=((2, 2), (2, 2)),
            dimension_numbers=("NCHW", "OIHW", "NCHW"), precision=hp)
        z = jnp.maximum(z + b.reshape(1, -1, 1, 1), 0.0)
        return jax.lax.reduce_window(z, -jnp.inf, jax.lax.max,
                                     (1, 1, 2, 2), (1, 1, 2, 2), "VALID")

    z = conv_block(x, params["conv1_w"], params["conv1_b"])
    z = conv_block(z, params["conv2_w"], params["conv2_b"])
    f = z.reshape(z.shape[0], -1)                        # NCHW flatten (torch .view)
    f = jnp.dot(f, params["fc1_w"], precision=hp) + params["fc1_b"]
    f = jnp.dot(f, params["fc2_w"], precision=hp) + params["fc2_b"]
    f = jnp.dot(f, params["fc3_w"], precision=hp) + params["fc3_b"]
    f = jnp.dot(f, params["fc4_w"], precision=hp) + params["fc4_b"]
    return f


if __name__ == "__main__":
    key = jax.random.PRNGKey(0)
    pkey, xkey = jax.random.split(key)
    params = init_params(pkey)
    prep = prepare_params(params)
    x = jax.random.normal(xkey, (2, 1, 100, 48), dtype=jnp.float32)  # NCHW, like PyTorch

    out = eye_tracking_forward(prep, x)
    out = jax.block_until_ready(out)
    assert out.shape == (2, 2) and out.dtype == jnp.float32

    ref = jax.block_until_ready(reference_forward(params, x))
    assert float(jnp.max(jnp.abs(out - ref))) < 2e-2

    print("KERNEL_OK")
</pallas_src>

<mosaic_0001>
module attributes {stable_mosaic.version = 11 : i64} {
  func.func @_conv_relu_pool_kernel(%arg0: i32, %arg1: memref<1x104x52xf32, #tpu.memory_space<vmem>>, %arg2: memref<5x52x384xf32, #tpu.memory_space<vmem>>, %arg3: memref<1x384xf32, #tpu.memory_space<vmem>>, %arg4: memref<54x100xf32, #tpu.memory_space<vmem>>, %arg5: memref<54x100xf32, #tpu.memory_space<vmem>>, %arg6: memref<384x224xf32, #tpu.memory_space<vmem>>, %arg7: memref<384x224xf32, #tpu.memory_space<vmem>>, %arg8: memref<1x54x224xf32, #tpu.memory_space<vmem>>) attributes {dimension_semantics = [#tpu.dimension_semantics<parallel>], iteration_bounds = array<i64: 2>, scalar_prefetch = 0 : i64, scratch_operands = 0 : i64, tpu.core_type = #tpu.core_type<tc>, window_params = [{transform_indices = @transform_0, window_bounds = array<i64: 1, 104, 52>}, {pipeline_mode = #tpu.pipeline_mode<synchronous>, transform_indices = @transform_1, window_bounds = array<i64: 5, 52, 384>}, {pipeline_mode = #tpu.pipeline_mode<synchronous>, transform_indices = @transform_2, window_bounds = array<i64: 1, 384>}, {pipeline_mode = #tpu.pipeline_mode<synchronous>, transform_indices = @transform_3, window_bounds = array<i64: 54, 100>}, {pipeline_mode = #tpu.pipeline_mode<synchronous>, transform_indices = @transform_4, window_bounds = array<i64: 54, 100>}, {pipeline_mode = #tpu.pipeline_mode<synchronous>, transform_indices = @transform_5, window_bounds = array<i64: 384, 224>}, {pipeline_mode = #tpu.pipeline_mode<synchronous>, transform_indices = @transform_6, window_bounds = array<i64: 384, 224>}, {transform_indices = @transform_7, window_bounds = array<i64: 1, 54, 224>}]} {
    %c0 = arith.constant 0 : index
    %c0_0 = arith.constant 0 : index
    %c0_1 = arith.constant 0 : index
    %0 = vector.load %arg1[%c0, %c0_0, %c0_1] : memref<1x104x52xf32, #tpu.memory_space<vmem>>, vector<1x100x52xf32>
    %1 = vector.shape_cast %0 : vector<1x100x52xf32> to vector<100x52xf32>
    %c0_2 = arith.constant 0 : index
    %c0_3 = arith.constant 0 : index
    %c0_4 = arith.constant 0 : index
    %2 = vector.load %arg2[%c0_2, %c0_3, %c0_4] : memref<5x52x384xf32, #tpu.memory_space<vmem>>, vector<1x52x384xf32>
    %3 = vector.shape_cast %2 : vector<1x52x384xf32> to vector<52x384xf32>
    %cst = arith.constant dense<0.000000e+00> : vector<100x384xf32>
    %4 = tpu.matmul %1, %3, %cst {dimension_numbers = #tpu.dot_dimension_numbers<[1], [0], [0], [1], [0, 0, 1, 1], [], []>} : vector<100x52xf32>, vector<52x384xf32>, vector<100x384xf32> -> vector<100x384xf32>
    %c0_5 = arith.constant 0 : index
    %c1 = arith.constant 1 : index
    %c0_6 = arith.constant 0 : index
    %5 = vector.load %arg1[%c0_5, %c1, %c0_6] : memref<1x104x52xf32, #tpu.memory_space<vmem>>, vector<1x100x52xf32>
    %6 = vector.shape_cast %5 : vector<1x100x52xf32> to vector<100x52xf32>
    %c1_7 = arith.constant 1 : index
    %c0_8 = arith.constant 0 : index
    %c0_9 = arith.constant 0 : index
    %7 = vector.load %arg2[%c1_7, %c0_8, %c0_9] : memref<5x52x384xf32, #tpu.memory_space<vmem>>, vector<1x52x384xf32>
    %8 = vector.shape_cast %7 : vector<1x52x384xf32> to vector<52x384xf32>
    %cst_10 = arith.constant dense<0.000000e+00> : vector<100x384xf32>
    %9 = tpu.matmul %6, %8, %cst_10 {dimension_numbers = #tpu.dot_dimension_numbers<[1], [0], [0], [1], [0, 0, 1, 1], [], []>} : vector<100x52xf32>, vector<52x384xf32>, vector<100x384xf32> -> vector<100x384xf32>
    %10 = arith.addf %4, %9 : vector<100x384xf32>
    %c0_11 = arith.constant 0 : index
    %c2 = arith.constant 2 : index
    %c0_12 = arith.constant 0 : index
    %11 = vector.load %arg1[%c0_11, %c2, %c0_12] : memref<1x104x52xf32, #tpu.memory_space<vmem>>, vector<1x100x52xf32>
    %12 = vector.shape_cast %11 : vector<1x100x52xf32> to vector<100x52xf32>
    %c2_13 = arith.constant 2 : index
    %c0_14 = arith.constant 0 : index
    %c0_15 = arith.constant 0 : index
    %13 = vector.load %arg2[%c2_13, %c0_14, %c0_15] : memref<5x52x384xf32, #tpu.memory_space<vmem>>, vector<1x52x384xf32>
    %14 = vector.shape_cast %13 : vector<1x52x384xf32> to vector<52x384xf32>
    %cst_16 = arith.constant dense<0.000000e+00> : vector<100x384xf32>
    %15 = tpu.matmul %12, %14, %cst_16 {dimension_numbers = #tpu.dot_dimension_numbers<[1], [0], [0], [1], [0, 0, 1, 1], [], []>} : vector<100x52xf32>, vector<52x384xf32>, vector<100x384xf32> -> vector<100x384xf32>
    %16 = arith.addf %10, %15 : vector<100x384xf32>
    %c0_17 = arith.constant 0 : index
    %c3 = arith.constant 3 : index
    %c0_18 = arith.constant 0 : index
    %17 = vector.load %arg1[%c0_17, %c3, %c0_18] : memref<1x104x52xf32, #tpu.memory_space<vmem>>, vector<1x100x52xf32>
    %18 = vector.shape_cast %17 : vector<1x100x52xf32> to vector<100x52xf32>
    %c3_19 = arith.constant 3 : index
    %c0_20 = arith.constant 0 : index
    %c0_21 = arith.constant 0 : index
    %19 = vector.load %arg2[%c3_19, %c0_20, %c0_21] : memref<5x52x384xf32, #tpu.memory_space<vmem>>, vector<1x52x384xf32>
    %20 = vector.shape_cast %19 : vector<1x52x384xf32> to vector<52x384xf32>
    %cst_22 = arith.constant dense<0.000000e+00> : vector<100x384xf32>
    %21 = tpu.matmul %18, %20, %cst_22 {dimension_numbers = #tpu.dot_dimension_numbers<[1], [0], [0], [1], [0, 0, 1, 1], [], []>} : vector<100x52xf32>, vector<52x384xf32>, vector<100x384xf32> -> vector<100x384xf32>
    %22 = arith.addf %16, %21 : vector<100x384xf32>
    %c0_23 = arith.constant 0 : index
    %c4 = arith.constant 4 : index
    %c0_24 = arith.constant 0 : index
    %23 = vector.load %arg1[%c0_23, %c4, %c0_24] : memref<1x104x52xf32, #tpu.memory_space<vmem>>, vector<1x100x52xf32>
    %24 = vector.shape_cast %23 : vector<1x100x52xf32> to vector<100x52xf32>
    %c4_25 = arith.constant 4 : index
    %c0_26 = arith.constant 0 : index
    %c0_27 = arith.constant 0 : index
    %25 = vector.load %arg2[%c4_25, %c0_26, %c0_27] : memref<5x52x384xf32, #tpu.memory_space<vmem>>, vector<1x52x384xf32>
    %26 = vector.shape_cast %25 : vector<1x52x384xf32> to vector<52x384xf32>
    %cst_28 = arith.constant dense<0.000000e+00> : vector<100x384xf32>
    %27 = tpu.matmul %24, %26, %cst_28 {dimension_numbers = #tpu.dot_dimension_numbers<[1], [0], [0], [1], [0, 0, 1, 1], [], []>} : vector<100x52xf32>, vector<52x384xf32>, vector<100x384xf32> -> vector<100x384xf32>
    %28 = arith.addf %22, %27 : vector<100x384xf32>
    %c0_29 = arith.constant 0 : index
    %c0_30 = arith.constant 0 : index
    %29 = vector.load %arg3[%c0_29, %c0_30] : memref<1x384xf32, #tpu.memory_space<vmem>>, vector<1x384xf32>
    %30 = vector.broadcast %29 : vector<1x384xf32> to vector<100x384xf32>
    %31 = arith.addf %28, %30 : vector<100x384xf32>
    %cst_31 = arith.constant 0.000000e+00 : f32
    %32 = vector.broadcast %cst_31 : f32 to vector<100x384xf32>
    %33 = arith.maximumf %31, %32 : vector<100x384xf32>
    %c0_32 = arith.constant 0 : index
    %c0_33 = arith.constant 0 : index
    %34 = vector.load %arg6[%c0_32, %c0_33] : memref<384x224xf32, #tpu.memory_space<vmem>>, vector<384x224xf32>
    %cst_34 = arith.constant dense<0.000000e+00> : vector<100x224xf32>
    %35 = tpu.matmul %33, %34, %cst_34 {dimension_numbers = #tpu.dot_dimension_numbers<[1], [0], [0], [1], [0, 0, 1, 1], [], []>} : vector<100x384xf32>, vector<384x224xf32>, vector<100x224xf32> -> vector<100x224xf32>
    %c0_35 = arith.constant 0 : index
    %c0_36 = arith.constant 0 : index
    %36 = vector.load %arg7[%c0_35, %c0_36] : memref<384x224xf32, #tpu.memory_space<vmem>>, vector<384x224xf32>
    %cst_37 = arith.constant dense<0.000000e+00> : vector<100x224xf32>
    %37 = tpu.matmul %33, %36, %cst_37 {dimension_numbers = #tpu.dot_dimension_numbers<[1], [0], [0], [1], [0, 0, 1, 1], [], []>} : vector<100x384xf32>, vector<384x224xf32>, vector<100x224xf32> -> vector<100x224xf32>
    %38 = arith.maximumf %35, %37 : vector<100x224xf32>
    %c0_38 = arith.constant 0 : index
    %c0_39 = arith.constant 0 : index
    %39 = vector.load %arg4[%c0_38, %c0_39] : memref<54x100xf32, #tpu.memory_space<vmem>>, vector<54x100xf32>
    %cst_40 = arith.constant dense<0.000000e+00> : vector<54x224xf32>
    %40 = tpu.matmul %39, %38, %cst_40 {dimension_numbers = #tpu.dot_dimension_numbers<[1], [0], [0], [1], [0, 0, 1, 1], [], []>} : vector<54x100xf32>, vector<100x224xf32>, vector<54x224xf32> -> vector<54x224xf32>
    %c0_41 = arith.constant 0 : index
    %c0_42 = arith.constant 0 : index
    %41 = vector.load %arg5[%c0_41, %c0_42] : memref<54x100xf32, #tpu.memory_space<vmem>>, vector<54x100xf32>
    %cst_43 = arith.constant dense<0.000000e+00> : vector<54x224xf32>
    %42 = tpu.matmul %41, %38, %cst_43 {dimension_numbers = #tpu.dot_dimension_numbers<[1], [0], [0], [1], [0, 0, 1, 1], [], []>} : vector<54x100xf32>, vector<100x224xf32>, vector<54x224xf32> -> vector<54x224xf32>
    %43 = arith.maximumf %40, %42 : vector<54x224xf32>
    %c0_44 = arith.constant 0 : index
    %c0_45 = arith.constant 0 : index
    %c0_46 = arith.constant 0 : index
    %44 = vector.load %arg8[%c0_44, %c0_45, %c0_46] : memref<1x54x224xf32, #tpu.memory_space<vmem>>, vector<1x54x224xf32>
    %45 = vector.shape_cast %44 : vector<1x54x224xf32> to vector<54x224xf32>
    %46 = vector.shape_cast %43 : vector<54x224xf32> to vector<1x54x224xf32>
    tpu.vector_store %arg8[%c0_44, %c0_45, %c0_46], %46 {strides = array<i32>} : memref<1x54x224xf32, #tpu.memory_space<vmem>>, vector<1x54x224xf32>,
    return
  }
  func.func @transform_0(%arg0: i32) -> (i32, i32, i32) {
    %c0_i32 = arith.constant 0 : i32
    %c0_i32_0 = arith.constant 0 : i32
    %c0_i32_1 = arith.constant 0 : i32
    return %arg0, %c0_i32, %c0_i32_0 : i32, i32, i32
  }
  func.func @transform_1(%arg0: i32) -> (i32, i32, i32) {
    %c0_i32 = arith.constant 0 : i32
    %c0_i32_0 = arith.constant 0 : i32
    %c0_i32_1 = arith.constant 0 : i32
    %c0_i32_2 = arith.constant 0 : i32
    return %c0_i32, %c0_i32_0, %c0_i32_1 : i32, i32, i32
  }
  func.func @transform_2(%arg0: i32) -> (i32, i32) {
    %c0_i32 = arith.constant 0 : i32
    %c0_i32_0 = arith.constant 0 : i32
    %c0_i32_1 = arith.constant 0 : i32
    return %c0_i32, %c0_i32_0 : i32, i32
  }
  func.func @transform_3(%arg0: i32) -> (i32, i32) {
    %c0_i32 = arith.constant 0 : i32
    %c0_i32_0 = arith.constant 0 : i32
    %c0_i32_1 = arith.constant 0 : i32
    return %c0_i32, %c0_i32_0 : i32, i32
  }
  func.func @transform_4(%arg0: i32) -> (i32, i32) {
    %c0_i32 = arith.constant 0 : i32
    %c0_i32_0 = arith.constant 0 : i32
    %c0_i32_1 = arith.constant 0 : i32
    return %c0_i32, %c0_i32_0 : i32, i32
  }
  func.func @transform_5(%arg0: i32) -> (i32, i32) {
    %c0_i32 = arith.constant 0 : i32
    %c0_i32_0 = arith.constant 0 : i32
    %c0_i32_1 = arith.constant 0 : i32
    return %c0_i32, %c0_i32_0 : i32, i32
  }
  func.func @transform_6(%arg0: i32) -> (i32, i32) {
    %c0_i32 = arith.constant 0 : i32
    %c0_i32_0 = arith.constant 0 : i32
    %c0_i32_1 = arith.constant 0 : i32
    return %c0_i32, %c0_i32_0 : i32, i32
  }
  func.func @transform_7(%arg0: i32) -> (i32, i32, i32) {
    %c0_i32 = arith.constant 0 : i32
    %c0_i32_0 = arith.constant 0 : i32
    %c0_i32_1 = arith.constant 0 : i32
    return %arg0, %c0_i32, %c0_i32_0 : i32, i32, i32
  }
}

module attributes {stable_mosaic.version = 11 : i64} {
  func.func @_fc_stack_kernel(%arg0: i32, %arg1: memref<2x4800xf32, #tpu.memory_space<vmem>>, %arg2: memref<4800x256xf32, #tpu.memory_space<vmem>>, %arg3: memref<1x256xf32, #tpu.memory_space<vmem>>, %arg4: memref<256x128xf32, #tpu.memory_space<vmem>>, %arg5: memref<1x128xf32, #tpu.memory_space<vmem>>, %arg6: memref<128x64xf32, #tpu.memory_space<vmem>>, %arg7: memref<1x64xf32, #tpu.memory_space<vmem>>, %arg8: memref<64x2xf32, #tpu.memory_space<vmem>>, %arg9: memref<1x2xf32, #tpu.memory_space<vmem>>, %arg10: memref<2x2xf32, #tpu.memory_space<vmem>>) attributes {dimension_semantics = [#tpu.dimension_semantics<arbitrary>], iteration_bounds = array<i64: 1>, scalar_prefetch = 0 : i64, scratch_operands = 0 : i64, tpu.core_type = #tpu.core_type<tc>, window_params = [{pipeline_mode = #tpu.pipeline_mode<synchronous>, transform_indices = @transform_0, window_bounds = array<i64: 2, 4800>}, {pipeline_mode = #tpu.pipeline_mode<synchronous>, transform_indices = @transform_1, window_bounds = array<i64: 4800, 256>}, {pipeline_mode = #tpu.pipeline_mode<synchronous>, transform_indices = @transform_2, window_bounds = array<i64: 1, 256>}, {pipeline_mode = #tpu.pipeline_mode<synchronous>, transform_indices = @transform_3, window_bounds = array<i64: 256, 128>}, {pipeline_mode = #tpu.pipeline_mode<synchronous>, transform_indices = @transform_4, window_bounds = array<i64: 1, 128>}, {pipeline_mode = #tpu.pipeline_mode<synchronous>, transform_indices = @transform_5, window_bounds = array<i64: 128, 64>}, {pipeline_mode = #tpu.pipeline_mode<synchronous>, transform_indices = @transform_6, window_bounds = array<i64: 1, 64>}, {pipeline_mode = #tpu.pipeline_mode<synchronous>, transform_indices = @transform_7, window_bounds = array<i64: 64, 2>}, {pipeline_mode = #tpu.pipeline_mode<synchronous>, transform_indices = @transform_8, window_bounds = array<i64: 1, 2>}, {pipeline_mode = #tpu.pipeline_mode<synchronous>, transform_indices = @transform_9, window_bounds = array<i64: 2, 2>}]} {
    %c0 = arith.constant 0 : index
    %c0_0 = arith.constant 0 : index
    %0 = vector.load %arg1[%c0, %c0_0] : memref<2x4800xf32, #tpu.memory_space<vmem>>, vector<2x4800xf32>
    %c0_1 = arith.constant 0 : index
    %c0_2 = arith.constant 0 : index
    %1 = vector.load %arg2[%c0_1, %c0_2] : memref<4800x256xf32, #tpu.memory_space<vmem>>, vector<4800x256xf32>
    %cst = arith.constant dense<0.000000e+00> : vector<2x256xf32>
    %2 = tpu.matmul %0, %1, %cst {dimension_numbers = #tpu.dot_dimension_numbers<[1], [0], [0], [1], [0, 0, 1, 1], [], []>} : vector<2x4800xf32>, vector<4800x256xf32>, vector<2x256xf32> -> vector<2x256xf32>
    %c0_3 = arith.constant 0 : index
    %c0_4 = arith.constant 0 : index
    %3 = vector.load %arg3[%c0_3, %c0_4] : memref<1x256xf32, #tpu.memory_space<vmem>>, vector<1x256xf32>
    %4 = vector.broadcast %3 : vector<1x256xf32> to vector<2x256xf32>
    %5 = arith.addf %2, %4 : vector<2x256xf32>
    %c0_5 = arith.constant 0 : index
    %c0_6 = arith.constant 0 : index
    %6 = vector.load %arg4[%c0_5, %c0_6] : memref<256x128xf32, #tpu.memory_space<vmem>>, vector<256x128xf32>
    %cst_7 = arith.constant dense<0.000000e+00> : vector<2x128xf32>
    %7 = tpu.matmul %5, %6, %cst_7 {dimension_numbers = #tpu.dot_dimension_numbers<[1], [0], [0], [1], [0, 0, 1, 1], [], []>} : vector<2x256xf32>, vector<256x128xf32>, vector<2x128xf32> -> vector<2x128xf32>
    %c0_8 = arith.constant 0 : index
    %c0_9 = arith.constant 0 : index
    %8 = vector.load %arg5[%c0_8, %c0_9] : memref<1x128xf32, #tpu.memory_space<vmem>>, vector<1x128xf32>
    %9 = vector.broadcast %8 : vector<1x128xf32> to vector<2x128xf32>
    %10 = arith.addf %7, %9 : vector<2x128xf32>
    %c0_10 = arith.constant 0 : index
    %c0_11 = arith.constant 0 : index
    %11 = vector.load %arg6[%c0_10, %c0_11] : memref<128x64xf32, #tpu.memory_space<vmem>>, vector<128x64xf32>
    %cst_12 = arith.constant dense<0.000000e+00> : vector<2x64xf32>
    %12 = tpu.matmul %10, %11, %cst_12 {dimension_numbers = #tpu.dot_dimension_numbers<[1], [0], [0], [1], [0, 0, 1, 1], [], []>} : vector<2x128xf32>, vector<128x64xf32>, vector<2x64xf32> -> vector<2x64xf32>
    %c0_13 = arith.constant 0 : index
    %c0_14 = arith.constant 0 : index
    %13 = vector.load %arg7[%c0_13, %c0_14] : memref<1x64xf32, #tpu.memory_space<vmem>>, vector<1x64xf32>
    %14 = vector.broadcast %13 : vector<1x64xf32> to vector<2x64xf32>
    %15 = arith.addf %12, %14 : vector<2x64xf32>
    %c0_15 = arith.constant 0 : index
    %c0_16 = arith.constant 0 : index
    %16 = vector.load %arg8[%c0_15, %c0_16] : memref<64x2xf32, #tpu.memory_space<vmem>>, vector<64x2xf32>
    %cst_17 = arith.constant dense<0.000000e+00> : vector<2x2xf32>
    %17 = tpu.matmul %15, %16, %cst_17 {dimension_numbers = #tpu.dot_dimension_numbers<[1], [0], [0], [1], [0, 0, 1, 1], [], []>} : vector<2x64xf32>, vector<64x2xf32>, vector<2x2xf32> -> vector<2x2xf32>
    %c0_18 = arith.constant 0 : index
    %c0_19 = arith.constant 0 : index
    %18 = vector.load %arg9[%c0_18, %c0_19] : memref<1x2xf32, #tpu.memory_space<vmem>>, vector<1x2xf32>
    %19 = vector.broadcast %18 : vector<1x2xf32> to vector<2x2xf32>
    %20 = arith.addf %17, %19 : vector<2x2xf32>
    %c0_20 = arith.constant 0 : index
    %c0_21 = arith.constant 0 : index
    %21 = vector.load %arg10[%c0_20, %c0_21] : memref<2x2xf32, #tpu.memory_space<vmem>>, vector<2x2xf32>
    tpu.vector_store %arg10[%c0_20, %c0_21], %20 {strides = array<i32>} : memref<2x2xf32, #tpu.memory_space<vmem>>, vector<2x2xf32>,
    return
  }
  func.func @transform_0(%arg0: i32) -> (i32, i32) {
    %c0_i32 = arith.constant 0 : i32
    %c0_i32_0 = arith.constant 0 : i32
    %c0_i32_1 = arith.constant 0 : i32
    return %c0_i32, %c0_i32_0 : i32, i32
  }
  func.func @transform_1(%arg0: i32) -> (i32, i32) {
    %c0_i32 = arith.constant 0 : i32
    %c0_i32_0 = arith.constant 0 : i32
    %c0_i32_1 = arith.constant 0 : i32
    return %c0_i32, %c0_i32_0 : i32, i32
  }
  func.func @transform_2(%arg0: i32) -> (i32, i32) {
    %c0_i32 = arith.constant 0 : i32
    %c0_i32_0 = arith.constant 0 : i32
    %c0_i32_1 = arith.constant 0 : i32
    return %c0_i32, %c0_i32_0 : i32, i32
  }
  func.func @transform_3(%arg0: i32) -> (i32, i32) {
    %c0_i32 = arith.constant 0 : i32
    %c0_i32_0 = arith.constant 0 : i32
    %c0_i32_1 = arith.constant 0 : i32
    return %c0_i32, %c0_i32_0 : i32, i32
  }
  func.func @transform_4(%arg0: i32) -> (i32, i32) {
    %c0_i32 = arith.constant 0 : i32
    %c0_i32_0 = arith.constant 0 : i32
    %c0_i32_1 = arith.constant 0 : i32
    return %c0_i32, %c0_i32_0 : i32, i32
  }
  func.func @transform_5(%arg0: i32) -> (i32, i32) {
    %c0_i32 = arith.constant 0 : i32
    %c0_i32_0 = arith.constant 0 : i32
    %c0_i32_1 = arith.constant 0 : i32
    return %c0_i32, %c0_i32_0 : i32, i32
  }
  func.func @transform_6(%arg0: i32) -> (i32, i32) {
    %c0_i32 = arith.constant 0 : i32
    %c0_i32_0 = arith.constant 0 : i32
    %c0_i32_1 = arith.constant 0 : i32
    return %c0_i32, %c0_i32_0 : i32, i32
  }
  func.func @transform_7(%arg0: i32) -> (i32, i32) {
    %c0_i32 = arith.constant 0 : i32
    %c0_i32_0 = arith.constant 0 : i32
    %c0_i32_1 = arith.constant 0 : i32
    return %c0_i32, %c0_i32_0 : i32, i32
  }
  func.func @transform_8(%arg0: i32) -> (i32, i32) {
    %c0_i32 = arith.constant 0 : i32
    %c0_i32_0 = arith.constant 0 : i32
    %c0_i32_1 = arith.constant 0 : i32
    return %c0_i32, %c0_i32_0 : i32, i32
  }
  func.func @transform_9(%arg0: i32) -> (i32, i32) {
    %c0_i32 = arith.constant 0 : i32
    %c0_i32_0 = arith.constant 0 : i32
    %c0_i32_1 = arith.constant 0 : i32
    return %c0_i32, %c0_i32_0 : i32, i32
  }
}

module attributes {stable_mosaic.version = 11 : i64} {
  func.func @_conv_relu_pool_kernel(%arg0: i32, %arg1: memref<1x54x224xf32, #tpu.memory_space<vmem>>, %arg2: memref<5x224x384xf32, #tpu.memory_space<vmem>>, %arg3: memref<1x384xf32, #tpu.memory_space<vmem>>, %arg4: memref<25x50xf32, #tpu.memory_space<vmem>>, %arg5: memref<25x50xf32, #tpu.memory_space<vmem>>, %arg6: memref<384x192xf32, #tpu.memory_space<vmem>>, %arg7: memref<384x192xf32, #tpu.memory_space<vmem>>, %arg8: memref<1x25x192xf32, #tpu.memory_space<vmem>>) attributes {dimension_semantics = [#tpu.dimension_semantics<parallel>], iteration_bounds = array<i64: 2>, scalar_prefetch = 0 : i64, scratch_operands = 0 : i64, tpu.core_type = #tpu.core_type<tc>, window_params = [{transform_indices = @transform_0, window_bounds = array<i64: 1, 54, 224>}, {pipeline_mode = #tpu.pipeline_mode<synchronous>, transform_indices = @transform_1, window_bounds = array<i64: 5, 224, 384>}, {pipeline_mode = #tpu.pipeline_mode<synchronous>, transform_indices = @transform_2, window_bounds = array<i64: 1, 384>}, {pipeline_mode = #tpu.pipeline_mode<synchronous>, transform_indices = @transform_3, window_bounds = array<i64: 25, 50>}, {pipeline_mode = #tpu.pipeline_mode<synchronous>, transform_indices = @transform_4, window_bounds = array<i64: 25, 50>}, {pipeline_mode = #tpu.pipeline_mode<synchronous>, transform_indices = @transform_5, window_bounds = array<i64: 384, 192>}, {pipeline_mode = #tpu.pipeline_mode<synchronous>, transform_indices = @transform_6, window_bounds = array<i64: 384, 192>}, {transform_indices = @transform_7, window_bounds = array<i64: 1, 25, 192>}]} {
    %c0 = arith.constant 0 : index
    %c0_0 = arith.constant 0 : index
    %c0_1 = arith.constant 0 : index
    %0 = vector.load %arg1[%c0, %c0_0, %c0_1] : memref<1x54x224xf32, #tpu.memory_space<vmem>>, vector<1x50x224xf32>
    %1 = vector.shape_cast %0 : vector<1x50x224xf32> to vector<50x224xf32>
    %c0_2 = arith.constant 0 : index
    %c0_3 = arith.constant 0 : index
    %c0_4 = arith.constant 0 : index
    %2 = vector.load %arg2[%c0_2, %c0_3, %c0_4] : memref<5x224x384xf32, #tpu.memory_space<vmem>>, vector<1x224x384xf32>
    %3 = vector.shape_cast %2 : vector<1x224x384xf32> to vector<224x384xf32>
    %cst = arith.constant dense<0.000000e+00> : vector<50x384xf32>
    %4 = tpu.matmul %1, %3, %cst {dimension_numbers = #tpu.dot_dimension_numbers<[1], [0], [0], [1], [0, 0, 1, 1], [], []>} : vector<50x224xf32>, vector<224x384xf32>, vector<50x384xf32> -> vector<50x384xf32>
    %c0_5 = arith.constant 0 : index
    %c1 = arith.constant 1 : index
    %c0_6 = arith.constant 0 : index
    %5 = vector.load %arg1[%c0_5, %c1, %c0_6] : memref<1x54x224xf32, #tpu.memory_space<vmem>>, vector<1x50x224xf32>
    %6 = vector.shape_cast %5 : vector<1x50x224xf32> to vector<50x224xf32>
    %c1_7 = arith.constant 1 : index
    %c0_8 = arith.constant 0 : index
    %c0_9 = arith.constant 0 : index
    %7 = vector.load %arg2[%c1_7, %c0_8, %c0_9] : memref<5x224x384xf32, #tpu.memory_space<vmem>>, vector<1x224x384xf32>
    %8 = vector.shape_cast %7 : vector<1x224x384xf32> to vector<224x384xf32>
    %cst_10 = arith.constant dense<0.000000e+00> : vector<50x384xf32>
    %9 = tpu.matmul %6, %8, %cst_10 {dimension_numbers = #tpu.dot_dimension_numbers<[1], [0], [0], [1], [0, 0, 1, 1], [], []>} : vector<50x224xf32>, vector<224x384xf32>, vector<50x384xf32> -> vector<50x384xf32>
    %10 = arith.addf %4, %9 : vector<50x384xf32>
    %c0_11 = arith.constant 0 : index
    %c2 = arith.constant 2 : index
    %c0_12 = arith.constant 0 : index
    %11 = vector.load %arg1[%c0_11, %c2, %c0_12] : memref<1x54x224xf32, #tpu.memory_space<vmem>>, vector<1x50x224xf32>
    %12 = vector.shape_cast %11 : vector<1x50x224xf32> to vector<50x224xf32>
    %c2_13 = arith.constant 2 : index
    %c0_14 = arith.constant 0 : index
    %c0_15 = arith.constant 0 : index
    %13 = vector.load %arg2[%c2_13, %c0_14, %c0_15] : memref<5x224x384xf32, #tpu.memory_space<vmem>>, vector<1x224x384xf32>
    %14 = vector.shape_cast %13 : vector<1x224x384xf32> to vector<224x384xf32>
    %cst_16 = arith.constant dense<0.000000e+00> : vector<50x384xf32>
    %15 = tpu.matmul %12, %14, %cst_16 {dimension_numbers = #tpu.dot_dimension_numbers<[1], [0], [0], [1], [0, 0, 1, 1], [], []>} : vector<50x224xf32>, vector<224x384xf32>, vector<50x384xf32> -> vector<50x384xf32>
    %16 = arith.addf %10, %15 : vector<50x384xf32>
    %c0_17 = arith.constant 0 : index
    %c3 = arith.constant 3 : index
    %c0_18 = arith.constant 0 : index
    %17 = vector.load %arg1[%c0_17, %c3, %c0_18] : memref<1x54x224xf32, #tpu.memory_space<vmem>>, vector<1x50x224xf32>
    %18 = vector.shape_cast %17 : vector<1x50x224xf32> to vector<50x224xf32>
    %c3_19 = arith.constant 3 : index
    %c0_20 = arith.constant 0 : index
    %c0_21 = arith.constant 0 : index
    %19 = vector.load %arg2[%c3_19, %c0_20, %c0_21] : memref<5x224x384xf32, #tpu.memory_space<vmem>>, vector<1x224x384xf32>
    %20 = vector.shape_cast %19 : vector<1x224x384xf32> to vector<224x384xf32>
    %cst_22 = arith.constant dense<0.000000e+00> : vector<50x384xf32>
    %21 = tpu.matmul %18, %20, %cst_22 {dimension_numbers = #tpu.dot_dimension_numbers<[1], [0], [0], [1], [0, 0, 1, 1], [], []>} : vector<50x224xf32>, vector<224x384xf32>, vector<50x384xf32> -> vector<50x384xf32>
    %22 = arith.addf %16, %21 : vector<50x384xf32>
    %c0_23 = arith.constant 0 : index
    %c4 = arith.constant 4 : index
    %c0_24 = arith.constant 0 : index
    %23 = vector.load %arg1[%c0_23, %c4, %c0_24] : memref<1x54x224xf32, #tpu.memory_space<vmem>>, vector<1x50x224xf32>
    %24 = vector.shape_cast %23 : vector<1x50x224xf32> to vector<50x224xf32>
    %c4_25 = arith.constant 4 : index
    %c0_26 = arith.constant 0 : index
    %c0_27 = arith.constant 0 : index
    %25 = vector.load %arg2[%c4_25, %c0_26, %c0_27] : memref<5x224x384xf32, #tpu.memory_space<vmem>>, vector<1x224x384xf32>
    %26 = vector.shape_cast %25 : vector<1x224x384xf32> to vector<224x384xf32>
    %cst_28 = arith.constant dense<0.000000e+00> : vector<50x384xf32>
    %27 = tpu.matmul %24, %26, %cst_28 {dimension_numbers = #tpu.dot_dimension_numbers<[1], [0], [0], [1], [0, 0, 1, 1], [], []>} : vector<50x224xf32>, vector<224x384xf32>, vector<50x384xf32> -> vector<50x384xf32>
    %28 = arith.addf %22, %27 : vector<50x384xf32>
    %c0_29 = arith.constant 0 : index
    %c0_30 = arith.constant 0 : index
    %29 = vector.load %arg3[%c0_29, %c0_30] : memref<1x384xf32, #tpu.memory_space<vmem>>, vector<1x384xf32>
    %30 = vector.broadcast %29 : vector<1x384xf32> to vector<50x384xf32>
    %31 = arith.addf %28, %30 : vector<50x384xf32>
    %cst_31 = arith.constant 0.000000e+00 : f32
    %32 = vector.broadcast %cst_31 : f32 to vector<50x384xf32>
    %33 = arith.maximumf %31, %32 : vector<50x384xf32>
    %c0_32 = arith.constant 0 : index
    %c0_33 = arith.constant 0 : index
    %34 = vector.load %arg6[%c0_32, %c0_33] : memref<384x192xf32, #tpu.memory_space<vmem>>, vector<384x192xf32>
    %cst_34 = arith.constant dense<0.000000e+00> : vector<50x192xf32>
    %35 = tpu.matmul %33, %34, %cst_34 {dimension_numbers = #tpu.dot_dimension_numbers<[1], [0], [0], [1], [0, 0, 1, 1], [], []>} : vector<50x384xf32>, vector<384x192xf32>, vector<50x192xf32> -> vector<50x192xf32>
    %c0_35 = arith.constant 0 : index
    %c0_36 = arith.constant 0 : index
    %36 = vector.load %arg7[%c0_35, %c0_36] : memref<384x192xf32, #tpu.memory_space<vmem>>, vector<384x192xf32>
    %cst_37 = arith.constant dense<0.000000e+00> : vector<50x192xf32>
    %37 = tpu.matmul %33, %36, %cst_37 {dimension_numbers = #tpu.dot_dimension_numbers<[1], [0], [0], [1], [0, 0, 1, 1], [], []>} : vector<50x384xf32>, vector<384x192xf32>, vector<50x192xf32> -> vector<50x192xf32>
    %38 = arith.maximumf %35, %37 : vector<50x192xf32>
    %c0_38 = arith.constant 0 : index
    %c0_39 = arith.constant 0 : index
    %39 = vector.load %arg4[%c0_38, %c0_39] : memref<25x50xf32, #tpu.memory_space<vmem>>, vector<25x50xf32>
    %cst_40 = arith.constant dense<0.000000e+00> : vector<25x192xf32>
    %40 = tpu.matmul %39, %38, %cst_40 {dimension_numbers = #tpu.dot_dimension_numbers<[1], [0], [0], [1], [0, 0, 1, 1], [], []>} : vector<25x50xf32>, vector<50x192xf32>, vector<25x192xf32> -> vector<25x192xf32>
    %c0_41 = arith.constant 0 : index
    %c0_42 = arith.constant 0 : index
    %41 = vector.load %arg5[%c0_41, %c0_42] : memref<25x50xf32, #tpu.memory_space<vmem>>, vector<25x50xf32>
    %cst_43 = arith.constant dense<0.000000e+00> : vector<25x192xf32>
    %42 = tpu.matmul %41, %38, %cst_43 {dimension_numbers = #tpu.dot_dimension_numbers<[1], [0], [0], [1], [0, 0, 1, 1], [], []>} : vector<25x50xf32>, vector<50x192xf32>, vector<25x192xf32> -> vector<25x192xf32>
    %43 = arith.maximumf %40, %42 : vector<25x192xf32>
    %c0_44 = arith.constant 0 : index
    %c0_45 = arith.constant 0 : index
    %c0_46 = arith.constant 0 : index
    %44 = vector.load %arg8[%c0_44, %c0_45, %c0_46] : memref<1x25x192xf32, #tpu.memory_space<vmem>>, vector<1x25x192xf32>
    %45 = vector.shape_cast %44 : vector<1x25x192xf32> to vector<25x192xf32>
    %46 = vector.shape_cast %43 : vector<25x192xf32> to vector<1x25x192xf32>
    tpu.vector_store %arg8[%c0_44, %c0_45, %c0_46], %46 {strides = array<i32>} : memref<1x25x192xf32, #tpu.memory_space<vmem>>, vector<1x25x192xf32>,
    return
  }
  func.func @transform_0(%arg0: i32) -> (i32, i32, i32) {
    %c0_i32 = arith.constant 0 : i32
    %c0_i32_0 = arith.constant 0 : i32
    %c0_i32_1 = arith.constant 0 : i32
    return %arg0, %c0_i32, %c0_i32_0 : i32, i32, i32
  }
  func.func @transform_1(%arg0: i32) -> (i32, i32, i32) {
    %c0_i32 = arith.constant 0 : i32
    %c0_i32_0 = arith.constant 0 : i32
    %c0_i32_1 = arith.constant 0 : i32
    %c0_i32_2 = arith.constant 0 : i32
    return %c0_i32, %c0_i32_0, %c0_i32_1 : i32, i32, i32
  }
  func.func @transform_2(%arg0: i32) -> (i32, i32) {
    %c0_i32 = arith.constant 0 : i32
    %c0_i32_0 = arith.constant 0 : i32
    %c0_i32_1 = arith.constant 0 : i32
    return %c0_i32, %c0_i32_0 : i32, i32
  }
  func.func @transform_3(%arg0: i32) -> (i32, i32) {
    %c0_i32 = arith.constant 0 : i32
    %c0_i32_0 = arith.constant 0 : i32
    %c0_i32_1 = arith.constant 0 : i32
    return %c0_i32, %c0_i32_0 : i32, i32
  }
  func.func @transform_4(%arg0: i32) -> (i32, i32) {
    %c0_i32 = arith.constant 0 : i32
    %c0_i32_0 = arith.constant 0 : i32
    %c0_i32_1 = arith.constant 0 : i32
    return %c0_i32, %c0_i32_0 : i32, i32
  }
  func.func @transform_5(%arg0: i32) -> (i32, i32) {
    %c0_i32 = arith.constant 0 : i32
    %c0_i32_0 = arith.constant 0 : i32
    %c0_i32_1 = arith.constant 0 : i32
    return %c0_i32, %c0_i32_0 : i32, i32
  }
  func.func @transform_6(%arg0: i32) -> (i32, i32) {
    %c0_i32 = arith.constant 0 : i32
    %c0_i32_0 = arith.constant 0 : i32
    %c0_i32_1 = arith.constant 0 : i32
    return %c0_i32, %c0_i32_0 : i32, i32
  }
  func.func @transform_7(%arg0: i32) -> (i32, i32, i32) {
    %c0_i32 = arith.constant 0 : i32
    %c0_i32_0 = arith.constant 0 : i32
    %c0_i32_1 = arith.constant 0 : i32
    return %arg0, %c0_i32, %c0_i32_0 : i32, i32, i32
  }
}

</mosaic_0001>

<bundles_post_ra>
// kernel: eye_tracking_forward.3
= control target key start
LH: loop header
LB: loop body
LE: loop exit
PB: predicated region body
PF: predicated region fallthrough
CT: control target
= control target key end

     0   :  { %12 = vsyncpa [#allocation3], 0  ;;  %s6231_s0 = inlined_call_operand.vmem [shape: f32[2,104,52], index: 0, kind: input, shape index: {}]   ;;  %s6232_s1 = inlined_call_operand.hbm [shape: f32[5,52,384], index: 1, kind: input, shape index: {}]   ;;  %s6233_s2 = inlined_call_operand.hbm [shape: f32[1,384], index: 2, kind: input, shape index: {}]   ;;  %s6234_s3 = inlined_call_operand.hbm [shape: f32[54,100], index: 3, kind: input, shape index: {}]   ;;  %s6235_s4 = inlined_call_operand.hbm [shape: f32[54,100], index: 4, kind: input, shape index: {}]   ;;  %s6236_s5 = inlined_call_operand.vmem [shape: f32[384,224], index: 5, kind: input, shape index: {}]   ;;  %s6237_s6 = inlined_call_operand.vmem [shape: f32[384,224], index: 6, kind: input, shape index: {}]   ;;  %s6238_s7 = inlined_call_operand.vmem [shape: f32[2,54,224], index: 7, kind: output, shape index: {}]  }
   0x1   :  { %13 = vsyncpa [#allocation5], 0 }
   0x2   :  { %14 = vsyncpa [#allocation8], 0  ;;  %s4809_s24 = smov 0  }
   0x3 LB: > { %s4758_s25 = smov [#allocation4]   ;;  %s4815_s27 = sadd.s32 4294967295, %s4756_s24   ;;  %s4756_s24 = sphi %s4809_s24, %s20_s24  }
   0x4   : > { %s229_s26 = sshll.u32 %s4758_s25, 4  ;;  %p3524_p0 = scmp.ge.s32.totalorder %s4756_s24, 1  ;;  %s230_s26 = int_to_ptr.vmem [resolvable:$true] %s229_s26 }
   0x5   : > { %p203_p1 = scmp.lt.s32.totalorder %s4756_s24, 3  ;;  %p6239_p2 = scmp.eq.s32.totalorder %s4815_s27, 0 }
   0x6   : > { %s4759_s29 = smov [#allocation2]   ;;  %s4760_s9 = smov [#allocation6]  }
   0x7   : > { %p4820_p3 = pnand %p3524_p0, %p203_p1  ;;  %s215_s30 = sshll.u32 %s4759_s29, 4  ;;  %s4826_s30 = int_to_ptr.vmem [resolvable:$true] %s215_s30 }
   0x8   : > { %s239_s10 = sshll.u32 %s4760_s9, 4  ;;  %s4626_s13 = scalar_lea.hbm %s6233_s2, 48  ;;  %s4834_s10 = int_to_ptr.vmem [resolvable:$true] %s239_s10 }
   0x9   : > { %s6241_s28 = scalar_select %p4820_p3, 1, 0 }
   0xa   : > { %p4586_p4 = pneg %p4820_p3  ;;  %p4627_p6 = scmp.ne.s32.totalorder %s6233_s2, %s4626_s13 }
   0xb   : > { %p4633_p10 = scmp.lt.u32.totalorder %s4626_s13, %s6233_s2 }
   0xc   : > { %p4830_p5 = pnand %p6239_p2, %p4586_p4 }
   0xe   : > { %p4844_p7 = pneg %p4830_p5 }
  0x10   : > { %p4629_p8 = pnand %p4844_p7, %p4627_p6 }
  0x12   : > { %p4630_p9 = pneg %p4629_p8 }
  0x14   : > { %p4635_p11 = pnand %p4633_p10, %p4630_p9 }
  0x16   : > { %4638 = shalt.err (!%p4635_p11)
}
  0x17   : > { %s4639_s19 = scalar_lea.vmem %s230_s26, 48  ;;  %s4646_s20 = scalar_lea.vmem %s230_s26, 64 }
  0x18   : > { %p4640_p12 = scmp.ne.s32.totalorder %s230_s26, %s4639_s19  ;;  %p4647_p1 = scmp.lt.s32.totalorder %s230_s26, %s230_s26 }
  0x19   : > { %p4648_p4 = scmp.lt.s32.totalorder %s4646_s20, %s4639_s19 }
  0x1a   : > { %p4642_p13 = pnand %p4640_p12, %p4844_p7 }
  0x1b   : > { %p4649_p2 = por %p4648_p4, %p4647_p1 }
  0x1c   : > { %p4643_p0 = pneg %p4642_p13 }
  0x1e   : > { %p4650_p3 = pnand %p4649_p2, %p4643_p0 }
  0x20   : > { %4653 = shalt.err (!%p4650_p3)
}
  0x21   : > { %4592 = dma.hbm_to_vmem [thread:$0]  (!%p4830_p5), %s6233_s2, 48, %s230_s26, [#allocation5]  }
  0x22   : > { %s4654_s29 = scalar_lea.hbm %s6232_s1, 13440 }
  0x23   : > { %p4655_p6 = scmp.ne.s32.totalorder %s6232_s1, %s4654_s29  ;;  %p4661_p2 = scmp.lt.u32.totalorder %s4654_s29, %s6232_s1 }
  0x25   : > { %p4657_p8 = pnand %p4655_p6, %p4844_p7 }
  0x27   : > { %p4658_p9 = pneg %p4657_p8 }
  0x29   : > { %p4663_p3 = pnand %p4661_p2, %p4658_p9 }
  0x2b   : > { %4666 = shalt.err (!%p4663_p3)
}
  0x2c   : > { %s4667_s26 = scalar_lea.vmem %s4826_s30, 13440  ;;  %p4675_p13 = scmp.lt.s32.totalorder %s4826_s30, %s4826_s30 }
  0x2d   : > { %p4668_p10 = scmp.ne.s32.totalorder %s4826_s30, %s4667_s26  ;;  %p4676_p0 = scmp.lt.s32.totalorder %s4667_s26, %s4667_s26 }
  0x2f   : > { %p4670_p11 = pnand %p4668_p10, %p4844_p7  ;;  %p4677_p1 = por %p4676_p0, %p4675_p13 }
  0x31   : > { %p4671_p12 = pneg %p4670_p11 }
  0x33   : > { %p4678_p4 = pnand %p4677_p1, %p4671_p12 }
  0x35   : > { %4681 = shalt.err (!%p4678_p4)
}
  0x36   : > { %s4761_s14 = smov 384   ;;  %s4762_s15 = smov 24  }
  0x37   : > { %4589 = dma.hbm_to_vmem [thread:$0]  (!%p4830_p5), %s6232_s1, 13440, %s4826_s30, [#allocation3], %s4761_s14, %s4761_s14, %s4762_s15  }
  0x38   : > { %s4682_s21 = scalar_lea.hbm %s6234_s3, 896 }
  0x39   : > { %p4683_p6 = scmp.ne.s32.totalorder %s6234_s3, %s4682_s21  ;;  %p4689_p2 = scmp.lt.u32.totalorder %s4682_s21, %s6234_s3 }
  0x3b   : > { %p4685_p8 = pnand %p4683_p6, %p4844_p7 }
  0x3d   : > { %p4686_p9 = pneg %p4685_p8 }
  0x3f   : > { %p4691_p3 = pnand %p4689_p2, %p4686_p9 }
  0x41   : > { %4694 = shalt.err (!%p4691_p3)
}
  0x42   : > { %s4695_s30 = scalar_lea.vmem %s4834_s10, 896  ;;  %p4703_p13 = scmp.lt.s32.totalorder %s4834_s10, %s4834_s10 }
  0x43   : > { %p4696_p10 = scmp.ne.s32.totalorder %s4834_s10, %s4695_s30  ;;  %p4704_p0 = scmp.lt.s32.totalorder %s4695_s30, %s4695_s30 }
  0x45   : > { %p4698_p11 = pnand %p4696_p10, %p4844_p7  ;;  %p4705_p1 = por %p4704_p0, %p4703_p13 }
  0x47   : > { %p4699_p12 = pneg %p4698_p11 }
  0x49   : > { %p4706_p4 = pnand %p4705_p1, %p4699_p12 }
  0x4b   : > { %4709 = shalt.err (!%p4706_p4)
}
  0x4c   : > { %s4763_s9 = smov 128   ;;  %s4764_s11 = smov 8  }
  0x4d   : > { %4595 = dma.hbm_to_vmem [thread:$0]  (!%p4830_p5), %s6234_s3, 896, %s4834_s10, [#allocation5], %s4763_s9, %s4763_s9, %s4764_s11  }
  0x4e   : > { %s4765_s26 = smov [#allocation7]   ;;  %s4710_s18 = scalar_lea.hbm %s6235_s4, 896 }
  0x4f   : > { %s252_s14 = sshll.u32 %s4765_s26, 4  ;;  %p4711_p6 = scmp.ne.s32.totalorder %s6235_s4, %s4710_s18  ;;  %s253_s14 = int_to_ptr.vmem [resolvable:$true] %s252_s14 }
  0x50   : > { %p4717_p2 = scmp.lt.u32.totalorder %s4710_s18, %s6235_s4 }
  0x51   : > { %p4713_p8 = pnand %p4711_p6, %p4844_p7 }
  0x53   : > { %p4714_p9 = pneg %p4713_p8 }
  0x55   : > { %p4719_p3 = pnand %p4717_p2, %p4714_p9 }
  0x57   : > { %4722 = shalt.err (!%p4719_p3)
}
  0x58   : > { %s4723_s10 = scalar_lea.vmem %s253_s14, 896  ;;  %p4731_p13 = scmp.lt.s32.totalorder %s253_s14, %s253_s14 }
  0x59   : > { %p4724_p10 = scmp.ne.s32.totalorder %s253_s14, %s4723_s10  ;;  %p4732_p0 = scmp.lt.s32.totalorder %s4723_s10, %s4723_s10 }
  0x5b   : > { %p4726_p11 = pnand %p4724_p10, %p4844_p7  ;;  %p4733_p1 = por %p4732_p0, %p4731_p13 }
  0x5d   : > { %p4727_p12 = pneg %p4726_p11 }
  0x5f   : > { %p4734_p4 = pnand %p4733_p1, %p4727_p12 }
  0x61   : > { %4737 = shalt.err (!%p4734_p4)
}
  0x62   : > { %4598 = dma.hbm_to_vmem [thread:$0]  (!%p4830_p5), %s6235_s4, 896, %s253_s14, [#allocation8], %s4763_s9, %s4763_s9, %s4764_s11  }
  0x63   : > { %p6244_p6 = scmp.ne.s32.totalorder %s6241_s28, 0 }
  0x64   : > { %p6245_p8 = scmp.eq.s32.totalorder (!%p6244_p6), %s4815_s27, 0 }
  0x65   : > { %282 = sbr.rel (%p6244_p6) target bundleno = 1119 (0x45f), region = 48 }
  0x6c   : > { %4743 = dma.done.wait (%p6245_p8), [#allocation3], 13440   ;;  %p6246_p7 = pmov %p6245_p8 }
  0x6e   : > { %4745 = vsyncadd (%p6246_p7), [#allocation3], 4294953856  ;;  %p6247_p9 = pmov %p6246_p7 }
  0x6f   : > { %p6248_p2 = pmov %p6246_p7 }
  0x70   : > { %4747 = dma.done.wait (%p6247_p9), [#allocation5], 944  }
  0x71   : > { %4749 = vsyncadd (%p6248_p2), [#allocation5], 4294966352  ;;  %p6249_p3 = pmov %p6248_p2 }
  0x72   : > { %p6250_p5 = pmov %p6248_p2 }
  0x73   : > { %4751 = dma.done.wait (%p6249_p3), [#allocation8], 896  }
  0x74   : > { %4753 = vsyncadd (%p6250_p5), [#allocation8], 4294966400  ;;  %v4766_v0 = vmov 0.0|0.0   ;;  %vm4767_vm0 = vmmov 0   ;;  %v4768_v1 = vmov 0.0   ;;  %p326_p10 = scmp.lt.s32.totalorder %s4815_s27, 1 }
  0x75   : > { %4079 = vmatprep.subr.bf16.mxu1 %v4766_v0  ;;  %3816 = vmatprep.mubr.msk.f32.mxu1 %vm4767_vm0, %v4768_v1  ;;  %v385_v2 = vld [vmem:[#allocation2 + $0xb0] sm:$0xff]  ;;  %v388_v3 = vld [vmem:[#allocation2 + $0xc8] sm:$0xff]  ;;  %v386_v4 = vld [vmem:[#allocation2 + $0xb8] sm:$0xff]  ;;  %vm445_vm1 = vcmask 1043456   ;;  %vm405_vm2 = vcmask 424960   ;;  %vm3126_vm3 = vcmask 818176  }
  0x76   : > { %519 = vmatprep.mubr.f32.mxu0 %v4768_v1  ;;  %v4067_v5 = vpack.c.bf16 %v388_v3, %v385_v2  ;;  %v389_v6 = vld [vmem:[#allocation2 + $0xd0] sm:$0xff]  ;;  %v384_v7 = vld [vmem:[#allocation2 + $0xa8] sm:$0xff]  ;;  %v387_v8 = vld [vmem:[#allocation2 + $0xc0] sm:$0xff]  ;;  %s6252_s27 = smov (!%p326_p10, %s4815_s27), 1  ;;  %vm3411_vm4 = vcmask 785408   ;;  %vm3424_vm5 = vcmask 783360  }
  0x77   : > { %v4080_v9 = vpack.c.bf16 %v389_v6, %v386_v4  ;;  %v4069_v10 = vpack.c.bf16 %v387_v8, %v384_v7  ;;  %v391_v11 = vld [vmem:[#allocation2 + $0xe0] sm:$0xff]  ;;  %v394_v12 = vld [vmem:[#allocation2 + $0xf8] sm:$0xff]  ;;  %v392_v13 = vld [vmem:[#allocation2 + $0xe8] sm:$0xff]  ;;  %s4568_s28 = smul.u32 104, %s6252_s27 }
  0x78   : > { %4068 = vmatprep.subr.bf16.mxu0 %v4067_v5  ;;  %v4071_v14 = vpack.c.bf16 %v394_v12, %v391_v11  ;;  %v395_v15 = vld [vmem:[#allocation2 + $0x100] sm:$0xff]  ;;  %v390_v16 = vld [vmem:[#allocation2 + $0xd8] sm:$0xff]  ;;  %v393_v17 = vld [vmem:[#allocation2 + $0xf0] sm:$0xff]  ;;  %s4569_s18 = smul.u32 112, %s6252_s27 }
  0x79   : > { %4081 = vmatpush3.bf16.msra.mxu1 %v4080_v9  ;;  %4070 = vmatpush1.bf16.msra.mxu0 %v4069_v10  ;;  %v4083_v18 = vpack.c.bf16 %v395_v15, %v392_v13  ;;  %v4073_v19 = vpack.c.bf16 %v393_v17, %v390_v16  ;;  %v397_v20 = vld [vmem:[#allocation2 + $0x110] sm:$0xff]  ;;  %v400_v21 = vld [vmem:[#allocation2 + $0x128] sm:$0xff]  ;;  %v398_v22 = vld [vmem:[#allocation2 + $0x118] sm:$0xff]  ;;  %s4954_s29 = scalar_lea.vmem %s6231_s0, %s4568_s28 }
  0x7a   : > { %4082 = vmatprep.subr.bf16.mxu1 %v4766_v0  ;;  %4072 = vmatprep.subr.bf16.mxu0 %v4071_v14  ;;  %v4075_v23 = vpack.c.bf16 %v400_v21, %v397_v20  ;;  %v401_v24 = vld [vmem:[#allocation2 + $0x130] sm:$0xff]  ;;  %v396_v25 = vld [vmem:[#allocation2 + $0x108] sm:$0xff]  ;;  %v399_v26 = vld [vmem:[#allocation2 + $0x120] sm:$0xff]  ;;  %s6206_s21 = scalar_lea.vmem %s6238_s7, %s4569_s18 }
  0x7b   : > { %v4086_v27 = vpack.c.bf16 %v401_v24, %v398_v22  ;;  %v4077_v28 = vpack.c.bf16 %v399_v26, %v396_v25  ;;  %v403_v29 = vld [vmem:[#allocation2 + $0x140] sm:$0xf]  ;;  %v404_v30 = vld [vmem:[#allocation2 + $0x148] sm:$0xf]  ;;  %v402_v33 = vld [vmem:[#allocation2 + $0x138] sm:$0xf] }
  0x7c   : > { %v350_v31 = vld [vmem:[#allocation2 + $0x8] sm:$0xff]  ;;  %v353_v32 = vld [vmem:[#allocation2 + $0x20] sm:$0xff]  ;;  %v352_v35 = vld [vmem:[#allocation2 + $0x18] sm:$0xff] }
  0x7d   : > { %4084 = vmatpush3.bf16.msra.mxu1 %v4083_v18  ;;  %4074 = vmatpush1.bf16.msra.mxu0 %v4073_v19  ;;  %v349_v34 = vld [vmem:[#allocation2] sm:$0xff]  ;;  %v351_v37 = vld [vmem:[#allocation2 + $0x10] sm:$0xff]  ;;  %v354_v38 = vld [vmem:[#allocation2 + $0x28] sm:$0xff]  ;;  %v4088_v39 = vpack.c.bf16 %v353_v32, %v350_v31 }
  0x7e   : > { %4085 = vmatprep.subr.bf16.mxu1 %v4766_v0  ;;  %4076 = vmatprep.subr.bf16.mxu0 %v4075_v23  ;;  %v370_v36 = vld [vmem:[%s4954_s29 + $0x1] sm:$0xff]  ;;  %v4090_v40 = vpack.c.bf16 %v352_v35, %v349_v34  ;;  %v356_v41 = vld [vmem:[#allocation2 + $0x38] sm:$0xff]  ;;  %v359_v42 = vld [vmem:[#allocation2 + $0x50] sm:$0xff]  ;;  %v4101_v44 = vpack.c.bf16 %v354_v38, %v351_v37 }
  0x7f   : > { %v355_v43 = vld [vmem:[#allocation2 + $0x30] sm:$0xff]  ;;  %v358_v45 = vld [vmem:[#allocation2 + $0x48] sm:$0xff]  ;;  %v357_v46 = vld [vmem:[#allocation2 + $0x40] sm:$0xff]  ;;  %v4092_v49 = vpack.c.bf16 %v359_v42, %v356_v41 }
  0x80   : > { %v360_v47 = vld [vmem:[#allocation2 + $0x58] sm:$0xff]  ;;  %v371_v48 = vld [vmem:[%s4954_s29 + $0x9] sm:$0xff]  ;;  %v4094_v50 = vpack.c.bf16 %v358_v45, %v355_v43  ;;  %v365_v52 = vld [vmem:[#allocation2 + $0x80] sm:$0xff] }
  0x81   : > { %4087 = vmatpush3.bf16.msra.mxu1 %v4086_v27  ;;  %4078 = vmatpush1.bf16.msra.mxu0 %v4077_v28  ;;  %v362_v51 = vld [vmem:[#allocation2 + $0x68] sm:$0xff]  ;;  %v361_v53 = vld [vmem:[#allocation2 + $0x60] sm:$0xff]  ;;  %v4104_v54 = vpack.c.bf16 %v360_v47, %v357_v46  ;;  %v364_v55 = vld [vmem:[#allocation2 + $0x78] sm:$0xff] }
  0x82   : > { %3814 = vmatprep.subr.mxu1 %v4768_v1  ;;  %3537 = vmatprep.subr.msk.mxu0 %vm445_vm1, %v403_v29  ;;  %v363_v56 = vld [vmem:[#allocation2 + $0x70] sm:$0xff]  ;;  %v366_v57 = vld [vmem:[#allocation2 + $0x88] sm:$0xff]  ;;  %v4096_v59 = vpack.c.bf16 %v365_v52, %v362_v51  ;;  %v4098_v60 = vpack.c.bf16 %v364_v55, %v361_v53  ;;  %v373_v62 = vld [vmem:[%s4954_s29 + $0x19] sm:$0xff] }
  0x83   : > { %v372_v58 = vld [vmem:[%s4954_s29 + $0x11] sm:$0xff]  ;;  %v4107_v61 = vpack.c.bf16 %v366_v57, %v363_v56  ;;  %v369_v5 = vld [vmem:[#allocation2 + $0xa0] sm:$0xf]  ;;  %v375_v8 = vld [vmem:[%s4954_s29 + $0x29] sm:$0xff] }
  0x84   : > { %v368_v63 = vld [vmem:[#allocation2 + $0x98] sm:$0xf]  ;;  %v1067_v3 = vld [vmem:[#allocation2 + $0x170] sm:$0xff]  ;;  %v374_v6 = vld [vmem:[%s4954_s29 + $0x21] sm:$0xff] }
  0x85   : > { %3815 = vmatpush3.msk.msra.mxu1 %vm445_vm1, %v404_v30  ;;  %3538 = vmatpush1.msk.msra.mxu0 %vm445_vm1, %v402_v33  ;;  %v1064_v2 = vld [vmem:[#allocation2 + $0x158] sm:$0xff]  ;;  %v367_v4 = vld [vmem:[#allocation2 + $0x90] sm:$0xf]  ;;  %v378_v11 = vld [vmem:[%s4954_s29 + $0x41] sm:$0xff] }
  0x86   : > { %3817 = vmatmul.mubr.msk.f32.vlgmr.msra.gmra.mrb[0].mxu1 %vm405_vm2, %v370_v36  ;;  %3539 = vmatmul.mubr.msk.f32.vlgmr.msra.gmra.mrb[0].mxu0 %vm405_vm2, %v370_v36  ;;  %v4109_v7 = vpack.c.bf16 %v1067_v3, %v1064_v2  ;;  %v376_v9 = vld [vmem:[%s4954_s29 + $0x31] sm:$0xff]  ;;  %v377_v10 = vld [vmem:[%s4954_s29 + $0x39] sm:$0xff]  ;;  %v379_v12 = vld [vmem:[%s4954_s29 + $0x49] sm:$0xff] }
  0x87   : > { %3819 = vmatprep.mubr.msk.f32.mxu1 %vm4767_vm0, %v4768_v1  ;;  %525 = vmatprep.mubr.f32.mxu0 %v4768_v1  ;;  %v380_v13 = vld [vmem:[%s4954_s29 + $0x51] sm:$0xff]  ;;  %v381_v14 = vld [vmem:[%s4954_s29 + $0x59] sm:$0xff]  ;;  %v382_v15 = vld [vmem:[%s4954_s29 + $0x61] sm:$0xf] }
  0x88   : > { %4089 = vmatprep.subr.bf16.mxu0 %v4088_v39  ;;  %4100 = vmatprep.subr.bf16.mxu1 %v4766_v0  ;;  %v1063_v16 = vld [vmem:[#allocation2 + $0x150] sm:$0xff]  ;;  %v1066_v17 = vld [vmem:[#allocation2 + $0x168] sm:$0xff]  ;;  %v1065_v18 = vld [vmem:[#allocation2 + $0x160] sm:$0xff] }
  0x89   : > { %4091 = vmatpush1.bf16.msra.mxu0 %v4090_v40  ;;  %4102 = vmatpush3.bf16.msra.mxu1 %v4101_v44  ;;  %v1068_v19 = vld [vmem:[#allocation2 + $0x178] sm:$0xff]  ;;  %v1070_v20 = vld [vmem:[#allocation2 + $0x188] sm:$0xff]  ;;  %v1073_v21 = vld [vmem:[#allocation2 + $0x1a0] sm:$0xff]  ;;  %v4111_v23 = vpack.c.bf16 %v1066_v17, %v1063_v16 }
  0x8a   : > { %3820 = vmatmul.mubr.msk.f32.gmra.mrb[2].mxu1 %vm405_vm2, %v371_v48  ;;  %3540 = vmatmul.mubr.msk.f32.gmra.mrb[2].mxu0 %vm405_vm2, %v371_v48  ;;  %v336_v22 = vld [vmem:[%s4954_s29] sm:$0xff]  ;;  %v4122_v25 = vpack.c.bf16 %v1068_v19, %v1065_v18  ;;  %v4113_v26 = vpack.c.bf16 %v1073_v21, %v1070_v20  ;;  %v1072_v27 = vld [vmem:[#allocation2 + $0x198] sm:$0xff]  ;;  %v1071_v28 = vld [vmem:[#allocation2 + $0x190] sm:$0xff] }
  0x8b   : > { %3822 = vmatprep.mubr.msk.f32.mxu1 %vm4767_vm0, %v4768_v1  ;;  %531 = vmatprep.mubr.f32.mxu0 %v4768_v1  ;;  %v1069_v24 = vld [vmem:[#allocation2 + $0x180] sm:$0xff]  ;;  %v1074_v29 = vld [vmem:[#allocation2 + $0x1a8] sm:$0xff]  ;;  %v1076_v30 = vld [vmem:[#allocation2 + $0x1b8] sm:$0xff] }
  0x8c   : > { %4093 = vmatprep.subr.bf16.mxu0 %v4092_v49  ;;  %4103 = vmatprep.subr.bf16.mxu1 %v4766_v0  ;;  %v1079_v31 = vld [vmem:[#allocation2 + $0x1d0] sm:$0xff]  ;;  %v337_v32 = vld [vmem:[%s4954_s29 + $0x8] sm:$0xff]  ;;  %v4115_v33 = vpack.c.bf16 %v1072_v27, %v1069_v24  ;;  %v4125_v35 = vpack.c.bf16 %v1074_v29, %v1071_v28  ;;  %v1077_v38 = vld [vmem:[#allocation2 + $0x1c0] sm:$0xff] }
  0x8d   : > { %4095 = vmatpush1.bf16.msra.mxu0 %v4094_v50  ;;  %4105 = vmatpush3.bf16.msra.mxu1 %v4104_v54  ;;  %v1075_v34 = vld [vmem:[#allocation2 + $0x1b0] sm:$0xff]  ;;  %v4117_v36 = vpack.c.bf16 %v1079_v31, %v1076_v30  ;;  %v1078_v37 = vld [vmem:[#allocation2 + $0x1c8] sm:$0xff]  ;;  %v1080_v39 = vld [vmem:[#allocation2 + $0x1d8] sm:$0xff] }
  0x8e   : > { %3823 = vmatmul.mubr.msk.f32.gmra.mrb[4].mxu1 %vm405_vm2, %v372_v58  ;;  %3541 = vmatmul.mubr.msk.f32.gmra.mrb[4].mxu0 %vm405_vm2, %v372_v58  ;;  %v338_v40 = vld [vmem:[%s4954_s29 + $0x10] sm:$0xff]  ;;  %v4119_v41 = vpack.c.bf16 %v1078_v37, %v1075_v34  ;;  %v4128_v42 = vpack.c.bf16 %v1080_v39, %v1077_v38  ;;  %v1082_v43 = vld [vmem:[#allocation2 + $0x1e8] sm:$0xf]  ;;  %v1459_v44 = vld [vmem:[#allocation2 + $0x200] sm:$0xff] }
  0x8f   : > { %3825 = vmatprep.mubr.msk.f32.mxu1 %vm4767_vm0, %v4768_v1  ;;  %537 = vmatprep.mubr.f32.mxu0 %v4768_v1  ;;  %v1462_v45 = vld [vmem:[#allocation2 + $0x218] sm:$0xff]  ;;  %v1081_v47 = vld [vmem:[#allocation2 + $0x1e0] sm:$0xf]  ;;  %v1083_v48 = vld [vmem:[#allocation2 + $0x1f0] sm:$0xf] }
  0x90   : > { %4097 = vmatprep.subr.bf16.mxu0 %v4096_v59  ;;  %4106 = vmatprep.subr.bf16.mxu1 %v4766_v0  ;;  %v339_v46 = vld [vmem:[%s4954_s29 + $0x18] sm:$0xff]  ;;  %v4130_v49 = vpack.c.bf16 %v1462_v45, %v1459_v44  ;;  %v340_v50 = vld [vmem:[%s4954_s29 + $0x20] sm:$0xff]  ;;  %v341_v51 = vld [vmem:[%s4954_s29 + $0x28] sm:$0xff] }
  0x91   : > { %4099 = vmatpush1.bf16.msra.mxu0 %v4098_v60  ;;  %4108 = vmatpush3.bf16.msra.mxu1 %v4107_v61  ;;  %v342_v52 = vld [vmem:[%s4954_s29 + $0x30] sm:$0xff]  ;;  %v343_v53 = vld [vmem:[%s4954_s29 + $0x38] sm:$0xff]  ;;  %v344_v54 = vld [vmem:[%s4954_s29 + $0x40] sm:$0xff] }
  0x92   : > { %3826 = vmatmul.mubr.msk.f32.gmra.mrb[6].mxu1 %vm405_vm2, %v373_v62  ;;  %3542 = vmatmul.mubr.msk.f32.gmra.mrb[6].mxu0 %vm405_vm2, %v373_v62  ;;  %v345_v55 = vld [vmem:[%s4954_s29 + $0x48] sm:$0xff]  ;;  %v346_v56 = vld [vmem:[%s4954_s29 + $0x50] sm:$0xff]  ;;  %v347_v57 = vld [vmem:[%s4954_s29 + $0x58] sm:$0xff] }
  0x93   : > { %3828 = vmatprep.mubr.msk.f32.mxu1 %vm4767_vm0, %v4768_v1  ;;  %543 = vmatprep.mubr.f32.mxu0 %v4768_v1  ;;  %v348_v58 = vld [vmem:[%s4954_s29 + $0x60] sm:$0xf]  ;;  %v1458_v59 = vld [vmem:[#allocation2 + $0x1f8] sm:$0xff]  ;;  %v1461_v60 = vld [vmem:[#allocation2 + $0x210] sm:$0xff] }
  0x94   : > { %3566 = vmatprep.subr.msk.mxu0 %vm445_vm1, %v368_v63  ;;  %3867 = vmatprep.subr.mxu1 %v4768_v1  ;;  %v1460_v61 = vld [vmem:[#allocation2 + $0x208] sm:$0xff]  ;;  %v1463_v62 = vld [vmem:[#allocation2 + $0x220] sm:$0xff]  ;;  %v1465_v63 = vld [vmem:[#allocation2 + $0x230] sm:$0xff] }
  0x95   : > { %3567 = vmatpush1.msk.msra.mxu0 %vm445_vm1, %v367_v4  ;;  %3868 = vmatpush3.msk.msra.mxu1 %vm445_vm1, %v369_v5  ;;  %v1468_v2 = vld [vmem:[#allocation2 + $0x248] sm:$0xff]  ;;  %v4132_v4 = vpack.c.bf16 %v1461_v60, %v1458_v59  ;;  %v1473_v18 = vld [vmem:[#allocation2 + $0x270] sm:$0xff]  ;;  %v1475_v20 = vld [vmem:[#allocation2 + $0x280] sm:$0xff] }
  0x96   : > { %3829 = vmatmul.mubr.msk.f32.gmra.mrb[8].mxu1 %vm405_vm2, %v374_v6  ;;  %3543 = vmatmul.mubr.msk.f32.gmra.mrb[8].mxu0 %vm405_vm2, %v374_v6  ;;  %v1049_v3 = vld [vmem:[%s4954_s29 + $0x2] sm:$0xff]  ;;  %v4143_v6 = vpack.c.bf16 %v1463_v62, %v1460_v61  ;;  %v1051_v21 = vld [vmem:[%s4954_s29 + $0x12] sm:$0xff]  ;;  %v1052_v27 = vld [vmem:[%s4954_s29 + $0x1a] sm:$0xff] }
  0x97   : > { %3831 = vmatprep.mubr.msk.f32.mxu1 %vm4767_vm0, %v4768_v1  ;;  %549 = vmatprep.mubr.f32.mxu0 %v4768_v1  ;;  %v1464_v5 = vld [vmem:[#allocation2 + $0x228] sm:$0xff]  ;;  %v1477_v24 = vld [vmem:[#allocation2 + $0x290] sm:$0xf]  ;;  %v1478_v29 = vld [vmem:[#allocation2 + $0x298] sm:$0xf] }
  0x98   : > { %4110 = vmatprep.subr.bf16.mxu0 %v4109_v7  ;;  %4121 = vmatprep.subr.bf16.mxu1 %v4766_v0  ;;  %v4134_v7 = vpack.c.bf16 %v1468_v2, %v1465_v63  ;;  %v1472_v19 = vld [vmem:[#allocation2 + $0x268] sm:$0xff]  ;;  %v1056_v34 = vld [vmem:[%s4954_s29 + $0x3a] sm:$0xff]  ;;  %v1059_v37 = vld [vmem:[%s4954_s29 + $0x52] sm:$0xff] }
  0x99   : > { %v1476_v28 = vld [vmem:[#allocation2 + $0x288] sm:$0xf]  ;;  %v1060_v38 = vld [vmem:[%s4954_s29 + $0x5a] sm:$0xff]  ;;  %v1061_v39 = vld [vmem:[%s4954_s29 + $0x62] sm:$0xf] }
  0x9a   : > { %3832 = vmatmul.mubr.msk.f32.gmra.mrb[10].mxu1 %vm405_vm2, %v375_v8  ;;  %3544 = vmatmul.mubr.msk.f32.gmra.mrb[10].mxu0 %vm405_vm2, %v375_v8  ;;  %v1467_v8 = vld [vmem:[#allocation2 + $0x240] sm:$0xff]  ;;  %v1860_v44 = vld [vmem:[#allocation2 + $0x2d8] sm:$0xff]  ;;  %v1863_v45 = vld [vmem:[#allocation2 + $0x2f0] sm:$0xff] }
  0x9b   : > { %3834 = vmatprep.mubr.msk.f32.mxu1 %vm4767_vm0, %v4768_v1  ;;  %555 = vmatprep.mubr.f32.mxu0 %v4768_v1  ;;  %v1053_v31 = vld [vmem:[%s4954_s29 + $0x22] sm:$0xff]  ;;  %v1868_v61 = vld [vmem:[#allocation2 + $0x318] sm:$0xff]  ;;  %v1867_v62 = vld [vmem:[#allocation2 + $0x310] sm:$0xff] }
  0x9c   : > { %v1870_v63 = vld [vmem:[#allocation2 + $0x328] sm:$0xff]  ;;  %v1446_v2 = vld [vmem:[%s4954_s29 + $0x13] sm:$0xff] }
  0x9e   : > { %3835 = vmatmul.mubr.msk.f32.gmra.mrb[12].mxu1 %vm405_vm2, %v376_v9  ;;  %3545 = vmatmul.mubr.msk.f32.gmra.mrb[12].mxu0 %vm405_vm2, %v376_v9  ;;  %v1466_v9 = vld [vmem:[#allocation2 + $0x238] sm:$0xff] }
  0x9f   : > { %3837 = vmatprep.mubr.msk.f32.mxu1 %vm4767_vm0, %v4768_v1  ;;  %561 = vmatprep.mubr.f32.mxu0 %v4768_v1 }
  0xa2   : > { %3838 = vmatmul.mubr.msk.f32.gmra.mrb[14].mxu1 %vm405_vm2, %v377_v10  ;;  %3546 = vmatmul.mubr.msk.f32.gmra.mrb[14].mxu0 %vm405_vm2, %v377_v10  ;;  %v1469_v10 = vld [vmem:[#allocation2 + $0x250] sm:$0xff] }
  0xa3   : > { %3840 = vmatprep.mubr.msk.f32.mxu1 %vm4767_vm0, %v4768_v1  ;;  %567 = vmatprep.mubr.f32.mxu0 %v4768_v1  ;;  %v4146_v16 = vpack.c.bf16 %v1469_v10, %v1466_v9  ;;  %v1449_v9 = vld [vmem:[%s4954_s29 + $0x2b] sm:$0xff]  ;;  %v1450_v10 = vld [vmem:[%s4954_s29 + $0x33] sm:$0xff] }
  0xa6   : > { %3841 = vmatmul.mubr.msk.f32.gmra.mrb[16].mxu1 %vm405_vm2, %v378_v11  ;;  %3547 = vmatmul.mubr.msk.f32.gmra.mrb[16].mxu0 %vm405_vm2, %v378_v11  ;;  %v1471_v11 = vld [vmem:[#allocation2 + $0x260] sm:$0xff] }
  0xa7   : > { %3843 = vmatprep.mubr.msk.f32.mxu1 %vm4767_vm0, %v4768_v1  ;;  %573 = vmatprep.mubr.f32.mxu0 %v4768_v1 }
  0xaa   : > { %3844 = vmatmul.mubr.msk.f32.gmra.mrb[18].mxu1 %vm405_vm2, %v379_v12  ;;  %3548 = vmatmul.mubr.msk.f32.gmra.mrb[18].mxu0 %vm405_vm2, %v379_v12  ;;  %v1474_v12 = vld [vmem:[#allocation2 + $0x278] sm:$0xff] }
  0xab   : > { %3846 = vmatprep.mubr.msk.f32.mxu1 %vm4767_vm0, %v4768_v1  ;;  %579 = vmatprep.mubr.f32.mxu0 %v4768_v1  ;;  %v4138_v17 = vpack.c.bf16 %v1474_v12, %v1471_v11  ;;  %v1451_v11 = vld [vmem:[%s4954_s29 + $0x3b] sm:$0xff]  ;;  %v1452_v12 = vld [vmem:[%s4954_s29 + $0x43] sm:$0xff] }
  0xae   : > { %3847 = vmatmul.mubr.msk.f32.gmra.mrb[20].mxu1 %vm405_vm2, %v380_v13  ;;  %3549 = vmatmul.mubr.msk.f32.gmra.mrb[20].mxu0 %vm405_vm2, %v380_v13  ;;  %v1050_v13 = vld [vmem:[%s4954_s29 + $0xa] sm:$0xff] }
  0xaf   : > { %3849 = vmatprep.mubr.msk.f32.mxu1 %vm4767_vm0, %v4768_v1  ;;  %585 = vmatprep.mubr.f32.mxu0 %v4768_v1 }
  0xb2   : > { %3850 = vmatmul.mubr.msk.f32.gmra.mrb[22].mxu1 %vm405_vm2, %v381_v14  ;;  %3550 = vmatmul.mubr.msk.f32.gmra.mrb[22].mxu0 %vm405_vm2, %v381_v14  ;;  %v4136_v14 = vpack.c.bf16 %v1467_v8, %v1464_v5  ;;  %v1872_v5 = vld [vmem:[#allocation2 + $0x338] sm:$0xf]  ;;  %v1448_v8 = vld [vmem:[%s4954_s29 + $0x23] sm:$0xff] }
  0xb3   : > { %3852 = vmatprep.mubr.msk.f32.mxu1 %vm4767_vm0, %v4768_v1  ;;  %591 = vmatprep.mubr.f32.mxu0 %v4768_v1 }
  0xb6   : > { %3853 = vmatmul.mubr.msk.f32.gmra.mrb[24].mxu1 %vm405_vm2, %v382_v15  ;;  %3551 = vmatmul.mubr.msk.f32.gmra.mrb[24].mxu0 %vm405_vm2, %v382_v15  ;;  %v1470_v15 = vld [vmem:[#allocation2 + $0x258] sm:$0xff] }
  0xb7   : > { %3869 = vmatprep.mubr.msk.f32.mxu1 %vm4767_vm0, %v4768_v1  ;;  %840 = vmatprep.mubr.f32.mxu0 %v4768_v1 }
  0xba   : > { %3870 = vmatmul.mubr.msk.f32.vlgmr.msra.gmra.mrb[26].mxu1 %vm405_vm2, %v336_v22  ;;  %3568 = vmatmul.mubr.msk.f32.vlgmr.msra.gmra.mrb[0].mxu0 %vm405_vm2, %v336_v22  ;;  %v4140_v22 = vpack.c.bf16 %v1473_v18, %v1470_v15  ;;  %v1455_v15 = vld [vmem:[%s4954_s29 + $0x5b] sm:$0xff]  ;;  %v1840_v18 = vld [vmem:[%s4954_s29 + $0xc] sm:$0xff] }
  0xbb   : > { %3872 = vmatprep.mubr.msk.f32.mxu1 %vm4767_vm0, %v4768_v1  ;;  %846 = vmatprep.mubr.f32.mxu0 %v4768_v1 }
  0xbc   : > { %4112 = vmatpush1.bf16.msra.mxu0 %v4111_v23  ;;  %4123 = vmatpush3.bf16.msra.mxu1 %v4122_v25  ;;  %v4149_v23 = vpack.c.bf16 %v1475_v20, %v1472_v19  ;;  %v1854_v25 = vld [vmem:[#allocation2 + $0x2a8] sm:$0xff] }
  0xbd   : > { %4114 = vmatprep.subr.bf16.mxu0 %v4113_v26  ;;  %4124 = vmatprep.subr.bf16.mxu1 %v4766_v0  ;;  %v1857_v26 = vld [vmem:[#allocation2 + $0x2c0] sm:$0xff] }
  0xbe   : > { %3873 = vmatmul.mubr.msk.f32.gmra.mrb[28].mxu1 %vm405_vm2, %v337_v32  ;;  %3569 = vmatmul.mubr.msk.f32.gmra.mrb[2].mxu0 %vm405_vm2, %v337_v32  ;;  %v4151_v30 = vpack.c.bf16 %v1857_v26, %v1854_v25  ;;  %v1054_v32 = vld [vmem:[%s4954_s29 + $0x2a] sm:$0xff] }
  0xbf   : > { %3875 = vmatprep.mubr.msk.f32.mxu1 %vm4767_vm0, %v4768_v1  ;;  %852 = vmatprep.mubr.f32.mxu0 %v4768_v1 }
  0xc0   : > { %4116 = vmatpush1.bf16.msra.mxu0 %v4115_v33  ;;  %4126 = vmatpush3.bf16.msra.mxu1 %v4125_v35  ;;  %v1055_v33 = vld [vmem:[%s4954_s29 + $0x32] sm:$0xff]  ;;  %v1057_v35 = vld [vmem:[%s4954_s29 + $0x42] sm:$0xff] }
  0xc1   : > { %4118 = vmatprep.subr.bf16.mxu0 %v4117_v36  ;;  %4127 = vmatprep.subr.bf16.mxu1 %v4766_v0  ;;  %v1058_v36 = vld [vmem:[%s4954_s29 + $0x4a] sm:$0xff] }
  0xc2   : > { %3876 = vmatmul.mubr.msk.f32.gmra.mrb[30].mxu1 %vm405_vm2, %v338_v40  ;;  %3570 = vmatmul.mubr.msk.f32.gmra.mrb[4].mxu0 %vm405_vm2, %v338_v40  ;;  %v1853_v40 = vld [vmem:[#allocation2 + $0x2a0] sm:$0xff] }
  0xc3   : > { %3878 = vmatprep.mubr.msk.f32.mxu1 %vm4767_vm0, %v4768_v1  ;;  %858 = vmatprep.mubr.f32.mxu0 %v4768_v1 }
  0xc4   : > { %4120 = vmatpush1.bf16.msra.mxu0 %v4119_v41  ;;  %4129 = vmatpush3.bf16.msra.mxu1 %v4128_v42  ;;  %v1856_v41 = vld [vmem:[#allocation2 + $0x2b8] sm:$0xff]  ;;  %v1855_v42 = vld [vmem:[#allocation2 + $0x2b0] sm:$0xff] }
  0xc5   : > { %3595 = vmatprep.subr.msk.mxu0 %vm445_vm1, %v1082_v43  ;;  %3920 = vmatprep.subr.mxu1 %v4768_v1  ;;  %v1858_v43 = vld [vmem:[#allocation2 + $0x2c8] sm:$0xff] }
  0xc6   : > { %3879 = vmatmul.mubr.msk.f32.gmra.mrb[32].mxu1 %vm405_vm2, %v339_v46  ;;  %3571 = vmatmul.mubr.msk.f32.gmra.mrb[6].mxu0 %vm405_vm2, %v339_v46  ;;  %v1444_v46 = vld [vmem:[%s4954_s29 + $0x3] sm:$0xff] }
  0xc7   : > { %3881 = vmatprep.mubr.msk.f32.mxu1 %vm4767_vm0, %v4768_v1  ;;  %864 = vmatprep.mubr.f32.mxu0 %v4768_v1 }
  0xc8   : > { %3596 = vmatpush1.msk.msra.mxu0 %vm445_vm1, %v1081_v47  ;;  %3921 = vmatpush3.msk.msra.mxu1 %vm445_vm1, %v1083_v48  ;;  %v4153_v47 = vpack.c.bf16 %v1856_v41, %v1853_v40  ;;  %v1859_v48 = vld [vmem:[#allocation2 + $0x2d0] sm:$0xff]  ;;  %v2714_v41 = vld [vmem:[%s6237_s6 + $0x18] sm:$0xff] }
  0xc9   : > { %4131 = vmatprep.subr.bf16.mxu0 %v4130_v49  ;;  %4142 = vmatprep.subr.bf16.mxu1 %v4766_v0  ;;  %v4164_v49 = vpack.c.bf16 %v1858_v43, %v1855_v42  ;;  %v2329_v42 = vld [vmem:[%s6236_s5] sm:$0xff]  ;;  %v2331_v43 = vld [vmem:[%s6236_s5 + $0x10] sm:$0xff] }
  0xca   : > { %3882 = vmatmul.mubr.msk.f32.gmra.mrb[34].mxu1 %vm405_vm2, %v340_v50  ;;  %3572 = vmatmul.mubr.msk.f32.gmra.mrb[8].mxu0 %vm405_vm2, %v340_v50  ;;  %v4155_v50 = vpack.c.bf16 %v1863_v45, %v1860_v44  ;;  %v4174_v45 = vpack.c.bf16 %v2331_v43, %v2329_v42  ;;  %v2728_v42 = vld [vmem:[%s6237_s6 + $0x88] sm:$0xff] }
  0xcb   : > { %3884 = vmatprep.mubr.msk.f32.mxu1 %vm4767_vm0, %v4768_v1  ;;  %870 = vmatprep.mubr.f32.mxu0 %v4768_v1 }
  0xce   : > { %3885 = vmatmul.mubr.msk.f32.gmra.mrb[36].mxu1 %vm405_vm2, %v341_v51  ;;  %3573 = vmatmul.mubr.msk.f32.gmra.mrb[10].mxu0 %vm405_vm2, %v341_v51  ;;  %v1862_v51 = vld [vmem:[#allocation2 + $0x2e8] sm:$0xff] }
  0xcf   : > { %3887 = vmatprep.mubr.msk.f32.mxu1 %vm4767_vm0, %v4768_v1  ;;  %876 = vmatprep.mubr.f32.mxu0 %v4768_v1 }
  0xd2   : > { %3888 = vmatmul.mubr.msk.f32.gmra.mrb[38].mxu1 %vm405_vm2, %v342_v52  ;;  %3574 = vmatmul.mubr.msk.f32.gmra.mrb[12].mxu0 %vm405_vm2, %v342_v52  ;;  %v1861_v52 = vld [vmem:[#allocation2 + $0x2e0] sm:$0xff] }
  0xd3   : > { %3890 = vmatprep.mubr.msk.f32.mxu1 %vm4767_vm0, %v4768_v1  ;;  %882 = vmatprep.mubr.f32.mxu0 %v4768_v1 }
  0xd6   : > { %3891 = vmatmul.mubr.msk.f32.gmra.mrb[40].mxu1 %vm405_vm2, %v343_v53  ;;  %3575 = vmatmul.mubr.msk.f32.gmra.mrb[14].mxu0 %vm405_vm2, %v343_v53  ;;  %v1864_v53 = vld [vmem:[#allocation2 + $0x2f8] sm:$0xff] }
  0xd7   : > { %3893 = vmatprep.mubr.msk.f32.mxu1 %vm4767_vm0, %v4768_v1  ;;  %888 = vmatprep.mubr.f32.mxu0 %v4768_v1  ;;  %v4167_v59 = vpack.c.bf16 %v1864_v53, %v1861_v52  ;;  %v2334_v52 = vld [vmem:[%s6236_s5 + $0x28] sm:$0xff]  ;;  %v2336_v53 = vld [vmem:[%s6236_s5 + $0x38] sm:$0xff] }
  0xda   : > { %3894 = vmatmul.mubr.msk.f32.gmra.mrb[42].mxu1 %vm405_vm2, %v344_v54  ;;  %3576 = vmatmul.mubr.msk.f32.gmra.mrb[16].mxu0 %vm405_vm2, %v344_v54  ;;  %v1866_v54 = vld [vmem:[#allocation2 + $0x308] sm:$0xff] }
  0xdb   : > { %3896 = vmatprep.mubr.msk.f32.mxu1 %vm4767_vm0, %v4768_v1  ;;  %894 = vmatprep.mubr.f32.mxu0 %v4768_v1 }
  0xde   : > { %3897 = vmatmul.mubr.msk.f32.gmra.mrb[44].mxu1 %vm405_vm2, %v345_v55  ;;  %3577 = vmatmul.mubr.msk.f32.gmra.mrb[18].mxu0 %vm405_vm2, %v345_v55  ;;  %v1869_v55 = vld [vmem:[#allocation2 + $0x320] sm:$0xff] }
  0xdf   : > { %3899 = vmatprep.mubr.msk.f32.mxu1 %vm4767_vm0, %v4768_v1  ;;  %900 = vmatprep.mubr.f32.mxu0 %v4768_v1  ;;  %v4159_v60 = vpack.c.bf16 %v1869_v55, %v1866_v54  ;;  %v2716_v54 = vld [vmem:[%s6237_s6 + $0x28] sm:$0xff]  ;;  %v4176_v55 = vpack.c.bf16 %v2336_v53, %v2334_v52  ;;  %v1851_v52 = vld [vmem:[%s4954_s29 + $0x64] sm:$0xf] }
  0xe2   : > { %3900 = vmatmul.mubr.msk.f32.gmra.mrb[46].mxu1 %vm405_vm2, %v346_v56  ;;  %3578 = vmatmul.mubr.msk.f32.gmra.mrb[20].mxu0 %vm405_vm2, %v346_v56  ;;  %v1445_v56 = vld [vmem:[%s4954_s29 + $0xb] sm:$0xff] }
  0xe3   : > { %3902 = vmatprep.mubr.msk.f32.mxu1 %vm4767_vm0, %v4768_v1  ;;  %906 = vmatprep.mubr.f32.mxu0 %v4768_v1 }
  0xe6   : > { %3903 = vmatmul.mubr.msk.f32.gmra.mrb[48].mxu1 %vm405_vm2, %v347_v57  ;;  %3579 = vmatmul.mubr.msk.f32.gmra.mrb[22].mxu0 %vm405_vm2, %v347_v57  ;;  %v4157_v57 = vpack.c.bf16 %v1862_v51, %v1859_v48  ;;  %v1847_v48 = vld [vmem:[%s4954_s29 + $0x44] sm:$0xff] }
  0xe7   : > { %3905 = vmatprep.mubr.msk.f32.mxu1 %vm4767_vm0, %v4768_v1  ;;  %912 = vmatprep.mubr.f32.mxu0 %v4768_v1 }
  0xea   : > { %3906 = vmatmul.mubr.msk.f32.gmra.mrb[50].mxu1 %vm405_vm2, %v348_v58  ;;  %3580 = vmatmul.mubr.msk.f32.gmra.mrb[24].mxu0 %vm405_vm2, %v348_v58  ;;  %v1865_v58 = vld [vmem:[#allocation2 + $0x300] sm:$0xff] }
  0xeb   : > { %3922 = vmatprep.mubr.msk.f32.mxu1 %vm4767_vm0, %v4768_v1  ;;  %1196 = vmatprep.mubr.f32.mxu0 %v4768_v1 }
  0xee   : > { %3923 = vmatmul.mubr.msk.f32.vlgmr.msra.gmra.mrb[52].mxu1 %vm405_vm2, %v1049_v3  ;;  %3597 = vmatmul.mubr.msk.f32.vlgmr.msra.gmra.mrb[0].mxu0 %vm405_vm2, %v1049_v3  ;;  %v4161_v3 = vpack.c.bf16 %v1868_v61, %v1865_v58  ;;  %v2335_v58 = vld [vmem:[%s6236_s5 + $0x30] sm:$0xff]  ;;  %v2715_v61 = vld [vmem:[%s6237_s6 + $0x20] sm:$0xff] }
  0xef   : > { %3925 = vmatprep.mubr.msk.f32.mxu1 %vm4767_vm0, %v4768_v1  ;;  %1202 = vmatprep.mubr.f32.mxu0 %v4768_v1 }
  0xf0   : > { %4133 = vmatpush1.bf16.msra.mxu0 %v4132_v4  ;;  %4144 = vmatpush3.bf16.msra.mxu1 %v4143_v6  ;;  %v4170_v4 = vpack.c.bf16 %v1870_v63, %v1867_v62  ;;  %v1447_v6 = vld [vmem:[%s4954_s29 + $0x1b] sm:$0xff]  ;;  %v2717_v62 = vld [vmem:[%s6237_s6 + $0x30] sm:$0xff] }
  0xf1   : > { %4135 = vmatprep.subr.bf16.mxu0 %v4134_v7  ;;  %4145 = vmatprep.subr.bf16.mxu1 %v4766_v0  ;;  %v1871_v7 = vld [vmem:[#allocation2 + $0x330] sm:$0xf] }
  0xf2   : > { %3926 = vmatmul.mubr.msk.f32.gmra.mrb[54].mxu1 %vm405_vm2, %v1050_v13  ;;  %3598 = vmatmul.mubr.msk.f32.gmra.mrb[2].mxu0 %vm405_vm2, %v1050_v13  ;;  %v1453_v13 = vld [vmem:[%s4954_s29 + $0x4b] sm:$0xff] }
  0xf3   : > { %3928 = vmatprep.mubr.msk.f32.mxu1 %vm4767_vm0, %v4768_v1  ;;  %1208 = vmatprep.mubr.f32.mxu0 %v4768_v1  ;;  %v1848_v63 = vld [vmem:[%s4954_s29 + $0x4c] sm:$0xff] }
  0xf4   : > { %4137 = vmatpush1.bf16.msra.mxu0 %v4136_v14  ;;  %4147 = vmatpush3.bf16.msra.mxu1 %v4146_v16  ;;  %v1454_v14 = vld [vmem:[%s4954_s29 + $0x53] sm:$0xff]  ;;  %v1456_v16 = vld [vmem:[%s4954_s29 + $0x63] sm:$0xf] }
  0xf5   : > { %4139 = vmatprep.subr.bf16.mxu0 %v4138_v17  ;;  %4148 = vmatprep.subr.bf16.mxu1 %v4766_v0  ;;  %v1839_v17 = vld [vmem:[%s4954_s29 + $0x4] sm:$0xff] }
  0xf6   : > { %3929 = vmatmul.mubr.msk.f32.gmra.mrb[56].mxu1 %vm405_vm2, %v1051_v21  ;;  %3599 = vmatmul.mubr.msk.f32.gmra.mrb[4].mxu0 %vm405_vm2, %v1051_v21  ;;  %v1841_v21 = vld [vmem:[%s4954_s29 + $0x14] sm:$0xff] }
  0xf7   : > { %3931 = vmatprep.mubr.msk.f32.mxu1 %vm4767_vm0, %v4768_v1  ;;  %1214 = vmatprep.mubr.f32.mxu0 %v4768_v1 }
  0xf8   : > { %4141 = vmatpush1.bf16.msra.mxu0 %v4140_v22  ;;  %4150 = vmatpush3.bf16.msra.mxu1 %v4149_v23 }
  0xf9   : > { %3624 = vmatprep.subr.msk.mxu0 %vm445_vm1, %v1477_v24  ;;  %3973 = vmatprep.subr.mxu1 %v4768_v1  ;;  %v1842_v24 = vld [vmem:[%s4954_s29 + $0x1c] sm:$0xff] }
  0xfa   : > { %3932 = vmatmul.mubr.msk.f32.gmra.mrb[58].mxu1 %vm405_vm2, %v1052_v27  ;;  %3600 = vmatmul.mubr.msk.f32.gmra.mrb[6].mxu0 %vm405_vm2, %v1052_v27  ;;  %v1843_v27 = vld [vmem:[%s4954_s29 + $0x24] sm:$0xff] }
  0xfb   : > { %3934 = vmatprep.mubr.msk.f32.mxu1 %vm4767_vm0, %v4768_v1  ;;  %1220 = vmatprep.mubr.f32.mxu0 %v4768_v1 }
  0xfc   : > { %3625 = vmatpush1.msk.msra.mxu0 %vm445_vm1, %v1476_v28  ;;  %3974 = vmatpush3.msk.msra.mxu1 %vm445_vm1, %v1478_v29 }
  0xfd   : > { %4152 = vmatprep.subr.bf16.mxu0 %v4151_v30  ;;  %4163 = vmatprep.subr.bf16.mxu1 %v4766_v0  ;;  %v1844_v30 = vld [vmem:[%s4954_s29 + $0x2c] sm:$0xff] }
  0xfe   : > { %3935 = vmatmul.mubr.msk.f32.gmra.mrb[60].mxu1 %vm405_vm2, %v1053_v31  ;;  %3601 = vmatmul.mubr.msk.f32.gmra.mrb[8].mxu0 %vm405_vm2, %v1053_v31 }
  0xff   : > { %3937 = vmatprep.mubr.msk.f32.mxu1 %vm4767_vm0, %v4768_v1  ;;  %1226 = vmatprep.mubr.f32.mxu0 %v4768_v1 }
 0x102   : > { %3938 = vmatmul.mubr.msk.f32.gmra.mrb[62].mxu1 %vm405_vm2, %v1054_v32  ;;  %3602 = vmatmul.mubr.msk.f32.gmra.mrb[10].mxu0 %vm405_vm2, %v1054_v32 }
 0x103   : > { %3940 = vmatprep.mubr.msk.f32.mxu1 %vm4767_vm0, %v4768_v1  ;;  %1232 = vmatprep.mubr.f32.mxu0 %v4768_v1 }
 0x106   : > { %3941 = vmatmul.mubr.msk.f32.gmra.mrb[64].mxu1 %vm405_vm2, %v1055_v33  ;;  %3603 = vmatmul.mubr.msk.f32.gmra.mrb[12].mxu0 %vm405_vm2, %v1055_v33  ;;  %v1845_v33 = vld [vmem:[%s4954_s29 + $0x34] sm:$0xff] }
 0x107   : > { %3943 = vmatprep.mubr.msk.f32.mxu1 %vm4767_vm0, %v4768_v1  ;;  %1238 = vmatprep.mubr.f32.mxu0 %v4768_v1 }
 0x10a   : > { %3944 = vmatmul.mubr.msk.f32.gmra.mrb[66].mxu1 %vm405_vm2, %v1056_v34  ;;  %3604 = vmatmul.mubr.msk.f32.gmra.mrb[14].mxu0 %vm405_vm2, %v1056_v34  ;;  %v1846_v34 = vld [vmem:[%s4954_s29 + $0x3c] sm:$0xff] }
 0x10b   : > { %3946 = vmatprep.mubr.msk.f32.mxu1 %vm4767_vm0, %v4768_v1  ;;  %1244 = vmatprep.mubr.f32.mxu0 %v4768_v1 }
 0x10e   : > { %3947 = vmatmul.mubr.msk.f32.gmra.mrb[68].mxu1 %vm405_vm2, %v1057_v35  ;;  %3605 = vmatmul.mubr.msk.f32.gmra.mrb[16].mxu0 %vm405_vm2, %v1057_v35 }
 0x10f   : > { %3949 = vmatprep.mubr.msk.f32.mxu1 %vm4767_vm0, %v4768_v1  ;;  %1250 = vmatprep.mubr.f32.mxu0 %v4768_v1 }
 0x112   : > { %3950 = vmatmul.mubr.msk.f32.gmra.mrb[70].mxu1 %vm405_vm2, %v1058_v36  ;;  %3606 = vmatmul.mubr.msk.f32.gmra.mrb[18].mxu0 %vm405_vm2, %v1058_v36 }
 0x113   : > { %3952 = vmatprep.mubr.msk.f32.mxu1 %vm4767_vm0, %v4768_v1  ;;  %1256 = vmatprep.mubr.f32.mxu0 %v4768_v1 }
 0x116   : > { %3953 = vmatmul.mubr.msk.f32.gmra.mrb[72].mxu1 %vm405_vm2, %v1059_v37  ;;  %3607 = vmatmul.mubr.msk.f32.gmra.mrb[20].mxu0 %vm405_vm2, %v1059_v37  ;;  %v2330_v37 = vld [vmem:[%s6236_s5 + $0x8] sm:$0xff] }
 0x117   : > { %3955 = vmatprep.mubr.msk.f32.mxu1 %vm4767_vm0, %v4768_v1  ;;  %1262 = vmatprep.mubr.f32.mxu0 %v4768_v1 }
 0x11a   : > { %3956 = vmatmul.mubr.msk.f32.gmra.mrb[74].mxu1 %vm405_vm2, %v1060_v38  ;;  %3608 = vmatmul.mubr.msk.f32.gmra.mrb[22].mxu0 %vm405_vm2, %v1060_v38  ;;  %v2332_v38 = vld [vmem:[%s6236_s5 + $0x18] sm:$0xff] }
 0x11b   : > { %3958 = vmatprep.mubr.msk.f32.mxu1 %vm4767_vm0, %v4768_v1  ;;  %1268 = vmatprep.mubr.f32.mxu0 %v4768_v1  ;;  %v4172_v40 = vpack.c.bf16 %v2332_v38, %v2330_v37 }
 0x11e   : > { %3959 = vmatmul.mubr.msk.f32.gmra.mrb[76].mxu1 %vm405_vm2, %v1061_v39  ;;  %3609 = vmatmul.mubr.msk.f32.gmra.mrb[24].mxu0 %vm405_vm2, %v1061_v39  ;;  %v2712_v39 = vld [vmem:[%s6237_s6 + $0x8] sm:$0xff] }
 0x11f   : > { %3975 = vmatprep.mubr.msk.f32.mxu1 %vm4767_vm0, %v4768_v1  ;;  %1591 = vmatprep.mubr.f32.mxu0 %v4768_v1  ;;  %v4268_v44 = vpack.c.bf16 %v2714_v41, %v2712_v39  ;;  %v2348_v41 = vld [vmem:[%s6236_s5 + $0x98] sm:$0xff] }
 0x122   : > { %3976 = vmatmul.mubr.msk.f32.vlgmr.msra.gmra.mrb[78].mxu1 %vm405_vm2, %v1444_v46  ;;  %3626 = vmatmul.mubr.msk.f32.vlgmr.msra.gmra.mrb[0].mxu0 %vm405_vm2, %v1444_v46  ;;  %v2711_v46 = vld [vmem:[%s6237_s6] sm:$0xff] }
 0x123   : > { %3978 = vmatprep.mubr.msk.f32.mxu1 %vm4767_vm0, %v4768_v1  ;;  %1597 = vmatprep.mubr.f32.mxu0 %v4768_v1 }
 0x124   : > { %4154 = vmatpush1.bf16.msra.mxu0 %v4153_v47  ;;  %4165 = vmatpush3.bf16.msra.mxu1 %v4164_v49  ;;  %v2713_v47 = vld [vmem:[%s6237_s6 + $0x10] sm:$0xff] }
 0x125   : > { %4156 = vmatprep.subr.bf16.mxu0 %v4155_v50  ;;  %4166 = vmatprep.subr.bf16.mxu1 %v4766_v0  ;;  %v4270_v50 = vpack.c.bf16 %v2713_v47, %v2711_v46  ;;  %v2347_v46 = vld [vmem:[%s6236_s5 + $0x90] sm:$0xff] }
 0x126   : > { %3979 = vmatmul.mubr.msk.f32.gmra.mrb[80].mxu1 %vm405_vm2, %v1445_v56  ;;  %3627 = vmatmul.mubr.msk.f32.gmra.mrb[2].mxu0 %vm405_vm2, %v1445_v56  ;;  %v2718_v56 = vld [vmem:[%s6237_s6 + $0x38] sm:$0xff] }
 0x127   : > { %3981 = vmatprep.mubr.msk.f32.mxu1 %vm4767_vm0, %v4768_v1  ;;  %1603 = vmatprep.mubr.f32.mxu0 %v4768_v1 }
 0x128   : > { %4158 = vmatpush1.bf16.msra.mxu0 %v4157_v57  ;;  %4168 = vmatpush3.bf16.msra.mxu1 %v4167_v59  ;;  %v2333_v57 = vld [vmem:[%s6236_s5 + $0x20] sm:$0xff]  ;;  %v4272_v59 = vpack.c.bf16 %v2718_v56, %v2716_v54  ;;  %v2350_v56 = vld [vmem:[%s6236_s5 + $0xa8] sm:$0xff] }
 0x129   : > { %4160 = vmatprep.subr.bf16.mxu0 %v4159_v60  ;;  %4169 = vmatprep.subr.bf16.mxu1 %v4766_v0  ;;  %v1873_v0 = vld [vmem:[#allocation2 + $0x340] sm:$0xf]  ;;  %v4178_v60 = vpack.c.bf16 %v2335_v58, %v2333_v57  ;;  %v2352_v57 = vld [vmem:[%s6236_s5 + $0xb8] sm:$0xff]  ;;  %v2732_v58 = vld [vmem:[%s6237_s6 + $0xa8] sm:$0xff] }
 0x12a   : > { %3982 = vmatmul.mubr.msk.f32.gmra.mrb[82].mxu1 %vm405_vm2, %v1446_v2  ;;  %3628 = vmatmul.mubr.msk.f32.gmra.mrb[4].mxu0 %vm405_vm2, %v1446_v2 }
 0x12b   : > { %3984 = vmatprep.mubr.msk.f32.mxu1 %vm4767_vm0, %v4768_v1  ;;  %1609 = vmatprep.mubr.f32.mxu0 %v4768_v1 }
 0x12c   : > { %4162 = vmatpush1.bf16.msra.mxu0 %v4161_v3  ;;  %4171 = vmatpush3.bf16.msra.mxu1 %v4170_v4  ;;  %v4274_v3 = vpack.c.bf16 %v2717_v62, %v2715_v61  ;;  %v2349_v61 = vld [vmem:[%s6236_s5 + $0xa0] sm:$0xff]  ;;  %v2351_v62 = vld [vmem:[%s6236_s5 + $0xb0] sm:$0xff] }
 0x12d   : > { %3653 = vmatprep.subr.msk.mxu0 %vm445_vm1, %v1872_v5  ;;  %4026 = vmatprep.subr.mxu1 %v4768_v1  ;;  %v2338_v5 = vld [vmem:[%s6236_s5 + $0x48] sm:$0xff] }
 0x12e   : > { %3985 = vmatmul.mubr.msk.f32.gmra.mrb[84].mxu1 %vm405_vm2, %v1447_v6  ;;  %3629 = vmatmul.mubr.msk.f32.gmra.mrb[6].mxu0 %vm405_vm2, %v1447_v6  ;;  %v2340_v6 = vld [vmem:[%s6236_s5 + $0x58] sm:$0xff] }
 0x12f   : > { %3987 = vmatprep.mubr.msk.f32.mxu1 %vm4767_vm0, %v4768_v1  ;;  %1615 = vmatprep.mubr.f32.mxu0 %v4768_v1 }
 0x130   : > { %3654 = vmatpush1.msk.msra.mxu0 %vm445_vm1, %v1871_v7  ;;  %4027 = vmatpush3.msk.msra.mxu1 %vm445_vm1, %v1873_v0  ;;  %v2720_v7 = vld [vmem:[%s6237_s6 + $0x48] sm:$0xff]  ;;  %v4180_v0 = vpack.c.bf16 %v2340_v6, %v2338_v5  ;;  %v2733_v5 = vld [vmem:[%s6237_s6 + $0xb0] sm:$0xff] }
 0x131   : > { %4173 = vmatprep.subr.bf16.mxu0 %v4172_v40  ;;  %4269 = vmatprep.subr.bf16.mxu1 %v4268_v44  ;;  %v2346_v40 = vld [vmem:[%s6236_s5 + $0x88] sm:$0xff]  ;;  %v2730_v44 = vld [vmem:[%s6237_s6 + $0x98] sm:$0xff] }
 0x132   : > { %3988 = vmatmul.mubr.msk.f32.gmra.mrb[86].mxu1 %vm405_vm2, %v1448_v8  ;;  %3630 = vmatmul.mubr.msk.f32.gmra.mrb[8].mxu0 %vm405_vm2, %v1448_v8  ;;  %v2722_v8 = vld [vmem:[%s6237_s6 + $0x58] sm:$0xff]  ;;  %v4188_v43 = vpack.c.bf16 %v2348_v41, %v2346_v40  ;;  %v4284_v47 = vpack.c.bf16 %v2730_v44, %v2728_v42  ;;  %v2741_v40 = vld [vmem:[%s6237_s6 + $0xf0] sm:$0xff] }
 0x133   : > { %3990 = vmatprep.mubr.msk.f32.mxu1 %vm4767_vm0, %v4768_v1  ;;  %1621 = vmatprep.mubr.f32.mxu0 %v4768_v1 }
 0x136   : > { %3991 = vmatmul.mubr.msk.f32.gmra.mrb[88].mxu1 %vm405_vm2, %v1449_v9  ;;  %3631 = vmatmul.mubr.msk.f32.gmra.mrb[10].mxu0 %vm405_vm2, %v1449_v9  ;;  %v2337_v9 = vld [vmem:[%s6236_s5 + $0x40] sm:$0xff] }
 0x137   : > { %3993 = vmatprep.mubr.msk.f32.mxu1 %vm4767_vm0, %v4768_v1  ;;  %1627 = vmatprep.mubr.f32.mxu0 %v4768_v1 }
 0x13a   : > { %3994 = vmatmul.mubr.msk.f32.gmra.mrb[90].mxu1 %vm405_vm2, %v1450_v10  ;;  %3632 = vmatmul.mubr.msk.f32.gmra.mrb[12].mxu0 %vm405_vm2, %v1450_v10  ;;  %v2339_v10 = vld [vmem:[%s6236_s5 + $0x50] sm:$0xff] }
 0x13b   : > { %3996 = vmatprep.mubr.msk.f32.mxu1 %vm4767_vm0, %v4768_v1  ;;  %1633 = vmatprep.mubr.f32.mxu0 %v4768_v1 }
 0x13e   : > { %3997 = vmatmul.mubr.msk.f32.gmra.mrb[92].mxu1 %vm405_vm2, %v1451_v11  ;;  %3633 = vmatmul.mubr.msk.f32.gmra.mrb[14].mxu0 %vm405_vm2, %v1451_v11  ;;  %v4276_v11 = vpack.c.bf16 %v2722_v8, %v2720_v7  ;;  %v2354_v8 = vld [vmem:[%s6236_s5 + $0xc8] sm:$0xff] }
 0x13f   : > { %3999 = vmatprep.mubr.msk.f32.mxu1 %vm4767_vm0, %v4768_v1  ;;  %1639 = vmatprep.mubr.f32.mxu0 %v4768_v1 }
 0x142   : > { %4000 = vmatmul.mubr.msk.f32.gmra.mrb[94].mxu1 %vm405_vm2, %v1452_v12  ;;  %3634 = vmatmul.mubr.msk.f32.gmra.mrb[16].mxu0 %vm405_vm2, %v1452_v12  ;;  %v4182_v12 = vpack.c.bf16 %v2339_v10, %v2337_v9  ;;  %v2356_v9 = vld [vmem:[%s6236_s5 + $0xd8] sm:$0xff]  ;;  %v2736_v10 = vld [vmem:[%s6237_s6 + $0xc8] sm:$0xff] }
 0x143   : > { %4002 = vmatprep.mubr.msk.f32.mxu1 %vm4767_vm0, %v4768_v1  ;;  %1645 = vmatprep.mubr.f32.mxu0 %v4768_v1 }
 0x146   : > { %4003 = vmatmul.mubr.msk.f32.gmra.mrb[96].mxu1 %vm405_vm2, %v1453_v13  ;;  %3635 = vmatmul.mubr.msk.f32.gmra.mrb[18].mxu0 %vm405_vm2, %v1453_v13  ;;  %v2719_v13 = vld [vmem:[%s6237_s6 + $0x40] sm:$0xff] }
 0x147   : > { %4005 = vmatprep.mubr.msk.f32.mxu1 %vm4767_vm0, %v4768_v1  ;;  %1651 = vmatprep.mubr.f32.mxu0 %v4768_v1 }
 0x14a   : > { %4006 = vmatmul.mubr.msk.f32.gmra.mrb[98].mxu1 %vm405_vm2, %v1454_v14  ;;  %3636 = vmatmul.mubr.msk.f32.gmra.mrb[20].mxu0 %vm405_vm2, %v1454_v14  ;;  %v2721_v14 = vld [vmem:[%s6237_s6 + $0x50] sm:$0xff] }
 0x14b   : > { %4008 = vmatprep.mubr.msk.f32.mxu1 %vm4767_vm0, %v4768_v1  ;;  %1657 = vmatprep.mubr.f32.mxu0 %v4768_v1 }
 0x14e   : > { %4009 = vmatmul.mubr.msk.f32.gmra.mrb[100].mxu1 %vm405_vm2, %v1455_v15  ;;  %3637 = vmatmul.mubr.msk.f32.gmra.mrb[22].mxu0 %vm405_vm2, %v1455_v15  ;;  %v1849_v15 = vld [vmem:[%s4954_s29 + $0x54] sm:$0xff] }
 0x14f   : > { %4011 = vmatprep.mubr.msk.f32.mxu1 %vm4767_vm0, %v4768_v1  ;;  %1663 = vmatprep.mubr.f32.mxu0 %v4768_v1 }
 0x152   : > { %4012 = vmatmul.mubr.msk.f32.gmra.mrb[102].mxu1 %vm405_vm2, %v1456_v16  ;;  %3638 = vmatmul.mubr.msk.f32.gmra.mrb[24].mxu0 %vm405_vm2, %v1456_v16 }
 0x153   : > { %4028 = vmatprep.mubr.msk.f32.mxu1 %vm4767_vm0, %v4768_v1  ;;  %1986 = vmatprep.mubr.f32.mxu0 %v4768_v1 }
 0x156   : > { %4029 = vmatmul.mubr.msk.f32.vlgmr.msra.gmra.mrb[104].mxu1 %vm405_vm2, %v1839_v17  ;;  %3655 = vmatmul.mubr.msk.f32.vlgmr.msra.gmra.mrb[0].mxu0 %vm405_vm2, %v1839_v17  ;;  %v4278_v17 = vpack.c.bf16 %v2721_v14, %v2719_v13  ;;  %v2353_v13 = vld [vmem:[%s6236_s5 + $0xc0] sm:$0xff]  ;;  %v2355_v14 = vld [vmem:[%s6236_s5 + $0xd0] sm:$0xff] }
 0x157   : > { %4031 = vmatprep.mubr.msk.f32.mxu1 %vm4767_vm0, %v4768_v1  ;;  %1992 = vmatprep.mubr.f32.mxu0 %v4768_v1 }
 0x158   : > { %4175 = vmatpush1.bf16.msra.mxu0 %v4174_v45  ;;  %4271 = vmatpush1.bf16.msra.mxu1 %v4270_v50  ;;  %v2345_v45 = vld [vmem:[%s6236_s5 + $0x80] sm:$0xff] }
 0x159   : > { %v5307_v19 = vpop.f32.mrb[0].mxu1  ;;  %4177 = vmatprep.subr.bf16.mxu0 %v4176_v55  ;;  %4273 = vmatprep.subr.bf16.mxu1 %v4272_v59  ;;  %v2727_v50 = vld [vmem:[%s6237_s6 + $0x80] sm:$0xff]  ;;  %v4192_v59 = vpack.c.bf16 %v2352_v57, %v2350_v56  ;;  %v2745_v56 = vld [vmem:[%s6237_s6 + $0x110] sm:$0xff] }
 0x15a   : > { %4032 = vmatmul.mubr.msk.f32.gmra.mrb[106].mxu1 %vm405_vm2, %v1840_v18  ;;  %3656 = vmatmul.mubr.msk.f32.gmra.mrb[2].mxu0 %vm405_vm2, %v1840_v18  ;;  %v3818_v20 = vpop.f32.mrb[1].mxu1 }
 0x15b   : > { %4034 = vmatprep.mubr.msk.f32.mxu1 %vm4767_vm0, %v4768_v1  ;;  %1998 = vmatprep.mubr.f32.mxu0 %v4768_v1  ;;  %v2342_v20 = vld [vmem:[%s6236_s5 + $0x68] sm:$0xff] }
 0x15c   : > { %4179 = vmatpush1.bf16.msra.mxu0 %v4178_v60  ;;  %4275 = vmatpush1.bf16.msra.mxu1 %v4274_v3  ;;  %v2734_v60 = vld [vmem:[%s6237_s6 + $0xb8] sm:$0xff]  ;;  %v4194_v3 = vpack.c.bf16 %v2351_v62, %v2349_v61  ;;  %v2366_v61 = vld [vmem:[%s6236_s5 + $0x128] sm:$0xff] }
 0x15d   : > { %v5315_v22 = vpop.f32.mrb[2].mxu1  ;;  %4181 = vmatprep.subr.bf16.mxu0 %v4180_v0  ;;  %4277 = vmatprep.subr.bf16.mxu1 %v4276_v11  ;;  %v4196_v11 = vpack.c.bf16 %v2356_v9, %v2354_v8  ;;  %v2368_v62 = vld [vmem:[%s6236_s5 + $0x138] sm:$0xff]  ;;  %v2747_v8 = vld [vmem:[%s6237_s6 + $0x120] sm:$0xff]  ;;  %v2749_v9 = vld [vmem:[%s6237_s6 + $0x130] sm:$0xff] }
 0x15e   : > { %4035 = vmatmul.mubr.msk.f32.gmra.mrb[108].mxu1 %vm405_vm2, %v1841_v21  ;;  %3657 = vmatmul.mubr.msk.f32.gmra.mrb[4].mxu0 %vm405_vm2, %v1841_v21  ;;  %v3821_v23 = vpop.f32.mrb[3].mxu1  ;;  %v2344_v21 = vld [vmem:[%s6236_s5 + $0x78] sm:$0xff] }
 0x15f   : > { %4037 = vmatprep.mubr.msk.f32.mxu1 %vm4767_vm0, %v4768_v1  ;;  %2004 = vmatprep.mubr.f32.mxu0 %v4768_v1  ;;  %v2724_v23 = vld [vmem:[%s6237_s6 + $0x68] sm:$0xff] }
 0x160   : > { %4183 = vmatpush1.bf16.msra.mxu0 %v4182_v12  ;;  %4279 = vmatpush1.bf16.msra.mxu1 %v4278_v17  ;;  %v2738_v12 = vld [vmem:[%s6237_s6 + $0xd8] sm:$0xff]  ;;  %v4198_v17 = vpack.c.bf16 %v2355_v14, %v2353_v13  ;;  %v2370_v14 = vld [vmem:[%s6236_s5 + $0x148] sm:$0xff] }
 0x161   : > { %v5323_v25 = vpop.f32.mrb[4].mxu1 }
 0x162   : > { %4038 = vmatmul.mubr.msk.f32.gmra.mrb[110].mxu1 %vm405_vm2, %v1842_v24  ;;  %3658 = vmatmul.mubr.msk.f32.gmra.mrb[6].mxu0 %vm405_vm2, %v1842_v24  ;;  %v3824_v26 = vpop.f32.mrb[5].mxu1  ;;  %v4184_v24 = vpack.c.bf16 %v2344_v21, %v2342_v20  ;;  %v2737_v20 = vld [vmem:[%s6237_s6 + $0xd0] sm:$0xff] }
 0x163   : > { %4040 = vmatprep.mubr.msk.f32.mxu1 %vm4767_vm0, %v4768_v1  ;;  %2010 = vmatprep.mubr.f32.mxu0 %v4768_v1  ;;  %v2726_v26 = vld [vmem:[%s6237_s6 + $0x78] sm:$0xff] }
 0x164   : > { %4185 = vmatprep.subr.bf16.mxu0 %v4184_v24 }
 0x165   : > { %v5331_v28 = vpop.f32.mrb[6].mxu1 }
 0x166   : > { %4041 = vmatmul.mubr.msk.f32.gmra.mrb[112].mxu1 %vm405_vm2, %v1843_v27  ;;  %3659 = vmatmul.mubr.msk.f32.gmra.mrb[8].mxu0 %vm405_vm2, %v1843_v27  ;;  %v3827_v29 = vpop.f32.mrb[7].mxu1  ;;  %v2341_v27 = vld [vmem:[%s6236_s5 + $0x60] sm:$0xff] }
 0x167   : > { %4043 = vmatprep.mubr.msk.f32.mxu1 %vm4767_vm0, %v4768_v1  ;;  %2016 = vmatprep.mubr.f32.mxu0 %v4768_v1  ;;  %v2343_v29 = vld [vmem:[%s6236_s5 + $0x70] sm:$0xff] }
 0x169   : > { %v5339_v31 = vpop.f32.mrb[8].mxu1 }
 0x16a   : > { %4044 = vmatmul.mubr.msk.f32.gmra.mrb[114].mxu1 %vm405_vm2, %v1844_v30  ;;  %3660 = vmatmul.mubr.msk.f32.gmra.mrb[10].mxu0 %vm405_vm2, %v1844_v30  ;;  %v3830_v32 = vpop.f32.mrb[9].mxu1  ;;  %v4280_v30 = vpack.c.bf16 %v2726_v26, %v2724_v23  ;;  %v2358_v26 = vld [vmem:[%s6236_s5 + $0xe8] sm:$0xff] }
 0x16b   : > { %4046 = vmatprep.mubr.msk.f32.mxu1 %vm4767_vm0, %v4768_v1  ;;  %2022 = vmatprep.mubr.f32.mxu0 %v4768_v1  ;;  %v4186_v32 = vpack.c.bf16 %v2343_v29, %v2341_v27  ;;  %v2360_v27 = vld [vmem:[%s6236_s5 + $0xf8] sm:$0xff]  ;;  %v2740_v29 = vld [vmem:[%s6237_s6 + $0xe8] sm:$0xff] }
 0x16c   : > { %4281 = vmatprep.subr.bf16.mxu1 %v4280_v30  ;;  %v4200_v30 = vpack.c.bf16 %v2360_v27, %v2358_v26  ;;  %v2751_v27 = vld [vmem:[%s6237_s6 + $0x140] sm:$0xff] }
 0x16d   : > { %v5348_v35 = vpop.f32.mrb[10].mxu1  ;;  %4187 = vmatpush1.bf16.msra.mxu0 %v4186_v32  ;;  %v2742_v32 = vld [vmem:[%s6237_s6 + $0xf8] sm:$0xff] }
 0x16e   : > { %4047 = vmatmul.mubr.msk.f32.gmra.mrb[116].mxu1 %vm405_vm2, %v1845_v33  ;;  %3661 = vmatmul.mubr.msk.f32.gmra.mrb[12].mxu0 %vm405_vm2, %v1845_v33  ;;  %v3833_v36 = vpop.f32.mrb[11].mxu1  ;;  %v2723_v33 = vld [vmem:[%s6237_s6 + $0x60] sm:$0xff] }
 0x16f   : > { %4049 = vmatprep.mubr.msk.f32.mxu1 %vm4767_vm0, %v4768_v1  ;;  %2028 = vmatprep.mubr.f32.mxu0 %v4768_v1  ;;  %v1850_v36 = vld [vmem:[%s4954_s29 + $0x5c] sm:$0xff] }
 0x170   : > { %4189 = vmatprep.subr.bf16.mxu0 %v4188_v43 }
 0x171   : > { %v5380_v49 = vpop.f32.mrb[12].mxu1 }
 0x172   : > { %4050 = vmatmul.mubr.msk.f32.gmra.mrb[118].mxu1 %vm405_vm2, %v1846_v34  ;;  %3662 = vmatmul.mubr.msk.f32.gmra.mrb[14].mxu0 %vm405_vm2, %v1846_v34  ;;  %v3836_v51 = vpop.f32.mrb[13].mxu1  ;;  %v2725_v34 = vld [vmem:[%s6237_s6 + $0x70] sm:$0xff] }
 0x173   : > { %4052 = vmatprep.mubr.msk.f32.mxu1 %vm4767_vm0, %v4768_v1  ;;  %2034 = vmatprep.mubr.f32.mxu0 %v4768_v1  ;;  %v4282_v38 = vpack.c.bf16 %v2725_v34, %v2723_v33  ;;  %v2729_v51 = vld [vmem:[%s6237_s6 + $0x90] sm:$0xff]  ;;  %v2357_v33 = vld [vmem:[%s6236_s5 + $0xe0] sm:$0xff] }
 0x174   : > { %v4286_v54 = vpack.c.bf16 %v2729_v51, %v2727_v50  ;;  %v2359_v34 = vld [vmem:[%s6236_s5 + $0xf0] sm:$0xff]  ;;  %v2361_v50 = vld [vmem:[%s6236_s5 + $0x100] sm:$0xff] }
 0x175   : > { %v5412_v2 = vpop.f32.mrb[14].mxu1  ;;  %4283 = vmatpush1.bf16.msra.mxu1 %v4282_v38  ;;  %v4202_v38 = vpack.c.bf16 %v2359_v34, %v2357_v33  ;;  %v2363_v51 = vld [vmem:[%s6236_s5 + $0x110] sm:$0xff] }
 0x176   : > { %4053 = vmatmul.mubr.msk.f32.gmra.mrb[120].mxu1 %vm405_vm2, %v1847_v48  ;;  %3663 = vmatmul.mubr.msk.f32.gmra.mrb[16].mxu0 %vm405_vm2, %v1847_v48  ;;  %v3839_v4 = vpop.f32.mrb[15].mxu1  ;;  %v4190_v48 = vpack.c.bf16 %v2347_v46, %v2345_v45  ;;  %v2362_v45 = vld [vmem:[%s6236_s5 + $0x108] sm:$0xff]  ;;  %v2364_v46 = vld [vmem:[%s6236_s5 + $0x118] sm:$0xff] }
 0x177   : > { %4055 = vmatprep.mubr.msk.f32.mxu1 %vm4767_vm0, %v4768_v1  ;;  %2040 = vmatprep.mubr.f32.mxu0 %v4768_v1  ;;  %v2731_v4 = vld [vmem:[%s6237_s6 + $0xa0] sm:$0xff] }
 0x178   : > { %4285 = vmatprep.subr.bf16.mxu1 %v4284_v47  ;;  %4191 = vmatpush1.bf16.msra.mxu0 %v4190_v48  ;;  %v4290_v7 = vpack.c.bf16 %v2733_v5, %v2731_v4  ;;  %v2744_v47 = vld [vmem:[%s6237_s6 + $0x108] sm:$0xff]  ;;  %v4204_v48 = vpack.c.bf16 %v2364_v46, %v2362_v45  ;;  %v2365_v4 = vld [vmem:[%s6236_s5 + $0x120] sm:$0xff]  ;;  %v2367_v5 = vld [vmem:[%s6236_s5 + $0x130] sm:$0xff] }
 0x179   : > { %v5444_v16 = vpop.f32.mrb[16].mxu1  ;;  %4287 = vmatpush1.bf16.msra.mxu1 %v4286_v54  ;;  %4193 = vmatprep.subr.bf16.mxu0 %v4192_v59  ;;  %v4206_v54 = vpack.c.bf16 %v2363_v51, %v2361_v50  ;;  %v2755_v46 = vld [vmem:[%s6237_s6 + $0x160] sm:$0xff] }
 0x17a   : > { %4056 = vmatmul.mubr.msk.f32.gmra.mrb[122].mxu1 %vm405_vm2, %v1848_v63  ;;  %3664 = vmatmul.mubr.msk.f32.gmra.mrb[18].mxu0 %vm405_vm2, %v1848_v63  ;;  %v3842_v18 = vpop.f32.mrb[17].mxu1  ;;  %v4288_v63 = vpack.c.bf16 %v2734_v60, %v2732_v58 }
 0x17b   : > { %4058 = vmatprep.mubr.msk.f32.mxu1 %vm4767_vm0, %v4768_v1  ;;  %2046 = vmatprep.mubr.f32.mxu0 %v4768_v1  ;;  %v2735_v18 = vld [vmem:[%s6237_s6 + $0xc0] sm:$0xff] }
 0x17c   : > { %4289 = vmatprep.subr.bf16.mxu1 %v4288_v63  ;;  %4195 = vmatpush1.bf16.msra.mxu0 %v4194_v3  ;;  %v4294_v23 = vpack.c.bf16 %v2737_v20, %v2735_v18  ;;  %v2748_v63 = vld [vmem:[%s6237_s6 + $0x128] sm:$0xff]  ;;  %v4208_v3 = vpack.c.bf16 %v2368_v62, %v2366_v61  ;;  %v2369_v20 = vld [vmem:[%s6236_s5 + $0x140] sm:$0xff] }
 0x17d   : > { %v5476_v37 = vpop.f32.mrb[18].mxu1  ;;  %4291 = vmatpush1.bf16.msra.mxu1 %v4290_v7  ;;  %4197 = vmatprep.subr.bf16.mxu0 %v4196_v11  ;;  %v4306_v11 = vpack.c.bf16 %v2749_v9, %v2747_v8  ;;  %v2759_v62 = vld [vmem:[%s6237_s6 + $0x180] sm:$0xff]  ;;  %v2764_v8 = vld [vmem:[%s6237_s6 + $0x1a8] sm:$0xff] }
 0x17e   : > { %4059 = vmatmul.mubr.msk.f32.gmra.mrb[124].mxu1 %vm405_vm2, %v1849_v15  ;;  %3665 = vmatmul.mubr.msk.f32.gmra.mrb[20].mxu0 %vm405_vm2, %v1849_v15  ;;  %v3845_v39 = vpop.f32.mrb[19].mxu1  ;;  %v4292_v15 = vpack.c.bf16 %v2738_v12, %v2736_v10 }
 0x17f   : > { %4061 = vmatprep.mubr.msk.f32.mxu1 %vm4767_vm0, %v4768_v1  ;;  %2052 = vmatprep.mubr.f32.mxu0 %v4768_v1  ;;  %v2739_v39 = vld [vmem:[%s6237_s6 + $0xe0] sm:$0xff] }
 0x180   : > { %4293 = vmatprep.subr.bf16.mxu1 %v4292_v15  ;;  %4199 = vmatpush1.bf16.msra.mxu0 %v4198_v17  ;;  %v4298_v42 = vpack.c.bf16 %v2741_v40, %v2739_v39  ;;  %v2372_v15 = vld [vmem:[%s6236_s5 + $0x158] sm:$0xff]  ;;  %v2752_v17 = vld [vmem:[%s6237_s6 + $0x148] sm:$0xff] }
 0x181   : > { %v5508_v53 = vpop.f32.mrb[20].mxu1  ;;  %4295 = vmatpush1.bf16.msra.mxu1 %v4294_v23  ;;  %4201 = vmatprep.subr.bf16.mxu0 %v4200_v30  ;;  %v4212_v18 = vpack.c.bf16 %v2372_v15, %v2370_v14  ;;  %v2371_v23 = vld [vmem:[%s6236_s5 + $0x150] sm:$0xff]  ;;  %v2756_v39 = vld [vmem:[%s6237_s6 + $0x168] sm:$0xff]  ;;  %v2763_v15 = vld [vmem:[%s6237_s6 + $0x1a0] sm:$0xff] }
 0x182   : > { %4062 = vmatmul.mubr.msk.f32.gmra.mrb[126].mxu1 %vm405_vm2, %v1850_v36  ;;  %3666 = vmatmul.mubr.msk.f32.gmra.mrb[22].mxu0 %vm405_vm2, %v1850_v36  ;;  %v3848_v55 = vpop.f32.mrb[21].mxu1  ;;  %v4296_v36 = vpack.c.bf16 %v2742_v32, %v2740_v29  ;;  %v4214_v26 = vpack.c.bf16 %v2371_v23, %v2369_v20  ;;  %v2753_v29 = vld [vmem:[%s6237_s6 + $0x150] sm:$0xff] }
 0x183   : > { %4064 = vmatprep.mubr.msk.f32.mxu1 %vm4767_vm0, %v4768_v1  ;;  %2058 = vmatprep.mubr.f32.mxu0 %v4768_v1  ;;  %v2743_v55 = vld [vmem:[%s6237_s6 + $0x100] sm:$0xff]  ;;  %v4310_v32 = vpack.c.bf16 %v2753_v29, %v2751_v27  ;;  %v2768_v27 = vld [vmem:[%s6237_s6 + $0x1c8] sm:$0xff] }
 0x184   : > { %4297 = vmatprep.subr.bf16.mxu1 %v4296_v36  ;;  %4203 = vmatpush1.bf16.msra.mxu0 %v4202_v38  ;;  %v4302_v58 = vpack.c.bf16 %v2745_v56, %v2743_v55  ;;  %v2374_v36 = vld [vmem:[%s6236_s5 + $0x168] sm:$0xff]  ;;  %v2376_v38 = vld [vmem:[%s6236_s5 + $0x178] sm:$0xff] }
 0x185   : > { %v5539_v6 = vpop.f32.mrb[22].mxu1  ;;  %4299 = vmatpush1.bf16.msra.mxu1 %v4298_v42  ;;  %4205 = vmatprep.subr.bf16.mxu0 %v4204_v48  ;;  %v4216_v40 = vpack.c.bf16 %v2376_v38, %v2374_v36  ;;  %v2375_v42 = vld [vmem:[%s6236_s5 + $0x170] sm:$0xff]  ;;  %v2760_v55 = vld [vmem:[%s6237_s6 + $0x188] sm:$0xff]  ;;  %v2767_v38 = vld [vmem:[%s6237_s6 + $0x1c0] sm:$0xff] }
 0x186   : > { %4065 = vmatmul.mubr.msk.f32.gmra.mrb[128].mxu1 %vm405_vm2, %v1851_v52  ;;  %3667 = vmatmul.mubr.msk.f32.gmra.mrb[24].mxu0 %vm405_vm2, %v1851_v52  ;;  %v3851_v0 = vpop.f32.mrb[23].mxu1 }
 0x187   : > { %v4210_v0 = vpack.c.bf16 %v2367_v5, %v2365_v4 }
 0x188   : > { %4207 = vmatpush1.bf16.msra.mxu0 %v4206_v54  ;;  %v2380_v54 = vld [vmem:[%s6236_s5 + $0x198] sm:$0xff] }
 0x189   : > { %v5567_v21 = vpop.f32.mrb[24].mxu1  ;;  %4209 = vmatprep.subr.bf16.mxu0 %v4208_v3 }
 0x18a   : > { %v3854_v24 = vpop.f32.mrb[25].mxu1 }
 0x18c   : > { %4211 = vmatpush1.bf16.msra.mxu0 %v4210_v0  ;;  %v2384_v0 = vld [vmem:[%s6236_s5 + $0x1b8] sm:$0xff] }
 0x18d   : > { %v985_v41 = vpop.f32.mrb[26].mxu1  ;;  %4213 = vmatprep.subr.bf16.mxu0 %v4212_v18 }
 0x18e   : > { %v5594_v43 = vadd.f32 %v985_v41, %v5307_v19  ;;  %v3871_v44 = vpop.f32.mrb[27].mxu1  ;;  %v2746_v19 = vld [vmem:[%s6237_s6 + $0x118] sm:$0xff]  ;;  %v2373_v41 = vld [vmem:[%s6236_s5 + $0x160] sm:$0xff] }
 0x18f   : > { %v4300_v52 = vpack.c.bf16 %v2746_v19, %v2744_v47  ;;  %v4218_v45 = vpack.c.bf16 %v2375_v42, %v2373_v41  ;;  %v2757_v47 = vld [vmem:[%s6237_s6 + $0x170] sm:$0xff] }
 0x190   : > { %4215 = vmatpush1.bf16.msra.mxu0 %v4214_v26  ;;  %v4314_v19 = vpack.c.bf16 %v2757_v47, %v2755_v46  ;;  %v2388_v26 = vld [vmem:[%s6236_s5 + $0x1d8] sm:$0xff]  ;;  %v2772_v46 = vld [vmem:[%s6237_s6 + $0x1e8] sm:$0xff] }
 0x191   : > { %v990_v57 = vpop.f32.mrb[28].mxu1  ;;  %4301 = vmatprep.subr.bf16.mxu1 %v4300_v52  ;;  %4217 = vmatprep.subr.bf16.mxu0 %v4216_v40  ;;  %v2378_v52 = vld [vmem:[%s6236_s5 + $0x188] sm:$0xff] }
 0x192   : > { %v5621_v59 = vadd.f32 %v990_v57, %v5315_v22  ;;  %v3874_v60 = vpop.f32.mrb[29].mxu1  ;;  %v2750_v22 = vld [vmem:[%s6237_s6 + $0x138] sm:$0xff]  ;;  %4303 = vmatpush1.bf16.msra.mxu1 %v4302_v58  ;;  %v4220_v56 = vpack.c.bf16 %v2380_v54, %v2378_v52  ;;  %v2377_v57 = vld [vmem:[%s6236_s5 + $0x180] sm:$0xff]  ;;  %v2379_v58 = vld [vmem:[%s6236_s5 + $0x190] sm:$0xff] }
 0x193   : > { %v4304_v7 = vpack.c.bf16 %v2750_v22, %v2748_v63  ;;  %v4222_v61 = vpack.c.bf16 %v2379_v58, %v2377_v57  ;;  %v2761_v63 = vld [vmem:[%s6237_s6 + $0x190] sm:$0xff]  ;;  %v2771_v54 = vld [vmem:[%s6237_s6 + $0x1e0] sm:$0xff] }
 0x194   : > { %4219 = vmatpush1.bf16.msra.mxu0 %v4218_v45  ;;  %v4318_v22 = vpack.c.bf16 %v2761_v63, %v2759_v62  ;;  %v2392_v45 = vld [vmem:[%s6236_s5 + $0x1f8] sm:$0xff] }
 0x195   : > { %v995_v10 = vpop.f32.mrb[30].mxu1  ;;  %4305 = vmatprep.subr.bf16.mxu1 %v4304_v7  ;;  %4221 = vmatprep.subr.bf16.mxu0 %v4220_v56  ;;  %v2382_v7 = vld [vmem:[%s6236_s5 + $0x1a8] sm:$0xff] }
 0x196   : > { %v5648_v12 = vadd.f32 %v995_v10, %v5323_v25  ;;  %v3877_v13 = vpop.f32.mrb[31].mxu1  ;;  %v2754_v25 = vld [vmem:[%s6237_s6 + $0x158] sm:$0xff]  ;;  %4307 = vmatpush1.bf16.msra.mxu1 %v4306_v11  ;;  %v4224_v9 = vpack.c.bf16 %v2384_v0, %v2382_v7  ;;  %v2381_v10 = vld [vmem:[%s6236_s5 + $0x1a0] sm:$0xff]  ;;  %v2383_v11 = vld [vmem:[%s6236_s5 + $0x1b0] sm:$0xff] }
 0x197   : > { %v4308_v24 = vpack.c.bf16 %v2754_v25, %v2752_v17  ;;  %v4226_v14 = vpack.c.bf16 %v2383_v11, %v2381_v10  ;;  %v2765_v17 = vld [vmem:[%s6237_s6 + $0x1b0] sm:$0xff] }
 0x198   : > { %4223 = vmatpush1.bf16.msra.mxu0 %v4222_v61  ;;  %v4322_v25 = vpack.c.bf16 %v2765_v17, %v2763_v15 }
 0x199   : > { %v1000_v30 = vpop.f32.mrb[32].mxu1  ;;  %4309 = vmatprep.subr.bf16.mxu1 %v4308_v24  ;;  %4225 = vmatprep.subr.bf16.mxu0 %v4224_v9  ;;  %v2386_v24 = vld [vmem:[%s6236_s5 + $0x1c8] sm:$0xff] }
 0x19a   : > { %v5675_v33 = vadd.f32 %v1000_v30, %v5331_v28  ;;  %v3880_v34 = vpop.f32.mrb[33].mxu1  ;;  %v2758_v28 = vld [vmem:[%s6237_s6 + $0x178] sm:$0xff]  ;;  %4311 = vmatpush1.bf16.msra.mxu1 %v4310_v32  ;;  %v4228_v29 = vpack.c.bf16 %v2388_v26, %v2386_v24  ;;  %v2385_v30 = vld [vmem:[%s6236_s5 + $0x1c0] sm:$0xff]  ;;  %v2387_v32 = vld [vmem:[%s6236_s5 + $0x1d0] sm:$0xff] }
 0x19b   : > { %v4312_v44 = vpack.c.bf16 %v2758_v28, %v2756_v39  ;;  %v4230_v36 = vpack.c.bf16 %v2387_v32, %v2385_v30  ;;  %v2769_v39 = vld [vmem:[%s6237_s6 + $0x1d0] sm:$0xff] }
 0x19c   : > { %4227 = vmatpush1.bf16.msra.mxu0 %v4226_v14  ;;  %v4326_v28 = vpack.c.bf16 %v2769_v39, %v2767_v38 }
 0x19d   : > { %v1005_v48 = vpop.f32.mrb[34].mxu1  ;;  %4313 = vmatprep.subr.bf16.mxu1 %v4312_v44  ;;  %4229 = vmatprep.subr.bf16.mxu0 %v4228_v29  ;;  %v2390_v44 = vld [vmem:[%s6236_s5 + $0x1e8] sm:$0xff] }
 0x19e   : > { %v5702_v50 = vadd.f32 %v1005_v48, %v5339_v31  ;;  %v3883_v51 = vpop.f32.mrb[35].mxu1  ;;  %v2762_v31 = vld [vmem:[%s6237_s6 + $0x198] sm:$0xff]  ;;  %4315 = vmatpush1.bf16.msra.mxu1 %v4314_v19  ;;  %v4232_v47 = vpack.c.bf16 %v2392_v45, %v2390_v44  ;;  %v2389_v48 = vld [vmem:[%s6236_s5 + $0x1e0] sm:$0xff]  ;;  %v2391_v19 = vld [vmem:[%s6236_s5 + $0x1f0] sm:$0xff] }
 0x19f   : > { %v4316_v60 = vpack.c.bf16 %v2762_v31, %v2760_v55  ;;  %v4234_v52 = vpack.c.bf16 %v2391_v19, %v2389_v48  ;;  %v2773_v55 = vld [vmem:[%s6237_s6 + $0x1f0] sm:$0xff] }
 0x1a0   : > { %4231 = vmatpush1.bf16.msra.mxu0 %v4230_v36  ;;  %v4330_v31 = vpack.c.bf16 %v2773_v55, %v2771_v54 }
 0x1a1   : > { %v1010_v3 = vpop.f32.mrb[36].mxu1  ;;  %4317 = vmatprep.subr.bf16.mxu1 %v4316_v60  ;;  %4233 = vmatprep.subr.bf16.mxu0 %v4232_v47 }
 0x1a2   : > { %v5729_v4 = vadd.f32 %v1010_v3, %v5348_v35  ;;  %v3886_v5 = vpop.f32.mrb[37].mxu1  ;;  %v2766_v35 = vld [vmem:[%s6237_s6 + $0x1b8] sm:$0xff]  ;;  %4319 = vmatpush1.bf16.msra.mxu1 %v4318_v22 }
 0x1a3   : > { %v4320_v13 = vpack.c.bf16 %v2766_v35, %v2764_v8  ;;  %v2394_v35 = vld [vmem:[%s6236_s5 + $0x208] sm:$0xff] }
 0x1a4   : > { %4235 = vmatpush1.bf16.msra.mxu0 %v4234_v52 }
 0x1a5   : > { %v1015_v18 = vpop.f32.mrb[38].mxu1  ;;  %4321 = vmatprep.subr.bf16.mxu1 %v4320_v13 }
 0x1a6   : > { %v5756_v20 = vadd.f32 %v1015_v18, %v5380_v49  ;;  %v3889_v23 = vpop.f32.mrb[39].mxu1  ;;  %v2770_v49 = vld [vmem:[%s6237_s6 + $0x1d8] sm:$0xff]  ;;  %4323 = vmatpush1.bf16.msra.mxu1 %v4322_v25 }
 0x1a7   : > { %v4324_v34 = vpack.c.bf16 %v2770_v49, %v2768_v27 }
 0x1a9   : > { %v1020_v40 = vpop.f32.mrb[40].mxu1  ;;  %4325 = vmatprep.subr.bf16.mxu1 %v4324_v34 }
 0x1aa   : > { %v5783_v41 = vadd.f32 %v1020_v40, %v5412_v2  ;;  %v3892_v42 = vpop.f32.mrb[41].mxu1  ;;  %v2774_v2 = vld [vmem:[%s6237_s6 + $0x1f8] sm:$0xff]  ;;  %4327 = vmatpush1.bf16.msra.mxu1 %v4326_v28 }
 0x1ab   : > { %v4328_v51 = vpack.c.bf16 %v2774_v2, %v2772_v46 }
 0x1ad   : > { %v1025_v56 = vpop.f32.mrb[42].mxu1  ;;  %4329 = vmatprep.subr.bf16.mxu1 %v4328_v51 }
 0x1ae   : > { %v1026_v57 = vadd.f32 %v1025_v56, %v5444_v16  ;;  %v3895_v58 = vpop.f32.mrb[43].mxu1  ;;  %4331 = vmatpush1.bf16.msra.mxu1 %v4330_v31 }
 0x1b1   : > { %v1030_v60 = vpop.f32.mrb[44].mxu1 }
 0x1b2   : > { %v1031_v61 = vadd.f32 %v1030_v60, %v5476_v37  ;;  %v3898_v62 = vpop.f32.mrb[45].mxu1  ;;  %v2396_v37 = vld [vmem:[%s6236_s5 + $0x218] sm:$0xff] }
 0x1b3   : > { %v4236_v10 = vpack.c.bf16 %v2396_v37, %v2394_v35 }
 0x1b5   : > { %v1035_v63 = vpop.f32.mrb[46].mxu1  ;;  %4237 = vmatprep.subr.bf16.mxu0 %v4236_v10 }
 0x1b6   : > { %v1036_v3 = vadd.f32 %v1035_v63, %v5508_v53  ;;  %v3901_v22 = vpop.f32.mrb[47].mxu1  ;;  %v2776_v53 = vld [vmem:[%s6237_s6 + $0x208] sm:$0xff] }
 0x1b9   : > { %v1040_v5 = vpop.f32.mrb[48].mxu1 }
 0x1ba   : > { %v1041_v7 = vadd.f32 %v1040_v5, %v5539_v6  ;;  %v3904_v0 = vpop.f32.mrb[49].mxu1  ;;  %v2778_v6 = vld [vmem:[%s6237_s6 + $0x218] sm:$0xff] }
 0x1bb   : > { %v4332_v11 = vpack.c.bf16 %v2778_v6, %v2776_v53 }
 0x1bd   : > { %v1045_v8 = vpop.f32.mrb[50].mxu1  ;;  %4333 = vmatprep.subr.bf16.mxu1 %v4332_v11 }
 0x1be   : > { %v1046_v9 = vadd.f32 %v1045_v8, %v5567_v21  ;;  %v3907_v16 = vpop.f32.mrb[51].mxu1 }
 0x1c1   : > { %v1341_v21 = vpop.f32.mrb[52].mxu1 }
 0x1c2   : > { %v1407_v13 = vadd.f32 %v1341_v21, %v5594_v43  ;;  %v3924_v14 = vpop.f32.mrb[53].mxu1 }
 0x1c5   : > { %v1346_v15 = vpop.f32.mrb[54].mxu1 }
 0x1c6   : > { %v1410_v17 = vadd.f32 %v1346_v15, %v5621_v59  ;;  %v3927_v18 = vpop.f32.mrb[55].mxu1 }
 0x1c9   : > { %v1351_v25 = vpop.f32.mrb[56].mxu1 }
 0x1ca   : > { %v1413_v23 = vadd.f32 %v1351_v25, %v5648_v12  ;;  %v3930_v24 = vpop.f32.mrb[57].mxu1  ;;  %v2236_v25 = vlaneseq }
 0x1cd   : > { %v1356_v26 = vpop.f32.mrb[58].mxu1 }
 0x1ce   : > { %v1416_v27 = vadd.f32 %v1356_v26, %v5675_v33  ;;  %v3933_v29 = vpop.f32.mrb[59].mxu1 }
 0x1d1   : > { %v1361_v49 = vpop.f32.mrb[60].mxu1 }
 0x1d2   : > { %v1419_v30 = vadd.f32 %v1361_v49, %v5702_v50  ;;  %v3936_v32 = vpop.f32.mrb[61].mxu1 }
 0x1d5   : > { %v1366_v34 = vpop.f32.mrb[62].mxu1 }
 0x1d6   : > { %v1422_v43 = vadd.f32 %v1366_v34, %v5729_v4  ;;  %v3939_v36 = vpop.f32.mrb[63].mxu1  ;;  %v5859_v34 = vld [vmem:[#allocation4] sm:$0x7] }
 0x1d9   : > { %v1371_v38 = vpop.f32.mrb[64].mxu1 }
 0x1da   : > { %v1425_v59 = vadd.f32 %v1371_v38, %v5756_v20  ;;  %v3942_v39 = vpop.f32.mrb[65].mxu1 }
 0x1dd   : > { %v1376_v40 = vpop.f32.mrb[66].mxu1 }
 0x1de   : > { %v1428_v12 = vadd.f32 %v1376_v40, %v5783_v41  ;;  %v3945_v28 = vpop.f32.mrb[67].mxu1 }
 0x1e1   : > { %v1381_v42 = vpop.f32.mrb[68].mxu1 }
 0x1e2   : > { %v1431_v44 = vadd.f32 %v1381_v42, %v1026_v57  ;;  %v3948_v33 = vpop.f32.mrb[69].mxu1  ;;  %v2393_v42 = vld [vmem:[%s6236_s5 + $0x200] sm:$0xff] }
 0x1e3   : > { %v2775_v33 = vld [vmem:[%s6237_s6 + $0x200] sm:$0xff] }
 0x1e5   : > { %v1386_v45 = vpop.f32.mrb[70].mxu1 }
 0x1e6   : > { %v1434_v46 = vadd.f32 %v1386_v45, %v1031_v61  ;;  %v3951_v47 = vpop.f32.mrb[71].mxu1 }
 0x1e9   : > { %v1391_v50 = vpop.f32.mrb[72].mxu1 }
 0x1ea   : > { %v1437_v2 = vadd.f32 %v1391_v50, %v1036_v3  ;;  %v3954_v48 = vpop.f32.mrb[73].mxu1 }
 0x1eb   : > { %v2398_v48 = vld [vmem:[%s6236_s5 + $0x228] sm:$0xff] }
 0x1ed   : > { %v1396_v19 = vpop.f32.mrb[74].mxu1 }
 0x1ee   : > { %v1440_v4 = vadd.f32 %v1396_v19, %v1041_v7  ;;  %v3957_v51 = vpop.f32.mrb[75].mxu1  ;;  %v2400_v19 = vld [vmem:[%s6236_s5 + $0x238] sm:$0xff] }
 0x1ef   : > { %v2780_v51 = vld [vmem:[%s6237_s6 + $0x228] sm:$0xff] }
 0x1f1   : > { %v1401_v52 = vpop.f32.mrb[76].mxu1 }
 0x1f2   : > { %v1443_v54 = vadd.f32 %v1401_v52, %v1046_v9  ;;  %v3960_v20 = vpop.f32.mrb[77].mxu1  ;;  %v2782_v52 = vld [vmem:[%s6237_s6 + $0x238] sm:$0xff] }
 0x1f5   : > { %v1736_v55 = vpop.f32.mrb[78].mxu1 }
 0x1f6   : > { %v1802_v56 = vadd.f32 %v1736_v55, %v1407_v13  ;;  %v3977_v31 = vpop.f32.mrb[79].mxu1 }
 0x1f9   : > { %v1741_v41 = vpop.f32.mrb[80].mxu1 }
 0x1fa   : > { %v5834_v58 = vadd.f32 %v1741_v41, %v1410_v17  ;;  %v3980_v57 = vpop.f32.mrb[81].mxu1  ;;  %v4240_v41 = vpack.c.bf16 %v2400_v19, %v2398_v48 }
 0x1fb   : > { %v2397_v57 = vld [vmem:[%s6236_s5 + $0x220] sm:$0xff] }
 0x1fd   : > { %v1746_v60 = vpop.f32.mrb[82].mxu1 }
 0x1fe   : > { %v5836_v62 = vadd.f32 %v1746_v60, %v1413_v23  ;;  %v3983_v61 = vpop.f32.mrb[83].mxu1  ;;  %v2399_v60 = vld [vmem:[%s6236_s5 + $0x230] sm:$0xff] }
 0x1ff   : > { %v2779_v61 = vld [vmem:[%s6237_s6 + $0x220] sm:$0xff] }
 0x201   : > { %v1751_v63 = vpop.f32.mrb[84].mxu1 }
 0x202   : > { %v5838_v3 = vadd.f32 %v1751_v63, %v1416_v27  ;;  %v3986_v22 = vpop.f32.mrb[85].mxu1  ;;  %v5854_v27 = vshrl.u32 %v2236_v25, 7  ;;  %v4242_v25 = vpack.c.bf16 %v2399_v60, %v2397_v57 }
 0x204   : > { %v2238_v32 = vsub.s32 0, %v5854_v27 }
 0x205   : > { %v1756_v5 = vpop.f32.mrb[86].mxu1 }
 0x206   : > { %v5840_v7 = vadd.f32 %v1756_v5, %v1419_v30  ;;  %v3989_v0 = vpop.f32.mrb[87].mxu1  ;;  %v5865_v39 = vrot.slane %v5859_v34, %v2238_v32  ;;  %v2783_v32 = vld [vmem:[%s6237_s6 + $0x240] sm:$0xff] }
 0x209   : > { %v1761_v8 = vpop.f32.mrb[88].mxu1 }
 0x20a   : > { %v5842_v9 = vadd.f32 %v1761_v8, %v1422_v43  ;;  %v3992_v16 = vpop.f32.mrb[89].mxu1  ;;  %v2242_v43 = vsub.s32 1, %v5854_v27 }
 0x20b   : > { %v4336_v16 = vpack.c.bf16 %v2782_v52, %v2780_v51 }
 0x20c   : > { %v5868_v40 = vrot.slane %v5859_v34, %v2242_v43 }
 0x20d   : > { %v1766_v35 = vpop.f32.mrb[90].mxu1 }
 0x20e   : > { %v5844_v37 = vadd.f32 %v1766_v35, %v1425_v59  ;;  %v3995_v53 = vpop.f32.mrb[91].mxu1  ;;  %v2781_v35 = vld [vmem:[%s6237_s6 + $0x230] sm:$0xff] }
 0x20f   : > { %v2402_v53 = vld [vmem:[%s6236_s5 + $0x248] sm:$0xff] }
 0x211   : > { %v1771_v10 = vpop.f32.mrb[92].mxu1 }
 0x212   : > { %v5846_v6 = vadd.f32 %v1771_v10, %v1428_v12  ;;  %v3998_v11 = vpop.f32.mrb[93].mxu1  ;;  %v2404_v10 = vld [vmem:[%s6236_s5 + $0x258] sm:$0xff] }
 0x213   : > { %v2784_v11 = vld [vmem:[%s6237_s6 + $0x248] sm:$0xff] }
 0x215   : > { %v1776_v21 = vpop.f32.mrb[94].mxu1 }
 0x216   : > { %v5848_v13 = vadd.f32 %v1776_v21, %v1431_v44  ;;  %v4001_v14 = vpop.f32.mrb[95].mxu1  ;;  %v2395_v44 = vld [vmem:[%s6236_s5 + $0x210] sm:$0xff]  ;;  %v2786_v21 = vld [vmem:[%s6237_s6 + $0x258] sm:$0xff] }
 0x219   : > { %v1781_v15 = vpop.f32.mrb[96].mxu1 }
 0x21a   : > { %v5850_v17 = vadd.f32 %v1781_v15, %v1434_v46  ;;  %v4004_v18 = vpop.f32.mrb[97].mxu1 }
 0x21d   : > { %v1786_v23 = vpop.f32.mrb[98].mxu1 }
 0x21e   : > { %v5852_v24 = vadd.f32 %v1786_v23, %v1437_v2  ;;  %v4007_v26 = vpop.f32.mrb[99].mxu1  ;;  %v2777_v2 = vld [vmem:[%s6237_s6 + $0x210] sm:$0xff]  ;;  %v4338_v23 = vpack.c.bf16 %v2781_v35, %v2779_v61 }
 0x21f   : > { %v4334_v31 = vpack.c.bf16 %v2777_v2, %v2775_v33  ;;  %v4244_v26 = vpack.c.bf16 %v2404_v10, %v2402_v53  ;;  %v2406_v33 = vld [vmem:[%s6236_s5 + $0x268] sm:$0xff] }
 0x221   : > { %v1791_v29 = vpop.f32.mrb[100].mxu1 }
 0x222   : > { %v5856_v49 = vadd.f32 %v1791_v29, %v1440_v4  ;;  %v4010_v30 = vpop.f32.mrb[101].mxu1  ;;  %v2401_v29 = vld [vmem:[%s6236_s5 + $0x240] sm:$0xff] }
 0x223   : > { %v2403_v30 = vld [vmem:[%s6236_s5 + $0x250] sm:$0xff] }
 0x225   : > { %v1796_v36 = vpop.f32.mrb[102].mxu1 }
 0x226   : > { %v5862_v38 = vadd.f32 %v1796_v36, %v1443_v54  ;;  %v4013_v59 = vpop.f32.mrb[103].mxu1 }
 0x229   : > { %v2131_v12 = vpop.f32.mrb[104].mxu1  ;;  %v1988_v28 = vpop.f32.mrb[0].mxu0 }
 0x22a   : > { %v5879_v45 = vadd.f32 %v2131_v12, %v1802_v56  ;;  %v2251_v46 = vadd.f32 %v5865_v39, %v1988_v28  ;;  %v1990_v47 = vpop.f32.mrb[1].mxu0  ;;  %v4030_v50 = vpop.f32.mrb[105].mxu1  ;;  %v4238_v56 = vpack.c.bf16 %v2395_v44, %v2393_v42  ;;  %v4340_v42 = vpack.c.bf16 %v2786_v21, %v2784_v11  ;;  %v2785_v44 = vld [vmem:[%s6237_s6 + $0x250] sm:$0xff] }
 0x22b   : > { %v2252_v4 = vadd.f32 %v5868_v40, %v1990_v47  ;;  %v2788_v47 = vld [vmem:[%s6237_s6 + $0x268] sm:$0xff]  ;;  %v2790_v50 = vld [vmem:[%s6237_s6 + $0x278] sm:$0xff]  ;;  %v4342_v51 = vpack.c.bf16 %v2785_v44, %v2783_v32 }
 0x22c   : > { %v2290_v63 = vmax.f32 %v2251_v46, 0.0  ;;  %v4344_v61 = vpack.c.bf16 %v2790_v50, %v2788_v47 }
 0x22d   : > { %v2291_v54 = vmax.f32 %v2252_v4, 0.0  ;;  %v2136_v20 = vpop.f32.mrb[106].mxu1  ;;  %v1994_v55 = vpop.f32.mrb[2].mxu0  ;;  %v4246_v4 = vpack.c.bf16 %v2403_v30, %v2401_v29 }
 0x22e   : > { %v5908_v22 = vadd.f32 %v2136_v20, %v5834_v58  ;;  %v2254_v5 = vadd.f32 %v5865_v39, %v1994_v55  ;;  %v1996_v0 = vpop.f32.mrb[3].mxu0  ;;  %v4033_v8 = vpop.f32.mrb[107].mxu1  ;;  %v2407_v20 = vld [vmem:[%s6236_s5 + $0x270] sm:$0xff]  ;;  %v2787_v55 = vld [vmem:[%s6237_s6 + $0x260] sm:$0xff] }
 0x22f   : > { %v2255_v58 = vadd.f32 %v5868_v40, %v1996_v0  ;;  %2489 = vmatprep.mubr.f32.mxu0 %v2291_v54  ;;  %2871 = vmatprep.mubr.f32.mxu1 %v2291_v54  ;;  %v2405_v54 = vld [vmem:[%s6236_s5 + $0x260] sm:$0xff]  ;;  %v2792_v8 = vld [vmem:[%s6237_s6 + $0x288] sm:$0xff] }
 0x230   : > { %2490 = vmatmul.mubr.f32.vlgmr.msra.gmra.mrb[26].mxu0 %v2290_v63  ;;  %2872 = vmatmul.mubr.f32.vlgmr.msra.gmra.mrb[130].mxu1 %v2290_v63  ;;  %v2293_v43 = vmax.f32 %v2254_v5, 0.0  ;;  %v2789_v63 = vld [vmem:[%s6237_s6 + $0x270] sm:$0xff]  ;;  %v2410_v5 = vld [vmem:[%s6236_s5 + $0x288] sm:$0xff] }
 0x231   : > { %v2294_v14 = vmax.f32 %v2255_v58, 0.0  ;;  %v2141_v15 = vpop.f32.mrb[108].mxu1  ;;  %v2000_v18 = vpop.f32.mrb[4].mxu0  ;;  %4239 = vmatpush1.bf16.msra.mxu0 %v4238_v56  ;;  %4335 = vmatpush1.bf16.msra.mxu1 %v4334_v31  ;;  %v4250_v58 = vpack.c.bf16 %v2407_v20, %v2405_v54  ;;  %v4346_v11 = vpack.c.bf16 %v2789_v63, %v2787_v55 }
 0x232   : > { %v5937_v36 = vadd.f32 %v2141_v15, %v5836_v62  ;;  %v2257_v59 = vadd.f32 %v5865_v39, %v2000_v18  ;;  %v2002_v12 = vpop.f32.mrb[5].mxu0  ;;  %v4036_v28 = vpop.f32.mrb[109].mxu1  ;;  %4241 = vmatprep.subr.bf16.mxu0 %v4240_v41  ;;  %4337 = vmatprep.subr.bf16.mxu1 %v4336_v16  ;;  %v2408_v62 = vld [vmem:[%s6236_s5 + $0x278] sm:$0xff]  ;;  %v2411_v15 = vld [vmem:[%s6236_s5 + $0x290] sm:$0xff]  ;;  %v2791_v18 = vld [vmem:[%s6237_s6 + $0x280] sm:$0xff] }
 0x233   : > { %v2258_v46 = vadd.f32 %v5868_v40, %v2002_v12  ;;  %2495 = vmatprep.mubr.f32.mxu0 %v2294_v14  ;;  %2877 = vmatprep.mubr.f32.mxu1 %v2294_v14  ;;  %v4248_v52 = vpack.c.bf16 %v2408_v62, %v2406_v33  ;;  %v2794_v16 = vld [vmem:[%s6237_s6 + $0x298] sm:$0xff]  ;;  %v2409_v14 = vld [vmem:[%s6236_s5 + $0x280] sm:$0xff]  ;;  %v2796_v28 = vld [vmem:[%s6237_s6 + $0x2a8] sm:$0xff] }
 0x234   : > { %2496 = vmatmul.mubr.f32.gmra.mrb[28].mxu0 %v2293_v43  ;;  %2878 = vmatmul.mubr.f32.gmra.mrb[132].mxu1 %v2293_v43  ;;  %v2296_v56 = vmax.f32 %v2257_v59, 0.0  ;;  %v4348_v32 = vpack.c.bf16 %v2794_v16, %v2792_v8  ;;  %v2793_v43 = vld [vmem:[%s6237_s6 + $0x290] sm:$0xff]  ;;  %v2414_v59 = vld [vmem:[%s6236_s5 + $0x2a8] sm:$0xff] }
 0x235   : > { %v2297_v2 = vmax.f32 %v2258_v46, 0.0  ;;  %v2146_v48 = vpop.f32.mrb[110].mxu1  ;;  %v2006_v19 = vpop.f32.mrb[6].mxu0  ;;  %4243 = vmatpush1.bf16.msra.mxu0 %v4242_v25  ;;  %4339 = vmatpush1.bf16.msra.mxu1 %v4338_v23  ;;  %v4254_v46 = vpack.c.bf16 %v2411_v15, %v2409_v14  ;;  %v4350_v47 = vpack.c.bf16 %v2793_v43, %v2791_v18 }
 0x236   : > { %v5966_v31 = vadd.f32 %v2146_v48, %v5838_v3  ;;  %v2260_v41 = vadd.f32 %v5865_v39, %v2006_v19  ;;  %v2008_v57 = vpop.f32.mrb[7].mxu0  ;;  %v4039_v60 = vpop.f32.mrb[111].mxu1  ;;  %4245 = vmatprep.subr.bf16.mxu0 %v4244_v26  ;;  %4341 = vmatprep.subr.bf16.mxu1 %v4340_v42  ;;  %v2412_v3 = vld [vmem:[%s6236_s5 + $0x298] sm:$0xff]  ;;  %v2415_v48 = vld [vmem:[%s6236_s5 + $0x2b0] sm:$0xff]  ;;  %v2795_v19 = vld [vmem:[%s6237_s6 + $0x2a0] sm:$0xff] }
 0x237   : > { %v2261_v0 = vadd.f32 %v5868_v40, %v2008_v57  ;;  %2501 = vmatprep.mubr.f32.mxu0 %v2297_v2  ;;  %2883 = vmatprep.mubr.f32.mxu1 %v2297_v2  ;;  %v4252_v21 = vpack.c.bf16 %v2412_v3, %v2410_v5  ;;  %v2798_v42 = vld [vmem:[%s6237_s6 + $0x2b8] sm:$0xff]  ;;  %v2413_v2 = vld [vmem:[%s6236_s5 + $0x2a0] sm:$0xff]  ;;  %v2800_v60 = vld [vmem:[%s6237_s6 + $0x2c8] sm:$0xff] }
 0x238   : > { %2502 = vmatmul.mubr.f32.gmra.mrb[30].mxu0 %v2296_v56  ;;  %2884 = vmatmul.mubr.f32.gmra.mrb[134].mxu1 %v2296_v56  ;;  %v2299_v25 = vmax.f32 %v2260_v41, 0.0  ;;  %v4352_v55 = vpack.c.bf16 %v2798_v42, %v2796_v28  ;;  %v2797_v56 = vld [vmem:[%s6237_s6 + $0x2b0] sm:$0xff]  ;;  %v2418_v41 = vld [vmem:[%s6236_s5 + $0x2c8] sm:$0xff] }
 0x239   : > { %v2300_v35 = vmax.f32 %v2261_v0, 0.0  ;;  %v2151_v53 = vpop.f32.mrb[112].mxu1  ;;  %v2012_v10 = vpop.f32.mrb[8].mxu0  ;;  %4247 = vmatpush1.bf16.msra.mxu0 %v4246_v4  ;;  %4343 = vmatpush1.bf16.msra.mxu1 %v4342_v51  ;;  %v4258_v0 = vpack.c.bf16 %v2415_v48, %v2413_v2  ;;  %v4354_v8 = vpack.c.bf16 %v2797_v56, %v2795_v19  ;;  %v2423_v48 = vld [vmem:[%s6236_s5 + $0x2f0] sm:$0xff]  ;;  %v2803_v19 = vld [vmem:[%s6237_s6 + $0x2e0] sm:$0xff] }
 0x23a   : > { %v5995_v23 = vadd.f32 %v2151_v53, %v5840_v7  ;;  %v2263_v26 = vadd.f32 %v5865_v39, %v2012_v10  ;;  %v2014_v29 = vpop.f32.mrb[9].mxu0  ;;  %v4042_v30 = vpop.f32.mrb[113].mxu1  ;;  %4249 = vmatprep.subr.bf16.mxu0 %v4248_v52  ;;  %4345 = vmatprep.subr.bf16.mxu1 %v4344_v61  ;;  %v2416_v7 = vld [vmem:[%s6236_s5 + $0x2b8] sm:$0xff]  ;;  %v2419_v53 = vld [vmem:[%s6236_s5 + $0x2d0] sm:$0xff]  ;;  %v2799_v10 = vld [vmem:[%s6237_s6 + $0x2c0] sm:$0xff] }
 0x23b   : > { %v2264_v12 = vadd.f32 %v5868_v40, %v2014_v29  ;;  %2507 = vmatprep.mubr.f32.mxu0 %v2300_v35  ;;  %2889 = vmatprep.mubr.f32.mxu1 %v2300_v35  ;;  %v4256_v50 = vpack.c.bf16 %v2416_v7, %v2414_v59  ;;  %v2802_v61 = vld [vmem:[%s6237_s6 + $0x2d8] sm:$0xff]  ;;  %v2417_v35 = vld [vmem:[%s6236_s5 + $0x2c0] sm:$0xff]  ;;  %v2804_v30 = vld [vmem:[%s6237_s6 + $0x2e8] sm:$0xff] }
 0x23c   : > { %2508 = vmatmul.mubr.f32.gmra.mrb[32].mxu0 %v2299_v25  ;;  %2890 = vmatmul.mubr.f32.gmra.mrb[136].mxu1 %v2299_v25  ;;  %v2302_v4 = vmax.f32 %v2263_v26, 0.0  ;;  %v4356_v18 = vpack.c.bf16 %v2802_v61, %v2800_v60  ;;  %v2801_v25 = vld [vmem:[%s6237_s6 + $0x2d0] sm:$0xff]  ;;  %v2422_v26 = vld [vmem:[%s6236_s5 + $0x2e8] sm:$0xff] }
 0x23d   : > { %v2303_v44 = vmax.f32 %v2264_v12, 0.0  ;;  %v2156_v33 = vpop.f32.mrb[114].mxu1  ;;  %v2018_v62 = vpop.f32.mrb[10].mxu0  ;;  %4251 = vmatpush1.bf16.msra.mxu0 %v4250_v58  ;;  %4347 = vmatpush1.bf16.msra.mxu1 %v4346_v11  ;;  %v4262_v12 = vpack.c.bf16 %v2419_v53, %v2417_v35  ;;  %v4358_v28 = vpack.c.bf16 %v2801_v25, %v2799_v10 }
 0x23e   : > { %v6024_v51 = vadd.f32 %v2156_v33, %v5842_v9  ;;  %v2266_v52 = vadd.f32 %v5865_v39, %v2018_v62  ;;  %v2020_v54 = vpop.f32.mrb[11].mxu0  ;;  %v4045_v20 = vpop.f32.mrb[115].mxu1  ;;  %4253 = vmatprep.subr.bf16.mxu0 %v4252_v21  ;;  %4349 = vmatprep.subr.bf16.mxu1 %v4348_v32  ;;  %v2420_v9 = vld [vmem:[%s6236_s5 + $0x2d8] sm:$0xff] }
 0x23f   : > { %v2267_v57 = vadd.f32 %v5868_v40, %v2020_v54  ;;  %2513 = vmatprep.mubr.f32.mxu0 %v2303_v44  ;;  %2895 = vmatprep.mubr.f32.mxu1 %v2303_v44  ;;  %v4260_v16 = vpack.c.bf16 %v2420_v9, %v2418_v41  ;;  %v2806_v32 = vld [vmem:[%s6237_s6 + $0x2f8] sm:$0xff]  ;;  %v2421_v44 = vld [vmem:[%s6236_s5 + $0x2e0] sm:$0xff] }
 0x240   : > { %2514 = vmatmul.mubr.f32.gmra.mrb[34].mxu0 %v2302_v4  ;;  %2896 = vmatmul.mubr.f32.gmra.mrb[138].mxu1 %v2302_v4  ;;  %v2305_v58 = vmax.f32 %v2266_v52, 0.0  ;;  %v4360_v2 = vpack.c.bf16 %v2806_v32, %v2804_v30 }
 0x241   : > { %v2306_v63 = vmax.f32 %v2267_v57, 0.0  ;;  %v2161_v5 = vpop.f32.mrb[116].mxu1  ;;  %v2024_v3 = vpop.f32.mrb[12].mxu0  ;;  %4255 = vmatpush1.bf16.msra.mxu0 %v4254_v46  ;;  %4351 = vmatpush1.bf16.msra.mxu1 %v4350_v47 }
 0x242   : > { %v6053_v11 = vadd.f32 %v2161_v5, %v5844_v37  ;;  %v2269_v21 = vadd.f32 %v5865_v39, %v2024_v3  ;;  %v2026_v14 = vpop.f32.mrb[13].mxu0  ;;  %v4048_v15 = vpop.f32.mrb[117].mxu1  ;;  %4257 = vmatprep.subr.bf16.mxu0 %v4256_v50  ;;  %4353 = vmatprep.subr.bf16.mxu1 %v4352_v55  ;;  %v2424_v37 = vld [vmem:[%s6236_s5 + $0x2f8] sm:$0xff]  ;;  %v4266_v55 = vpack.c.bf16 %v2423_v48, %v2421_v44 }
 0x243   : > { %v2270_v29 = vadd.f32 %v5868_v40, %v2026_v14  ;;  %2519 = vmatprep.mubr.f32.mxu0 %v2306_v63  ;;  %2901 = vmatprep.mubr.f32.mxu1 %v2306_v63  ;;  %v4264_v42 = vpack.c.bf16 %v2424_v37, %v2422_v26 }
 0x244   : > { %2520 = vmatmul.mubr.f32.gmra.mrb[36].mxu0 %v2305_v58  ;;  %2902 = vmatmul.mubr.f32.gmra.mrb[140].mxu1 %v2305_v58  ;;  %v2308_v33 = vmax.f32 %v2269_v21, 0.0 }
 0x245   : > { %v2309_v43 = vmax.f32 %v2270_v29, 0.0  ;;  %v2166_v59 = vpop.f32.mrb[118].mxu1  ;;  %v2030_v7 = vpop.f32.mrb[14].mxu0  ;;  %4259 = vmatpush1.bf16.msra.mxu0 %v4258_v0  ;;  %4355 = vmatpush1.bf16.msra.mxu1 %v4354_v8 }
 0x246   : > { %v6076_v62 = vadd.f32 %v2166_v59, %v5846_v6  ;;  %v2272_v46 = vadd.f32 %v5865_v39, %v2030_v7  ;;  %v2032_v47 = vpop.f32.mrb[15].mxu0  ;;  %v4051_v50 = vpop.f32.mrb[119].mxu1  ;;  %4261 = vmatprep.subr.bf16.mxu0 %v4260_v16  ;;  %4357 = vmatprep.subr.bf16.mxu1 %v4356_v18  ;;  %v2805_v6 = vld [vmem:[%s6237_s6 + $0x2f0] sm:$0xff] }
 0x247   : > { %v2273_v4 = vadd.f32 %v5868_v40, %v2032_v47  ;;  %2525 = vmatprep.mubr.f32.mxu0 %v2309_v43  ;;  %2907 = vmatprep.mubr.f32.mxu1 %v2309_v43  ;;  %v4362_v56 = vpack.c.bf16 %v2805_v6, %v2803_v19  ;;  %v2246_v43 = vsub.s32 2, %v5854_v27 }
 0x248   : > { %2526 = vmatmul.mubr.f32.gmra.mrb[38].mxu0 %v2308_v33  ;;  %2908 = vmatmul.mubr.f32.gmra.mrb[142].mxu1 %v2308_v33  ;;  %v2311_v41 = vmax.f32 %v2272_v46, 0.0 }
 0x249   : > { %v2312_v52 = vmax.f32 %v2273_v4, 0.0  ;;  %v2171_v54 = vpop.f32.mrb[120].mxu1  ;;  %v2036_v20 = vpop.f32.mrb[16].mxu0  ;;  %4263 = vmatpush1.bf16.msra.mxu0 %v4262_v12  ;;  %4359 = vmatpush1.bf16.msra.mxu1 %v4358_v28  ;;  %v6111_v47 = vrot.slane %v5859_v34, %v2246_v43 }
 0x24a   : > { %v6090_v9 = vadd.f32 %v2171_v54, %v5848_v13  ;;  %v2275_v57 = vadd.f32 %v5865_v39, %v2036_v20  ;;  %v2038_v60 = vpop.f32.mrb[17].mxu0  ;;  %v4054_v61 = vpop.f32.mrb[121].mxu1  ;;  %4265 = vmatprep.subr.bf16.mxu0 %v4264_v42  ;;  %4361 = vmatprep.subr.bf16.mxu1 %v4360_v2 }
 0x24b   : > { %v2276_v63 = vadd.f32 %v5868_v40, %v2038_v60  ;;  %2531 = vmatprep.mubr.f32.mxu0 %v2312_v52  ;;  %2913 = vmatprep.mubr.f32.mxu1 %v2312_v52  ;;  %v2253_v4 = vadd.f32 %v6111_v47, %v5879_v45  ;;  %v2259_v45 = vadd.f32 %v6111_v47, %v5937_v36 }
 0x24c   : > { %2532 = vmatmul.mubr.f32.gmra.mrb[40].mxu0 %v2311_v41  ;;  %2914 = vmatmul.mubr.f32.gmra.mrb[144].mxu1 %v2311_v41  ;;  %v2314_v8 = vmax.f32 %v2275_v57, 0.0  ;;  %v2265_v36 = vadd.f32 %v6111_v47, %v5995_v23  ;;  %v2271_v23 = vadd.f32 %v6111_v47, %v6053_v11  ;;  %v2277_v11 = vadd.f32 %v6111_v47, %v6090_v9 }
 0x24d   : > { %v2315_v5 = vmax.f32 %v2276_v63, 0.0  ;;  %v2176_v3 = vpop.f32.mrb[122].mxu1  ;;  %v2042_v0 = vpop.f32.mrb[18].mxu0  ;;  %4267 = vmatpush1.bf16.msra.mxu0 %v4266_v55  ;;  %4363 = vmatpush1.bf16.msra.mxu1 %v4362_v56  ;;  %v2298_v52 = vmax.f32 %v2259_v45, 0.0 }
 0x24e   : > { %v6095_v13 = vadd.f32 %v2176_v3, %v5850_v17  ;;  %v2278_v16 = vadd.f32 %v5865_v39, %v2042_v0  ;;  %v2044_v35 = vpop.f32.mrb[19].mxu0  ;;  %v4057_v53 = vpop.f32.mrb[123].mxu1  ;;  %v2304_v20 = vmax.f32 %v2265_v36, 0.0  ;;  %v2310_v56 = vmax.f32 %v2271_v23, 0.0 }
 0x24f   : > { %v2279_v10 = vadd.f32 %v5868_v40, %v2044_v35  ;;  %2537 = vmatprep.mubr.f32.mxu0 %v2315_v5  ;;  %2919 = vmatprep.mubr.f32.mxu1 %v2315_v5  ;;  %v2316_v57 = vmax.f32 %v2277_v11, 0.0 }
 0x250   : > { %2538 = vmatmul.mubr.f32.gmra.mrb[42].mxu0 %v2314_v8  ;;  %2920 = vmatmul.mubr.f32.gmra.mrb[146].mxu1 %v2314_v8  ;;  %v2317_v15 = vmax.f32 %v2278_v16, 0.0 }
 0x251   : > { %v2318_v58 = vmax.f32 %v2279_v10, 0.0  ;;  %v2181_v21 = vpop.f32.mrb[124].mxu1  ;;  %v2048_v14 = vpop.f32.mrb[20].mxu0 }
 0x252   : > { %v6100_v18 = vadd.f32 %v2181_v21, %v5852_v24  ;;  %v2281_v17 = vadd.f32 %v5865_v39, %v2048_v14  ;;  %v2050_v25 = vpop.f32.mrb[21].mxu0  ;;  %v4060_v26 = vpop.f32.mrb[125].mxu1 }
 0x253   : > { %v2282_v37 = vadd.f32 %v5868_v40, %v2050_v25  ;;  %2543 = vmatprep.mubr.f32.mxu0 %v2318_v58  ;;  %2925 = vmatprep.mubr.f32.mxu1 %v2318_v58 }
 0x254   : > { %2544 = vmatmul.mubr.f32.gmra.mrb[44].mxu0 %v2317_v15  ;;  %2926 = vmatmul.mubr.f32.gmra.mrb[148].mxu1 %v2317_v15  ;;  %v2320_v59 = vmax.f32 %v2281_v17, 0.0  ;;  %v2283_v9 = vadd.f32 %v6111_v47, %v6100_v18 }
 0x255   : > { %v2321_v29 = vmax.f32 %v2282_v37, 0.0  ;;  %v2186_v30 = vpop.f32.mrb[126].mxu1  ;;  %v2054_v32 = vpop.f32.mrb[22].mxu0 }
 0x256   : > { %v6106_v7 = vadd.f32 %v2186_v30, %v5856_v49  ;;  %v2284_v24 = vadd.f32 %v5865_v39, %v2054_v32  ;;  %v2056_v12 = vpop.f32.mrb[23].mxu0  ;;  %v4063_v28 = vpop.f32.mrb[127].mxu1  ;;  %v2322_v61 = vmax.f32 %v2283_v9, 0.0 }
 0x257   : > { %v2285_v42 = vadd.f32 %v5868_v40, %v2056_v12  ;;  %2549 = vmatprep.mubr.f32.mxu0 %v2321_v29  ;;  %2931 = vmatprep.mubr.f32.mxu1 %v2321_v29 }
 0x258   : > { %2550 = vmatmul.mubr.f32.gmra.mrb[46].mxu0 %v2320_v59  ;;  %2932 = vmatmul.mubr.f32.gmra.mrb[150].mxu1 %v2320_v59  ;;  %v2323_v27 = vmax.f32 %v2284_v24, 0.0  ;;  %v2286_v63 = vadd.f32 %v6111_v47, %v6106_v7 }
 0x259   : > { %v2324_v44 = vmax.f32 %v2285_v42, 0.0  ;;  %v2191_v33 = vpop.f32.mrb[128].mxu1  ;;  %v2060_v46 = vpop.f32.mrb[24].mxu0 }
 0x25a   : > { %v6114_v49 = vadd.f32 %v2191_v33, %v5862_v38  ;;  %v2287_v50 = vadd.f32 %v5865_v39, %v2060_v46  ;;  %v2062_v2 = vpop.f32.mrb[25].mxu0  ;;  %v4066_v48 = vpop.f32.mrb[129].mxu1  ;;  %v2292_v38 = vmax.f32 %v2253_v4, 0.0  ;;  %v2256_v39 = vadd.f32 %v6111_v47, %v5908_v22 }
 0x25b   : > { %v2288_v19 = vadd.f32 %v5868_v40, %v2062_v2  ;;  %2555 = vmatprep.mubr.f32.mxu0 %v2324_v44  ;;  %2937 = vmatprep.mubr.f32.mxu1 %v2324_v44  ;;  %v2262_v22 = vadd.f32 %v6111_v47, %v5966_v31  ;;  %v2268_v31 = vadd.f32 %v6111_v47, %v6024_v51  ;;  %v2325_v5 = vmax.f32 %v2286_v63, 0.0 }
 0x25c   : > { %2556 = vmatmul.mubr.f32.gmra.mrb[48].mxu0 %v2323_v27  ;;  %2938 = vmatmul.mubr.f32.gmra.mrb[152].mxu1 %v2323_v27  ;;  %v2326_v34 = vmax.f32 %v2287_v50, 0.0  ;;  %v2295_v40 = vmax.f32 %v2256_v39, 0.0  ;;  %v2274_v51 = vadd.f32 %v6111_v47, %v6076_v62  ;;  %v2280_v62 = vadd.f32 %v6111_v47, %v6095_v13 }
 0x25d   : > { %v2327_v6 = vmax.f32 %v2288_v19, 0.0  ;;  %v2301_v54 = vmax.f32 %v2262_v22, 0.0  ;;  %v2307_v55 = vmax.f32 %v2268_v31, 0.0  ;;  %v2289_v3 = vadd.f32 %v6111_v47, %v6114_v49 }
 0x25e   : > { %v2313_v41 = vmax.f32 %v2274_v51, 0.0  ;;  %v2319_v60 = vmax.f32 %v2280_v62, 0.0 }
 0x25f   : > { %2561 = vmatprep.mubr.f32.mxu0 %v2327_v6  ;;  %2943 = vmatprep.mubr.f32.mxu1 %v2327_v6  ;;  %v2328_v0 = vmax.f32 %v2289_v3, 0.0 }
 0x260   : > { %2562 = vmatmul.mubr.f32.gmra.mrb[50].mxu0 %v2326_v34  ;;  %2944 = vmatmul.mubr.f32.gmra.mrb[154].mxu1 %v2326_v34 }
 0x261   : > { %2632 = vmatprep.mubr.f32.mxu0 %v4768_v1  ;;  %3014 = vmatprep.mubr.f32.mxu1 %v4768_v1 }
 0x264   : > { %2633 = vmatmul.mubr.f32.vlgmr.msra.gmra.mrb[26].mxu0 %v2292_v38  ;;  %3015 = vmatmul.mubr.f32.vlgmr.msra.gmra.mrb[130].mxu1 %v2292_v38 }
 0x265   : > { %2638 = vmatprep.mubr.f32.mxu0 %v4768_v1  ;;  %3020 = vmatprep.mubr.f32.mxu1 %v4768_v1 }
 0x268   : > { %2639 = vmatmul.mubr.f32.gmra.mrb[28].mxu0 %v2295_v40  ;;  %3021 = vmatmul.mubr.f32.gmra.mrb[132].mxu1 %v2295_v40 }
 0x269   : > { %2644 = vmatprep.mubr.f32.mxu0 %v4768_v1  ;;  %3026 = vmatprep.mubr.f32.mxu1 %v4768_v1 }
 0x26c   : > { %2645 = vmatmul.mubr.f32.gmra.mrb[30].mxu0 %v2298_v52  ;;  %3027 = vmatmul.mubr.f32.gmra.mrb[134].mxu1 %v2298_v52 }
 0x26d   : > { %2650 = vmatprep.mubr.f32.mxu0 %v4768_v1  ;;  %3032 = vmatprep.mubr.f32.mxu1 %v4768_v1 }
 0x270   : > { %2651 = vmatmul.mubr.f32.gmra.mrb[32].mxu0 %v2301_v54  ;;  %3033 = vmatmul.mubr.f32.gmra.mrb[136].mxu1 %v2301_v54 }
 0x271   : > { %2656 = vmatprep.mubr.f32.mxu0 %v4768_v1  ;;  %3038 = vmatprep.mubr.f32.mxu1 %v4768_v1 }
 0x274   : > { %2657 = vmatmul.mubr.f32.gmra.mrb[34].mxu0 %v2304_v20  ;;  %3039 = vmatmul.mubr.f32.gmra.mrb[138].mxu1 %v2304_v20 }
 0x275   : > { %2662 = vmatprep.mubr.f32.mxu0 %v4768_v1  ;;  %3044 = vmatprep.mubr.f32.mxu1 %v4768_v1 }
 0x278   : > { %2663 = vmatmul.mubr.f32.gmra.mrb[36].mxu0 %v2307_v55  ;;  %3045 = vmatmul.mubr.f32.gmra.mrb[140].mxu1 %v2307_v55 }
 0x279   : > { %2668 = vmatprep.mubr.f32.mxu0 %v4768_v1  ;;  %3050 = vmatprep.mubr.f32.mxu1 %v4768_v1 }
 0x27c   : > { %2669 = vmatmul.mubr.f32.gmra.mrb[38].mxu0 %v2310_v56  ;;  %3051 = vmatmul.mubr.f32.gmra.mrb[142].mxu1 %v2310_v56 }
 0x27d   : > { %2674 = vmatprep.mubr.f32.mxu0 %v4768_v1  ;;  %3056 = vmatprep.mubr.f32.mxu1 %v4768_v1 }
 0x280   : > { %2675 = vmatmul.mubr.f32.gmra.mrb[40].mxu0 %v2313_v41  ;;  %3057 = vmatmul.mubr.f32.gmra.mrb[144].mxu1 %v2313_v41 }
 0x281   : > { %2680 = vmatprep.mubr.f32.mxu0 %v4768_v1  ;;  %3062 = vmatprep.mubr.f32.mxu1 %v4768_v1 }
 0x284   : > { %2681 = vmatmul.mubr.f32.gmra.mrb[42].mxu0 %v2316_v57  ;;  %3063 = vmatmul.mubr.f32.gmra.mrb[146].mxu1 %v2316_v57 }
 0x285   : > { %2686 = vmatprep.mubr.f32.mxu0 %v4768_v1  ;;  %3068 = vmatprep.mubr.f32.mxu1 %v4768_v1 }
 0x288   : > { %2687 = vmatmul.mubr.f32.gmra.mrb[44].mxu0 %v2319_v60  ;;  %3069 = vmatmul.mubr.f32.gmra.mrb[148].mxu1 %v2319_v60 }
 0x289   : > { %2692 = vmatprep.mubr.f32.mxu0 %v4768_v1  ;;  %3074 = vmatprep.mubr.f32.mxu1 %v4768_v1 }
 0x28c   : > { %2693 = vmatmul.mubr.f32.gmra.mrb[46].mxu0 %v2322_v61  ;;  %3075 = vmatmul.mubr.f32.gmra.mrb[150].mxu1 %v2322_v61 }
 0x28d   : > { %2698 = vmatprep.mubr.f32.mxu0 %v4768_v1  ;;  %3080 = vmatprep.mubr.f32.mxu1 %v4768_v1 }
 0x290   : > { %2699 = vmatmul.mubr.f32.gmra.mrb[48].mxu0 %v2325_v5  ;;  %3081 = vmatmul.mubr.f32.gmra.mrb[152].mxu1 %v2325_v5 }
 0x291   : > { %2704 = vmatprep.mubr.f32.mxu0 %v4768_v1  ;;  %3086 = vmatprep.mubr.f32.mxu1 %v4768_v1 }
 0x294   : > { %2705 = vmatmul.mubr.f32.gmra.mrb[50].mxu0 %v2328_v0  ;;  %3087 = vmatmul.mubr.f32.gmra.mrb[154].mxu1 %v2328_v0 }
 0x295   : > { %3218 = vmatprep.mubr.f32.mxu0 %v4768_v1  ;;  %3353 = vmatprep.mubr.f32.mxu1 %v4768_v1 }
 0x337   : > { %v2634_v8 = vpop.f32.mrb[26].mxu0  ;;  %v3016_v13 = vpop.f32.mrb[130].mxu1 }
 0x338   : > { %v3093_v16 = vmax.f32 %v2634_v8, %v3016_v13  ;;  %v2636_v35 = vpop.f32.mrb[27].mxu0  ;;  %v3018_v53 = vpop.f32.mrb[131].mxu1 }
 0x339   : > { %v3094_v10 = vmax.f32 %v2636_v35, %v3018_v53 }
 0x33b   : > { %v2640_v58 = vpop.f32.mrb[28].mxu0  ;;  %v3022_v21 = vpop.f32.mrb[132].mxu1 }
 0x33c   : > { %v3095_v14 = vmax.f32 %v2640_v58, %v3022_v21  ;;  %v2642_v15 = vpop.f32.mrb[29].mxu0  ;;  %v3024_v18 = vpop.f32.mrb[133].mxu1 }
 0x33d   : > { %v3096_v17 = vmax.f32 %v2642_v15, %v3024_v18 }
 0x33e   : > { %v4366_v25 = vpack.c.bf16 %v3095_v14, %v3093_v16 }
 0x33f   : > { %v4364_v26 = vpack.c.bf16 %v3096_v17, %v3094_v10  ;;  %v2646_v37 = vpop.f32.mrb[30].mxu0  ;;  %v3028_v29 = vpop.f32.mrb[134].mxu1 }
 0x340   : > { %v3097_v30 = vmax.f32 %v2646_v37, %v3028_v29  ;;  %v2648_v32 = vpop.f32.mrb[31].mxu0  ;;  %v3030_v43 = vpop.f32.mrb[135].mxu1 }
 0x341   : > { %v3098_v59 = vmax.f32 %v2648_v32, %v3030_v43  ;;  %4365 = vmatprep.subr.bf16.mxu0 %v4364_v26  ;;  %4389 = vmatprep.subr.bf16.mxu1 %v4364_v26 }
 0x342   : > { %4367 = vmatpush1.bf16.msra.mxu0 %v4366_v25  ;;  %4391 = vmatpush1.bf16.msra.mxu1 %v4366_v25 }
 0x343   : > { %v2652_v7 = vpop.f32.mrb[32].mxu0  ;;  %v3034_v24 = vpop.f32.mrb[136].mxu1 }
 0x344   : > { %v3099_v12 = vmax.f32 %v2652_v7, %v3034_v24  ;;  %v2654_v28 = vpop.f32.mrb[33].mxu0  ;;  %v3036_v42 = vpop.f32.mrb[137].mxu1 }
 0x345   : > { %v3100_v44 = vmax.f32 %v2654_v28, %v3036_v42 }
 0x346   : > { %v4370_v33 = vpack.c.bf16 %v3099_v12, %v3097_v30 }
 0x347   : > { %v4368_v46 = vpack.c.bf16 %v3100_v44, %v3098_v59  ;;  %v2658_v47 = vpop.f32.mrb[34].mxu0  ;;  %v3040_v27 = vpop.f32.mrb[138].mxu1 }
 0x348   : > { %v3101_v49 = vmax.f32 %v2658_v47, %v3040_v27  ;;  %v2660_v50 = vpop.f32.mrb[35].mxu0  ;;  %v3042_v2 = vpop.f32.mrb[139].mxu1  ;;  %v3261_v47 = vld [vmem:[#allocation7] sm:$0xff]  ;;  %v3120_v27 = vld [vmem:[#allocation6 + $0x8] sm:$0xff] }
 0x349   : > { %v3102_v48 = vmax.f32 %v2660_v50, %v3042_v2  ;;  %4369 = vmatprep.subr.bf16.mxu0 %v4368_v46  ;;  %4393 = vmatprep.subr.bf16.mxu1 %v4368_v46  ;;  %v3119_v46 = vld [vmem:[#allocation6] sm:$0xff]  ;;  %v3121_v50 = vld [vmem:[#allocation6 + $0x10] sm:$0xff]  ;;  %v3263_v2 = vld [vmem:[#allocation7 + $0x10] sm:$0xff] }
 0x34a   : > { %4371 = vmatpush1.bf16.msra.mxu0 %v4370_v33  ;;  %4395 = vmatpush1.bf16.msra.mxu1 %v4370_v33 }
 0x34b   : > { %v2664_v19 = vpop.f32.mrb[36].mxu0  ;;  %v3046_v6 = vpop.f32.mrb[140].mxu1 }
 0x34c   : > { %v3103_v4 = vmax.f32 %v2664_v19, %v3046_v6  ;;  %v2666_v34 = vpop.f32.mrb[37].mxu0  ;;  %v3048_v38 = vpop.f32.mrb[141].mxu1  ;;  %v3264_v19 = vld [vmem:[#allocation7 + $0x18] sm:$0xff]  ;;  %v3123_v6 = vld [vmem:[#allocation6 + $0x20] sm:$0xff] }
 0x34d   : > { %v3104_v39 = vmax.f32 %v2666_v34, %v3048_v38  ;;  %v3124_v34 = vld [vmem:[#allocation6 + $0x28] sm:$0xff]  ;;  %v3266_v38 = vld [vmem:[#allocation7 + $0x28] sm:$0xff] }
 0x34e   : > { %v4374_v40 = vpack.c.bf16 %v3103_v4, %v3101_v49  ;;  %v3262_v49 = vld [vmem:[#allocation7 + $0x8] sm:$0xff]  ;;  %v3265_v4 = vld [vmem:[#allocation7 + $0x20] sm:$0xff] }
 0x34f   : > { %v4372_v45 = vpack.c.bf16 %v3104_v39, %v3102_v48  ;;  %v2670_v52 = vpop.f32.mrb[38].mxu0  ;;  %v3052_v22 = vpop.f32.mrb[142].mxu1  ;;  %v3122_v48 = vld [vmem:[#allocation6 + $0x18] sm:$0xff]  ;;  %v3125_v39 = vld [vmem:[#allocation6 + $0x30] sm:$0x3f] }
 0x350   : > { %v3105_v54 = vmax.f32 %v2670_v52, %v3052_v22  ;;  %v2672_v36 = vpop.f32.mrb[39].mxu0  ;;  %v3054_v20 = vpop.f32.mrb[143].mxu1 }
 0x351   : > { %v3106_v31 = vmax.f32 %v2672_v36, %v3054_v20  ;;  %4373 = vmatprep.subr.bf16.mxu0 %v4372_v45  ;;  %4397 = vmatprep.subr.bf16.mxu1 %v4372_v45 }
 0x352   : > { %4375 = vmatpush1.bf16.msra.mxu0 %v4374_v40  ;;  %4399 = vmatpush1.bf16.msra.mxu1 %v4374_v40  ;;  %v3267_v40 = vld [vmem:[#allocation7 + $0x30] sm:$0x3f] }
 0x353   : > { %v2676_v55 = vpop.f32.mrb[40].mxu0  ;;  %v3058_v23 = vpop.f32.mrb[144].mxu1 }
 0x354   : > { %v3107_v56 = vmax.f32 %v2676_v55, %v3058_v23  ;;  %v2678_v51 = vpop.f32.mrb[41].mxu0  ;;  %v3060_v41 = vpop.f32.mrb[145].mxu1 }
 0x355   : > { %v3108_v11 = vmax.f32 %v2678_v51, %v3060_v41 }
 0x356   : > { %v4378_v57 = vpack.c.bf16 %v3107_v56, %v3105_v54 }
 0x357   : > { %v4376_v62 = vpack.c.bf16 %v3108_v11, %v3106_v31  ;;  %v2682_v60 = vpop.f32.mrb[42].mxu0  ;;  %v3064_v9 = vpop.f32.mrb[146].mxu1 }
 0x358   : > { %v3109_v61 = vmax.f32 %v2682_v60, %v3064_v9  ;;  %v2684_v63 = vpop.f32.mrb[43].mxu0  ;;  %v3066_v5 = vpop.f32.mrb[147].mxu1 }
 0x359   : > { %v3110_v3 = vmax.f32 %v2684_v63, %v3066_v5  ;;  %4377 = vmatprep.subr.bf16.mxu0 %v4376_v62  ;;  %4401 = vmatprep.subr.bf16.mxu1 %v4376_v62 }
 0x35a   : > { %4379 = vmatpush1.bf16.msra.mxu0 %v4378_v57  ;;  %4403 = vmatpush1.bf16.msra.mxu1 %v4378_v57 }
 0x35b   : > { %v2688_v0 = vpop.f32.mrb[44].mxu0  ;;  %v3070_v8 = vpop.f32.mrb[148].mxu1 }
 0x35c   : > { %v3111_v13 = vmax.f32 %v2688_v0, %v3070_v8  ;;  %v2690_v16 = vpop.f32.mrb[45].mxu0  ;;  %v3072_v35 = vpop.f32.mrb[149].mxu1 }
 0x35d   : > { %v3112_v53 = vmax.f32 %v2690_v16, %v3072_v35 }
 0x35e   : > { %v4382_v10 = vpack.c.bf16 %v3111_v13, %v3109_v61 }
 0x35f   : > { %v4380_v58 = vpack.c.bf16 %v3112_v53, %v3110_v3  ;;  %v2694_v21 = vpop.f32.mrb[46].mxu0  ;;  %v3076_v14 = vpop.f32.mrb[150].mxu1 }
 0x360   : > { %v3113_v15 = vmax.f32 %v2694_v21, %v3076_v14  ;;  %v2696_v18 = vpop.f32.mrb[47].mxu0  ;;  %v3078_v17 = vpop.f32.mrb[151].mxu1 }
 0x361   : > { %v3114_v25 = vmax.f32 %v2696_v18, %v3078_v17  ;;  %4381 = vmatprep.subr.bf16.mxu0 %v4380_v58  ;;  %4405 = vmatprep.subr.bf16.mxu1 %v4380_v58 }
 0x362   : > { %4383 = vmatpush1.bf16.msra.mxu0 %v4382_v10  ;;  %4407 = vmatpush1.bf16.msra.mxu1 %v4382_v10 }
 0x363   : > { %v2700_v26 = vpop.f32.mrb[48].mxu0  ;;  %v3082_v37 = vpop.f32.mrb[152].mxu1 }
 0x364   : > { %v3115_v29 = vmax.f32 %v2700_v26, %v3082_v37  ;;  %v2702_v30 = vpop.f32.mrb[49].mxu0  ;;  %v3084_v32 = vpop.f32.mrb[153].mxu1 }
 0x365   : > { %v3116_v43 = vmax.f32 %v2702_v30, %v3084_v32 }
 0x366   : > { %v4386_v59 = vpack.c.bf16 %v3115_v29, %v3113_v15 }
 0x367   : > { %v4384_v7 = vpack.c.bf16 %v3116_v43, %v3114_v25  ;;  %v2706_v24 = vpop.f32.mrb[50].mxu0  ;;  %v3088_v12 = vpop.f32.mrb[154].mxu1 }
 0x368   : > { %v3117_v28 = vmax.f32 %v2706_v24, %v3088_v12  ;;  %v2708_v42 = vpop.f32.mrb[51].mxu0  ;;  %v3090_v44 = vpop.f32.mrb[155].mxu1 }
 0x369   : > { %v3118_v33 = vmax.f32 %v2708_v42, %v3090_v44  ;;  %4385 = vmatprep.subr.bf16.mxu0 %v4384_v7  ;;  %4409 = vmatprep.subr.bf16.mxu1 %v4384_v7 }
 0x36a   : > { %4387 = vmatpush1.bf16.msra.mxu0 %v4386_v59  ;;  %4411 = vmatpush1.bf16.msra.mxu1 %v4386_v59 }
 0x36b   : > { %3682 = vmatprep.subr.msk.mxu0 %vm445_vm1, %v3118_v33  ;;  %3691 = vmatprep.subr.msk.mxu1 %vm445_vm1, %v3118_v33 }
 0x36e   : > { %3683 = vmatpush1.msk.msra.mxu0 %vm445_vm1, %v3117_v28  ;;  %3692 = vmatpush1.msk.msra.mxu1 %vm445_vm1, %v3117_v28 }
 0x36f   : > { %3684 = vmatmul.mubr.msk.f32.vlgmr.msra.gmra.mrb[52].mxu0 %vm3126_vm3, %v3119_v46  ;;  %3693 = vmatmul.mubr.msk.f32.vlgmr.msra.gmra.mrb[156].mxu1 %vm3126_vm3, %v3261_v47 }
 0x370   : > { %3224 = vmatprep.mubr.f32.mxu0 %v4768_v1  ;;  %3359 = vmatprep.mubr.f32.mxu1 %v4768_v1 }
 0x373   : > { %3685 = vmatmul.mubr.msk.f32.gmra.mrb[54].mxu0 %vm3126_vm3, %v3120_v27  ;;  %3694 = vmatmul.mubr.msk.f32.gmra.mrb[158].mxu1 %vm3126_vm3, %v3262_v49 }
 0x374   : > { %3230 = vmatprep.mubr.f32.mxu0 %v4768_v1  ;;  %3365 = vmatprep.mubr.f32.mxu1 %v4768_v1 }
 0x377   : > { %3686 = vmatmul.mubr.msk.f32.gmra.mrb[56].mxu0 %vm3126_vm3, %v3121_v50  ;;  %3695 = vmatmul.mubr.msk.f32.gmra.mrb[160].mxu1 %vm3126_vm3, %v3263_v2 }
 0x378   : > { %3236 = vmatprep.mubr.f32.mxu0 %v4768_v1  ;;  %3371 = vmatprep.mubr.f32.mxu1 %v4768_v1 }
 0x37b   : > { %3687 = vmatmul.mubr.msk.f32.gmra.mrb[58].mxu0 %vm3126_vm3, %v3122_v48  ;;  %3696 = vmatmul.mubr.msk.f32.gmra.mrb[162].mxu1 %vm3126_vm3, %v3264_v19 }
 0x37c   : > { %3242 = vmatprep.mubr.f32.mxu0 %v4768_v1  ;;  %3377 = vmatprep.mubr.f32.mxu1 %v4768_v1 }
 0x37f   : > { %3688 = vmatmul.mubr.msk.f32.gmra.mrb[60].mxu0 %vm3126_vm3, %v3123_v6  ;;  %3697 = vmatmul.mubr.msk.f32.gmra.mrb[164].mxu1 %vm3126_vm3, %v3265_v4 }
 0x380   : > { %3248 = vmatprep.mubr.f32.mxu0 %v4768_v1  ;;  %3383 = vmatprep.mubr.f32.mxu1 %v4768_v1 }
 0x383   : > { %3689 = vmatmul.mubr.msk.f32.gmra.mrb[62].mxu0 %vm3126_vm3, %v3124_v34  ;;  %3698 = vmatmul.mubr.msk.f32.gmra.mrb[166].mxu1 %vm3126_vm3, %v3266_v38 }
 0x384   : > { %3254 = vmatprep.mubr.f32.mxu0 %v4768_v1  ;;  %3389 = vmatprep.mubr.f32.mxu1 %v4768_v1 }
 0x387   : > { %3690 = vmatmul.mubr.msk.f32.gmra.mrb[64].mxu0 %vm3126_vm3, %v3125_v39  ;;  %3699 = vmatmul.mubr.msk.f32.gmra.mrb[168].mxu1 %vm3126_vm3, %v3267_v40 }
 0x442   : > { %v3220_v45 = vpop.f32.mrb[52].mxu0  ;;  %v3355_v52 = vpop.f32.mrb[156].mxu1 }
 0x443   : > { %v3396_v22 = vmax.f32 %v3220_v45, %v3355_v52  ;;  %v3222_v1 = vpop.f32.mrb[53].mxu0  ;;  %v3357_v54 = vpop.f32.mrb[157].mxu1 }
 0x444   : > { %v3397_v36 = vmax.f32 %v3222_v1, %v3357_v54 }
 0x445   : > { %3410 = vst [vmem:[%s6206_s21] sm:$0xff] %v3396_v22 }
 0x446   : > { %3412 = vst.msk [vmem:[%s6206_s21 + $0x8] sm:$0xff] %vm3411_vm4, %v3397_v36  ;;  %v3226_v20 = vpop.f32.mrb[54].mxu0  ;;  %v3361_v31 = vpop.f32.mrb[158].mxu1 }
 0x447   : > { %v3398_v55 = vmax.f32 %v3226_v20, %v3361_v31  ;;  %v3228_v23 = vpop.f32.mrb[55].mxu0  ;;  %v3363_v56 = vpop.f32.mrb[159].mxu1 }
 0x448   : > { %v3399_v51 = vmax.f32 %v3228_v23, %v3363_v56 }
 0x449   : > { %3413 = vst [vmem:[%s6206_s21 + $0x10] sm:$0xff] %v3398_v55 }
 0x44a   : > { %3414 = vst.msk [vmem:[%s6206_s21 + $0x18] sm:$0xff] %vm3411_vm4, %v3399_v51  ;;  %v3232_v41 = vpop.f32.mrb[56].mxu0  ;;  %v3367_v11 = vpop.f32.mrb[160].mxu1 }
 0x44b   : > { %v3400_v57 = vmax.f32 %v3232_v41, %v3367_v11  ;;  %v3234_v62 = vpop.f32.mrb[57].mxu0  ;;  %v3369_v60 = vpop.f32.mrb[161].mxu1 }
 0x44c   : > { %v3401_v9 = vmax.f32 %v3234_v62, %v3369_v60 }
 0x44d   : > { %3415 = vst [vmem:[%s6206_s21 + $0x20] sm:$0xff] %v3400_v57 }
 0x44e   : > { %3416 = vst.msk [vmem:[%s6206_s21 + $0x28] sm:$0xff] %vm3411_vm4, %v3401_v9  ;;  %v3238_v61 = vpop.f32.mrb[58].mxu0  ;;  %v3373_v63 = vpop.f32.mrb[162].mxu1 }
 0x44f   : > { %v3402_v5 = vmax.f32 %v3238_v61, %v3373_v63  ;;  %v3240_v3 = vpop.f32.mrb[59].mxu0  ;;  %v3375_v0 = vpop.f32.mrb[163].mxu1 }
 0x450   : > { %v3403_v8 = vmax.f32 %v3240_v3, %v3375_v0 }
 0x451   : > { %3417 = vst [vmem:[%s6206_s21 + $0x30] sm:$0xff] %v3402_v5 }
 0x452   : > { %3418 = vst.msk [vmem:[%s6206_s21 + $0x38] sm:$0xff] %vm3411_vm4, %v3403_v8  ;;  %v3244_v13 = vpop.f32.mrb[60].mxu0  ;;  %v3379_v16 = vpop.f32.mrb[164].mxu1 }
 0x453   : > { %v3404_v35 = vmax.f32 %v3244_v13, %v3379_v16  ;;  %v3246_v53 = vpop.f32.mrb[61].mxu0  ;;  %v3381_v10 = vpop.f32.mrb[165].mxu1 }
 0x454   : > { %v3405_v58 = vmax.f32 %v3246_v53, %v3381_v10 }
 0x455   : > { %3419 = vst [vmem:[%s6206_s21 + $0x40] sm:$0xff] %v3404_v35 }
 0x456   : > { %3420 = vst.msk [vmem:[%s6206_s21 + $0x48] sm:$0xff] %vm3411_vm4, %v3405_v58  ;;  %v3250_v21 = vpop.f32.mrb[62].mxu0  ;;  %v3385_v14 = vpop.f32.mrb[166].mxu1 }
 0x457   : > { %v3406_v15 = vmax.f32 %v3250_v21, %v3385_v14  ;;  %v3252_v18 = vpop.f32.mrb[63].mxu0  ;;  %v3387_v17 = vpop.f32.mrb[167].mxu1 }
 0x458   : > { %v3407_v25 = vmax.f32 %v3252_v18, %v3387_v17 }
 0x459   : > { %3421 = vst [vmem:[%s6206_s21 + $0x50] sm:$0xff] %v3406_v15 }
 0x45a   : > { %3422 = vst.msk [vmem:[%s6206_s21 + $0x58] sm:$0xff] %vm3411_vm4, %v3407_v25  ;;  %v3256_v26 = vpop.f32.mrb[64].mxu0  ;;  %v3391_v37 = vpop.f32.mrb[168].mxu1 }
 0x45b   : > { %v3408_v29 = vmax.f32 %v3256_v26, %v3391_v37  ;;  %v3258_v30 = vpop.f32.mrb[65].mxu0  ;;  %v3393_v32 = vpop.f32.mrb[169].mxu1 }
 0x45c   : > { %v3409_v43 = vmax.f32 %v3258_v30, %v3393_v32 }
 0x45d   : > { %3423 = vst [vmem:[%s6206_s21 + $0x60] sm:$0x3f] %v3408_v29 }
 0x45e   : > { %3425 = vst.msk [vmem:[%s6206_s21 + $0x68] sm:$0x3f] %vm3424_vm5, %v3409_v43 }
 0x45f PF: > { %s20_s24 = sadd.s32 1, %s4756_s24  }
 0x460   : > { %p17_p11 = scmp.ge.s32.totalorder %s20_s24, 4  }
 0x462   :  { %19 = sbr.rel (!%p17_p11) target bundleno = 3 (0x3), region = 99 }
 0x469   :  { %3447 = vsyncpa [#allocation3], 1 }
 0x46a   :  { %3449 = vsyncpa [#allocation3 + $0x1], 1 }
 0x46b   :  { %3450 = vsyncpa [#allocation5], 1 }
 0x46c   :  { %3451 = vsyncpa [#allocation8], 1 }

// kernel: eye_tracking_forward.4
= control target key start
LH: loop header
LB: loop body
LE: loop exit
PB: predicated region body
PF: predicated region fallthrough
CT: control target
= control target key end

     0   :  { %12 = vsyncpa [#allocation3], 0  ;;  %s7023_s0 = inlined_call_operand.vmem [shape: f32[2,54,224], index: 0, kind: input, shape index: {}]   ;;  %s7024_s1 = inlined_call_operand.vmem [shape: f32[5,224,384], index: 1, kind: input, shape index: {}]   ;;  %s7025_s2 = inlined_call_operand.hbm [shape: f32[1,384], index: 2, kind: input, shape index: {}]   ;;  %s7026_s3 = inlined_call_operand.hbm [shape: f32[25,50], index: 3, kind: input, shape index: {}]   ;;  %s7027_s4 = inlined_call_operand.hbm [shape: f32[25,50], index: 4, kind: input, shape index: {}]   ;;  %s7028_s5 = inlined_call_operand.vmem [shape: f32[384,192], index: 5, kind: input, shape index: {}]   ;;  %s7029_s6 = inlined_call_operand.vmem [shape: f32[384,192], index: 6, kind: input, shape index: {}]   ;;  %s7030_s7 = inlined_call_operand.vmem [shape: f32[2,25,192], index: 7, kind: output, shape index: {}]  }
   0x1   :  { %13 = vsyncpa [#allocation5], 0  ;;  %s4549_s24 = smov 0  }
   0x2 LB: > { %s4502_s25 = smov [#allocation4]   ;;  %s4555_s27 = sadd.s32 4294967295, %s4500_s24   ;;  %s4500_s24 = sphi %s4549_s24, %s19_s24  }
   0x3   : > { %s228_s26 = sshll.u32 %s4502_s25, 4  ;;  %p3125_p0 = scmp.ge.s32.totalorder %s4500_s24, 1  ;;  %s4564_s26 = int_to_ptr.vmem [resolvable:$true] %s228_s26 }
   0x4   : > { %p202_p1 = scmp.lt.s32.totalorder %s4500_s24, 3  ;;  %p4371_p2 = scmp.eq.s32.totalorder %s4555_s27, 0 }
   0x5   : > { %s4503_s29 = smov [#allocation2]   ;;  %s4504_s9 = smov [#allocation6]  }
   0x6   : > { %p4560_p3 = pnand %p3125_p0, %p202_p1  ;;  %s218_s30 = sshll.u32 %s4503_s29, 4  ;;  %s4574_s30 = int_to_ptr.vmem [resolvable:$true] %s218_s30 }
   0x7   : > { %s241_s10 = sshll.u32 %s4504_s9, 4  ;;  %s4402_s13 = scalar_lea.hbm %s7026_s3, 512  ;;  %s4576_s10 = int_to_ptr.vmem [resolvable:$true] %s241_s10 }
   0x8   : > { %p4361_p4 = pneg %p4560_p3  ;;  %p4403_p6 = scmp.ne.s32.totalorder %s7026_s3, %s4402_s13 }
   0x9   : > { %p4409_p10 = scmp.lt.u32.totalorder %s4402_s13, %s7026_s3 }
   0xa   : > { %p4570_p5 = pnand %p4371_p2, %p4361_p4 }
   0xc   : > { %p4586_p7 = pneg %p4570_p5 }
   0xe   : > { %p4405_p8 = pnand %p4586_p7, %p4403_p6 }
  0x10   : > { %p4406_p9 = pneg %p4405_p8 }
  0x12   : > { %p4411_p11 = pnand %p4409_p10, %p4406_p9 }
  0x14   : > { %4414 = shalt.err (!%p4411_p11)
}
  0x15   : > { %s4415_s19 = scalar_lea.vmem %s4564_s26, 512  ;;  %p4423_p1 = scmp.lt.s32.totalorder %s4564_s26, %s4564_s26 }
  0x16   : > { %p4416_p12 = scmp.ne.s32.totalorder %s4564_s26, %s4415_s19  ;;  %p4424_p4 = scmp.lt.s32.totalorder %s4415_s19, %s4415_s19 }
  0x18   : > { %p4418_p13 = pnand %p4416_p12, %p4586_p7  ;;  %p4425_p6 = por %p4424_p4, %p4423_p1 }
  0x1a   : > { %p4419_p0 = pneg %p4418_p13 }
  0x1c   : > { %p4426_p8 = pnand %p4425_p6, %p4419_p0 }
  0x1e   : > { %4429 = shalt.err (!%p4426_p8)
}
  0x1f   : > { %s4505_s20 = smov 128   ;;  %s4506_s21 = smov 8  }
  0x20   : > { %4367 = dma.hbm_to_vmem [thread:$0]  (!%p4570_p5), %s7026_s3, 512, %s4564_s26, [#allocation5], %s4505_s20, %s4505_s20, %s4506_s21  }
  0x21   : > { %s4430_s9 = scalar_lea.hbm %s7025_s2, 48 }
  0x22   : > { %p4431_p9 = scmp.ne.s32.totalorder %s7025_s2, %s4430_s9  ;;  %p4437_p12 = scmp.lt.u32.totalorder %s4430_s9, %s7025_s2 }
  0x24   : > { %p4433_p10 = pnand %p4431_p9, %p4586_p7 }
  0x26   : > { %p4434_p11 = pneg %p4433_p10 }
  0x28   : > { %p4439_p13 = pnand %p4437_p12, %p4434_p11 }
  0x2a   : > { %4442 = shalt.err (!%p4439_p13)
}
  0x2b   : > { %s4443_s26 = scalar_lea.vmem %s4574_s30, 48  ;;  %s4450_s15 = scalar_lea.vmem %s4574_s30, 64 }
  0x2c   : > { %p4444_p0 = scmp.ne.s32.totalorder %s4574_s30, %s4443_s26  ;;  %p4451_p6 = scmp.lt.s32.totalorder %s4574_s30, %s4574_s30 }
  0x2d   : > { %p4452_p8 = scmp.lt.s32.totalorder %s4450_s15, %s4443_s26 }
  0x2e   : > { %p4446_p1 = pnand %p4444_p0, %p4586_p7 }
  0x2f   : > { %p4453_p9 = por %p4452_p8, %p4451_p6 }
  0x30   : > { %p4447_p4 = pneg %p4446_p1 }
  0x32   : > { %p4454_p10 = pnand %p4453_p9, %p4447_p4 }
  0x34   : > { %4457 = shalt.err (!%p4454_p10)
}
  0x35   : > { %4364 = dma.hbm_to_vmem [thread:$0]  (!%p4570_p5), %s7025_s2, 48, %s4574_s30, [#allocation3]  }
  0x36   : > { %s4458_s23 = scalar_lea.hbm %s7027_s4, 512 }
  0x37   : > { %p4459_p11 = scmp.ne.s32.totalorder %s7027_s4, %s4458_s23  ;;  %p4465_p0 = scmp.lt.u32.totalorder %s4458_s23, %s7027_s4 }
  0x39   : > { %p4461_p12 = pnand %p4459_p11, %p4586_p7 }
  0x3b   : > { %p4462_p13 = pneg %p4461_p12 }
  0x3d   : > { %p4467_p1 = pnand %p4465_p0, %p4462_p13 }
  0x3f   : > { %4470 = shalt.err (!%p4467_p1)
}
  0x40   : > { %s4471_s30 = scalar_lea.vmem %s4576_s10, 512  ;;  %p4479_p9 = scmp.lt.s32.totalorder %s4576_s10, %s4576_s10 }
  0x41   : > { %p4472_p4 = scmp.ne.s32.totalorder %s4576_s10, %s4471_s30  ;;  %p4480_p10 = scmp.lt.s32.totalorder %s4471_s30, %s4471_s30 }
  0x43   : > { %p4474_p6 = pnand %p4472_p4, %p4586_p7  ;;  %p4481_p11 = por %p4480_p10, %p4479_p9 }
  0x45   : > { %p4475_p8 = pneg %p4474_p6 }
  0x47   : > { %p4482_p12 = pnand %p4481_p11, %p4475_p8 }
  0x49   : > { %4485 = shalt.err (!%p4482_p12)
}
  0x4a   : > { %4370 = dma.hbm_to_vmem [thread:$0]  (!%p4570_p5), %s7027_s4, 512, %s4576_s10, [#allocation5], %s4505_s20, %s4505_s20, %s4506_s21  }
  0x4b   : > { %271 = sbr.rel (%p4560_p3) target bundleno = 1090 (0x442), region = 48 }
  0x52   : > { %4491 = dma.done.wait (%p4371_p2), [#allocation3], 48  }
  0x53   : > { %4493 = vsyncadd (%p4371_p2), [#allocation3], 4294967248 }
  0x54   : > { %4495 = dma.done.wait (%p4371_p2), [#allocation5], 1024  }
  0x55   : > { %4497 = vsyncadd (%p4371_p2), [#allocation5], 4294966272  ;;  %v4507_v0 = vmov 0.0|0.0   ;;  %v3138_v1 = vld [vmem:[%s7024_s1 + $0x2a8] sm:$0xff]  ;;  %v3141_v2 = vld [vmem:[%s7024_s1 + $0x2c0] sm:$0xff]  ;;  %p311_p2 = scmp.lt.s32.totalorder %s4555_s27, 1 }
  0x56   : > { %3614 = vmatprep.subr.bf16.mxu1 %v4507_v0  ;;  %v3139_v3 = vld [vmem:[%s7024_s1 + $0x2b0] sm:$0xff]  ;;  %v3558_v4 = vpack.c.bf16 %v3141_v2, %v3138_v1  ;;  %v3142_v5 = vld [vmem:[%s7024_s1 + $0x2c8] sm:$0xff]  ;;  %v3137_v6 = vld [vmem:[%s7024_s1 + $0x2a0] sm:$0xff]  ;;  %vm522_vm0 = vcmask 1046528   ;;  %vm556_vm1 = vcmask 785408   ;;  %vm1094_vm2 = vcmask 1045504  }
  0x57   : > { %v3140_v7 = vld [vmem:[%s7024_s1 + $0x2b8] sm:$0xff]  ;;  %v3615_v8 = vpack.c.bf16 %v3142_v5, %v3139_v3  ;;  %v3147_v11 = vld [vmem:[%s7024_s1 + $0x2f0] sm:$0xff]  ;;  %v3145_v12 = vld [vmem:[%s7024_s1 + $0x2e0] sm:$0xff]  ;;  %s7035_s27 = smov (!%p311_p2, %s4555_s27), 1  ;;  %vm1463_vm3 = vcmask 1044480   ;;  %vm1832_vm4 = vcmask 1043456  }
  0x58   : > { %v3560_v9 = vpack.c.bf16 %v3140_v7, %v3137_v6  ;;  %v3144_v10 = vld [vmem:[%s7024_s1 + $0x2d8] sm:$0xff]  ;;  %3559 = vmatprep.subr.bf16.mxu0 %v3558_v4  ;;  %v3143_v15 = vld [vmem:[%s7024_s1 + $0x2d0] sm:$0xff]  ;;  %v3146_v16 = vld [vmem:[%s7024_s1 + $0x2e8] sm:$0xff]  ;;  %s4348_s8 = smul.u32 112, %s7035_s27  ;;  %vm2818_vm5 = vcmask 1041408   ;;  %vm2805_vm6 = vcmask 408576  }
  0x59   : > { %v3562_v13 = vpack.c.bf16 %v3147_v11, %v3144_v10  ;;  %v3148_v14 = vld [vmem:[%s7024_s1 + $0x2f8] sm:$0xff]  ;;  %3616 = vmatpush1.bf16.msra.mxu1 %v3615_v8  ;;  %v3564_v18 = vpack.c.bf16 %v3146_v16, %v3143_v15  ;;  %v3150_v19 = vld [vmem:[%s7024_s1 + $0x308] sm:$0xff]  ;;  %v3153_v20 = vld [vmem:[%s7024_s1 + $0x320] sm:$0xff]  ;;  %s3557_s21 = sshll.u32 %s7035_s27, 6  ;;  %vm3028_vm7 = vcmask 523264   ;;  %vm3035_vm8 = vcmask 516096  }
  0x5a   : > { %3561 = vmatpush1.bf16.msra.mxu0 %v3560_v9  ;;  %v3618_v17 = vpack.c.bf16 %v3148_v14, %v3145_v12  ;;  %v3151_v21 = vld [vmem:[%s7024_s1 + $0x310] sm:$0xff]  ;;  %3617 = vmatprep.subr.bf16.mxu1 %v4507_v0  ;;  %v3566_v22 = vpack.c.bf16 %v3153_v20, %v3150_v19  ;;  %v3154_v23 = vld [vmem:[%s7024_s1 + $0x328] sm:$0xff]  ;;  %v3149_v24 = vld [vmem:[%s7024_s1 + $0x300] sm:$0xff]  ;;  %s4831_s29 = scalar_lea.vmem %s7023_s0, %s4348_s8  ;;  %s7007_s26 = scalar_lea.vmem %s7030_s7, %s3557_s21 }
  0x5b   : > { %3563 = vmatprep.subr.bf16.mxu0 %v3562_v13  ;;  %v3152_v25 = vld [vmem:[%s7024_s1 + $0x318] sm:$0xff]  ;;  %v3159_v27 = vld [vmem:[%s7024_s1 + $0x350] sm:$0xff]  ;;  %v3621_v28 = vpack.c.bf16 %v3154_v23, %v3151_v21  ;;  %v3157_v30 = vld [vmem:[%s7024_s1 + $0x340] sm:$0xff] }
  0x5c   : > { %v3156_v26 = vld [vmem:[%s7024_s1 + $0x338] sm:$0xff]  ;;  %v3568_v29 = vpack.c.bf16 %v3152_v25, %v3149_v24  ;;  %v3155_v33 = vld [vmem:[%s7024_s1 + $0x330] sm:$0xff]  ;;  %v3158_v34 = vld [vmem:[%s7024_s1 + $0x348] sm:$0xff] }
  0x5d   : > { %3619 = vmatpush1.bf16.msra.mxu1 %v3618_v17  ;;  %v3570_v31 = vpack.c.bf16 %v3159_v27, %v3156_v26  ;;  %v3160_v32 = vld [vmem:[%s7024_s1 + $0x358] sm:$0xff]  ;;  %v3162_v35 = vld [vmem:[%s7024_s1 + $0x368] sm:$0xff]  ;;  %v3165_v36 = vld [vmem:[%s7024_s1 + $0x380] sm:$0xff]  ;;  %v3572_v38 = vpack.c.bf16 %v3158_v34, %v3155_v33 }
  0x5e   : > { %3565 = vmatpush1.bf16.msra.mxu0 %v3564_v18  ;;  %3620 = vmatprep.subr.bf16.mxu1 %v4507_v0  ;;  %v3624_v37 = vpack.c.bf16 %v3160_v32, %v3157_v30  ;;  %v3163_v39 = vld [vmem:[%s7024_s1 + $0x370] sm:$0xff]  ;;  %v3574_v40 = vpack.c.bf16 %v3165_v36, %v3162_v35  ;;  %v3166_v41 = vld [vmem:[%s7024_s1 + $0x388] sm:$0xff]  ;;  %v3161_v42 = vld [vmem:[%s7024_s1 + $0x360] sm:$0xff] }
  0x5f   : > { %3567 = vmatprep.subr.bf16.mxu0 %v3566_v22  ;;  %v3164_v43 = vld [vmem:[%s7024_s1 + $0x378] sm:$0xff]  ;;  %v3171_v45 = vld [vmem:[%s7024_s1 + $0x3b0] sm:$0xff]  ;;  %v3627_v46 = vpack.c.bf16 %v3166_v41, %v3163_v39  ;;  %v3169_v48 = vld [vmem:[%s7024_s1 + $0x3a0] sm:$0xff] }
  0x60   : > { %v3168_v44 = vld [vmem:[%s7024_s1 + $0x398] sm:$0xff]  ;;  %v3576_v47 = vpack.c.bf16 %v3164_v43, %v3161_v42  ;;  %v3167_v51 = vld [vmem:[%s7024_s1 + $0x390] sm:$0xff]  ;;  %v3170_v52 = vld [vmem:[%s7024_s1 + $0x3a8] sm:$0xff] }
  0x61   : > { %3622 = vmatpush1.bf16.msra.mxu1 %v3621_v28  ;;  %v3578_v49 = vpack.c.bf16 %v3171_v45, %v3168_v44  ;;  %v3172_v50 = vld [vmem:[%s7024_s1 + $0x3b8] sm:$0xff]  ;;  %v3174_v53 = vld [vmem:[%s7024_s1 + $0x3c8] sm:$0xff]  ;;  %v3177_v54 = vld [vmem:[%s7024_s1 + $0x3e0] sm:$0xff]  ;;  %v3580_v56 = vpack.c.bf16 %v3170_v52, %v3167_v51 }
  0x62   : > { %3569 = vmatpush1.bf16.msra.mxu0 %v3568_v29  ;;  %3623 = vmatprep.subr.bf16.mxu1 %v4507_v0  ;;  %v3630_v55 = vpack.c.bf16 %v3172_v50, %v3169_v48  ;;  %v3175_v57 = vld [vmem:[%s7024_s1 + $0x3d0] sm:$0xff]  ;;  %v3582_v58 = vpack.c.bf16 %v3177_v54, %v3174_v53  ;;  %v3178_v59 = vld [vmem:[%s7024_s1 + $0x3e8] sm:$0xff]  ;;  %v3173_v60 = vld [vmem:[%s7024_s1 + $0x3c0] sm:$0xff] }
  0x63   : > { %3571 = vmatprep.subr.bf16.mxu0 %v3570_v31  ;;  %v3176_v61 = vld [vmem:[%s7024_s1 + $0x3d8] sm:$0xff]  ;;  %v3183_v63 = vld [vmem:[%s7024_s1 + $0x410] sm:$0xff]  ;;  %v3633_v1 = vpack.c.bf16 %v3178_v59, %v3175_v57  ;;  %v3181_v3 = vld [vmem:[%s7024_s1 + $0x400] sm:$0xff] }
  0x64   : > { %v3180_v62 = vld [vmem:[%s7024_s1 + $0x3f8] sm:$0xff]  ;;  %v3584_v2 = vpack.c.bf16 %v3176_v61, %v3173_v60  ;;  %v3179_v6 = vld [vmem:[%s7024_s1 + $0x3f0] sm:$0xff]  ;;  %v3182_v7 = vld [vmem:[%s7024_s1 + $0x408] sm:$0xff] }
  0x65   : > { %3625 = vmatpush1.bf16.msra.mxu1 %v3624_v37  ;;  %v3586_v4 = vpack.c.bf16 %v3183_v63, %v3180_v62  ;;  %v3184_v5 = vld [vmem:[%s7024_s1 + $0x418] sm:$0xff]  ;;  %v3186_v8 = vld [vmem:[%s7024_s1 + $0x428] sm:$0xff]  ;;  %v3189_v9 = vld [vmem:[%s7024_s1 + $0x440] sm:$0xff]  ;;  %v3588_v11 = vpack.c.bf16 %v3182_v7, %v3179_v6 }
  0x66   : > { %3573 = vmatpush1.bf16.msra.mxu0 %v3572_v38  ;;  %3626 = vmatprep.subr.bf16.mxu1 %v4507_v0  ;;  %v3636_v10 = vpack.c.bf16 %v3184_v5, %v3181_v3  ;;  %v3187_v12 = vld [vmem:[%s7024_s1 + $0x430] sm:$0xff]  ;;  %v4843_v13 = vld [vmem:[%s4831_s29 + $0x18] sm:$0xff]  ;;  %v420_v14 = vld [vmem:[%s4831_s29 + $0x8] sm:$0xfe]  ;;  %v3590_v15 = vpack.c.bf16 %v3189_v9, %v3186_v8 }
  0x67   : > { %3575 = vmatprep.subr.bf16.mxu0 %v3574_v40  ;;  %v3190_v16 = vld [vmem:[%s7024_s1 + $0x448] sm:$0xff]  ;;  %v3185_v17 = vld [vmem:[%s7024_s1 + $0x420] sm:$0xff]  ;;  %v3188_v18 = vld [vmem:[%s7024_s1 + $0x438] sm:$0xff]  ;;  %v526_v19 = vrot.slane %v420_v14, 1  ;;  %v527_v20 = vrot.slane %v4843_v13, 1 }
  0x68   : > { %v3192_v21 = vld [vmem:[%s7024_s1 + $0x458] sm:$0xff]  ;;  %v3195_v22 = vld [vmem:[%s7024_s1 + $0x470] sm:$0xff]  ;;  %v3639_v24 = vpack.c.bf16 %v3190_v16, %v3187_v12  ;;  %v3592_v25 = vpack.c.bf16 %v3188_v18, %v3185_v17  ;;  %v3193_v26 = vld [vmem:[%s7024_s1 + $0x460] sm:$0xff] }
  0x69   : > { %3628 = vmatpush1.bf16.msra.mxu1 %v3627_v46  ;;  %v528_v23 = vsel %vm522_vm0, %v526_v19, %v527_v20  ;;  %v3594_v27 = vpack.c.bf16 %v3195_v22, %v3192_v21  ;;  %v3196_v28 = vld [vmem:[%s7024_s1 + $0x478] sm:$0xff]  ;;  %v3191_v29 = vld [vmem:[%s7024_s1 + $0x450] sm:$0xff]  ;;  %v3194_v30 = vld [vmem:[%s7024_s1 + $0x468] sm:$0xff] }
  0x6a   : > { %3577 = vmatpush1.bf16.msra.mxu0 %v3576_v47  ;;  %3629 = vmatprep.subr.bf16.mxu1 %v4507_v0  ;;  %v3198_v31 = vld [vmem:[%s7024_s1 + $0x488] sm:$0xff]  ;;  %v3201_v32 = vld [vmem:[%s7024_s1 + $0x4a0] sm:$0xff]  ;;  %v3642_v33 = vpack.c.bf16 %v3196_v28, %v3193_v26  ;;  %v3596_v34 = vpack.c.bf16 %v3194_v30, %v3191_v29  ;;  %v3199_v35 = vld [vmem:[%s7024_s1 + $0x490] sm:$0xff] }
  0x6b   : > { %3579 = vmatprep.subr.bf16.mxu0 %v3578_v49  ;;  %3228 = vmatprep.mubr.msk.f32.mxu1 %vm556_vm1, %v528_v23  ;;  %v3598_v36 = vpack.c.bf16 %v3201_v32, %v3198_v31  ;;  %v3202_v37 = vld [vmem:[%s7024_s1 + $0x4a8] sm:$0xff]  ;;  %v3197_v38 = vld [vmem:[%s7024_s1 + $0x480] sm:$0xff]  ;;  %v3200_v39 = vld [vmem:[%s7024_s1 + $0x498] sm:$0xff] }
  0x6c   : > { %3221 = vmatprep.mubr.msk.f32.mxu0 %vm556_vm1, %v528_v23  ;;  %v3204_v40 = vld [vmem:[%s7024_s1 + $0x4b8] sm:$0xff]  ;;  %v3207_v41 = vld [vmem:[%s7024_s1 + $0x4d0] sm:$0xff]  ;;  %v3645_v42 = vpack.c.bf16 %v3202_v37, %v3199_v35  ;;  %v3600_v43 = vpack.c.bf16 %v3200_v39, %v3197_v38  ;;  %v3205_v44 = vld [vmem:[%s7024_s1 + $0x4c0] sm:$0xff] }
  0x6d   : > { %3631 = vmatpush1.bf16.msra.mxu1 %v3630_v55  ;;  %v3602_v45 = vpack.c.bf16 %v3207_v41, %v3204_v40  ;;  %v3208_v46 = vld [vmem:[%s7024_s1 + $0x4d8] sm:$0xff]  ;;  %v3203_v47 = vld [vmem:[%s7024_s1 + $0x4b0] sm:$0xff]  ;;  %v3206_v48 = vld [vmem:[%s7024_s1 + $0x4c8] sm:$0xff] }
  0x6e   : > { %3581 = vmatpush1.bf16.msra.mxu0 %v3580_v56  ;;  %3632 = vmatprep.subr.bf16.mxu1 %v4507_v0  ;;  %v3210_v49 = vld [vmem:[%s7024_s1 + $0x4e8] sm:$0xff]  ;;  %v3213_v50 = vld [vmem:[%s7024_s1 + $0x500] sm:$0xff]  ;;  %v3648_v51 = vpack.c.bf16 %v3208_v46, %v3205_v44  ;;  %v3604_v52 = vpack.c.bf16 %v3206_v48, %v3203_v47  ;;  %v3211_v53 = vld [vmem:[%s7024_s1 + $0x4f0] sm:$0xff] }
  0x6f   : > { %3583 = vmatprep.subr.bf16.mxu0 %v3582_v58  ;;  %v3606_v54 = vpack.c.bf16 %v3213_v50, %v3210_v49  ;;  %v3214_v55 = vld [vmem:[%s7024_s1 + $0x508] sm:$0xff]  ;;  %v3209_v56 = vld [vmem:[%s7024_s1 + $0x4e0] sm:$0xff]  ;;  %v3212_v57 = vld [vmem:[%s7024_s1 + $0x4f8] sm:$0xff] }
  0x70   : > { %v3216_v58 = vld [vmem:[%s7024_s1 + $0x518] sm:$0xff]  ;;  %v3219_v59 = vld [vmem:[%s7024_s1 + $0x530] sm:$0xff]  ;;  %v3651_v60 = vpack.c.bf16 %v3214_v55, %v3211_v53  ;;  %v3608_v61 = vpack.c.bf16 %v3212_v57, %v3209_v56  ;;  %v3217_v62 = vld [vmem:[%s7024_s1 + $0x520] sm:$0xff] }
  0x71   : > { %3634 = vmatpush1.bf16.msra.mxu1 %v3633_v1  ;;  %v3220_v63 = vld [vmem:[%s7024_s1 + $0x538] sm:$0xff]  ;;  %v3215_v1 = vld [vmem:[%s7024_s1 + $0x510] sm:$0xff]  ;;  %v3218_v3 = vld [vmem:[%s7024_s1 + $0x528] sm:$0xff] }
  0x72   : > { %3585 = vmatpush1.bf16.msra.mxu0 %v3584_v2  ;;  %3635 = vmatprep.subr.bf16.mxu1 %v4507_v0  ;;  %v3610_v2 = vpack.c.bf16 %v3219_v59, %v3216_v58  ;;  %v419_v5 = vld [vmem:[%s4831_s29] sm:$0xfe]  ;;  %v336_v6 = vld [vmem:[%s7024_s1 + $0x8] sm:$0xff]  ;;  %v3654_v8 = vpack.c.bf16 %v3220_v63, %v3217_v62  ;;  %v3612_v9 = vpack.c.bf16 %v3218_v3, %v3215_v1  ;;  %v337_v12 = vld [vmem:[%s7024_s1 + $0x10] sm:$0xff] }
  0x73   : > { %3587 = vmatprep.subr.bf16.mxu0 %v3586_v4  ;;  %v4958_v4 = vld [vmem:[%s4831_s29 + $0x10] sm:$0xff]  ;;  %v339_v7 = vld [vmem:[%s7024_s1 + $0x20] sm:$0xff]  ;;  %v340_v14 = vld [vmem:[%s7024_s1 + $0x28] sm:$0xff] }
  0x74   : > { %v3656_v16 = vpack.c.bf16 %v339_v7, %v336_v6  ;;  %v335_v17 = vld [vmem:[%s7024_s1] sm:$0xff]  ;;  %v338_v18 = vld [vmem:[%s7024_s1 + $0x18] sm:$0xff]  ;;  %v345_v22 = vld [vmem:[%s7024_s1 + $0x50] sm:$0xff] }
  0x75   : > { %3637 = vmatpush1.bf16.msra.mxu1 %v3636_v10  ;;  %v523_v10 = vrot.slane %v419_v5, 1  ;;  %v4985_v19 = vld [vmem:[%s4831_s29 + $0x20] sm:$0xff]  ;;  %v342_v21 = vld [vmem:[%s7024_s1 + $0x38] sm:$0xff]  ;;  %v3658_v26 = vpack.c.bf16 %v338_v18, %v335_v17  ;;  %v341_v32 = vld [vmem:[%s7024_s1 + $0x30] sm:$0xff] }
  0x76   : > { %3589 = vmatpush1.bf16.msra.mxu0 %v3588_v11  ;;  %3638 = vmatprep.subr.bf16.mxu1 %v4507_v0  ;;  %v524_v11 = vrot.slane %v4958_v4, 1  ;;  %v346_v28 = vld [vmem:[%s7024_s1 + $0x58] sm:$0xff]  ;;  %v529_v29 = vrot.slane %v4985_v19, 1  ;;  %v3660_v31 = vpack.c.bf16 %v345_v22, %v342_v21  ;;  %v348_v35 = vld [vmem:[%s7024_s1 + $0x68] sm:$0xff]  ;;  %v349_v41 = vld [vmem:[%s7024_s1 + $0x70] sm:$0xff] }
  0x77   : > { %3591 = vmatprep.subr.bf16.mxu0 %v3590_v15  ;;  %v4975_v15 = vld [vmem:[%s4831_s29 + $0x28] sm:$0xff]  ;;  %v5003_v30 = vld [vmem:[%s4831_s29 + $0x38] sm:$0xff]  ;;  %v347_v46 = vld [vmem:[%s7024_s1 + $0x60] sm:$0xff] }
  0x78   : > { %v531_v23 = vrot.slane %v4975_v15, 1  ;;  %v535_v38 = vrot.slane %v5003_v30, 1  ;;  %v350_v47 = vld [vmem:[%s7024_s1 + $0x78] sm:$0xff]  ;;  %v5044_v48 = vld [vmem:[%s4831_s29 + $0x40] sm:$0xff]  ;;  %v357_v50 = vld [vmem:[%s7024_s1 + $0xb0] sm:$0xff] }
  0x79   : > { %3640 = vmatpush1.bf16.msra.mxu1 %v3639_v24  ;;  %v525_v24 = vsel %vm522_vm0, %v523_v10, %v524_v11  ;;  %v354_v49 = vld [vmem:[%s7024_s1 + $0x98] sm:$0xff]  ;;  %v355_v55 = vld [vmem:[%s7024_s1 + $0xa0] sm:$0xff]  ;;  %v537_v58 = vrot.slane %v5044_v48, 1  ;;  %v356_v62 = vld [vmem:[%s7024_s1 + $0xa8] sm:$0xff] }
  0x7a   : > { %3593 = vmatpush1.bf16.msra.mxu0 %v3592_v25  ;;  %3641 = vmatprep.subr.bf16.mxu1 %v4507_v0  ;;  %v3713_v25 = vpack.c.bf16 %v340_v14, %v337_v12  ;;  %v532_v37 = vsel %vm522_vm0, %v527_v20, %v531_v23  ;;  %v5034_v20 = vld [vmem:[%s4831_s29 + $0x48] sm:$0xff]  ;;  %v358_v56 = vld [vmem:[%s7024_s1 + $0xb8] sm:$0xff]  ;;  %v5075_v63 = vld [vmem:[%s4831_s29 + $0x50] sm:$0xff] }
  0x7b   : > { %3595 = vmatprep.subr.bf16.mxu0 %v3594_v27  ;;  %v343_v27 = vld [vmem:[%s7024_s1 + $0x40] sm:$0xff]  ;;  %v5065_v59 = vld [vmem:[%s4831_s29 + $0x58] sm:$0xff]  ;;  %v360_v1 = vld [vmem:[%s7024_s1 + $0xc8] sm:$0xff]  ;;  %v3722_v6 = vpack.c.bf16 %v358_v56, %v355_v55 }
  0x7c   : > { %v3716_v39 = vpack.c.bf16 %v346_v28, %v343_v27  ;;  %v543_v5 = vrot.slane %v5065_v59, 1  ;;  %v422_v12 = vld [vmem:[%s4831_s29 + $0x68] sm:$0x7]  ;;  %v362_v17 = vld [vmem:[%s7024_s1 + $0xd8] sm:$0xff]  ;;  %v421_v18 = vld [vmem:[%s4831_s29 + $0x60] sm:$0x7] }
  0x7d   : > { %3643 = vmatpush1.bf16.msra.mxu1 %v3642_v33  ;;  %v344_v33 = vld [vmem:[%s7024_s1 + $0x48] sm:$0xff]  ;;  %v366_v21 = vld [vmem:[%s7024_s1 + $0xf8] sm:$0xff]  ;;  %v369_v22 = vld [vmem:[%s7024_s1 + $0x110] sm:$0xff] }
  0x7e   : > { %3597 = vmatpush1.bf16.msra.mxu0 %v3596_v34  ;;  %3644 = vmatprep.subr.bf16.mxu1 %v4507_v0  ;;  %v5013_v34 = vld [vmem:[%s4831_s29 + $0x30] sm:$0xff]  ;;  %v3662_v40 = vpack.c.bf16 %v344_v33, %v341_v32  ;;  %v367_v27 = vld [vmem:[%s7024_s1 + $0x100] sm:$0xff]  ;;  %v370_v32 = vld [vmem:[%s7024_s1 + $0x118] sm:$0xff] }
  0x7f   : > { %3599 = vmatprep.subr.bf16.mxu0 %v3598_v36  ;;  %v351_v36 = vld [vmem:[%s7024_s1 + $0x80] sm:$0xff]  ;;  %v533_v44 = vrot.slane %v5013_v34, 1  ;;  %v365_v33 = vld [vmem:[%s7024_s1 + $0xf0] sm:$0xff]  ;;  %v380_v56 = vld [vmem:[%s7024_s1 + $0x168] sm:$0xff] }
  0x80   : > { %v377_v55 = vld [vmem:[%s7024_s1 + $0x150] sm:$0xff] }
  0x81   : > { %3646 = vmatpush1.bf16.msra.mxu1 %v3645_v42  ;;  %v352_v42 = vld [vmem:[%s7024_s1 + $0x88] sm:$0xff]  ;;  %v534_v57 = vsel %vm522_vm0, %v529_v29, %v533_v44  ;;  %v538_v10 = vsel %vm522_vm0, %v533_v44, %v537_v58 }
  0x82   : > { %3601 = vmatpush1.bf16.msra.mxu0 %v3600_v43  ;;  %3647 = vmatprep.subr.bf16.mxu1 %v4507_v0  ;;  %v530_v43 = vsel %vm522_vm0, %v524_v11, %v529_v29  ;;  %v3719_v53 = vpack.c.bf16 %v352_v42, %v349_v41  ;;  %v541_v11 = vrot.slane %v5075_v63, 1  ;;  %v545_v29 = vrot.slane %v421_v18, 1  ;;  %v373_v41 = vld [vmem:[%s7024_s1 + $0x130] sm:$0xff]  ;;  %v376_v44 = vld [vmem:[%s7024_s1 + $0x148] sm:$0xff] }
  0x83   : > { %3603 = vmatprep.subr.bf16.mxu0 %v3602_v45  ;;  %v3664_v45 = vpack.c.bf16 %v351_v36, %v348_v35  ;;  %v368_v35 = vld [vmem:[%s7024_s1 + $0x108] sm:$0xff] }
  0x84   : > { %v542_v28 = vsel %vm522_vm0, %v537_v58, %v541_v11  ;;  %v372_v36 = vld [vmem:[%s7024_s1 + $0x128] sm:$0xff]  ;;  %v546_v42 = vsel %vm522_vm0, %v541_v11, %v545_v29  ;;  %v387_v58 = vld [vmem:[%s7024_s1 + $0x1a0] sm:$0xff] }
  0x85   : > { %3649 = vmatpush1.bf16.msra.mxu1 %v3648_v51  ;;  %v536_v51 = vsel %vm522_vm0, %v531_v23, %v535_v38  ;;  %v391_v11 = vld [vmem:[%s7024_s1 + $0x1c0] sm:$0xff]  ;;  %v396_v18 = vld [vmem:[%s7024_s1 + $0x1e8] sm:$0xff] }
  0x86   : > { %3605 = vmatpush1.bf16.msra.mxu0 %v3604_v52  ;;  %3650 = vmatprep.subr.bf16.mxu1 %v4507_v0  ;;  %v539_v52 = vrot.slane %v5034_v20, 1 }
  0x87   : > { %3607 = vmatprep.subr.bf16.mxu0 %v3606_v54  ;;  %v3666_v54 = vpack.c.bf16 %v350_v47, %v347_v46  ;;  %v374_v46 = vld [vmem:[%s7024_s1 + $0x138] sm:$0xff] }
  0x88   : > { %v540_v3 = vsel %vm522_vm0, %v535_v38, %v539_v52  ;;  %v544_v23 = vsel %vm522_vm0, %v539_v52, %v543_v5  ;;  %v378_v47 = vld [vmem:[%s7024_s1 + $0x158] sm:$0xff]  ;;  %v379_v52 = vld [vmem:[%s7024_s1 + $0x160] sm:$0xff] }
  0x89   : > { %3652 = vmatpush1.bf16.msra.mxu1 %v3651_v60  ;;  %v3668_v60 = vpack.c.bf16 %v357_v50, %v354_v49  ;;  %v381_v49 = vld [vmem:[%s7024_s1 + $0x170] sm:$0xff]  ;;  %v3731_v50 = vpack.c.bf16 %v376_v44, %v373_v41  ;;  %v411_v41 = vld [vmem:[%s7024_s1 + $0x260] sm:$0xff] }
  0x8a   : > { %3609 = vmatpush1.bf16.msra.mxu0 %v3608_v61  ;;  %3653 = vmatprep.subr.bf16.mxu1 %v4507_v0  ;;  %v353_v61 = vld [vmem:[%s7024_s1 + $0x90] sm:$0xff] }
  0x8b   : > { %3611 = vmatprep.subr.bf16.mxu0 %v3610_v2  ;;  %v363_v2 = vld [vmem:[%s7024_s1 + $0xe0] sm:$0xff]  ;;  %v3670_v7 = vpack.c.bf16 %v356_v62, %v353_v61  ;;  %v3686_v62 = vpack.c.bf16 %v380_v56, %v377_v55  ;;  %v409_v44 = vld [vmem:[%s7024_s1 + $0x250] sm:$0xff]  ;;  %v418_v56 = vld [vmem:[%s7024_s1 + $0x298] sm:$0xff] }
  0x8c   : > { %v3672_v14 = vpack.c.bf16 %v363_v2, %v360_v1  ;;  %v385_v1 = vld [vmem:[%s7024_s1 + $0x190] sm:$0xff] }
  0x8d   : > { %3655 = vmatpush1.bf16.msra.mxu1 %v3654_v8  ;;  %v361_v8 = vld [vmem:[%s7024_s1 + $0xd0] sm:$0xff] }
  0x8e   : > { %3613 = vmatpush1.bf16.msra.mxu0 %v3612_v9  ;;  %3712 = vmatprep.subr.bf16.mxu1 %v4507_v0  ;;  %v364_v9 = vld [vmem:[%s7024_s1 + $0xe8] sm:$0xff] }
  0x8f   : > { %3657 = vmatprep.subr.bf16.mxu0 %v3656_v16  ;;  %v359_v16 = vld [vmem:[%s7024_s1 + $0xc0] sm:$0xff] }
  0x90   : > { %743 = vmatmul.mubr.f32.vlgmr.msra.gmra.mrb[0].mxu1 %v525_v24 }
  0x91   : > { %636 = vmatmul.mubr.f32.vlgmr.msra.gmra.mrb[0].mxu0 %v525_v24  ;;  %3714 = vmatpush1.bf16.msra.mxu1 %v3713_v25  ;;  %v547_v24 = vrot.slane %v422_v12, 1  ;;  %v3725_v25 = vpack.c.bf16 %v364_v9, %v361_v8  ;;  %v393_v8 = vld [vmem:[%s7024_s1 + $0x1d0] sm:$0xff] }
  0x92   : > { %3659 = vmatpush1.bf16.msra.mxu0 %v3658_v26  ;;  %3715 = vmatprep.subr.bf16.mxu1 %v4507_v0  ;;  %v3674_v26 = vpack.c.bf16 %v362_v17, %v359_v16  ;;  %v389_v16 = vld [vmem:[%s7024_s1 + $0x1b0] sm:$0xff]  ;;  %v392_v17 = vld [vmem:[%s7024_s1 + $0x1c8] sm:$0xff] }
  0x93   : > { %3661 = vmatprep.subr.bf16.mxu0 %v3660_v31  ;;  %3229 = vmatprep.mubr.msk.f32.mxu1 %vm556_vm1, %v532_v37  ;;  %v3676_v31 = vpack.c.bf16 %v369_v22, %v366_v21  ;;  %v548_v38 = vsel %vm522_vm0, %v543_v5, %v547_v24  ;;  %v383_v5 = vld [vmem:[%s7024_s1 + $0x180] sm:$0xff] }
  0x94   : > { %3222 = vmatprep.mubr.msk.f32.mxu0 %vm556_vm1, %v532_v37  ;;  %748 = vmatmul.mubr.f32.gmra.mrb[2].mxu1 %v530_v43  ;;  %v375_v37 = vld [vmem:[%s7024_s1 + $0x140] sm:$0xff] }
  0x95   : > { %642 = vmatmul.mubr.f32.gmra.mrb[2].mxu0 %v530_v43  ;;  %3717 = vmatpush1.bf16.msra.mxu1 %v3716_v39  ;;  %v3728_v39 = vpack.c.bf16 %v370_v32, %v367_v27  ;;  %v3680_v43 = vpack.c.bf16 %v375_v37, %v372_v36  ;;  %v399_v21 = vld [vmem:[%s7024_s1 + $0x200] sm:$0xff]  ;;  %v406_v37 = vld [vmem:[%s7024_s1 + $0x238] sm:$0xff] }
  0x96   : > { %3663 = vmatpush1.bf16.msra.mxu0 %v3662_v40  ;;  %3718 = vmatprep.subr.bf16.mxu1 %v4507_v0  ;;  %v3678_v40 = vpack.c.bf16 %v368_v35, %v365_v33  ;;  %v395_v27 = vld [vmem:[%s7024_s1 + $0x1e0] sm:$0xff] }
  0x97   : > { %3665 = vmatprep.subr.bf16.mxu0 %v3664_v45  ;;  %3230 = vmatprep.mubr.msk.f32.mxu1 %vm556_vm1, %v536_v51  ;;  %v371_v45 = vld [vmem:[%s7024_s1 + $0x120] sm:$0xff] }
  0x98   : > { %3223 = vmatprep.mubr.msk.f32.mxu0 %vm556_vm1, %v536_v51  ;;  %753 = vmatmul.mubr.f32.gmra.mrb[4].mxu1 %v534_v57  ;;  %v3682_v51 = vpack.c.bf16 %v374_v46, %v371_v45  ;;  %v403_v35 = vld [vmem:[%s7024_s1 + $0x220] sm:$0xff]  ;;  %v412_v46 = vld [vmem:[%s7024_s1 + $0x268] sm:$0xff] }
  0x99   : > { %648 = vmatmul.mubr.f32.gmra.mrb[4].mxu0 %v534_v57  ;;  %3720 = vmatpush1.bf16.msra.mxu1 %v3719_v53  ;;  %v3684_v53 = vpack.c.bf16 %v381_v49, %v378_v47  ;;  %v384_v57 = vld [vmem:[%s7024_s1 + $0x188] sm:$0xff]  ;;  %v407_v47 = vld [vmem:[%s7024_s1 + $0x240] sm:$0xff]  ;;  %v410_v49 = vld [vmem:[%s7024_s1 + $0x258] sm:$0xff] }
  0x9a   : > { %3667 = vmatpush1.bf16.msra.mxu0 %v3666_v54  ;;  %3721 = vmatprep.subr.bf16.mxu1 %v4507_v0  ;;  %v382_v54 = vld [vmem:[%s7024_s1 + $0x178] sm:$0xff]  ;;  %v3688_v2 = vpack.c.bf16 %v387_v58, %v384_v57  ;;  %v413_v57 = vld [vmem:[%s7024_s1 + $0x270] sm:$0xff]  ;;  %v416_v58 = vld [vmem:[%s7024_s1 + $0x288] sm:$0xff] }
  0x9b   : > { %3669 = vmatprep.subr.bf16.mxu0 %v3668_v60  ;;  %3231 = vmatprep.mubr.msk.f32.mxu1 %vm556_vm1, %v540_v3  ;;  %v322_v60 = vld [vmem:[%s4831_s29 + $0x8] sm:$0xff]  ;;  %v3734_v61 = vpack.c.bf16 %v382_v54, %v379_v52  ;;  %v3749_v52 = vpack.c.bf16 %v412_v46, %v409_v44  ;;  %v415_v54 = vld [vmem:[%s7024_s1 + $0x280] sm:$0xff]  ;;  %v3275_v46 = vld [vmem:[%s7024_s1 + $0x610] sm:$0xff] }
  0x9c   : > { %3224 = vmatprep.mubr.msk.f32.mxu0 %vm556_vm1, %v540_v3  ;;  %758 = vmatmul.mubr.f32.gmra.mrb[6].mxu1 %v538_v10  ;;  %v388_v3 = vld [vmem:[%s7024_s1 + $0x1a8] sm:$0xff] }
  0x9d   : > { %654 = vmatmul.mubr.f32.gmra.mrb[6].mxu0 %v538_v10  ;;  %3723 = vmatpush1.bf16.msra.mxu1 %v3722_v6  ;;  %v386_v6 = vld [vmem:[%s7024_s1 + $0x198] sm:$0xff]  ;;  %v3737_v9 = vpack.c.bf16 %v388_v3, %v385_v1  ;;  %v3710_v1 = vpack.c.bf16 %v416_v58, %v413_v57 }
  0x9e   : > { %3671 = vmatpush1.bf16.msra.mxu0 %v3670_v7  ;;  %3724 = vmatprep.subr.bf16.mxu1 %v4507_v0  ;;  %v390_v7 = vld [vmem:[%s7024_s1 + $0x1b8] sm:$0xff]  ;;  %v3690_v10 = vpack.c.bf16 %v386_v6, %v383_v5  ;;  %v3254_v5 = vld [vmem:[%s7024_s1 + $0x568] sm:$0xff]  ;;  %v3249_v6 = vld [vmem:[%s7024_s1 + $0x540] sm:$0xff] }
  0x9f   : > { %3673 = vmatprep.subr.bf16.mxu0 %v3672_v14  ;;  %3232 = vmatprep.mubr.msk.f32.mxu1 %vm556_vm1, %v544_v23  ;;  %v3692_v12 = vpack.c.bf16 %v393_v8, %v390_v7  ;;  %v394_v14 = vld [vmem:[%s7024_s1 + $0x1d8] sm:$0xff] }
  0xa0   : > { %3225 = vmatprep.mubr.msk.f32.mxu0 %vm556_vm1, %v544_v23  ;;  %763 = vmatmul.mubr.f32.gmra.mrb[8].mxu1 %v542_v28  ;;  %v3740_v22 = vpack.c.bf16 %v394_v14, %v391_v11  ;;  %v3694_v23 = vpack.c.bf16 %v392_v17, %v389_v16  ;;  %v3252_v7 = vld [vmem:[%s7024_s1 + $0x558] sm:$0xff]  ;;  %v3257_v14 = vld [vmem:[%s7024_s1 + $0x580] sm:$0xff] }
  0xa1   : > { %660 = vmatmul.mubr.f32.gmra.mrb[8].mxu0 %v542_v28  ;;  %3726 = vmatpush1.bf16.msra.mxu1 %v3725_v25  ;;  %v3696_v25 = vpack.c.bf16 %v399_v21, %v396_v18  ;;  %v398_v28 = vld [vmem:[%s7024_s1 + $0x1f8] sm:$0xff]  ;;  %v3255_v18 = vld [vmem:[%s7024_s1 + $0x570] sm:$0xff]  ;;  %v3258_v21 = vld [vmem:[%s7024_s1 + $0x588] sm:$0xff] }
  0xa2   : > { %3675 = vmatpush1.bf16.msra.mxu0 %v3674_v26  ;;  %3727 = vmatprep.subr.bf16.mxu1 %v4507_v0  ;;  %v400_v26 = vld [vmem:[%s7024_s1 + $0x208] sm:$0xff]  ;;  %v3698_v33 = vpack.c.bf16 %v398_v28, %v395_v27  ;;  %v3256_v8 = vld [vmem:[%s7024_s1 + $0x578] sm:$0xff] }
  0xa3   : > { %3677 = vmatprep.subr.bf16.mxu0 %v3676_v31  ;;  %3233 = vmatprep.mubr.msk.f32.mxu1 %vm556_vm1, %v548_v38  ;;  %v405_v31 = vld [vmem:[%s7024_s1 + $0x230] sm:$0xff]  ;;  %v3260_v17 = vld [vmem:[%s7024_s1 + $0x598] sm:$0xff]  ;;  %v3266_v28 = vld [vmem:[%s7024_s1 + $0x5c8] sm:$0xff] }
  0xa4   : > { %3226 = vmatprep.mubr.msk.f32.mxu0 %vm556_vm1, %v548_v38  ;;  %768 = vmatmul.mubr.f32.gmra.mrb[10].mxu1 %v546_v42  ;;  %v401_v38 = vld [vmem:[%s7024_s1 + $0x210] sm:$0xff]  ;;  %v3284_v58 = vld [vmem:[%s7024_s1 + $0x658] sm:$0xff] }
  0xa5   : > { %666 = vmatmul.mubr.f32.gmra.mrb[10].mxu0 %v546_v42  ;;  %3729 = vmatpush1.bf16.msra.mxu1 %v3728_v39  ;;  %v404_v39 = vld [vmem:[%s7024_s1 + $0x228] sm:$0xff]  ;;  %v3746_v42 = vpack.c.bf16 %v406_v37, %v403_v35  ;;  %v3269_v37 = vld [vmem:[%s7024_s1 + $0x5e0] sm:$0xff] }
  0xa6   : > { %3679 = vmatpush1.bf16.msra.mxu0 %v3678_v40  ;;  %3730 = vmatprep.subr.bf16.mxu1 %v4507_v0  ;;  %v408_v40 = vld [vmem:[%s7024_s1 + $0x248] sm:$0xff] }
  0xa7   : > { %3681 = vmatprep.subr.bf16.mxu0 %v3680_v43  ;;  %3234 = vmatprep.mubr.msk.f32.mxu1 %vm556_vm1, %v547_v24  ;;  %v3702_v43 = vpack.c.bf16 %v404_v39, %v401_v38  ;;  %v3704_v45 = vpack.c.bf16 %v411_v41, %v408_v40  ;;  %v3272_v39 = vld [vmem:[%s7024_s1 + $0x5f8] sm:$0xff]  ;;  %v3267_v40 = vld [vmem:[%s7024_s1 + $0x5d0] sm:$0xff]  ;;  %v3270_v41 = vld [vmem:[%s7024_s1 + $0x5e8] sm:$0xff] }
  0xa8   : > { %3227 = vmatprep.mubr.msk.f32.mxu0 %vm556_vm1, %v547_v24  ;;  %773 = vmatmul.mubr.f32.gmra.mrb[12].mxu1 %v545_v29  ;;  %v397_v24 = vld [vmem:[%s7024_s1 + $0x1f0] sm:$0xff]  ;;  %v3820_v44 = vpack.c.bf16 %v3272_v39, %v3269_v37  ;;  %v3302_v37 = vld [vmem:[%s7024_s1 + $0x6e8] sm:$0xff]  ;;  %v3300_v39 = vld [vmem:[%s7024_s1 + $0x6d8] sm:$0xff] }
  0xa9   : > { %672 = vmatmul.mubr.f32.gmra.mrb[12].mxu0 %v545_v29  ;;  %3732 = vmatpush1.bf16.msra.mxu1 %v3731_v50  ;;  %v402_v29 = vld [vmem:[%s7024_s1 + $0x218] sm:$0xff]  ;;  %v3743_v32 = vpack.c.bf16 %v400_v26, %v397_v24  ;;  %v3814_v24 = vpack.c.bf16 %v3260_v17, %v3257_v14  ;;  %v3263_v26 = vld [vmem:[%s7024_s1 + $0x5b0] sm:$0xff]  ;;  %v334_v14 = vld [vmem:[%s4831_s29 + $0x68] sm:$0x3]  ;;  %v1099_v17 = vrot.slane %v4843_v13, 2 }
  0xaa   : > { %3683 = vmatpush1.bf16.msra.mxu0 %v3682_v51  ;;  %3733 = vmatprep.subr.bf16.mxu1 %v4507_v0  ;;  %v3700_v36 = vpack.c.bf16 %v405_v31, %v402_v29  ;;  %v414_v50 = vld [vmem:[%s7024_s1 + $0x278] sm:$0xff]  ;;  %v417_v51 = vld [vmem:[%s7024_s1 + $0x290] sm:$0xff]  ;;  %v3261_v29 = vld [vmem:[%s7024_s1 + $0x5a0] sm:$0xff]  ;;  %v3817_v35 = vpack.c.bf16 %v3266_v28, %v3263_v26 }
  0xab   : > { %3685 = vmatprep.subr.bf16.mxu0 %v3684_v53  ;;  %3242 = vmatprep.mubr.msk.f32.mxu1 %vm556_vm1, %v322_v60  ;;  %v3706_v53 = vpack.c.bf16 %v410_v49, %v407_v47  ;;  %v3708_v55 = vpack.c.bf16 %v417_v51, %v414_v50  ;;  %v3264_v31 = vld [vmem:[%s7024_s1 + $0x5b8] sm:$0xff]  ;;  %v3278_v49 = vld [vmem:[%s7024_s1 + $0x628] sm:$0xff]  ;;  %v3273_v50 = vld [vmem:[%s7024_s1 + $0x600] sm:$0xff] }
  0xac   : > { %3235 = vmatprep.mubr.msk.f32.mxu0 %vm556_vm1, %v322_v60  ;;  %v3250_v60 = vld [vmem:[%s7024_s1 + $0x548] sm:$0xff]  ;;  %v3276_v51 = vld [vmem:[%s7024_s1 + $0x618] sm:$0xff]  ;;  %v3291_v26 = vld [vmem:[%s7024_s1 + $0x690] sm:$0xff] }
  0xad   : > { %3735 = vmatpush1.bf16.msra.mxu1 %v3734_v61  ;;  %v3253_v61 = vld [vmem:[%s7024_s1 + $0x560] sm:$0xff]  ;;  %v3298_v28 = vld [vmem:[%s7024_s1 + $0x6c8] sm:$0xff] }
  0xae   : > { %3687 = vmatpush1.bf16.msra.mxu0 %v3686_v62  ;;  %3736 = vmatprep.subr.bf16.mxu1 %v4507_v0  ;;  %v3752_v62 = vpack.c.bf16 %v418_v56, %v415_v54  ;;  %v3754_v3 = vpack.c.bf16 %v3253_v61, %v3250_v60  ;;  %v3823_v54 = vpack.c.bf16 %v3278_v49, %v3275_v46  ;;  %v3281_v56 = vld [vmem:[%s7024_s1 + $0x640] sm:$0xff]  ;;  %v3279_v60 = vld [vmem:[%s7024_s1 + $0x630] sm:$0xff]  ;;  %v3282_v61 = vld [vmem:[%s7024_s1 + $0x648] sm:$0xff] }
  0xaf   : > { %3689 = vmatprep.subr.bf16.mxu0 %v3688_v2  ;;  %v3251_v2 = vld [vmem:[%s7024_s1 + $0x550] sm:$0xff]  ;;  %v3308_v46 = vld [vmem:[%s7024_s1 + $0x718] sm:$0xff]  ;;  %v3306_v49 = vld [vmem:[%s7024_s1 + $0x708] sm:$0xff] }
  0xb0   : > { %v3811_v11 = vpack.c.bf16 %v3254_v5, %v3251_v2  ;;  %v3826_v2 = vpack.c.bf16 %v3284_v58, %v3281_v56  ;;  %v3287_v5 = vld [vmem:[%s7024_s1 + $0x670] sm:$0xff]  ;;  %v3314_v56 = vld [vmem:[%s7024_s1 + $0x748] sm:$0xff]  ;;  %v3312_v58 = vld [vmem:[%s7024_s1 + $0x738] sm:$0xff] }
  0xb1   : > { %3738 = vmatpush1.bf16.msra.mxu1 %v3737_v9  ;;  %v3259_v9 = vld [vmem:[%s7024_s1 + $0x590] sm:$0xff] }
  0xb2   : > { %3691 = vmatpush1.bf16.msra.mxu0 %v3690_v10  ;;  %3739 = vmatprep.subr.bf16.mxu1 %v4507_v0  ;;  %v321_v10 = vld [vmem:[%s4831_s29] sm:$0xff]  ;;  %v3758_v16 = vpack.c.bf16 %v3259_v9, %v3256_v8  ;;  %v3290_v8 = vld [vmem:[%s7024_s1 + $0x688] sm:$0xff] }
  0xb3   : > { %3693 = vmatprep.subr.bf16.mxu0 %v3692_v12  ;;  %v3756_v12 = vpack.c.bf16 %v3252_v7, %v3249_v6  ;;  %v1002_v6 = vld [vmem:[%s4831_s29 + $0x8] sm:$0xfc]  ;;  %v3285_v9 = vld [vmem:[%s7024_s1 + $0x660] sm:$0xff] }
  0xb5   : > { %3741 = vmatpush1.bf16.msra.mxu1 %v3740_v22  ;;  %v3262_v22 = vld [vmem:[%s7024_s1 + $0x5a8] sm:$0xff] }
  0xb6   : > { %3695 = vmatpush1.bf16.msra.mxu0 %v3694_v23  ;;  %3742 = vmatprep.subr.bf16.mxu1 %v4507_v0  ;;  %v3265_v23 = vld [vmem:[%s7024_s1 + $0x5c0] sm:$0xff] }
  0xb7   : > { %3697 = vmatprep.subr.bf16.mxu0 %v3696_v25  ;;  %v3760_v25 = vpack.c.bf16 %v3258_v21, %v3255_v18  ;;  %v3762_v27 = vpack.c.bf16 %v3265_v23, %v3262_v22  ;;  %v3829_v18 = vpack.c.bf16 %v3290_v8, %v3287_v5  ;;  %v333_v22 = vld [vmem:[%s4831_s29 + $0x60] sm:$0x3]  ;;  %v3320_v5 = vld [vmem:[%s7024_s1 + $0x778] sm:$0xff]  ;;  %v3322_v8 = vld [vmem:[%s7024_s1 + $0x788] sm:$0xff] }
  0xb8   : > { %v3293_v23 = vld [vmem:[%s7024_s1 + $0x6a0] sm:$0xff] }
  0xb9   : > { %3744 = vmatpush1.bf16.msra.mxu1 %v3743_v32  ;;  %v3268_v32 = vld [vmem:[%s7024_s1 + $0x5d8] sm:$0xff] }
  0xba   : > { %3699 = vmatpush1.bf16.msra.mxu0 %v3698_v33  ;;  %3745 = vmatprep.subr.bf16.mxu1 %v4507_v0  ;;  %v3271_v33 = vld [vmem:[%s7024_s1 + $0x5f0] sm:$0xff] }
  0xbb   : > { %3701 = vmatprep.subr.bf16.mxu0 %v3700_v36  ;;  %v3764_v36 = vpack.c.bf16 %v3264_v31, %v3261_v29  ;;  %v3766_v38 = vpack.c.bf16 %v3271_v33, %v3268_v32  ;;  %v3301_v29 = vld [vmem:[%s7024_s1 + $0x6e0] sm:$0xff] }
  0xbd   : > { %3747 = vmatpush1.bf16.msra.mxu1 %v3746_v42  ;;  %v3274_v42 = vld [vmem:[%s7024_s1 + $0x608] sm:$0xff] }
  0xbe   : > { %3703 = vmatpush1.bf16.msra.mxu0 %v3702_v43  ;;  %3748 = vmatprep.subr.bf16.mxu1 %v4507_v0  ;;  %v3277_v43 = vld [vmem:[%s7024_s1 + $0x620] sm:$0xff] }
  0xbf   : > { %3705 = vmatprep.subr.bf16.mxu0 %v3704_v45  ;;  %v3768_v45 = vpack.c.bf16 %v3270_v41, %v3267_v40  ;;  %v3770_v47 = vpack.c.bf16 %v3277_v43, %v3274_v42  ;;  %v3304_v40 = vld [vmem:[%s7024_s1 + $0x6f8] sm:$0xff]  ;;  %v3307_v41 = vld [vmem:[%s7024_s1 + $0x710] sm:$0xff] }
  0xc1   : > { %3750 = vmatpush1.bf16.msra.mxu1 %v3749_v52  ;;  %v3280_v52 = vld [vmem:[%s7024_s1 + $0x638] sm:$0xff] }
  0xc2   : > { %3707 = vmatpush1.bf16.msra.mxu0 %v3706_v53  ;;  %3751 = vmatprep.subr.bf16.mxu1 %v4507_v0  ;;  %v3283_v53 = vld [vmem:[%s7024_s1 + $0x650] sm:$0xff] }
  0xc3   : > { %3709 = vmatprep.subr.bf16.mxu0 %v3708_v55  ;;  %v3772_v55 = vpack.c.bf16 %v3276_v51, %v3273_v50  ;;  %v3774_v57 = vpack.c.bf16 %v3283_v53, %v3280_v52  ;;  %v3310_v50 = vld [vmem:[%s7024_s1 + $0x728] sm:$0xff]  ;;  %v3313_v51 = vld [vmem:[%s7024_s1 + $0x740] sm:$0xff] }
  0xc5   : > { %3753 = vmatpush1.bf16.msra.mxu1 %v3752_v62  ;;  %v3286_v62 = vld [vmem:[%s7024_s1 + $0x668] sm:$0xff] }
  0xc6   : > { %3711 = vmatpush1.bf16.msra.mxu0 %v3710_v1  ;;  %3810 = vmatprep.subr.bf16.mxu1 %v4507_v0  ;;  %v3289_v1 = vld [vmem:[%s7024_s1 + $0x680] sm:$0xff] }
  0xc7   : > { %3755 = vmatprep.subr.bf16.mxu0 %v3754_v3  ;;  %v3776_v3 = vpack.c.bf16 %v3282_v61, %v3279_v60  ;;  %v3778_v7 = vpack.c.bf16 %v3289_v1, %v3286_v62  ;;  %v3316_v60 = vld [vmem:[%s7024_s1 + $0x758] sm:$0xff]  ;;  %v3319_v61 = vld [vmem:[%s7024_s1 + $0x770] sm:$0xff] }
  0xc8   : > { %966 = vmatmul.mubr.f32.vlgmr.msra.gmra.mrb[14].mxu1 %v321_v10 }
  0xc9   : > { %859 = vmatmul.mubr.f32.vlgmr.msra.gmra.mrb[0].mxu0 %v321_v10  ;;  %3812 = vmatpush1.bf16.msra.mxu1 %v3811_v11  ;;  %v3288_v10 = vld [vmem:[%s7024_s1 + $0x678] sm:$0xff] }
  0xca   : > { %3757 = vmatpush1.bf16.msra.mxu0 %v3756_v12  ;;  %3813 = vmatprep.subr.bf16.mxu1 %v4507_v0  ;;  %v3292_v11 = vld [vmem:[%s7024_s1 + $0x698] sm:$0xff]  ;;  %v3295_v12 = vld [vmem:[%s7024_s1 + $0x6b0] sm:$0xff]  ;;  %v3780_v21 = vpack.c.bf16 %v3288_v10, %v3285_v9  ;;  %v3325_v9 = vld [vmem:[%s7024_s1 + $0x7a0] sm:$0xff] }
  0xcb   : > { %3759 = vmatprep.subr.bf16.mxu0 %v3758_v16  ;;  %3243 = vmatprep.mubr.msk.f32.mxu1 %vm556_vm1, %v4843_v13  ;;  %v1098_v16 = vrot.slane %v1002_v6, 2  ;;  %v3315_v6 = vld [vmem:[%s7024_s1 + $0x750] sm:$0xff] }
  0xcc   : > { %3236 = vmatprep.mubr.msk.f32.mxu0 %vm556_vm1, %v4843_v13  ;;  %971 = vmatmul.mubr.f32.gmra.mrb[16].mxu1 %v4958_v4 }
  0xcd   : > { %865 = vmatmul.mubr.f32.gmra.mrb[2].mxu0 %v4958_v4  ;;  %3815 = vmatpush1.bf16.msra.mxu1 %v3814_v24  ;;  %v3782_v24 = vpack.c.bf16 %v3295_v12, %v3292_v11  ;;  %v1100_v31 = vsel %vm1094_vm2, %v1098_v16, %v1099_v17  ;;  %v3323_v12 = vld [vmem:[%s7024_s1 + $0x790] sm:$0xff]  ;;  %v3326_v16 = vld [vmem:[%s7024_s1 + $0x7a8] sm:$0xff] }
  0xce   : > { %3761 = vmatpush1.bf16.msra.mxu0 %v3760_v25  ;;  %3816 = vmatprep.subr.bf16.mxu1 %v4507_v0  ;;  %v3296_v25 = vld [vmem:[%s7024_s1 + $0x6b8] sm:$0xff] }
  0xcf   : > { %3763 = vmatprep.subr.bf16.mxu0 %v3762_v27  ;;  %3244 = vmatprep.mubr.msk.f32.mxu1 %vm556_vm1, %v4975_v15  ;;  %v3294_v27 = vld [vmem:[%s7024_s1 + $0x6a8] sm:$0xff]  ;;  %v3832_v32 = vpack.c.bf16 %v3296_v25, %v3293_v23  ;;  %v3331_v23 = vld [vmem:[%s7024_s1 + $0x7d0] sm:$0xff] }
  0xd0   : > { %3237 = vmatprep.mubr.msk.f32.mxu0 %vm556_vm1, %v4975_v15  ;;  %976 = vmatmul.mubr.f32.gmra.mrb[18].mxu1 %v4985_v19  ;;  %v3784_v33 = vpack.c.bf16 %v3294_v27, %v3291_v26  ;;  %v3329_v26 = vld [vmem:[%s7024_s1 + $0x7c0] sm:$0xff]  ;;  %v3332_v27 = vld [vmem:[%s7024_s1 + $0x7d8] sm:$0xff] }
  0xd1   : > { %871 = vmatmul.mubr.f32.gmra.mrb[4].mxu0 %v4985_v19  ;;  %3818 = vmatpush1.bf16.msra.mxu1 %v3817_v35  ;;  %v3299_v35 = vld [vmem:[%s7024_s1 + $0x6d0] sm:$0xff] }
  0xd2   : > { %3765 = vmatpush1.bf16.msra.mxu0 %v3764_v36  ;;  %3819 = vmatprep.subr.bf16.mxu1 %v4507_v0  ;;  %v3786_v36 = vpack.c.bf16 %v3301_v29, %v3298_v28  ;;  %v3835_v42 = vpack.c.bf16 %v3302_v37, %v3299_v35  ;;  %v3327_v29 = vld [vmem:[%s7024_s1 + $0x7b0] sm:$0xff]  ;;  %v3351_v35 = vld [vmem:[%s7024_s1 + $0x800] sm:$0xff] }
  0xd3   : > { %3767 = vmatprep.subr.bf16.mxu0 %v3766_v38  ;;  %3245 = vmatprep.mubr.msk.f32.mxu1 %vm556_vm1, %v5003_v30  ;;  %v3297_v38 = vld [vmem:[%s7024_s1 + $0x6c0] sm:$0xff] }
  0xd4   : > { %3238 = vmatprep.mubr.msk.f32.mxu0 %vm556_vm1, %v5003_v30  ;;  %981 = vmatmul.mubr.f32.gmra.mrb[20].mxu1 %v5013_v34  ;;  %v3788_v43 = vpack.c.bf16 %v3300_v39, %v3297_v38  ;;  %v1096_v39 = vrot.slane %v4958_v4, 2  ;;  %v3350_v4 = vld [vmem:[%s7024_s1 + $0x7f8] sm:$0xff] }
  0xd5   : > { %877 = vmatmul.mubr.f32.gmra.mrb[6].mxu0 %v5013_v34  ;;  %3821 = vmatpush1.bf16.msra.mxu1 %v3820_v44  ;;  %v3305_v44 = vld [vmem:[%s7024_s1 + $0x700] sm:$0xff] }
  0xd6   : > { %3769 = vmatpush1.bf16.msra.mxu0 %v3768_v45  ;;  %3822 = vmatprep.subr.bf16.mxu1 %v4507_v0  ;;  %v3790_v45 = vpack.c.bf16 %v3307_v41, %v3304_v40  ;;  %v3838_v52 = vpack.c.bf16 %v3308_v46, %v3305_v44  ;;  %v3349_v40 = vld [vmem:[%s7024_s1 + $0x7f0] sm:$0xff]  ;;  %v1103_v44 = vrot.slane %v4975_v15, 2  ;;  %v3355_v15 = vld [vmem:[%s7024_s1 + $0x820] sm:$0xff] }
  0xd7   : > { %3771 = vmatprep.subr.bf16.mxu0 %v3770_v47  ;;  %3246 = vmatprep.mubr.msk.f32.mxu1 %vm556_vm1, %v5034_v20  ;;  %v3303_v47 = vld [vmem:[%s7024_s1 + $0x6f0] sm:$0xff] }
  0xd8   : > { %3239 = vmatprep.mubr.msk.f32.mxu0 %vm556_vm1, %v5034_v20  ;;  %986 = vmatmul.mubr.f32.gmra.mrb[22].mxu1 %v5044_v48  ;;  %v3792_v53 = vpack.c.bf16 %v3306_v49, %v3303_v47  ;;  %v3357_v46 = vld [vmem:[%s7024_s1 + $0x830] sm:$0xff] }
  0xd9   : > { %883 = vmatmul.mubr.f32.gmra.mrb[8].mxu0 %v5044_v48  ;;  %3824 = vmatpush1.bf16.msra.mxu1 %v3823_v54  ;;  %v3311_v54 = vld [vmem:[%s7024_s1 + $0x730] sm:$0xff] }
  0xda   : > { %3773 = vmatpush1.bf16.msra.mxu0 %v3772_v55  ;;  %3825 = vmatprep.subr.bf16.mxu1 %v4507_v0  ;;  %v3794_v55 = vpack.c.bf16 %v3313_v51, %v3310_v50  ;;  %v3841_v62 = vpack.c.bf16 %v3314_v56, %v3311_v54  ;;  %v1101_v51 = vrot.slane %v4985_v19, 2  ;;  %v3356_v54 = vld [vmem:[%s7024_s1 + $0x828] sm:$0xff]  ;;  %v1104_v19 = vsel %vm1094_vm2, %v1099_v17, %v1103_v44 }
  0xdb   : > { %3775 = vmatprep.subr.bf16.mxu0 %v3774_v57  ;;  %3247 = vmatprep.mubr.msk.f32.mxu1 %vm556_vm1, %v5065_v59  ;;  %v3309_v57 = vld [vmem:[%s7024_s1 + $0x720] sm:$0xff]  ;;  %v1107_v56 = vrot.slane %v5003_v30, 2  ;;  %v1105_v17 = vrot.slane %v5013_v34, 2  ;;  %v3361_v30 = vld [vmem:[%s7024_s1 + $0x850] sm:$0xff]  ;;  %v3362_v34 = vld [vmem:[%s7024_s1 + $0x858] sm:$0xff] }
  0xdc   : > { %3240 = vmatprep.mubr.msk.f32.mxu0 %vm556_vm1, %v5065_v59  ;;  %991 = vmatmul.mubr.f32.gmra.mrb[24].mxu1 %v5075_v63  ;;  %v3796_v1 = vpack.c.bf16 %v3312_v58, %v3309_v57  ;;  %v3360_v57 = vld [vmem:[%s7024_s1 + $0x848] sm:$0xff]  ;;  %v3363_v58 = vld [vmem:[%s7024_s1 + $0x860] sm:$0xff] }
  0xdd   : > { %889 = vmatmul.mubr.f32.gmra.mrb[10].mxu0 %v5075_v63  ;;  %3827 = vmatpush1.bf16.msra.mxu1 %v3826_v2  ;;  %v3317_v2 = vld [vmem:[%s7024_s1 + $0x760] sm:$0xff] }
  0xde   : > { %3777 = vmatpush1.bf16.msra.mxu0 %v3776_v3  ;;  %3828 = vmatprep.subr.bf16.mxu1 %v4507_v0  ;;  %v3798_v3 = vpack.c.bf16 %v3319_v61, %v3316_v60  ;;  %v3844_v10 = vpack.c.bf16 %v3320_v5, %v3317_v2  ;;  %v1102_v60 = vsel %vm1094_vm2, %v1096_v39, %v1101_v51  ;;  %v1111_v5 = vrot.slane %v5034_v20, 2 }
  0xdf   : > { %3779 = vmatprep.subr.bf16.mxu0 %v3778_v7  ;;  %3248 = vmatprep.mubr.msk.f32.mxu1 %vm556_vm1, %v334_v14  ;;  %v3318_v7 = vld [vmem:[%s7024_s1 + $0x768] sm:$0xff]  ;;  %v1108_v2 = vsel %vm1094_vm2, %v1103_v44, %v1107_v56  ;;  %v1109_v20 = vrot.slane %v5044_v48, 2  ;;  %v3377_v44 = vld [vmem:[%s7024_s1 + $0x8d0] sm:$0xff] }
  0xe0   : > { %3241 = vmatprep.mubr.msk.f32.mxu0 %vm556_vm1, %v334_v14  ;;  %996 = vmatmul.mubr.f32.gmra.mrb[26].mxu1 %v333_v22  ;;  %v3800_v11 = vpack.c.bf16 %v3318_v7, %v3315_v6  ;;  %v3802_v14 = vpack.c.bf16 %v3325_v9, %v3322_v8  ;;  %v3366_v6 = vld [vmem:[%s7024_s1 + $0x878] sm:$0xff]  ;;  %v3369_v7 = vld [vmem:[%s7024_s1 + $0x890] sm:$0xff]  ;;  %v1106_v8 = vsel %vm1094_vm2, %v1101_v51, %v1105_v17  ;;  %v3368_v48 = vld [vmem:[%s7024_s1 + $0x888] sm:$0xff] }
  0xe1   : > { %895 = vmatmul.mubr.f32.gmra.mrb[12].mxu0 %v333_v22  ;;  %3830 = vmatpush1.bf16.msra.mxu1 %v3829_v18  ;;  %v3321_v18 = vld [vmem:[%s7024_s1 + $0x780] sm:$0xff]  ;;  %v3328_v22 = vld [vmem:[%s7024_s1 + $0x7b8] sm:$0xff] }
  0xe2   : > { %3781 = vmatpush1.bf16.msra.mxu0 %v3780_v21  ;;  %3831 = vmatprep.subr.bf16.mxu1 %v4507_v0  ;;  %v3324_v21 = vld [vmem:[%s7024_s1 + $0x798] sm:$0xff]  ;;  %v3806_v28 = vpack.c.bf16 %v3331_v23, %v3328_v22  ;;  %v3372_v22 = vld [vmem:[%s7024_s1 + $0x8a8] sm:$0xff]  ;;  %v3375_v23 = vld [vmem:[%s7024_s1 + $0x8c0] sm:$0xff] }
  0xe3   : > { %3783 = vmatprep.subr.bf16.mxu0 %v3782_v24  ;;  %3340 = vmatprep.mubr.msk.f32.mxu1 %vm556_vm1, %v1100_v31  ;;  %v3847_v24 = vpack.c.bf16 %v3326_v16, %v3323_v12  ;;  %v3804_v25 = vpack.c.bf16 %v3324_v21, %v3321_v18  ;;  %v3370_v12 = vld [vmem:[%s7024_s1 + $0x898] sm:$0xff]  ;;  %v1112_v16 = vsel %vm1094_vm2, %v1107_v56, %v1111_v5  ;;  %v1115_v21 = vrot.slane %v5065_v59, 2 }
  0xe4   : > { %3333 = vmatprep.mubr.msk.f32.mxu0 %vm556_vm1, %v1100_v31  ;;  %v3330_v31 = vld [vmem:[%s7024_s1 + $0x7c8] sm:$0xff]  ;;  %v3864_v18 = vpack.c.bf16 %v3369_v7, %v3366_v6  ;;  %v3386_v56 = vld [vmem:[%s7024_s1 + $0x918] sm:$0xff]  ;;  %v3399_v7 = vld [vmem:[%s7024_s1 + $0x980] sm:$0xff] }
  0xe5   : > { %3833 = vmatpush1.bf16.msra.mxu1 %v3832_v32  ;;  %v1001_v32 = vld [vmem:[%s4831_s29] sm:$0xfc]  ;;  %v3808_v37 = vpack.c.bf16 %v3330_v31, %v3327_v29  ;;  %v3376_v29 = vld [vmem:[%s7024_s1 + $0x8c8] sm:$0xff] }
  0xe6   : > { %3785 = vmatpush1.bf16.msra.mxu0 %v3784_v33  ;;  %3834 = vmatprep.subr.bf16.mxu1 %v4507_v0  ;;  %v3348_v33 = vld [vmem:[%s7024_s1 + $0x7e8] sm:$0xff]  ;;  %v1095_v38 = vrot.slane %v1001_v32, 2  ;;  %v3371_v31 = vld [vmem:[%s7024_s1 + $0x8a0] sm:$0xff] }
  0xe7   : > { %3787 = vmatprep.subr.bf16.mxu0 %v3786_v36  ;;  %v3850_v36 = vpack.c.bf16 %v3332_v27, %v3329_v26  ;;  %v3852_v41 = vpack.c.bf16 %v3351_v35, %v3348_v33  ;;  %v1113_v27 = vrot.slane %v5075_v63, 2  ;;  %v3374_v63 = vld [vmem:[%s7024_s1 + $0x8b8] sm:$0xff]  ;;  %v1003_v32 = vld [vmem:[%s4831_s29 + $0x60] sm:$0xf]  ;;  %v1116_v33 = vsel %vm1094_vm2, %v1111_v5, %v1115_v21  ;;  %v3392_v5 = vld [vmem:[%s7024_s1 + $0x948] sm:$0xff] }
  0xe8   : > { %v1097_v47 = vsel %vm1094_vm2, %v1095_v38, %v1096_v39  ;;  %v3868_v35 = vpack.c.bf16 %v3375_v23, %v3372_v22  ;;  %v3381_v38 = vld [vmem:[%s7024_s1 + $0x8f0] sm:$0xff]  ;;  %v3396_v6 = vld [vmem:[%s7024_s1 + $0x968] sm:$0xff]  ;;  %v3403_v23 = vld [vmem:[%s7024_s1 + $0x9a0] sm:$0xff] }
  0xe9   : > { %3836 = vmatpush1.bf16.msra.mxu1 %v3835_v42  ;;  %v3352_v42 = vld [vmem:[%s7024_s1 + $0x808] sm:$0xff]  ;;  %v1114_v39 = vsel %vm1094_vm2, %v1109_v20, %v1113_v27 }
  0xea   : > { %3789 = vmatpush1.bf16.msra.mxu0 %v3788_v43  ;;  %3837 = vmatprep.subr.bf16.mxu1 %v4507_v0  ;;  %v3347_v43 = vld [vmem:[%s7024_s1 + $0x7e0] sm:$0xff]  ;;  %v3909_v49 = vpack.c.bf16 %v3352_v42, %v3349_v40  ;;  %v1117_v42 = vrot.slane %v1003_v32, 2 }
  0xeb   : > { %3791 = vmatprep.subr.bf16.mxu0 %v3790_v45  ;;  %v3354_v45 = vld [vmem:[%s7024_s1 + $0x818] sm:$0xff]  ;;  %v3854_v50 = vpack.c.bf16 %v3350_v4, %v3347_v43  ;;  %v3379_v43 = vld [vmem:[%s7024_s1 + $0x8e0] sm:$0xff] }
  0xec   : > { %v3382_v4 = vld [vmem:[%s7024_s1 + $0x8f8] sm:$0xff]  ;;  %v1118_v51 = vsel %vm1094_vm2, %v1113_v27, %v1117_v42  ;;  %v3408_v27 = vld [vmem:[%s7024_s1 + $0x9c8] sm:$0xff] }
  0xed   : > { %3839 = vmatpush1.bf16.msra.mxu1 %v3838_v52  ;;  %v3358_v52 = vld [vmem:[%s7024_s1 + $0x838] sm:$0xff] }
  0xee   : > { %3793 = vmatpush1.bf16.msra.mxu0 %v3792_v53  ;;  %3840 = vmatprep.subr.bf16.mxu1 %v4507_v0  ;;  %v3353_v53 = vld [vmem:[%s7024_s1 + $0x810] sm:$0xff]  ;;  %v3912_v13 = vpack.c.bf16 %v3358_v52, %v3355_v15  ;;  %v3924_v15 = vpack.c.bf16 %v3382_v4, %v3379_v43  ;;  %v3418_v43 = vld [vmem:[%s7024_s1 + $0xa18] sm:$0xff] }
  0xef   : > { %3795 = vmatprep.subr.bf16.mxu0 %v3794_v55  ;;  %v3856_v55 = vpack.c.bf16 %v3357_v46, %v3354_v45  ;;  %v3858_v61 = vpack.c.bf16 %v3356_v54, %v3353_v53  ;;  %v3380_v45 = vld [vmem:[%s7024_s1 + $0x8e8] sm:$0xff]  ;;  %v3385_v53 = vld [vmem:[%s7024_s1 + $0x910] sm:$0xff] }
  0xf0   : > { %v3874_v52 = vpack.c.bf16 %v3380_v45, %v3377_v44  ;;  %v1371_v54 = vld [vmem:[%s4831_s29 + $0x8] sm:$0xf8]  ;;  %v3413_v4 = vld [vmem:[%s7024_s1 + $0x9f0] sm:$0xff] }
  0xf1   : > { %3842 = vmatpush1.bf16.msra.mxu1 %v3841_v62  ;;  %v3364_v62 = vld [vmem:[%s7024_s1 + $0x868] sm:$0xff] }
  0xf2   : > { %3797 = vmatpush1.bf16.msra.mxu0 %v3796_v1  ;;  %3843 = vmatprep.subr.bf16.mxu1 %v4507_v0  ;;  %v3359_v1 = vld [vmem:[%s7024_s1 + $0x840] sm:$0xff]  ;;  %v3915_v9 = vpack.c.bf16 %v3364_v62, %v3361_v30  ;;  %v3416_v44 = vld [vmem:[%s7024_s1 + $0xa08] sm:$0xff] }
  0xf3   : > { %3799 = vmatprep.subr.bf16.mxu0 %v3798_v3  ;;  %v3860_v3 = vpack.c.bf16 %v3363_v58, %v3360_v57  ;;  %v3390_v58 = vld [vmem:[%s7024_s1 + $0x938] sm:$0xff]  ;;  %v3420_v45 = vld [vmem:[%s7024_s1 + $0xa28] sm:$0xff] }
  0xf5   : > { %3845 = vmatpush1.bf16.msra.mxu1 %v3844_v10  ;;  %v3862_v10 = vpack.c.bf16 %v3362_v34, %v3359_v1  ;;  %v3391_v1 = vld [vmem:[%s7024_s1 + $0x940] sm:$0xff] }
  0xf6   : > { %3801 = vmatpush1.bf16.msra.mxu0 %v3800_v11  ;;  %3846 = vmatprep.subr.bf16.mxu1 %v4507_v0  ;;  %v3367_v11 = vld [vmem:[%s7024_s1 + $0x880] sm:$0xff] }
  0xf7   : > { %3803 = vmatprep.subr.bf16.mxu0 %v3802_v14  ;;  %v3365_v14 = vld [vmem:[%s7024_s1 + $0x870] sm:$0xff]  ;;  %v3918_v26 = vpack.c.bf16 %v3370_v12, %v3367_v11  ;;  %v3884_v11 = vpack.c.bf16 %v3399_v7, %v3396_v6  ;;  %v3400_v12 = vld [vmem:[%s7024_s1 + $0x988] sm:$0xff] }
  0xf8   : > { %v3866_v59 = vpack.c.bf16 %v3368_v48, %v3365_v14  ;;  %v3395_v14 = vld [vmem:[%s7024_s1 + $0x960] sm:$0xff]  ;;  %v3398_v48 = vld [vmem:[%s7024_s1 + $0x978] sm:$0xff]  ;;  %v5924_v6 = vld [vmem:[%s4831_s29 + $0x10] sm:$0xff] }
  0xf9   : > { %3848 = vmatpush1.bf16.msra.mxu1 %v3847_v24  ;;  %v1004_v24 = vld [vmem:[%s4831_s29 + $0x68] sm:$0xf]  ;;  %v3886_v22 = vpack.c.bf16 %v3398_v48, %v3395_v14  ;;  %v1465_v7 = vrot.slane %v5924_v6, 3  ;;  %v3452_v48 = vld [vmem:[%s7024_s1 + $0xab8] sm:$0xff] }
  0xfa   : > { %3805 = vmatpush1.bf16.msra.mxu0 %v3804_v25  ;;  %3849 = vmatprep.subr.bf16.mxu1 %v4507_v0  ;;  %v1110_v25 = vsel %vm1094_vm2, %v1105_v17, %v1109_v20  ;;  %v3397_v20 = vld [vmem:[%s7024_s1 + $0x970] sm:$0xff] }
  0xfb   : > { %3807 = vmatprep.subr.bf16.mxu0 %v3806_v28  ;;  %v3373_v28 = vld [vmem:[%s7024_s1 + $0x8b0] sm:$0xff] }
  0xfc   : > { %v3921_v40 = vpack.c.bf16 %v3376_v29, %v3373_v28  ;;  %v3411_v28 = vld [vmem:[%s7024_s1 + $0x9e0] sm:$0xff] }
  0xfd   : > { %3851 = vmatpush1.bf16.msra.mxu1 %v3850_v36  ;;  %v5720_v36 = vrot.slane %v1004_v24, 2  ;;  %v3892_v32 = vpack.c.bf16 %v3411_v28, %v3408_v27  ;;  %v3454_v27 = vld [vmem:[%s7024_s1 + $0xac8] sm:$0xff] }
  0xfe   : > { %3809 = vmatpush1.bf16.msra.mxu0 %v3808_v37  ;;  %3908 = vmatprep.subr.bf16.mxu1 %v4507_v0  ;;  %v3378_v37 = vld [vmem:[%s7024_s1 + $0x8d8] sm:$0xff] }
  0xff   : > { %3853 = vmatprep.subr.bf16.mxu0 %v3852_v41  ;;  %v3870_v41 = vpack.c.bf16 %v3374_v63, %v3371_v31  ;;  %v1120_v46 = vsel %vm1094_vm2, %v1115_v21, %v5720_v36  ;;  %v3933_v21 = vpack.c.bf16 %v3400_v12, %v3397_v20  ;;  %v3409_v63 = vld [vmem:[%s7024_s1 + $0x9d0] sm:$0xff]  ;;  %v3445_v20 = vld [vmem:[%s7024_s1 + $0xa80] sm:$0xff]  ;;  %v5941_v12 = vld [vmem:[%s4831_s29 + $0x28] sm:$0xff] }
 0x100   : > { %1314 = vmatmul.mubr.f32.vlgmr.msra.gmra.mrb[28].mxu1 %v1097_v47  ;;  %v1472_v14 = vrot.slane %v5941_v12, 3 }
 0x101   : > { %1207 = vmatmul.mubr.f32.vlgmr.msra.gmra.mrb[0].mxu0 %v1097_v47  ;;  %3910 = vmatpush1.bf16.msra.mxu1 %v3909_v49  ;;  %v3872_v47 = vpack.c.bf16 %v3381_v38, %v3378_v37  ;;  %v3384_v49 = vld [vmem:[%s7024_s1 + $0x908] sm:$0xff]  ;;  %v3414_v37 = vld [vmem:[%s7024_s1 + $0x9f8] sm:$0xff]  ;;  %v3417_v38 = vld [vmem:[%s7024_s1 + $0xa10] sm:$0xff] }
 0x102   : > { %3855 = vmatpush1.bf16.msra.mxu0 %v3854_v50  ;;  %3341 = vmatprep.mubr.msk.f32.mxu1 %vm556_vm1, %v1104_v19  ;;  %v3387_v50 = vld [vmem:[%s7024_s1 + $0x920] sm:$0xff] }
 0x103   : > { %3911 = vmatprep.subr.bf16.mxu1 %v4507_v0  ;;  %3857 = vmatprep.subr.bf16.mxu0 %v3856_v55  ;;  %v3383_v55 = vld [vmem:[%s7024_s1 + $0x900] sm:$0xff]  ;;  %v3876_v57 = vpack.c.bf16 %v3387_v50, %v3384_v49  ;;  %v3898_v49 = vpack.c.bf16 %v3416_v44, %v3413_v4  ;;  %v3421_v50 = vld [vmem:[%s7024_s1 + $0xa30] sm:$0xff]  ;;  %v6002_v44 = vld [vmem:[%s4831_s29 + $0x48] sm:$0xff] }
 0x104   : > { %3334 = vmatprep.mubr.msk.f32.mxu0 %vm556_vm1, %v1104_v19  ;;  %1319 = vmatmul.mubr.f32.gmra.mrb[30].mxu1 %v1102_v60  ;;  %v3388_v19 = vld [vmem:[%s7024_s1 + $0x928] sm:$0xff]  ;;  %v3878_v62 = vpack.c.bf16 %v3386_v56, %v3383_v55 }
 0x105   : > { %1213 = vmatmul.mubr.f32.gmra.mrb[2].mxu0 %v1102_v60  ;;  %3913 = vmatpush1.bf16.msra.mxu1 %v3912_v13  ;;  %v3393_v60 = vld [vmem:[%s7024_s1 + $0x950] sm:$0xff]  ;;  %v1467_v13 = vrot.slane %v1371_v54, 3  ;;  %v3927_v30 = vpack.c.bf16 %v3388_v19, %v3385_v53  ;;  %v3422_v53 = vld [vmem:[%s7024_s1 + $0xa38] sm:$0xff] }
 0x106   : > { %3859 = vmatpush1.bf16.msra.mxu0 %v3858_v61  ;;  %3342 = vmatprep.mubr.msk.f32.mxu1 %vm556_vm1, %v1108_v2  ;;  %v5777_v61 = vld [vmem:[%s4831_s29 + $0x18] sm:$0xff]  ;;  %v3880_v34 = vpack.c.bf16 %v3393_v60, %v3390_v58  ;;  %v3429_v19 = vld [vmem:[%s7024_s1 + $0xa70] sm:$0xff] }
 0x107   : > { %3914 = vmatprep.subr.bf16.mxu1 %v4507_v0  ;;  %3861 = vmatprep.subr.bf16.mxu0 %v3860_v3  ;;  %v1468_v17 = vrot.slane %v5777_v61, 3  ;;  %v3389_v3 = vld [vmem:[%s7024_s1 + $0x930] sm:$0xff]  ;;  %v3426_v54 = vld [vmem:[%s7024_s1 + $0xa58] sm:$0xff] }
 0x108   : > { %3335 = vmatprep.mubr.msk.f32.mxu0 %vm556_vm1, %v1108_v2  ;;  %1324 = vmatmul.mubr.f32.gmra.mrb[32].mxu1 %v1106_v8  ;;  %v3394_v2 = vld [vmem:[%s7024_s1 + $0x958] sm:$0xff]  ;;  %v3904_v60 = vpack.c.bf16 %v3429_v19, %v3426_v54  ;;  %v3463_v19 = vld [vmem:[%s7024_s1 + $0xb10] sm:$0xff] }
 0x109   : > { %1219 = vmatmul.mubr.f32.gmra.mrb[4].mxu0 %v1106_v8  ;;  %3916 = vmatpush1.bf16.msra.mxu1 %v3915_v9  ;;  %v1469_v8 = vsel %vm1463_vm3, %v1467_v13, %v1468_v17  ;;  %v3930_v9 = vpack.c.bf16 %v3394_v2, %v3391_v1  ;;  %v3430_v58 = vld [vmem:[%s7024_s1 + $0xa78] sm:$0xff]  ;;  %v3425_v13 = vld [vmem:[%s7024_s1 + $0xa50] sm:$0xff]  ;;  %v3446_v1 = vld [vmem:[%s7024_s1 + $0xa88] sm:$0xff]  ;;  %v1473_v28 = vsel %vm1463_vm3, %v1468_v17, %v1472_v14 }
 0x10a   : > { %3863 = vmatpush1.bf16.msra.mxu0 %v3862_v10  ;;  %3343 = vmatprep.mubr.msk.f32.mxu1 %vm556_vm1, %v1112_v16  ;;  %v3882_v10 = vpack.c.bf16 %v3392_v5, %v3389_v3  ;;  %v3468_v54 = vld [vmem:[%s7024_s1 + $0xb38] sm:$0xff] }
 0x10b   : > { %3917 = vmatprep.subr.bf16.mxu1 %v4507_v0  ;;  %3865 = vmatprep.subr.bf16.mxu0 %v3864_v18  ;;  %v3405_v18 = vld [vmem:[%s7024_s1 + $0x9b0] sm:$0xff] }
 0x10c   : > { %3336 = vmatprep.mubr.msk.f32.mxu0 %vm556_vm1, %v1112_v16  ;;  %1329 = vmatmul.mubr.f32.gmra.mrb[34].mxu1 %v1110_v25  ;;  %v3402_v16 = vld [vmem:[%s7024_s1 + $0x998] sm:$0xff] }
 0x10d   : > { %1225 = vmatmul.mubr.f32.gmra.mrb[6].mxu0 %v1110_v25  ;;  %3919 = vmatpush1.bf16.msra.mxu1 %v3918_v26  ;;  %v3888_v24 = vpack.c.bf16 %v3405_v18, %v3402_v16  ;;  %v3406_v25 = vld [vmem:[%s7024_s1 + $0x9b8] sm:$0xff]  ;;  %v3401_v26 = vld [vmem:[%s7024_s1 + $0x990] sm:$0xff] }
 0x10e   : > { %3867 = vmatpush1.bf16.msra.mxu0 %v3866_v59  ;;  %3344 = vmatprep.mubr.msk.f32.mxu1 %vm556_vm1, %v1116_v33  ;;  %v3404_v59 = vld [vmem:[%s7024_s1 + $0x9a8] sm:$0xff]  ;;  %v3936_v29 = vpack.c.bf16 %v3406_v25, %v3403_v23  ;;  %v3455_v16 = vld [vmem:[%s7024_s1 + $0xad0] sm:$0xff]  ;;  %v5952_v23 = vld [vmem:[%s4831_s29 + $0x20] sm:$0xff] }
 0x10f   : > { %3920 = vmatprep.subr.bf16.mxu1 %v4507_v0  ;;  %3869 = vmatprep.subr.bf16.mxu0 %v3868_v35  ;;  %v3890_v31 = vpack.c.bf16 %v3404_v59, %v3401_v26  ;;  %v3407_v35 = vld [vmem:[%s7024_s1 + $0x9c0] sm:$0xff]  ;;  %v3456_v26 = vld [vmem:[%s7024_s1 + $0xad8] sm:$0xff]  ;;  %v3451_v59 = vld [vmem:[%s7024_s1 + $0xab0] sm:$0xff] }
 0x110   : > { %3337 = vmatprep.mubr.msk.f32.mxu0 %vm556_vm1, %v1116_v33  ;;  %1334 = vmatmul.mubr.f32.gmra.mrb[36].mxu1 %v1114_v39  ;;  %v3412_v33 = vld [vmem:[%s7024_s1 + $0x9e8] sm:$0xff]  ;;  %v3453_v25 = vld [vmem:[%s7024_s1 + $0xac0] sm:$0xff] }
 0x111   : > { %1231 = vmatmul.mubr.f32.gmra.mrb[8].mxu0 %v1114_v39  ;;  %3922 = vmatpush1.bf16.msra.mxu1 %v3921_v40  ;;  %v3939_v39 = vpack.c.bf16 %v3412_v33, %v3409_v63  ;;  %v3461_v33 = vld [vmem:[%s7024_s1 + $0xb00] sm:$0xff] }
 0x112   : > { %3871 = vmatpush1.bf16.msra.mxu0 %v3870_v41  ;;  %3345 = vmatprep.mubr.msk.f32.mxu1 %vm556_vm1, %v1120_v46  ;;  %v3415_v41 = vld [vmem:[%s7024_s1 + $0xa00] sm:$0xff] }
 0x113   : > { %3923 = vmatprep.subr.bf16.mxu1 %v4507_v0  ;;  %3873 = vmatprep.subr.bf16.mxu0 %v3872_v47  ;;  %v3942_v47 = vpack.c.bf16 %v3418_v43, %v3415_v41  ;;  %v3457_v41 = vld [vmem:[%s7024_s1 + $0xae0] sm:$0xff] }
 0x114   : > { %3338 = vmatprep.mubr.msk.f32.mxu0 %vm556_vm1, %v1120_v46  ;;  %1339 = vmatmul.mubr.f32.gmra.mrb[38].mxu1 %v1118_v51  ;;  %v3423_v46 = vld [vmem:[%s7024_s1 + $0xa40] sm:$0xff] }
 0x115   : > { %1237 = vmatmul.mubr.f32.gmra.mrb[10].mxu0 %v1118_v51  ;;  %3925 = vmatpush1.bf16.msra.mxu1 %v3924_v15  ;;  %v3900_v51 = vpack.c.bf16 %v3423_v46, %v3420_v45  ;;  %v3424_v15 = vld [vmem:[%s7024_s1 + $0xa48] sm:$0xff]  ;;  %v1480_v45 = vrot.slane %v6002_v44, 3  ;;  %v3464_v46 = vld [vmem:[%s7024_s1 + $0xb18] sm:$0xff] }
 0x116   : > { %3875 = vmatpush1.bf16.msra.mxu0 %v3874_v52  ;;  %3346 = vmatprep.mubr.msk.f32.mxu1 %vm556_vm1, %v5720_v36  ;;  %v3419_v52 = vld [vmem:[%s7024_s1 + $0xa20] sm:$0xff]  ;;  %v3945_v55 = vpack.c.bf16 %v3424_v15, %v3421_v50 }
 0x117   : > { %3926 = vmatprep.subr.bf16.mxu1 %v4507_v0  ;;  %3877 = vmatprep.subr.bf16.mxu0 %v3876_v57  ;;  %v3902_v56 = vpack.c.bf16 %v3422_v53, %v3419_v52  ;;  %v3427_v57 = vld [vmem:[%s7024_s1 + $0xa60] sm:$0xff] }
 0x118   : > { %3339 = vmatprep.mubr.msk.f32.mxu0 %vm556_vm1, %v5720_v36  ;;  %1344 = vmatmul.mubr.f32.gmra.mrb[40].mxu1 %v1117_v42  ;;  %v3410_v36 = vld [vmem:[%s7024_s1 + $0x9d8] sm:$0xff]  ;;  %v3948_v2 = vpack.c.bf16 %v3430_v58, %v3427_v57  ;;  %v6014_v15 = vld [vmem:[%s4831_s29 + $0x40] sm:$0xff] }
 0x119   : > { %1243 = vmatmul.mubr.f32.gmra.mrb[12].mxu0 %v1117_v42  ;;  %3928 = vmatpush1.bf16.msra.mxu1 %v3927_v30  ;;  %v3894_v40 = vpack.c.bf16 %v3410_v36, %v3407_v35  ;;  %v3896_v42 = vpack.c.bf16 %v3417_v38, %v3414_v37  ;;  %v3428_v30 = vld [vmem:[%s7024_s1 + $0xa68] sm:$0xff]  ;;  %v4010_v35 = vpack.c.bf16 %v3456_v26, %v3453_v25  ;;  %v5983_v37 = vld [vmem:[%s4831_s29 + $0x30] sm:$0xff]  ;;  %v1478_v52 = vrot.slane %v6014_v15, 3  ;;  %v3465_v53 = vld [vmem:[%s7024_s1 + $0xb20] sm:$0xff] }
 0x11a   : > { %3879 = vmatpush1.bf16.msra.mxu0 %v3878_v62  ;;  %3929 = vmatprep.subr.bf16.mxu1 %v4507_v0  ;;  %v1370_v62 = vld [vmem:[%s4831_s29] sm:$0xf8]  ;;  %v3906_v3 = vpack.c.bf16 %v3428_v30, %v3425_v13  ;;  %v3956_v36 = vpack.c.bf16 %v3454_v27, %v3451_v59  ;;  %v1474_v38 = vrot.slane %v5983_v37, 3  ;;  %v6033_v58 = vld [vmem:[%s4831_s29 + $0x58] sm:$0xff]  ;;  %v3470_v13 = vld [vmem:[%s7024_s1 + $0xb48] sm:$0xff] }
 0x11b   : > { %3881 = vmatprep.subr.bf16.mxu0 %v3880_v34  ;;  %3438 = vmatprep.mubr.msk.f32.mxu1 %vm556_vm1, %v1469_v8  ;;  %v3449_v34 = vld [vmem:[%s7024_s1 + $0xaa0] sm:$0xff]  ;;  %v1464_v5 = vrot.slane %v1370_v62, 3  ;;  %v1373_v62 = vld [vmem:[%s4831_s29 + $0x68] sm:$0x1f]  ;;  %v3480_v59 = vld [vmem:[%s7024_s1 + $0xb98] sm:$0xff] }
 0x11c   : > { %3431 = vmatprep.mubr.msk.f32.mxu0 %vm556_vm1, %v1469_v8  ;;  %v3447_v8 = vld [vmem:[%s7024_s1 + $0xa90] sm:$0xff]  ;;  %v3473_v30 = vld [vmem:[%s7024_s1 + $0xb60] sm:$0xff] }
 0x11d   : > { %3931 = vmatpush1.bf16.msra.mxu1 %v3930_v9  ;;  %v3950_v9 = vpack.c.bf16 %v3449_v34, %v3446_v1  ;;  %v1466_v18 = vsel %vm1463_vm3, %v1464_v5, %v1465_v7  ;;  %v1479_v1 = vsel %vm1463_vm3, %v1474_v38, %v1478_v52  ;;  %v4016_v34 = vpack.c.bf16 %v3468_v54, %v3465_v53  ;;  %v3477_v26 = vld [vmem:[%s7024_s1 + $0xb80] sm:$0xff]  ;;  %v3475_v27 = vld [vmem:[%s7024_s1 + $0xb70] sm:$0xff]  ;;  %v3492_v53 = vld [vmem:[%s7024_s1 + $0xbf8] sm:$0xff] }
 0x11e   : > { %3883 = vmatpush1.bf16.msra.mxu0 %v3882_v10  ;;  %3932 = vmatprep.subr.bf16.mxu1 %v4507_v0  ;;  %v3450_v10 = vld [vmem:[%s7024_s1 + $0xaa8] sm:$0xff]  ;;  %v3487_v54 = vld [vmem:[%s7024_s1 + $0xbd0] sm:$0xff] }
 0x11f   : > { %3885 = vmatprep.subr.bf16.mxu0 %v3884_v11  ;;  %v3448_v11 = vld [vmem:[%s7024_s1 + $0xa98] sm:$0xff] }
 0x121   : > { %3934 = vmatpush1.bf16.msra.mxu1 %v3933_v21  ;;  %v4007_v21 = vpack.c.bf16 %v3450_v10, %v3447_v8  ;;  %v3474_v8 = vld [vmem:[%s7024_s1 + $0xb68] sm:$0xff]  ;;  %v3472_v10 = vld [vmem:[%s7024_s1 + $0xb58] sm:$0xff] }
 0x122   : > { %3887 = vmatpush1.bf16.msra.mxu0 %v3886_v22  ;;  %3935 = vmatprep.subr.bf16.mxu1 %v4507_v0  ;;  %v3952_v22 = vpack.c.bf16 %v3448_v11, %v3445_v20  ;;  %v1372_v20 = vld [vmem:[%s4831_s29 + $0x60] sm:$0x1f] }
 0x123   : > { %3889 = vmatprep.subr.bf16.mxu0 %v3888_v24  ;;  %v1470_v24 = vrot.slane %v5952_v23, 3  ;;  %v1486_v25 = vrot.slane %v1372_v20, 3 }
 0x125   : > { %3937 = vmatpush1.bf16.msra.mxu1 %v3936_v29  ;;  %v3954_v29 = vpack.c.bf16 %v3455_v16, %v3452_v48  ;;  %v1471_v17 = vsel %vm1463_vm3, %v1465_v7, %v1470_v24  ;;  %v3471_v7 = vld [vmem:[%s7024_s1 + $0xb50] sm:$0xff]  ;;  %v1488_v48 = vrot.slane %v1373_v62, 3  ;;  %v3476_v16 = vld [vmem:[%s7024_s1 + $0xb78] sm:$0xff] }
 0x126   : > { %3891 = vmatpush1.bf16.msra.mxu0 %v3890_v31  ;;  %3938 = vmatprep.subr.bf16.mxu1 %v4507_v0  ;;  %v5972_v31 = vld [vmem:[%s4831_s29 + $0x38] sm:$0xff] }
 0x127   : > { %3893 = vmatprep.subr.bf16.mxu0 %v3892_v32  ;;  %v1476_v63 = vrot.slane %v5972_v31, 3  ;;  %v3458_v32 = vld [vmem:[%s7024_s1 + $0xae8] sm:$0xff] }
 0x128   : > { %v3958_v4 = vpack.c.bf16 %v3461_v33, %v3458_v32  ;;  %v3482_v32 = vld [vmem:[%s7024_s1 + $0xba8] sm:$0xff]  ;;  %v3485_v33 = vld [vmem:[%s7024_s1 + $0xbc0] sm:$0xff] }
 0x129   : > { %3940 = vmatpush1.bf16.msra.mxu1 %v3939_v39  ;;  %v3459_v39 = vld [vmem:[%s7024_s1 + $0xaf0] sm:$0xff]  ;;  %v1477_v43 = vsel %vm1463_vm3, %v1472_v14, %v1476_v63  ;;  %v3966_v14 = vpack.c.bf16 %v3473_v30, %v3470_v13 }
 0x12a   : > { %3895 = vmatpush1.bf16.msra.mxu0 %v3894_v40  ;;  %3941 = vmatprep.subr.bf16.mxu1 %v4507_v0  ;;  %v3462_v40 = vld [vmem:[%s7024_s1 + $0xb08] sm:$0xff]  ;;  %v3495_v30 = vld [vmem:[%s7024_s1 + $0xc10] sm:$0xff] }
 0x12b   : > { %3897 = vmatprep.subr.bf16.mxu0 %v3896_v42  ;;  %v3460_v42 = vld [vmem:[%s7024_s1 + $0xaf8] sm:$0xff]  ;;  %v4013_v50 = vpack.c.bf16 %v3462_v40, %v3459_v39  ;;  %v1740_v39 = vld [vmem:[%s4831_s29 + $0x8] sm:$0xf0] }
 0x12c   : > { %v3486_v40 = vld [vmem:[%s7024_s1 + $0xbc8] sm:$0xff] }
 0x12d   : > { %3943 = vmatpush1.bf16.msra.mxu1 %v3942_v47  ;;  %v3467_v47 = vld [vmem:[%s7024_s1 + $0xb30] sm:$0xff] }
 0x12e   : > { %3899 = vmatpush1.bf16.msra.mxu0 %v3898_v49  ;;  %3944 = vmatprep.subr.bf16.mxu1 %v4507_v0  ;;  %v1475_v49 = vsel %vm1463_vm3, %v1470_v24, %v1474_v38  ;;  %v3962_v57 = vpack.c.bf16 %v3467_v47, %v3464_v46  ;;  %v3483_v38 = vld [vmem:[%s7024_s1 + $0xbb0] sm:$0xff]  ;;  %v1836_v46 = vrot.slane %v1740_v39, 4  ;;  %v1837_v47 = vrot.slane %v5777_v61, 4  ;;  %v3518_v39 = vld [vmem:[%s7024_s1 + $0xcc8] sm:$0xff] }
 0x12f   : > { %3901 = vmatprep.subr.bf16.mxu0 %v3900_v51  ;;  %v3960_v51 = vpack.c.bf16 %v3460_v42, %v3457_v41  ;;  %v3481_v41 = vld [vmem:[%s7024_s1 + $0xba0] sm:$0xff]  ;;  %v3484_v42 = vld [vmem:[%s7024_s1 + $0xbb8] sm:$0xff]  ;;  %v1843_v61 = vrot.slane %v5983_v37, 4 }
 0x131   : > { %3946 = vmatpush1.bf16.msra.mxu1 %v3945_v55  ;;  %v3466_v55 = vld [vmem:[%s7024_s1 + $0xb28] sm:$0xff] }
 0x132   : > { %3903 = vmatpush1.bf16.msra.mxu0 %v3902_v56  ;;  %3947 = vmatprep.subr.bf16.mxu1 %v4507_v0  ;;  %v1481_v56 = vsel %vm1463_vm3, %v1476_v63, %v1480_v45 }
 0x133   : > { %3905 = vmatprep.subr.bf16.mxu0 %v3904_v60  ;;  %v1484_v60 = vrot.slane %v6033_v58, 3 }
 0x135   : > { %3949 = vmatpush1.bf16.msra.mxu1 %v3948_v2  ;;  %v3964_v2 = vpack.c.bf16 %v3466_v55, %v3463_v19  ;;  %v1485_v11 = vsel %vm1463_vm3, %v1480_v45, %v1484_v60  ;;  %v3491_v45 = vld [vmem:[%s7024_s1 + $0xbf0] sm:$0xff]  ;;  %v3490_v19 = vld [vmem:[%s7024_s1 + $0xbe8] sm:$0xff] }
 0x136   : > { %3907 = vmatpush1.bf16.msra.mxu0 %v3906_v3  ;;  %4006 = vmatprep.subr.bf16.mxu1 %v4507_v0  ;;  %v6046_v3 = vld [vmem:[%s4831_s29 + $0x50] sm:$0xff]  ;;  %v3494_v55 = vld [vmem:[%s7024_s1 + $0xc08] sm:$0xff]  ;;  %v3980_v13 = vpack.c.bf16 %v3490_v19, %v3487_v54 }
 0x137   : > { %3951 = vmatprep.subr.bf16.mxu0 %v3950_v9  ;;  %v1482_v5 = vrot.slane %v6046_v3, 3  ;;  %v3469_v9 = vld [vmem:[%s7024_s1 + $0xb40] sm:$0xff] }
 0x138   : > { %1683 = vmatmul.mubr.f32.vlgmr.msra.gmra.mrb[42].mxu1 %v1466_v18  ;;  %v3968_v24 = vpack.c.bf16 %v3472_v10, %v3469_v9  ;;  %v3501_v10 = vld [vmem:[%s7024_s1 + $0xc40] sm:$0xff] }
 0x139   : > { %1576 = vmatmul.mubr.f32.vlgmr.msra.gmra.mrb[0].mxu0 %v1466_v18  ;;  %4008 = vmatpush1.bf16.msra.mxu1 %v4007_v21  ;;  %v3479_v18 = vld [vmem:[%s7024_s1 + $0xb90] sm:$0xff]  ;;  %v1483_v21 = vsel %vm1463_vm3, %v1478_v52, %v1482_v5 }
 0x13a   : > { %3953 = vmatpush1.bf16.msra.mxu0 %v3952_v22  ;;  %3439 = vmatprep.mubr.msk.f32.mxu1 %vm556_vm1, %v1473_v28  ;;  %v4019_v22 = vpack.c.bf16 %v3474_v8, %v3471_v7  ;;  %v3970_v63 = vpack.c.bf16 %v3479_v18, %v3476_v16  ;;  %v3503_v7 = vld [vmem:[%s7024_s1 + $0xc50] sm:$0xff]  ;;  %v3506_v16 = vld [vmem:[%s7024_s1 + $0xc68] sm:$0xff]  ;;  %v3509_v18 = vld [vmem:[%s7024_s1 + $0xc80] sm:$0xff] }
 0x13b   : > { %4009 = vmatprep.subr.bf16.mxu1 %v4507_v0  ;;  %3955 = vmatprep.subr.bf16.mxu0 %v3954_v29  ;;  %v1489_v29 = vsel %vm1463_vm3, %v1484_v60, %v1488_v48 }
 0x13c   : > { %3432 = vmatprep.mubr.msk.f32.mxu0 %vm556_vm1, %v1473_v28  ;;  %1688 = vmatmul.mubr.f32.gmra.mrb[44].mxu1 %v1471_v17  ;;  %v3478_v28 = vld [vmem:[%s7024_s1 + $0xb88] sm:$0xff] }
 0x13d   : > { %1582 = vmatmul.mubr.f32.gmra.mrb[2].mxu0 %v1471_v17  ;;  %4011 = vmatpush1.bf16.msra.mxu1 %v4010_v35  ;;  %v1487_v17 = vsel %vm1463_vm3, %v1482_v5, %v1486_v25  ;;  %v4022_v35 = vpack.c.bf16 %v3480_v59, %v3477_v26  ;;  %v3500_v5 = vld [vmem:[%s7024_s1 + $0xc38] sm:$0xff]  ;;  %v3510_v26 = vld [vmem:[%s7024_s1 + $0xc88] sm:$0xff]  ;;  %v3505_v59 = vld [vmem:[%s7024_s1 + $0xc60] sm:$0xff] }
 0x13e   : > { %3957 = vmatpush1.bf16.msra.mxu0 %v3956_v36  ;;  %3440 = vmatprep.mubr.msk.f32.mxu1 %vm556_vm1, %v1477_v43  ;;  %v3972_v36 = vpack.c.bf16 %v3478_v28, %v3475_v27  ;;  %v3986_v20 = vpack.c.bf16 %v3503_v7, %v3500_v5  ;;  %v3508_v27 = vld [vmem:[%s7024_s1 + $0xc78] sm:$0xff]  ;;  %v1834_v7 = vrot.slane %v5924_v6, 4  ;;  %v2478_v6 = vld [vmem:[%s7029_s6 + $0x8] sm:$0xff] }
 0x13f   : > { %4012 = vmatprep.subr.bf16.mxu1 %v4507_v0  ;;  %3959 = vmatprep.subr.bf16.mxu0 %v3958_v4  ;;  %v3488_v4 = vld [vmem:[%s7024_s1 + $0xbd8] sm:$0xff] }
 0x140   : > { %3433 = vmatprep.mubr.msk.f32.mxu0 %vm556_vm1, %v1477_v43  ;;  %1693 = vmatmul.mubr.f32.gmra.mrb[46].mxu1 %v1475_v49  ;;  %v3974_v43 = vpack.c.bf16 %v3485_v33, %v3482_v32  ;;  %v3978_v52 = vpack.c.bf16 %v3491_v45, %v3488_v4  ;;  %v3512_v28 = vld [vmem:[%s7024_s1 + $0xc98] sm:$0xff]  ;;  %v3992_v32 = vpack.c.bf16 %v3508_v27, %v3505_v59  ;;  %v3513_v33 = vld [vmem:[%s7024_s1 + $0xca0] sm:$0xff]  ;;  %v3522_v45 = vld [vmem:[%s7024_s1 + $0xce8] sm:$0xff]  ;;  %v1847_v27 = vrot.slane %v6014_v15, 4 }
 0x141   : > { %1588 = vmatmul.mubr.f32.gmra.mrb[4].mxu0 %v1475_v49  ;;  %4014 = vmatpush1.bf16.msra.mxu1 %v4013_v50  ;;  %v4025_v49 = vpack.c.bf16 %v3486_v40, %v3483_v38  ;;  %v3976_v50 = vpack.c.bf16 %v3484_v42, %v3481_v41  ;;  %v3514_v38 = vld [vmem:[%s7024_s1 + $0xca8] sm:$0xff]  ;;  %v3521_v40 = vld [vmem:[%s7024_s1 + $0xce0] sm:$0xff] }
 0x142   : > { %3961 = vmatpush1.bf16.msra.mxu0 %v3960_v51  ;;  %3441 = vmatprep.mubr.msk.f32.mxu1 %vm556_vm1, %v1481_v56  ;;  %v3489_v51 = vld [vmem:[%s7024_s1 + $0xbe0] sm:$0xff]  ;;  %v3998_v4 = vpack.c.bf16 %v3521_v40, %v3518_v39 }
 0x143   : > { %4015 = vmatprep.subr.bf16.mxu1 %v4507_v0  ;;  %3963 = vmatprep.subr.bf16.mxu0 %v3962_v57  ;;  %v1838_v57 = vsel %vm1832_vm4, %v1836_v46, %v1837_v47  ;;  %v4028_v60 = vpack.c.bf16 %v3492_v53, %v3489_v51  ;;  %v3517_v46 = vld [vmem:[%s7024_s1 + $0xcc0] sm:$0xff]  ;;  %v3527_v51 = vld [vmem:[%s7024_s1 + $0xd10] sm:$0xff] }
 0x144   : > { %3434 = vmatprep.mubr.msk.f32.mxu0 %vm556_vm1, %v1481_v56  ;;  %1698 = vmatmul.mubr.f32.gmra.mrb[48].mxu1 %v1479_v1  ;;  %v3497_v56 = vld [vmem:[%s7024_s1 + $0xc20] sm:$0xff] }
 0x145   : > { %1594 = vmatmul.mubr.f32.gmra.mrb[6].mxu0 %v1479_v1  ;;  %4017 = vmatpush1.bf16.msra.mxu1 %v4016_v34  ;;  %v3982_v62 = vpack.c.bf16 %v3497_v56, %v3494_v55  ;;  %v3498_v1 = vld [vmem:[%s7024_s1 + $0xc28] sm:$0xff]  ;;  %v3493_v34 = vld [vmem:[%s7024_s1 + $0xc00] sm:$0xff]  ;;  %v3528_v56 = vld [vmem:[%s7024_s1 + $0xd18] sm:$0xff] }
 0x146   : > { %3965 = vmatpush1.bf16.msra.mxu0 %v3964_v2  ;;  %3442 = vmatprep.mubr.msk.f32.mxu1 %vm556_vm1, %v1485_v11  ;;  %v3496_v2 = vld [vmem:[%s7024_s1 + $0xc18] sm:$0xff]  ;;  %v4031_v8 = vpack.c.bf16 %v3498_v1, %v3495_v30  ;;  %v3525_v55 = vld [vmem:[%s7024_s1 + $0xd00] sm:$0xff] }
 0x147   : > { %4018 = vmatprep.subr.bf16.mxu1 %v4507_v0  ;;  %3967 = vmatprep.subr.bf16.mxu0 %v3966_v14  ;;  %v3984_v9 = vpack.c.bf16 %v3496_v2, %v3493_v34  ;;  %v3499_v14 = vld [vmem:[%s7024_s1 + $0xc30] sm:$0xff]  ;;  %v1739_v30 = vld [vmem:[%s4831_s29] sm:$0xf0]  ;;  %v4046_v34 = vpack.c.bf16 %v3528_v56, %v3525_v55 }
 0x148   : > { %3435 = vmatprep.mubr.msk.f32.mxu0 %vm556_vm1, %v1485_v11  ;;  %1703 = vmatmul.mubr.f32.gmra.mrb[50].mxu1 %v1483_v21  ;;  %v3504_v11 = vld [vmem:[%s7024_s1 + $0xc58] sm:$0xff]  ;;  %v1833_v5 = vrot.slane %v1739_v30, 4  ;;  %v2173_v55 = vld [vmem:[%s7028_s5 + $0x30] sm:$0xff] }
 0x149   : > { %1600 = vmatmul.mubr.f32.gmra.mrb[8].mxu0 %v1483_v21  ;;  %4020 = vmatpush1.bf16.msra.mxu1 %v4019_v22  ;;  %v4034_v21 = vpack.c.bf16 %v3504_v11, %v3501_v10  ;;  %v2170_v11 = vld [vmem:[%s7028_s5 + $0x18] sm:$0xff] }
 0x14a   : > { %3969 = vmatpush1.bf16.msra.mxu0 %v3968_v24  ;;  %3443 = vmatprep.mubr.msk.f32.mxu1 %vm556_vm1, %v1489_v29  ;;  %v3507_v24 = vld [vmem:[%s7024_s1 + $0xc70] sm:$0xff] }
 0x14b   : > { %4021 = vmatprep.subr.bf16.mxu1 %v4507_v0  ;;  %3971 = vmatprep.subr.bf16.mxu0 %v3970_v63  ;;  %v4037_v63 = vpack.c.bf16 %v3510_v26, %v3507_v24 }
 0x14c   : > { %3436 = vmatprep.mubr.msk.f32.mxu0 %vm556_vm1, %v1489_v29  ;;  %1708 = vmatmul.mubr.f32.gmra.mrb[52].mxu1 %v1487_v17  ;;  %v3515_v29 = vld [vmem:[%s7024_s1 + $0xcb0] sm:$0xff] }
 0x14d   : > { %1606 = vmatmul.mubr.f32.gmra.mrb[10].mxu0 %v1487_v17  ;;  %4023 = vmatpush1.bf16.msra.mxu1 %v4022_v35  ;;  %v3994_v17 = vpack.c.bf16 %v3515_v29, %v3512_v28  ;;  %v3516_v35 = vld [vmem:[%s7024_s1 + $0xcb8] sm:$0xff]  ;;  %v1853_v28 = vrot.slane %v6033_v58, 4 }
 0x14e   : > { %3973 = vmatpush1.bf16.msra.mxu0 %v3972_v36  ;;  %3444 = vmatprep.mubr.msk.f32.mxu1 %vm556_vm1, %v1488_v48  ;;  %v3511_v36 = vld [vmem:[%s7024_s1 + $0xc90] sm:$0xff]  ;;  %v4040_v41 = vpack.c.bf16 %v3516_v35, %v3513_v33  ;;  %v1851_v33 = vrot.slane %v6046_v3, 4  ;;  %v1741_v35 = vld [vmem:[%s4831_s29 + $0x60] sm:$0x3f] }
 0x14f   : > { %4024 = vmatprep.subr.bf16.mxu1 %v4507_v0  ;;  %3975 = vmatprep.subr.bf16.mxu0 %v3974_v43  ;;  %v3996_v42 = vpack.c.bf16 %v3514_v38, %v3511_v36  ;;  %v3519_v43 = vld [vmem:[%s7024_s1 + $0xcd0] sm:$0xff]  ;;  %v1855_v39 = vrot.slane %v1741_v35, 4  ;;  %v2493_v35 = vld [vmem:[%s7029_s6 + $0x80] sm:$0xff] }
 0x150   : > { %3437 = vmatprep.mubr.msk.f32.mxu0 %vm556_vm1, %v1488_v48  ;;  %1713 = vmatmul.mubr.f32.gmra.mrb[54].mxu1 %v1486_v25  ;;  %v3502_v48 = vld [vmem:[%s7024_s1 + $0xc48] sm:$0xff]  ;;  %v4043_v54 = vpack.c.bf16 %v3522_v45, %v3519_v43  ;;  %v1852_v38 = vsel %vm1832_vm4, %v1847_v27, %v1851_v33  ;;  %v2477_v43 = vld [vmem:[%s7029_s6] sm:$0xff]  ;;  %v2479_v45 = vld [vmem:[%s7029_s6 + $0x10] sm:$0xff] }
 0x151   : > { %1612 = vmatmul.mubr.f32.gmra.mrb[12].mxu0 %v1486_v25  ;;  %4026 = vmatpush1.bf16.msra.mxu1 %v4025_v49  ;;  %v3988_v22 = vpack.c.bf16 %v3502_v48, %v3499_v14  ;;  %v3990_v25 = vpack.c.bf16 %v3509_v18, %v3506_v16  ;;  %v3520_v49 = vld [vmem:[%s7024_s1 + $0xcd8] sm:$0xff]  ;;  %v1845_v18 = vrot.slane %v5972_v31, 4  ;;  %v1849_v31 = vrot.slane %v6002_v44, 4  ;;  %v1742_v44 = vld [vmem:[%s4831_s29 + $0x68] sm:$0x3f] }
 0x152   : > { %3977 = vmatpush1.bf16.msra.mxu0 %v3976_v50  ;;  %4027 = vmatprep.subr.bf16.mxu1 %v4507_v0  ;;  %v3524_v50 = vld [vmem:[%s7024_s1 + $0xcf8] sm:$0xff]  ;;  %v4000_v19 = vpack.c.bf16 %v3520_v49, %v3517_v46  ;;  %v1856_v3 = vsel %vm1832_vm4, %v1851_v33, %v1855_v39  ;;  %v4146_v46 = vpack.c.bf16 %v2479_v45, %v2477_v43  ;;  %v2172_v49 = vld [vmem:[%s7028_s5 + $0x28] sm:$0xff]  ;;  %v2185_v33 = vld [vmem:[%s7028_s5 + $0x90] sm:$0xff] }
 0x153   : > { %3979 = vmatprep.subr.bf16.mxu0 %v3978_v52  ;;  %3536 = vmatprep.mubr.msk.f32.mxu1 %vm556_vm1, %v1838_v57  ;;  %v2480_v48 = vld [vmem:[%s7029_s6 + $0x18] sm:$0xff]  ;;  %v1850_v37 = vsel %vm1832_vm4, %v1845_v18, %v1849_v31  ;;  %v1854_v15 = vsel %vm1832_vm4, %v1849_v31, %v1853_v28  ;;  %v2489_v31 = vld [vmem:[%s7029_s6 + $0x60] sm:$0xff] }
 0x154   : > { %3529 = vmatprep.mubr.msk.f32.mxu0 %vm556_vm1, %v1838_v57  ;;  %v4002_v57 = vpack.c.bf16 %v3527_v51, %v3524_v50  ;;  %v2174_v50 = vld [vmem:[%s7028_s5 + $0x38] sm:$0xff]  ;;  %v2482_v51 = vld [vmem:[%s7029_s6 + $0x28] sm:$0xff] }
 0x155   : > { %4029 = vmatpush1.bf16.msra.mxu1 %v4028_v60  ;;  %v3523_v60 = vld [vmem:[%s7024_s1 + $0xcf0] sm:$0xff]  ;;  %v2500_v45 = vld [vmem:[%s7029_s6 + $0xb8] sm:$0xff] }
 0x156   : > { %3981 = vmatpush1.bf16.msra.mxu0 %v3980_v13  ;;  %4030 = vmatprep.subr.bf16.mxu1 %v4507_v0  ;;  %v3526_v13 = vld [vmem:[%s7024_s1 + $0xd08] sm:$0xff] }
 0x157   : > { %3983 = vmatprep.subr.bf16.mxu0 %v3982_v62  ;;  %v4004_v2 = vpack.c.bf16 %v3526_v13, %v3523_v60  ;;  %v2481_v60 = vld [vmem:[%s7029_s6 + $0x20] sm:$0xff]  ;;  %v2483_v13 = vld [vmem:[%s7029_s6 + $0x30] sm:$0xff] }
 0x158   : > { %v4150_v30 = vpack.c.bf16 %v2483_v13, %v2481_v60 }
 0x159   : > { %4032 = vmatpush1.bf16.msra.mxu1 %v4031_v8  ;;  %v1841_v8 = vrot.slane %v5941_v12, 4  ;;  %v1839_v12 = vrot.slane %v5952_v23, 4 }
 0x15a   : > { %3985 = vmatpush1.bf16.msra.mxu0 %v3984_v9  ;;  %4033 = vmatprep.subr.bf16.mxu1 %v4507_v0 }
 0x15b   : > { %3987 = vmatprep.subr.bf16.mxu0 %v3986_v20  ;;  %v2168_v20 = vld [vmem:[%s7028_s5 + $0x8] sm:$0xff]  ;;  %v1842_v16 = vsel %vm1832_vm4, %v1837_v47, %v1841_v8  ;;  %v1840_v23 = vsel %vm1832_vm4, %v1834_v7, %v1839_v12  ;;  %v1846_v47 = vsel %vm1832_vm4, %v1841_v8, %v1845_v18  ;;  %v1844_v59 = vsel %vm1832_vm4, %v1839_v12, %v1843_v61  ;;  %v2175_v8 = vld [vmem:[%s7028_s5 + $0x40] sm:$0xff] }
 0x15c   : > { %v4048_v14 = vpack.c.bf16 %v2170_v11, %v2168_v20 }
 0x15d   : > { %4035 = vmatpush1.bf16.msra.mxu1 %v4034_v21  ;;  %v4144_v21 = vpack.c.bf16 %v2480_v48, %v2478_v6  ;;  %v2485_v6 = vld [vmem:[%s7029_s6 + $0x40] sm:$0xff]  ;;  %v2182_v48 = vld [vmem:[%s7028_s5 + $0x78] sm:$0xff] }
 0x15e   : > { %3989 = vmatpush1.bf16.msra.mxu0 %v3988_v22  ;;  %4036 = vmatprep.subr.bf16.mxu1 %v4507_v0 }
 0x15f   : > { %3991 = vmatprep.subr.bf16.mxu0 %v3990_v25 }
 0x161   : > { %4038 = vmatpush1.bf16.msra.mxu1 %v4037_v63 }
 0x162   : > { %3993 = vmatpush1.bf16.msra.mxu0 %v3992_v32  ;;  %4039 = vmatprep.subr.bf16.mxu1 %v4507_v0  ;;  %v1848_v32 = vsel %vm1832_vm4, %v1843_v61, %v1847_v27  ;;  %v2184_v27 = vld [vmem:[%s7028_s5 + $0x88] sm:$0xff] }
 0x163   : > { %3995 = vmatprep.subr.bf16.mxu0 %v3994_v17  ;;  %v6240_v52 = vpop.f32.mrb[0].mxu1  ;;  %v1857_v17 = vrot.slane %v1742_v44, 4 }
 0x164   : > { %v746_v53 = vpop.f32.mrb[1].mxu1 }
 0x165   : > { %4041 = vmatpush1.bf16.msra.mxu1 %v4040_v41  ;;  %v1858_v40 = vsel %vm1832_vm4, %v1853_v28, %v1857_v17  ;;  %v2167_v41 = vld [vmem:[%s7028_s5] sm:$0xff]  ;;  %v4052_v53 = vpack.c.bf16 %v2174_v50, %v2172_v49  ;;  %v2494_v28 = vld [vmem:[%s7029_s6 + $0x88] sm:$0xff]  ;;  %v2189_v49 = vld [vmem:[%s7028_s5 + $0xb0] sm:$0xff] }
 0x166   : > { %3997 = vmatpush1.bf16.msra.mxu0 %v3996_v42  ;;  %4042 = vmatprep.subr.bf16.mxu1 %v4507_v0  ;;  %v2169_v42 = vld [vmem:[%s7028_s5 + $0x10] sm:$0xff] }
 0x167   : > { %3999 = vmatprep.subr.bf16.mxu0 %v3998_v4  ;;  %v6256_v62 = vpop.f32.mrb[2].mxu1  ;;  %v4050_v4 = vpack.c.bf16 %v2169_v42, %v2167_v41  ;;  %v2498_v41 = vld [vmem:[%s7029_s6 + $0xa8] sm:$0xff] }
 0x168   : > { %v751_v1 = vpop.f32.mrb[3].mxu1  ;;  %v4164_v50 = vpack.c.bf16 %v2500_v45, %v2498_v41  ;;  %v2516_v41 = vld [vmem:[%s7029_s6 + $0x138] sm:$0xff]  ;;  %v2205_v45 = vld [vmem:[%s7028_s5 + $0x130] sm:$0xff] }
 0x169   : > { %4044 = vmatpush1.bf16.msra.mxu1 %v4043_v54  ;;  %v2484_v54 = vld [vmem:[%s7029_s6 + $0x38] sm:$0xff]  ;;  %v2176_v1 = vld [vmem:[%s7028_s5 + $0x48] sm:$0xff] }
 0x16a   : > { %4001 = vmatpush1.bf16.msra.mxu0 %v4000_v19  ;;  %4045 = vmatprep.subr.bf16.mxu1 %v4507_v0  ;;  %v1835_v0 = vsel %vm1832_vm4, %v1833_v5, %v1834_v7  ;;  %v2171_v19 = vld [vmem:[%s7028_s5 + $0x20] sm:$0xff]  ;;  %v4148_v56 = vpack.c.bf16 %v2484_v54, %v2482_v51  ;;  %v2488_v7 = vld [vmem:[%s7029_s6 + $0x58] sm:$0xff] }
 0x16b   : > { %4003 = vmatprep.subr.bf16.mxu0 %v4002_v57  ;;  %v6261_v9 = vpop.f32.mrb[4].mxu1  ;;  %v4054_v57 = vpack.c.bf16 %v2173_v55, %v2171_v19  ;;  %v2192_v55 = vld [vmem:[%s7028_s5 + $0xc8] sm:$0xff] }
 0x16c   : > { %v756_v10 = vpop.f32.mrb[5].mxu1 }
 0x16d   : > { %4047 = vmatpush1.bf16.msra.mxu1 %v4046_v34  ;;  %v2178_v34 = vld [vmem:[%s7028_s5 + $0x58] sm:$0xff]  ;;  %v2177_v10 = vld [vmem:[%s7028_s5 + $0x50] sm:$0xff] }
 0x16e   : > { %4005 = vmatpush1.bf16.msra.mxu0 %v4004_v2  ;;  %4145 = vmatprep.subr.bf16.mxu1 %v4144_v21  ;;  %v2486_v2 = vld [vmem:[%s7029_s6 + $0x48] sm:$0xff]  ;;  %v4056_v5 = vpack.c.bf16 %v2178_v34, %v2176_v1  ;;  %v4058_v11 = vpack.c.bf16 %v2177_v10, %v2175_v8  ;;  %v2492_v21 = vld [vmem:[%s7029_s6 + $0x78] sm:$0xff]  ;;  %v2191_v34 = vld [vmem:[%s7028_s5 + $0xc0] sm:$0xff] }
 0x16f   : > { %v6281_v22 = vpop.f32.mrb[6].mxu1  ;;  %4049 = vmatprep.subr.bf16.mxu0 %v4048_v14  ;;  %v4152_v20 = vpack.c.bf16 %v2488_v7, %v2486_v2  ;;  %v2180_v14 = vld [vmem:[%s7028_s5 + $0x68] sm:$0xff]  ;;  %v2504_v1 = vld [vmem:[%s7029_s6 + $0xd8] sm:$0xff]  ;;  %v2193_v2 = vld [vmem:[%s7028_s5 + $0xd0] sm:$0xff] }
 0x170   : > { %2052 = vmatmul.mubr.f32.vlgmr.msra.gmra.mrb[56].mxu1 %v1835_v0  ;;  %v761_v24 = vpop.f32.mrb[7].mxu1  ;;  %v4060_v18 = vpack.c.bf16 %v2182_v48, %v2180_v14  ;;  %v4074_v7 = vpack.c.bf16 %v2193_v2, %v2191_v34  ;;  %v2503_v8 = vld [vmem:[%s7029_s6 + $0xd0] sm:$0xff]  ;;  %v2517_v34 = vld [vmem:[%s7029_s6 + $0x140] sm:$0xff] }
 0x171   : > { %1945 = vmatmul.mubr.f32.vlgmr.msra.gmra.mrb[0].mxu0 %v1835_v0  ;;  %3537 = vmatprep.mubr.msk.f32.mxu1 %vm556_vm1, %v1842_v16  ;;  %v2487_v0 = vld [vmem:[%s7029_s6 + $0x50] sm:$0xff]  ;;  %v2179_v24 = vld [vmem:[%s7028_s5 + $0x60] sm:$0xff] }
 0x172   : > { %3530 = vmatprep.mubr.msk.f32.mxu0 %vm556_vm1, %v1842_v16  ;;  %4051 = vmatpush1.bf16.msra.mxu0 %v4050_v4  ;;  %v4154_v12 = vpack.c.bf16 %v2487_v0, %v2485_v6  ;;  %v2490_v16 = vld [vmem:[%s7029_s6 + $0x68] sm:$0xff]  ;;  %v2198_v6 = vld [vmem:[%s7028_s5 + $0xf8] sm:$0xff]  ;;  %v2519_v2 = vld [vmem:[%s7029_s6 + $0x150] sm:$0xff] }
 0x173   : > { %v6289_v25 = vpop.f32.mrb[8].mxu1  ;;  %4147 = vmatpush1.bf16.msra.mxu1 %v4146_v46  ;;  %4053 = vmatprep.subr.bf16.mxu0 %v4052_v53  ;;  %v4156_v61 = vpack.c.bf16 %v2492_v21, %v2490_v16  ;;  %v2187_v46 = vld [vmem:[%s7028_s5 + $0xa0] sm:$0xff]  ;;  %v2499_v53 = vld [vmem:[%s7029_s6 + $0xb0] sm:$0xff]  ;;  %v2506_v0 = vld [vmem:[%s7029_s6 + $0xe8] sm:$0xff] }
 0x174   : > { %2057 = vmatmul.mubr.f32.gmra.mrb[58].mxu1 %v1840_v23  ;;  %v766_v26 = vpop.f32.mrb[9].mxu1  ;;  %4149 = vmatprep.subr.bf16.mxu1 %v4148_v56  ;;  %v4070_v51 = vpack.c.bf16 %v2189_v49, %v2187_v46  ;;  %v2194_v56 = vld [vmem:[%s7028_s5 + $0xd8] sm:$0xff]  ;;  %v2197_v21 = vld [vmem:[%s7028_s5 + $0xf0] sm:$0xff]  ;;  %v2513_v46 = vld [vmem:[%s7029_s6 + $0x120] sm:$0xff] }
 0x175   : > { %1951 = vmatmul.mubr.f32.gmra.mrb[2].mxu0 %v1840_v23  ;;  %3538 = vmatprep.mubr.msk.f32.mxu1 %vm556_vm1, %v1846_v47  ;;  %v2181_v23 = vld [vmem:[%s7028_s5 + $0x70] sm:$0xff]  ;;  %v2508_v16 = vld [vmem:[%s7029_s6 + $0xf8] sm:$0xff] }
 0x176   : > { %3531 = vmatprep.mubr.msk.f32.mxu0 %vm556_vm1, %v1846_v47  ;;  %4055 = vmatpush1.bf16.msra.mxu0 %v4054_v57  ;;  %v4062_v47 = vpack.c.bf16 %v2181_v23, %v2179_v24  ;;  %v2491_v26 = vld [vmem:[%s7029_s6 + $0x70] sm:$0xff]  ;;  %v2502_v57 = vld [vmem:[%s7029_s6 + $0xc8] sm:$0xff]  ;;  %v4172_v24 = vpack.c.bf16 %v2508_v16, %v2506_v0  ;;  %v4186_v0 = vpack.c.bf16 %v2519_v2, %v2517_v34  ;;  %v2230_v34 = vld [vmem:[%s7028_s5 + $0x1f8] sm:$0xff] }
 0x177   : > { %v6298_v29 = vpop.f32.mrb[10].mxu1  ;;  %4151 = vmatpush1.bf16.msra.mxu1 %v4150_v30  ;;  %4057 = vmatprep.subr.bf16.mxu0 %v4056_v5  ;;  %v4072_v30 = vpack.c.bf16 %v2194_v56, %v2192_v55  ;;  %v4168_v5 = vpack.c.bf16 %v2504_v1, %v2502_v57  ;;  %v2515_v49 = vld [vmem:[%s7029_s6 + $0x130] sm:$0xff]  ;;  %v2538_v2 = vld [vmem:[%s7029_s6 + $0x1e8] sm:$0xff] }
 0x178   : > { %2062 = vmatmul.mubr.f32.gmra.mrb[60].mxu1 %v1844_v59  ;;  %v771_v63 = vpop.f32.mrb[11].mxu1  ;;  %4153 = vmatprep.subr.bf16.mxu1 %v4152_v20  ;;  %v4182_v56 = vpack.c.bf16 %v2515_v49, %v2513_v46  ;;  %v2209_v1 = vld [vmem:[%s7028_s5 + $0x150] sm:$0xff]  ;;  %v2226_v46 = vld [vmem:[%s7028_s5 + $0x1d8] sm:$0xff]  ;;  %v2534_v49 = vld [vmem:[%s7029_s6 + $0x1c8] sm:$0xff] }
 0x179   : > { %1957 = vmatmul.mubr.f32.gmra.mrb[4].mxu0 %v1844_v59  ;;  %3539 = vmatprep.mubr.msk.f32.mxu1 %vm556_vm1, %v1850_v37  ;;  %v4158_v59 = vpack.c.bf16 %v2491_v26, %v2489_v31  ;;  %v2496_v63 = vld [vmem:[%s7029_s6 + $0x98] sm:$0xff]  ;;  %v2213_v16 = vld [vmem:[%s7028_s5 + $0x170] sm:$0xff] }
 0x17a   : > { %3532 = vmatprep.mubr.msk.f32.mxu0 %vm556_vm1, %v1850_v37  ;;  %4059 = vmatpush1.bf16.msra.mxu0 %v4058_v11  ;;  %v2186_v37 = vld [vmem:[%s7028_s5 + $0x98] sm:$0xff]  ;;  %v2196_v11 = vld [vmem:[%s7028_s5 + $0xe8] sm:$0xff] }
 0x17b   : > { %v6306_v36 = vpop.f32.mrb[12].mxu1  ;;  %4155 = vmatpush1.bf16.msra.mxu1 %v4154_v12  ;;  %4061 = vmatprep.subr.bf16.mxu0 %v4060_v18  ;;  %v4064_v44 = vpack.c.bf16 %v2186_v37, %v2184_v27  ;;  %v4076_v48 = vpack.c.bf16 %v2198_v6, %v2196_v11  ;;  %v2195_v18 = vld [vmem:[%s7028_s5 + $0xe0] sm:$0xff]  ;;  %v2202_v26 = vld [vmem:[%s7028_s5 + $0x118] sm:$0xff] }
 0x17c   : > { %2067 = vmatmul.mubr.f32.gmra.mrb[62].mxu1 %v1848_v32  ;;  %v776_v58 = vpop.f32.mrb[13].mxu1  ;;  %4157 = vmatprep.subr.bf16.mxu1 %v4156_v61  ;;  %v4078_v23 = vpack.c.bf16 %v2197_v21, %v2195_v18  ;;  %v2507_v61 = vld [vmem:[%s7029_s6 + $0xf0] sm:$0xff]  ;;  %v2512_v27 = vld [vmem:[%s7029_s6 + $0x118] sm:$0xff]  ;;  %v2521_v18 = vld [vmem:[%s7029_s6 + $0x160] sm:$0xff] }
 0x17d   : > { %1963 = vmatmul.mubr.f32.gmra.mrb[6].mxu0 %v1848_v32  ;;  %3540 = vmatprep.mubr.msk.f32.mxu1 %vm556_vm1, %v1854_v15  ;;  %v2183_v32 = vld [vmem:[%s7028_s5 + $0x80] sm:$0xff]  ;;  %v2495_v58 = vld [vmem:[%s7029_s6 + $0x90] sm:$0xff] }
 0x17e   : > { %3533 = vmatprep.mubr.msk.f32.mxu0 %vm556_vm1, %v1854_v15  ;;  %4063 = vmatpush1.bf16.msra.mxu0 %v4062_v47  ;;  %v4160_v15 = vpack.c.bf16 %v2496_v63, %v2494_v28  ;;  %v2200_v47 = vld [vmem:[%s7028_s5 + $0x108] sm:$0xff]  ;;  %v2199_v63 = vld [vmem:[%s7028_s5 + $0x100] sm:$0xff]  ;;  %v2523_v21 = vld [vmem:[%s7029_s6 + $0x170] sm:$0xff] }
 0x17f   : > { %4159 = vmatpush1.bf16.msra.mxu1 %v4158_v59  ;;  %4065 = vmatprep.subr.bf16.mxu0 %v4064_v44  ;;  %v2510_v59 = vld [vmem:[%s7029_s6 + $0x108] sm:$0xff]  ;;  %v4080_v28 = vpack.c.bf16 %v2202_v26, %v2200_v47 }
 0x180   : > { %2072 = vmatmul.mubr.f32.gmra.mrb[64].mxu1 %v1852_v38  ;;  %4161 = vmatprep.subr.bf16.mxu1 %v4160_v15  ;;  %v4176_v44 = vpack.c.bf16 %v2512_v27, %v2510_v59  ;;  %v4190_v27 = vpack.c.bf16 %v2523_v21, %v2521_v18  ;;  %v2542_v18 = vld [vmem:[%s7029_s6 + $0x208] sm:$0xff]  ;;  %v2544_v21 = vld [vmem:[%s7029_s6 + $0x218] sm:$0xff] }
 0x181   : > { %1969 = vmatmul.mubr.f32.gmra.mrb[8].mxu0 %v1852_v38  ;;  %3541 = vmatprep.mubr.msk.f32.mxu1 %vm556_vm1, %v1858_v40  ;;  %v4162_v38 = vpack.c.bf16 %v2495_v58, %v2493_v35  ;;  %v2511_v58 = vld [vmem:[%s7029_s6 + $0x110] sm:$0xff] }
 0x182   : > { %3534 = vmatprep.mubr.msk.f32.mxu0 %vm556_vm1, %v1858_v40  ;;  %v2188_v40 = vld [vmem:[%s7028_s5 + $0xa8] sm:$0xff] }
 0x183   : > { %4163 = vmatpush1.bf16.msra.mxu1 %v4162_v38  ;;  %v2204_v38 = vld [vmem:[%s7028_s5 + $0x128] sm:$0xff] }
 0x184   : > { %2077 = vmatmul.mubr.f32.gmra.mrb[66].mxu1 %v1856_v3  ;;  %4165 = vmatprep.subr.bf16.mxu1 %v4164_v50 }
 0x185   : > { %1975 = vmatmul.mubr.f32.gmra.mrb[10].mxu0 %v1856_v3  ;;  %3542 = vmatprep.mubr.msk.f32.mxu1 %vm556_vm1, %v1857_v17  ;;  %v2190_v3 = vld [vmem:[%s7028_s5 + $0xb8] sm:$0xff] }
 0x186   : > { %3535 = vmatprep.mubr.msk.f32.mxu0 %vm556_vm1, %v1857_v17  ;;  %v4066_v17 = vpack.c.bf16 %v2185_v33, %v2183_v32  ;;  %v4068_v4 = vpack.c.bf16 %v2190_v3, %v2188_v40  ;;  %v2201_v32 = vld [vmem:[%s7028_s5 + $0x110] sm:$0xff]  ;;  %v2509_v33 = vld [vmem:[%s7029_s6 + $0x100] sm:$0xff]  ;;  %v2514_v3 = vld [vmem:[%s7029_s6 + $0x128] sm:$0xff] }
 0x187   : > { %v4082_v35 = vpack.c.bf16 %v2201_v32, %v2199_v63  ;;  %v4178_v40 = vpack.c.bf16 %v2511_v58, %v2509_v33  ;;  %v2525_v63 = vld [vmem:[%s7029_s6 + $0x180] sm:$0xff]  ;;  %v2527_v32 = vld [vmem:[%s7029_s6 + $0x190] sm:$0xff]  ;;  %v2220_v33 = vld [vmem:[%s7028_s5 + $0x1a8] sm:$0xff] }
 0x188   : > { %2082 = vmatmul.mubr.f32.gmra.mrb[68].mxu1 %v1855_v39  ;;  %4067 = vmatpush1.bf16.msra.mxu0 %v4066_v17  ;;  %v2532_v58 = vld [vmem:[%s7029_s6 + $0x1b8] sm:$0xff] }
 0x189   : > { %1981 = vmatmul.mubr.f32.gmra.mrb[12].mxu0 %v1855_v39  ;;  %4069 = vmatprep.subr.bf16.mxu0 %v4068_v4  ;;  %v4180_v4 = vpack.c.bf16 %v2516_v41, %v2514_v3  ;;  %v2221_v3 = vld [vmem:[%s7028_s5 + $0x1b0] sm:$0xff]  ;;  %v2529_v41 = vld [vmem:[%s7029_s6 + $0x1a0] sm:$0xff] }
 0x18c   : > { %4071 = vmatpush1.bf16.msra.mxu0 %v4070_v51 }
 0x18d   : > { %4073 = vmatprep.subr.bf16.mxu0 %v4072_v30  ;;  %v2207_v30 = vld [vmem:[%s7028_s5 + $0x140] sm:$0xff] }
 0x190   : > { %4075 = vmatpush1.bf16.msra.mxu0 %v4074_v7  ;;  %v2214_v7 = vld [vmem:[%s7028_s5 + $0x178] sm:$0xff] }
 0x191   : > { %4077 = vmatprep.subr.bf16.mxu0 %v4076_v48  ;;  %v2211_v48 = vld [vmem:[%s7028_s5 + $0x160] sm:$0xff] }
 0x194   : > { %4079 = vmatpush1.bf16.msra.mxu0 %v4078_v23  ;;  %v2218_v23 = vld [vmem:[%s7028_s5 + $0x198] sm:$0xff] }
 0x195   : > { %4081 = vmatprep.subr.bf16.mxu0 %v4080_v28  ;;  %v2215_v28 = vld [vmem:[%s7028_s5 + $0x180] sm:$0xff] }
 0x198   : > { %4083 = vmatpush1.bf16.msra.mxu0 %v4082_v35  ;;  %v2530_v35 = vld [vmem:[%s7029_s6 + $0x1a8] sm:$0xff] }
 0x19b   : > { %v967_v39 = vpop.f32.mrb[14].mxu1 }
 0x19c   : > { %v6435_v42 = vadd.f32 %v967_v39, %v6240_v52  ;;  %v969_v43 = vpop.f32.mrb[15].mxu1  ;;  %v2497_v52 = vld [vmem:[%s7029_s6 + $0xa0] sm:$0xff]  ;;  %v2206_v39 = vld [vmem:[%s7028_s5 + $0x138] sm:$0xff] }
 0x19d   : > { %v4166_v54 = vpack.c.bf16 %v2499_v53, %v2497_v52  ;;  %v2203_v43 = vld [vmem:[%s7028_s5 + $0x120] sm:$0xff]  ;;  %v2208_v52 = vld [vmem:[%s7028_s5 + $0x148] sm:$0xff]  ;;  %v2210_v53 = vld [vmem:[%s7028_s5 + $0x158] sm:$0xff] }
 0x19e   : > { %v4086_v51 = vpack.c.bf16 %v2205_v45, %v2203_v43  ;;  %v4088_v57 = vpack.c.bf16 %v2210_v53, %v2208_v52  ;;  %v4196_v43 = vpack.c.bf16 %v2532_v58, %v2530_v35  ;;  %v2224_v45 = vld [vmem:[%s7028_s5 + $0x1c8] sm:$0xff] }
 0x19f   : > { %v972_v19 = vpop.f32.mrb[16].mxu1  ;;  %4167 = vmatpush1.bf16.msra.mxu1 %v4166_v54  ;;  %v2518_v54 = vld [vmem:[%s7029_s6 + $0x148] sm:$0xff]  ;;  %v4104_v53 = vpack.c.bf16 %v2226_v46, %v2224_v45 }
 0x1a0   : > { %v6462_v60 = vadd.f32 %v972_v19, %v6256_v62  ;;  %v974_v13 = vpop.f32.mrb[17].mxu1  ;;  %v2501_v62 = vld [vmem:[%s7029_s6 + $0xc0] sm:$0xff]  ;;  %4169 = vmatprep.subr.bf16.mxu1 %v4168_v5  ;;  %v2212_v5 = vld [vmem:[%s7028_s5 + $0x168] sm:$0xff] }
 0x1a1   : > { %v4170_v10 = vpack.c.bf16 %v2503_v8, %v2501_v62  ;;  %v2520_v13 = vld [vmem:[%s7029_s6 + $0x158] sm:$0xff]  ;;  %v2522_v62 = vld [vmem:[%s7029_s6 + $0x168] sm:$0xff] }
 0x1a2   : > { %v2524_v8 = vld [vmem:[%s7029_s6 + $0x178] sm:$0xff] }
 0x1a3   : > { %v977_v20 = vpop.f32.mrb[18].mxu1  ;;  %4171 = vmatpush1.bf16.msra.mxu1 %v4170_v10 }
 0x1a4   : > { %v6489_v12 = vadd.f32 %v977_v20, %v6261_v9  ;;  %v979_v14 = vpop.f32.mrb[19].mxu1  ;;  %v2505_v9 = vld [vmem:[%s7029_s6 + $0xe0] sm:$0xff]  ;;  %4173 = vmatprep.subr.bf16.mxu1 %v4172_v24  ;;  %v4090_v20 = vpack.c.bf16 %v2209_v1, %v2207_v30  ;;  %v2216_v24 = vld [vmem:[%s7028_s5 + $0x188] sm:$0xff]  ;;  %v2535_v30 = vld [vmem:[%s7029_s6 + $0x1d0] sm:$0xff] }
 0x1a5   : > { %v4174_v31 = vpack.c.bf16 %v2507_v61, %v2505_v9  ;;  %v4092_v14 = vpack.c.bf16 %v2214_v7, %v2212_v5  ;;  %v2526_v9 = vld [vmem:[%s7029_s6 + $0x188] sm:$0xff]  ;;  %v2528_v61 = vld [vmem:[%s7029_s6 + $0x198] sm:$0xff] }
 0x1a6   : > { %v2540_v7 = vld [vmem:[%s7029_s6 + $0x1f8] sm:$0xff] }
 0x1a7   : > { %v982_v37 = vpop.f32.mrb[20].mxu1  ;;  %4175 = vmatpush1.bf16.msra.mxu1 %v4174_v31  ;;  %v4094_v31 = vpack.c.bf16 %v2213_v16, %v2211_v48  ;;  %v2232_v48 = vld [vmem:[%s7028_s5 + $0x208] sm:$0xff]  ;;  %v2234_v16 = vld [vmem:[%s7028_s5 + $0x218] sm:$0xff] }
 0x1a8   : > { %v6528_v15 = vadd.f32 %v982_v37, %v6281_v22  ;;  %v984_v17 = vpop.f32.mrb[21].mxu1  ;;  %4177 = vmatprep.subr.bf16.mxu1 %v4176_v44  ;;  %v4084_v22 = vpack.c.bf16 %v2206_v39, %v2204_v38  ;;  %v4096_v37 = vpack.c.bf16 %v2218_v23, %v2216_v24  ;;  %v2217_v44 = vld [vmem:[%s7028_s5 + $0x190] sm:$0xff]  ;;  %v4194_v39 = vpack.c.bf16 %v2527_v32, %v2525_v63 }
 0x1a9   : > { %v2222_v17 = vld [vmem:[%s7028_s5 + $0x1b8] sm:$0xff]  ;;  %v4098_v38 = vpack.c.bf16 %v2217_v44, %v2215_v28  ;;  %v4208_v24 = vpack.c.bf16 %v2544_v21, %v2542_v18  ;;  %v2546_v21 = vld [vmem:[%s7029_s6 + $0x228] sm:$0xff] }
 0x1aa   : > { %4085 = vmatprep.subr.bf16.mxu0 %v4084_v22  ;;  %v2219_v22 = vld [vmem:[%s7028_s5 + $0x1a0] sm:$0xff]  ;;  %v2238_v18 = vld [vmem:[%s7028_s5 + $0x238] sm:$0xff] }
 0x1ab   : > { %v987_v50 = vpop.f32.mrb[22].mxu1  ;;  %4179 = vmatpush1.bf16.msra.mxu1 %v4178_v40  ;;  %4087 = vmatpush1.bf16.msra.mxu0 %v4086_v51  ;;  %v4100_v40 = vpack.c.bf16 %v2222_v17, %v2220_v33  ;;  %v4102_v51 = vpack.c.bf16 %v2221_v3, %v2219_v22 }
 0x1ac   : > { %v6567_v19 = vadd.f32 %v987_v50, %v6289_v25  ;;  %v989_v55 = vpop.f32.mrb[23].mxu1  ;;  %4181 = vmatprep.subr.bf16.mxu1 %v4180_v4  ;;  %v4184_v25 = vpack.c.bf16 %v2520_v13, %v2518_v54  ;;  %4089 = vmatprep.subr.bf16.mxu0 %v4088_v57  ;;  %v2531_v4 = vld [vmem:[%s7029_s6 + $0x1b0] sm:$0xff]  ;;  %v2536_v50 = vld [vmem:[%s7029_s6 + $0x1d8] sm:$0xff]  ;;  %v2533_v57 = vld [vmem:[%s7029_s6 + $0x1c0] sm:$0xff] }
 0x1ad   : > { %v4198_v52 = vpack.c.bf16 %v2531_v4, %v2529_v41  ;;  %v4200_v54 = vpack.c.bf16 %v2536_v50, %v2534_v49  ;;  %v2223_v55 = vld [vmem:[%s7028_s5 + $0x1c0] sm:$0xff]  ;;  %v4202_v1 = vpack.c.bf16 %v2535_v30, %v2533_v57  ;;  %v2110_v57 = vlaneseq }
 0x1af   : > { %v992_v10 = vpop.f32.mrb[24].mxu1  ;;  %4183 = vmatpush1.bf16.msra.mxu1 %v4182_v56  ;;  %4091 = vmatpush1.bf16.msra.mxu0 %v4090_v20  ;;  %v2225_v56 = vld [vmem:[%s7028_s5 + $0x1d0] sm:$0xff] }
 0x1b0   : > { %v6597_v11 = vadd.f32 %v992_v10, %v6298_v29  ;;  %v994_v6 = vpop.f32.mrb[25].mxu1  ;;  %4185 = vmatprep.subr.bf16.mxu1 %v4184_v25  ;;  %v4188_v29 = vpack.c.bf16 %v2524_v8, %v2522_v62  ;;  %4093 = vmatprep.subr.bf16.mxu0 %v4092_v14  ;;  %v4106_v13 = vpack.c.bf16 %v2225_v56, %v2223_v55  ;;  %v2228_v25 = vld [vmem:[%s7028_s5 + $0x1e8] sm:$0xff]  ;;  %v2227_v62 = vld [vmem:[%s7028_s5 + $0x1e0] sm:$0xff]  ;;  %v2229_v8 = vld [vmem:[%s7028_s5 + $0x1f0] sm:$0xff] }
 0x1b1   : > { %v4108_v5 = vpack.c.bf16 %v2230_v34, %v2228_v25  ;;  %v4204_v10 = vpack.c.bf16 %v2540_v7, %v2538_v2  ;;  %v4110_v20 = vpack.c.bf16 %v2229_v8, %v2227_v62  ;;  %v2537_v6 = vld [vmem:[%s7029_s6 + $0x1e0] sm:$0xff]  ;;  %v2233_v8 = vld [vmem:[%s7028_s5 + $0x210] sm:$0xff] }
 0x1b2   : > { %v2231_v62 = vld [vmem:[%s7028_s5 + $0x200] sm:$0xff] }
 0x1b3   : > { %v997_v47 = vpop.f32.mrb[26].mxu1  ;;  %4187 = vmatpush1.bf16.msra.mxu1 %v4186_v0  ;;  %4095 = vmatpush1.bf16.msra.mxu0 %v4094_v31  ;;  %v2539_v0 = vld [vmem:[%s7029_s6 + $0x1f0] sm:$0xff] }
 0x1b4   : > { %v6624_v26 = vadd.f32 %v997_v47, %v6306_v36  ;;  %v999_v59 = vpop.f32.mrb[27].mxu1  ;;  %4189 = vmatprep.subr.bf16.mxu1 %v4188_v29  ;;  %v4192_v36 = vpack.c.bf16 %v2528_v61, %v2526_v9  ;;  %4097 = vmatprep.subr.bf16.mxu0 %v4096_v37  ;;  %v4206_v14 = vpack.c.bf16 %v2539_v0, %v2537_v6 }
 0x1b5   : > { %v4112_v29 = vpack.c.bf16 %v2234_v16, %v2232_v48  ;;  %v2543_v48 = vld [vmem:[%s7029_s6 + $0x210] sm:$0xff]  ;;  %v2236_v16 = vld [vmem:[%s7028_s5 + $0x228] sm:$0xff] }
 0x1b7   : > { %4191 = vmatpush1.bf16.msra.mxu1 %v4190_v27  ;;  %4099 = vmatpush1.bf16.msra.mxu0 %v4098_v38 }
 0x1b8   : > { %4193 = vmatprep.subr.bf16.mxu1 %v4192_v36  ;;  %4101 = vmatprep.subr.bf16.mxu0 %v4100_v40 }
 0x1bb   : > { %4195 = vmatpush1.bf16.msra.mxu1 %v4194_v39  ;;  %4103 = vmatpush1.bf16.msra.mxu0 %v4102_v51 }
 0x1bc   : > { %4197 = vmatprep.subr.bf16.mxu1 %v4196_v43  ;;  %4105 = vmatprep.subr.bf16.mxu0 %v4104_v53 }
 0x1bf   : > { %4199 = vmatpush1.bf16.msra.mxu1 %v4198_v52  ;;  %4107 = vmatpush1.bf16.msra.mxu0 %v4106_v13  ;;  %v6739_v13 = vshrl.u32 %v2110_v57, 7  ;;  %v2244_v57 = vld [vmem:[%s7028_s5 + $0x268] sm:$0xff] }
 0x1c0   : > { %4201 = vmatprep.subr.bf16.mxu1 %v4200_v54  ;;  %4109 = vmatprep.subr.bf16.mxu0 %v4108_v5 }
 0x1c1   : > { %v2112_v30 = vsub.s32 0, %v6739_v13  ;;  %v2116_v25 = vsub.s32 1, %v6739_v13 }
 0x1c3   : > { %4203 = vmatpush1.bf16.msra.mxu1 %v4202_v1  ;;  %4111 = vmatpush1.bf16.msra.mxu0 %v4110_v20  ;;  %v6742_v1 = vld [vmem:[#allocation2] sm:$0x7] }
 0x1c4   : > { %4205 = vmatprep.subr.bf16.mxu1 %v4204_v10  ;;  %4113 = vmatprep.subr.bf16.mxu0 %v4112_v29  ;;  %v6746_v34 = vrot.slane %v6742_v1, %v2112_v30  ;;  %v6749_v2 = vrot.slane %v6742_v1, %v2116_v25  ;;  %v2541_v10 = vld [vmem:[%s7029_s6 + $0x200] sm:$0xff]  ;;  %v2554_v25 = vld [vmem:[%s7029_s6 + $0x268] sm:$0xff] }
 0x1c7   : > { %4207 = vmatpush1.bf16.msra.mxu1 %v4206_v14 }
 0x1c8   : > { %4209 = vmatprep.subr.bf16.mxu1 %v4208_v24  ;;  %v2548_v24 = vld [vmem:[%s7029_s6 + $0x238] sm:$0xff] }
 0x1d3   : > { %v1315_v23 = vpop.f32.mrb[28].mxu1 }
 0x1d4   : > { %v1351_v9 = vadd.f32 %v1315_v23, %v6435_v42  ;;  %v1317_v61 = vpop.f32.mrb[29].mxu1 }
 0x1d7   : > { %v1320_v47 = vpop.f32.mrb[30].mxu1 }
 0x1d8   : > { %v1354_v31 = vadd.f32 %v1320_v47, %v6462_v60  ;;  %v1322_v59 = vpop.f32.mrb[31].mxu1  ;;  %v4114_v47 = vpack.c.bf16 %v2233_v8, %v2231_v62 }
 0x1d9   : > { %v4116_v59 = vpack.c.bf16 %v2238_v18, %v2236_v16  ;;  %v2553_v16 = vld [vmem:[%s7029_s6 + $0x260] sm:$0xff] }
 0x1db   : > { %v1325_v27 = vpop.f32.mrb[32].mxu1 }
 0x1dc   : > { %v1357_v37 = vadd.f32 %v1325_v27, %v6489_v12  ;;  %v1327_v28 = vpop.f32.mrb[33].mxu1  ;;  %v2235_v27 = vld [vmem:[%s7028_s5 + $0x220] sm:$0xff] }
 0x1dd   : > { %v2545_v28 = vld [vmem:[%s7029_s6 + $0x220] sm:$0xff] }
 0x1df   : > { %v1330_v44 = vpop.f32.mrb[34].mxu1 }
 0x1e0   : > { %v1360_v63 = vadd.f32 %v1330_v44, %v6528_v15  ;;  %v1332_v36 = vpop.f32.mrb[35].mxu1 }
 0x1e3   : > { %v1335_v32 = vpop.f32.mrb[36].mxu1 }
 0x1e4   : > { %v1363_v33 = vadd.f32 %v1335_v32, %v6567_v19  ;;  %v1337_v17 = vpop.f32.mrb[37].mxu1 }
 0x1e5   : > { %v4212_v17 = vpack.c.bf16 %v2548_v24, %v2546_v21 }
 0x1e7   : > { %v1340_v35 = vpop.f32.mrb[38].mxu1 }
 0x1e8   : > { %v1366_v42 = vadd.f32 %v1340_v35, %v6597_v11  ;;  %v1342_v58 = vpop.f32.mrb[39].mxu1  ;;  %v2547_v35 = vld [vmem:[%s7029_s6 + $0x230] sm:$0xff] }
 0x1e9   : > { %v2242_v58 = vld [vmem:[%s7028_s5 + $0x258] sm:$0xff] }
 0x1eb   : > { %v1345_v38 = vpop.f32.mrb[40].mxu1 }
 0x1ec   : > { %v1369_v60 = vadd.f32 %v1345_v38, %v6624_v26  ;;  %v1347_v39 = vpop.f32.mrb[41].mxu1 }
 0x1ed   : > { %v2552_v39 = vld [vmem:[%s7029_s6 + $0x258] sm:$0xff] }
 0x20b   : > { %v1684_v40 = vpop.f32.mrb[42].mxu1 }
 0x20c   : > { %v1720_v22 = vadd.f32 %v1684_v40, %v1351_v9  ;;  %v1686_v12 = vpop.f32.mrb[43].mxu1 }
 0x20f   : > { %v1689_v3 = vpop.f32.mrb[44].mxu1 }
 0x210   : > { %v1723_v41 = vadd.f32 %v1689_v3, %v1354_v31  ;;  %v1691_v43 = vpop.f32.mrb[45].mxu1  ;;  %v4210_v31 = vpack.c.bf16 %v2543_v48, %v2541_v10  ;;  %v2245_v48 = vld [vmem:[%s7028_s5 + $0x270] sm:$0xff] }
 0x213   : > { %v1694_v15 = vpop.f32.mrb[46].mxu1 }
 0x214   : > { %v6729_v4 = vadd.f32 %v1694_v15, %v1357_v37  ;;  %v1696_v45 = vpop.f32.mrb[47].mxu1  ;;  %v2237_v37 = vld [vmem:[%s7028_s5 + $0x230] sm:$0xff]  ;;  %v2239_v15 = vld [vmem:[%s7028_s5 + $0x240] sm:$0xff] }
 0x215   : > { %v4118_v3 = vpack.c.bf16 %v2237_v37, %v2235_v27  ;;  %v2241_v45 = vld [vmem:[%s7028_s5 + $0x250] sm:$0xff]  ;;  %v2560_v27 = vld [vmem:[%s7029_s6 + $0x298] sm:$0xff] }
 0x216   : > { %v4122_v10 = vpack.c.bf16 %v2241_v45, %v2239_v15  ;;  %v2564_v15 = vld [vmem:[%s7029_s6 + $0x2b8] sm:$0xff] }
 0x217   : > { %v1699_v19 = vpop.f32.mrb[48].mxu1 }
 0x218   : > { %v6731_v46 = vadd.f32 %v1699_v19, %v1360_v63  ;;  %v1701_v49 = vpop.f32.mrb[49].mxu1  ;;  %v2549_v19 = vld [vmem:[%s7029_s6 + $0x240] sm:$0xff] }
 0x21b   : > { %v1704_v11 = vpop.f32.mrb[50].mxu1 }
 0x21c   : > { %v6733_v50 = vadd.f32 %v1704_v11, %v1363_v33  ;;  %v1706_v51 = vpop.f32.mrb[51].mxu1 }
 0x21f   : > { %v1709_v26 = vpop.f32.mrb[52].mxu1 }
 0x220   : > { %v6735_v52 = vadd.f32 %v1709_v26, %v1366_v42  ;;  %v1711_v53 = vpop.f32.mrb[53].mxu1  ;;  %v2240_v42 = vld [vmem:[%s7028_s5 + $0x248] sm:$0xff] }
 0x221   : > { %v4120_v43 = vpack.c.bf16 %v2242_v58, %v2240_v42  ;;  %v2557_v42 = vld [vmem:[%s7029_s6 + $0x280] sm:$0xff] }
 0x223   : > { %v1714_v54 = vpop.f32.mrb[54].mxu1 }
 0x224   : > { %v6737_v55 = vadd.f32 %v1714_v54, %v1369_v60  ;;  %v1716_v56 = vpop.f32.mrb[55].mxu1  ;;  %v2550_v60 = vld [vmem:[%s7029_s6 + $0x248] sm:$0xff] }
 0x225   : > { %v4216_v54 = vpack.c.bf16 %v2552_v39, %v2550_v60  ;;  %v2551_v56 = vld [vmem:[%s7029_s6 + $0x250] sm:$0xff] }
 0x243   : > { %v2053_v5 = vpop.f32.mrb[56].mxu1 }
 0x244   : > { %v1946_v7 = vpop.f32.mrb[0].mxu0  ;;  %v6760_v20 = vadd.f32 %v2053_v5, %v1720_v22  ;;  %v2055_v14 = vpop.f32.mrb[57].mxu1  ;;  %v2556_v5 = vld [vmem:[%s7029_s6 + $0x278] sm:$0xff] }
 0x245   : > { %v2125_v6 = vadd.f32 %v6746_v34, %v1946_v7  ;;  %v1948_v0 = vpop.f32.mrb[1].mxu0  ;;  %v2243_v14 = vld [vmem:[%s7028_s5 + $0x260] sm:$0xff] }
 0x246   : > { %v2126_v29 = vadd.f32 %v6749_v2, %v1948_v0 }
 0x247   : > { %v2058_v9 = vpop.f32.mrb[58].mxu1  ;;  %v2146_v44 = vmax.f32 %v2125_v6, 0.0  ;;  %v4218_v6 = vpack.c.bf16 %v2551_v56, %v2549_v19  ;;  %v2253_v56 = vld [vmem:[%s7028_s5 + $0x2b0] sm:$0xff] }
 0x248   : > { %v2147_v23 = vmax.f32 %v2126_v29, 0.0  ;;  %v1952_v61 = vpop.f32.mrb[2].mxu0  ;;  %v6788_v63 = vadd.f32 %v2058_v9, %v1723_v41  ;;  %v2060_v33 = vpop.f32.mrb[59].mxu1  ;;  %v4214_v41 = vpack.c.bf16 %v2547_v35, %v2545_v28  ;;  %v4220_v9 = vpack.c.bf16 %v2556_v5, %v2554_v25  ;;  %v2249_v35 = vld [vmem:[%s7028_s5 + $0x290] sm:$0xff] }
 0x249   : > { %v2128_v36 = vadd.f32 %v6746_v34, %v1952_v61  ;;  %v1954_v32 = vpop.f32.mrb[3].mxu0  ;;  %v2555_v61 = vld [vmem:[%s7029_s6 + $0x270] sm:$0xff] }
 0x24a   : > { %v2129_v38 = vadd.f32 %v6749_v2, %v1954_v32  ;;  %2327 = vmatprep.mubr.f32.mxu0 %v2147_v23  ;;  %2637 = vmatprep.mubr.f32.mxu1 %v2147_v23  ;;  %v4222_v32 = vpack.c.bf16 %v2555_v61, %v2553_v16  ;;  %v2255_v61 = vld [vmem:[%s7028_s5 + $0x2c0] sm:$0xff] }
 0x24b   : > { %2328 = vmatmul.mubr.f32.vlgmr.msra.gmra.mrb[14].mxu0 %v2146_v44  ;;  %2638 = vmatmul.mubr.f32.vlgmr.msra.gmra.mrb[70].mxu1 %v2146_v44  ;;  %v2063_v22 = vpop.f32.mrb[60].mxu1  ;;  %v2149_v49 = vmax.f32 %v2128_v36, 0.0  ;;  %v4126_v36 = vpack.c.bf16 %v2245_v48, %v2243_v14  ;;  %v2568_v14 = vld [vmem:[%s7029_s6 + $0x2d8] sm:$0xff]  ;;  %v2120_v48 = vsub.s32 2, %v6739_v13 }
 0x24c   : > { %v2150_v40 = vmax.f32 %v2129_v38, 0.0  ;;  %4115 = vmatpush1.bf16.msra.mxu0 %v4114_v47  ;;  %4211 = vmatpush1.bf16.msra.mxu1 %v4210_v31  ;;  %v1958_v12 = vpop.f32.mrb[4].mxu0  ;;  %v6817_v11 = vadd.f32 %v2063_v22, %v6729_v4  ;;  %v2065_v53 = vpop.f32.mrb[61].mxu1  ;;  %v2246_v4 = vld [vmem:[%s7028_s5 + $0x278] sm:$0xff]  ;;  %v2248_v47 = vld [vmem:[%s7028_s5 + $0x288] sm:$0xff] }
 0x24d   : > { %v2131_v51 = vadd.f32 %v6746_v34, %v1958_v12  ;;  %v1960_v26 = vpop.f32.mrb[5].mxu0  ;;  %4117 = vmatprep.subr.bf16.mxu0 %v4116_v59  ;;  %4213 = vmatprep.subr.bf16.mxu1 %v4212_v17  ;;  %v4124_v0 = vpack.c.bf16 %v2246_v4, %v2244_v57  ;;  %v2558_v59 = vld [vmem:[%s7029_s6 + $0x288] sm:$0xff]  ;;  %v2247_v17 = vld [vmem:[%s7028_s5 + $0x280] sm:$0xff]  ;;  %v2559_v12 = vld [vmem:[%s7029_s6 + $0x290] sm:$0xff] }
 0x24e   : > { %v2132_v30 = vadd.f32 %v6749_v2, %v1960_v26  ;;  %2333 = vmatprep.mubr.f32.mxu0 %v2150_v40  ;;  %2643 = vmatprep.mubr.f32.mxu1 %v2150_v40  ;;  %v4224_v22 = vpack.c.bf16 %v2560_v27, %v2558_v59  ;;  %v4226_v26 = vpack.c.bf16 %v2559_v12, %v2557_v42  ;;  %v2561_v57 = vld [vmem:[%s7029_s6 + $0x2a0] sm:$0xff] }
 0x24f   : > { %2334 = vmatmul.mubr.f32.gmra.mrb[16].mxu0 %v2149_v49  ;;  %2644 = vmatmul.mubr.f32.gmra.mrb[72].mxu1 %v2149_v49  ;;  %v2068_v62 = vpop.f32.mrb[62].mxu1  ;;  %v2152_v18 = vmax.f32 %v2131_v51, 0.0  ;;  %v4130_v51 = vpack.c.bf16 %v2249_v35, %v2247_v17  ;;  %v2259_v42 = vld [vmem:[%s7028_s5 + $0x2e0] sm:$0xff] }
 0x250   : > { %v2153_v7 = vmax.f32 %v2132_v30, 0.0  ;;  %4119 = vmatpush1.bf16.msra.mxu0 %v4118_v3  ;;  %4215 = vmatpush1.bf16.msra.mxu1 %v4214_v41  ;;  %v1964_v8 = vpop.f32.mrb[6].mxu0  ;;  %v6846_v29 = vadd.f32 %v2068_v62, %v6731_v46  ;;  %v2070_v23 = vpop.f32.mrb[63].mxu1  ;;  %v2250_v46 = vld [vmem:[%s7028_s5 + $0x298] sm:$0xff]  ;;  %v2252_v3 = vld [vmem:[%s7028_s5 + $0x2a8] sm:$0xff]  ;;  %v2569_v12 = vld [vmem:[%s7029_s6 + $0x2e0] sm:$0xff] }
 0x251   : > { %v2134_v21 = vadd.f32 %v6746_v34, %v1964_v8  ;;  %v1966_v24 = vpop.f32.mrb[7].mxu0  ;;  %4121 = vmatprep.subr.bf16.mxu0 %v4120_v43  ;;  %4217 = vmatprep.subr.bf16.mxu1 %v4216_v54  ;;  %v4128_v33 = vpack.c.bf16 %v2250_v46, %v2248_v47  ;;  %v2562_v43 = vld [vmem:[%s7029_s6 + $0x2a8] sm:$0xff]  ;;  %v2251_v54 = vld [vmem:[%s7028_s5 + $0x2a0] sm:$0xff]  ;;  %v2563_v8 = vld [vmem:[%s7029_s6 + $0x2b0] sm:$0xff] }
 0x252   : > { %v2135_v31 = vadd.f32 %v6749_v2, %v1966_v24  ;;  %2339 = vmatprep.mubr.f32.mxu0 %v2153_v7  ;;  %2649 = vmatprep.mubr.f32.mxu1 %v2153_v7  ;;  %v4228_v62 = vpack.c.bf16 %v2564_v15, %v2562_v43  ;;  %v4134_v24 = vpack.c.bf16 %v2253_v56, %v2251_v54  ;;  %v2257_v47 = vld [vmem:[%s7028_s5 + $0x2d0] sm:$0xff]  ;;  %v4508_v43 = vmov 0.0  }
 0x253   : > { %2340 = vmatmul.mubr.f32.gmra.mrb[18].mxu0 %v2152_v18  ;;  %2650 = vmatmul.mubr.f32.gmra.mrb[74].mxu1 %v2152_v18  ;;  %v2073_v28 = vpop.f32.mrb[64].mxu1  ;;  %v2155_v58 = vmax.f32 %v2134_v21, 0.0  ;;  %v4230_v23 = vpack.c.bf16 %v2563_v8, %v2561_v57 }
 0x254   : > { %v2156_v37 = vmax.f32 %v2135_v31, 0.0  ;;  %4123 = vmatpush1.bf16.msra.mxu0 %v4122_v10  ;;  %4219 = vmatpush1.bf16.msra.mxu1 %v4218_v6  ;;  %v1970_v44 = vpop.f32.mrb[8].mxu0  ;;  %v6875_v38 = vadd.f32 %v2073_v28, %v6733_v50  ;;  %v2075_v40 = vpop.f32.mrb[65].mxu1  ;;  %v2254_v50 = vld [vmem:[%s7028_s5 + $0x2b8] sm:$0xff]  ;;  %v2256_v10 = vld [vmem:[%s7028_s5 + $0x2c8] sm:$0xff]  ;;  %v2567_v28 = vld [vmem:[%s7029_s6 + $0x2d0] sm:$0xff] }
 0x255   : > { %v2137_v60 = vadd.f32 %v6746_v34, %v1970_v44  ;;  %v1972_v39 = vpop.f32.mrb[9].mxu0  ;;  %4125 = vmatprep.subr.bf16.mxu0 %v4124_v0  ;;  %4221 = vmatprep.subr.bf16.mxu1 %v4220_v9  ;;  %v4132_v53 = vpack.c.bf16 %v2254_v50, %v2252_v3  ;;  %v2566_v0 = vld [vmem:[%s7029_s6 + $0x2c8] sm:$0xff]  ;;  %v2571_v3 = vld [vmem:[%s7029_s6 + $0x2f0] sm:$0xff] }
 0x256   : > { %v2138_v41 = vadd.f32 %v6749_v2, %v1972_v39  ;;  %2345 = vmatprep.mubr.f32.mxu0 %v2156_v37  ;;  %2655 = vmatprep.mubr.f32.mxu1 %v2156_v37  ;;  %v4232_v27 = vpack.c.bf16 %v2568_v14, %v2566_v0  ;;  %v2565_v37 = vld [vmem:[%s7029_s6 + $0x2c0] sm:$0xff]  ;;  %v2260_v44 = vld [vmem:[%s7028_s5 + $0x2e8] sm:$0xff]  ;;  %v4238_v50 = vpack.c.bf16 %v2571_v3, %v2569_v12 }
 0x257   : > { %2346 = vmatmul.mubr.f32.gmra.mrb[20].mxu0 %v2155_v58  ;;  %2656 = vmatmul.mubr.f32.gmra.mrb[76].mxu1 %v2155_v58  ;;  %v2078_v19 = vpop.f32.mrb[66].mxu1  ;;  %v2158_v4 = vmax.f32 %v2137_v60, 0.0  ;;  %v4234_v35 = vpack.c.bf16 %v2567_v28, %v2565_v37  ;;  %v2121_v58 = vrot.slane %v6742_v1, %v2120_v48 }
 0x258   : > { %v2159_v45 = vmax.f32 %v2138_v41, 0.0  ;;  %4127 = vmatpush1.bf16.msra.mxu0 %v4126_v36  ;;  %4223 = vmatpush1.bf16.msra.mxu1 %v4222_v32  ;;  %v1976_v49 = vpop.f32.mrb[10].mxu0  ;;  %v6904_v30 = vadd.f32 %v2078_v19, %v6735_v52  ;;  %v2080_v7 = vpop.f32.mrb[67].mxu1  ;;  %v2258_v52 = vld [vmem:[%s7028_s5 + $0x2d8] sm:$0xff]  ;;  %v2570_v32 = vld [vmem:[%s7029_s6 + $0x2e8] sm:$0xff] }
 0x259   : > { %v2140_v25 = vadd.f32 %v6746_v34, %v1976_v49  ;;  %v1978_v5 = vpop.f32.mrb[11].mxu0  ;;  %4129 = vmatprep.subr.bf16.mxu0 %v4128_v33  ;;  %4225 = vmatprep.subr.bf16.mxu1 %v4224_v22  ;;  %v4136_v9 = vpack.c.bf16 %v2258_v52, %v2256_v10  ;;  %v2572_v33 = vld [vmem:[%s7029_s6 + $0x2f8] sm:$0xff]  ;;  %v2261_v22 = vld [vmem:[%s7028_s5 + $0x2f0] sm:$0xff]  ;;  %v2127_v41 = vadd.f32 %v2121_v58, %v6760_v20 }
 0x25a   : > { %v2141_v6 = vadd.f32 %v6749_v2, %v1978_v5  ;;  %2351 = vmatprep.mubr.f32.mxu0 %v2159_v45  ;;  %2661 = vmatprep.mubr.f32.mxu1 %v2159_v45  ;;  %v4236_v40 = vpack.c.bf16 %v2572_v33, %v2570_v32  ;;  %v4142_v1 = vpack.c.bf16 %v2261_v22, %v2259_v42 }
 0x25b   : > { %2352 = vmatmul.mubr.f32.gmra.mrb[22].mxu0 %v2158_v4  ;;  %2662 = vmatmul.mubr.f32.gmra.mrb[78].mxu1 %v2158_v4  ;;  %v2083_v18 = vpop.f32.mrb[68].mxu1  ;;  %v2161_v46 = vmax.f32 %v2140_v25, 0.0  ;;  %v2148_v15 = vmax.f32 %v2127_v41, 0.0  ;;  %v2130_v45 = vadd.f32 %v2121_v58, %v6788_v63  ;;  %v2133_v20 = vadd.f32 %v2121_v58, %v6817_v11  ;;  %v2914_v41 = vld [vmem:[#allocation6] sm:$0xff] }
 0x25c   : > { %v2162_v16 = vmax.f32 %v2141_v6, 0.0  ;;  %4131 = vmatpush1.bf16.msra.mxu0 %v4130_v51  ;;  %4227 = vmatpush1.bf16.msra.mxu1 %v4226_v26  ;;  %v1982_v21 = vpop.f32.mrb[12].mxu0  ;;  %v6931_v13 = vadd.f32 %v2083_v18, %v6737_v55  ;;  %v2085_v55 = vpop.f32.mrb[69].mxu1  ;;  %v2136_v51 = vadd.f32 %v2121_v58, %v6846_v29  ;;  %v2139_v26 = vadd.f32 %v2121_v58, %v6875_v38 }
 0x25d   : > { %v2143_v31 = vadd.f32 %v6746_v34, %v1982_v21  ;;  %v1984_v59 = vpop.f32.mrb[13].mxu0  ;;  %4133 = vmatprep.subr.bf16.mxu0 %v4132_v53  ;;  %4229 = vmatprep.subr.bf16.mxu1 %v4228_v62  ;;  %v2262_v34 = vld [vmem:[%s7028_s5 + $0x2f8] sm:$0xff]  ;;  %v2151_v19 = vmax.f32 %v2130_v45, 0.0  ;;  %v2154_v49 = vmax.f32 %v2133_v20, 0.0  ;;  %v2142_v53 = vadd.f32 %v2121_v58, %v6904_v30  ;;  %v2915_v45 = vld [vmem:[#allocation6 + $0x8] sm:$0xff] }
 0x25e   : > { %v2144_v36 = vadd.f32 %v6749_v2, %v1984_v59  ;;  %2357 = vmatprep.mubr.f32.mxu0 %v2162_v16  ;;  %2667 = vmatprep.mubr.f32.mxu1 %v2162_v16  ;;  %v4138_v2 = vpack.c.bf16 %v2257_v47, %v2255_v61  ;;  %v4140_v39 = vpack.c.bf16 %v2262_v34, %v2260_v44  ;;  %v2157_v63 = vmax.f32 %v2136_v51, 0.0  ;;  %v2916_v20 = vld [vmem:[#allocation6 + $0x10] sm:$0xff]  ;;  %v2917_v51 = vld [vmem:[#allocation6 + $0x18] sm:$0x1] }
 0x25f   : > { %2358 = vmatmul.mubr.f32.gmra.mrb[24].mxu0 %v2161_v46  ;;  %2668 = vmatmul.mubr.f32.gmra.mrb[80].mxu1 %v2161_v46  ;;  %v2164_v60 = vmax.f32 %v2143_v31, 0.0  ;;  %v2160_v11 = vmax.f32 %v2139_v26, 0.0  ;;  %v2163_v29 = vmax.f32 %v2142_v53, 0.0  ;;  %v2145_v54 = vadd.f32 %v2121_v58, %v6931_v13 }
 0x260   : > { %v2165_v17 = vmax.f32 %v2144_v36, 0.0  ;;  %4135 = vmatpush1.bf16.msra.mxu0 %v4134_v24  ;;  %4231 = vmatpush1.bf16.msra.mxu1 %v4230_v23 }
 0x261   : > { %4137 = vmatprep.subr.bf16.mxu0 %v4136_v9  ;;  %4233 = vmatprep.subr.bf16.mxu1 %v4232_v27  ;;  %v2166_v38 = vmax.f32 %v2145_v54, 0.0 }
 0x262   : > { %2363 = vmatprep.mubr.f32.mxu0 %v2165_v17  ;;  %2673 = vmatprep.mubr.f32.mxu1 %v2165_v17 }
 0x263   : > { %2364 = vmatmul.mubr.f32.gmra.mrb[26].mxu0 %v2164_v60  ;;  %2674 = vmatmul.mubr.f32.gmra.mrb[82].mxu1 %v2164_v60 }
 0x264   : > { %4139 = vmatpush1.bf16.msra.mxu0 %v4138_v2  ;;  %4235 = vmatpush1.bf16.msra.mxu1 %v4234_v35 }
 0x265   : > { %4141 = vmatprep.subr.bf16.mxu0 %v4140_v39  ;;  %4237 = vmatprep.subr.bf16.mxu1 %v4236_v40 }
 0x266   : > { %2434 = vmatprep.mubr.f32.mxu0 %v4508_v43  ;;  %2744 = vmatprep.mubr.f32.mxu1 %v4508_v43 }
 0x268   : > { %4143 = vmatpush1.bf16.msra.mxu0 %v4142_v1  ;;  %4239 = vmatpush1.bf16.msra.mxu1 %v4238_v50  ;;  %v2801_v50 = vld [vmem:[#allocation4] sm:$0xff] }
 0x26b   : > { %2435 = vmatmul.mubr.f32.vlgmr.msra.gmra.mrb[14].mxu0 %v2148_v15  ;;  %2745 = vmatmul.mubr.f32.vlgmr.msra.gmra.mrb[70].mxu1 %v2148_v15  ;;  %v2802_v15 = vld [vmem:[#allocation4 + $0x8] sm:$0xff] }
 0x26c   : > { %2440 = vmatprep.mubr.f32.mxu0 %v4508_v43  ;;  %2750 = vmatprep.mubr.f32.mxu1 %v4508_v43 }
 0x26f   : > { %2441 = vmatmul.mubr.f32.gmra.mrb[16].mxu0 %v2151_v19  ;;  %2751 = vmatmul.mubr.f32.gmra.mrb[72].mxu1 %v2151_v19  ;;  %v2803_v19 = vld [vmem:[#allocation4 + $0x10] sm:$0xff] }
 0x270   : > { %2446 = vmatprep.mubr.f32.mxu0 %v4508_v43  ;;  %2756 = vmatprep.mubr.f32.mxu1 %v4508_v43 }
 0x273   : > { %2447 = vmatmul.mubr.f32.gmra.mrb[18].mxu0 %v2154_v49  ;;  %2757 = vmatmul.mubr.f32.gmra.mrb[74].mxu1 %v2154_v49  ;;  %v2804_v49 = vld [vmem:[#allocation4 + $0x18] sm:$0x1] }
 0x274   : > { %2452 = vmatprep.mubr.f32.mxu0 %v4508_v43  ;;  %2762 = vmatprep.mubr.f32.mxu1 %v4508_v43 }
 0x277   : > { %2453 = vmatmul.mubr.f32.gmra.mrb[20].mxu0 %v2157_v63  ;;  %2763 = vmatmul.mubr.f32.gmra.mrb[76].mxu1 %v2157_v63 }
 0x278   : > { %2458 = vmatprep.mubr.f32.mxu0 %v4508_v43  ;;  %2768 = vmatprep.mubr.f32.mxu1 %v4508_v43 }
 0x27b   : > { %2459 = vmatmul.mubr.f32.gmra.mrb[22].mxu0 %v2160_v11  ;;  %2769 = vmatmul.mubr.f32.gmra.mrb[78].mxu1 %v2160_v11 }
 0x27c   : > { %2464 = vmatprep.mubr.f32.mxu0 %v4508_v43  ;;  %2774 = vmatprep.mubr.f32.mxu1 %v4508_v43 }
 0x27f   : > { %2465 = vmatmul.mubr.f32.gmra.mrb[24].mxu0 %v2163_v29  ;;  %2775 = vmatmul.mubr.f32.gmra.mrb[80].mxu1 %v2163_v29 }
 0x280   : > { %2470 = vmatprep.mubr.f32.mxu0 %v4508_v43  ;;  %2780 = vmatprep.mubr.f32.mxu1 %v4508_v43 }
 0x283   : > { %2471 = vmatmul.mubr.f32.gmra.mrb[26].mxu0 %v2166_v38  ;;  %2781 = vmatmul.mubr.f32.gmra.mrb[82].mxu1 %v2166_v38 }
 0x284   : > { %2889 = vmatprep.mubr.f32.mxu0 %v4508_v43  ;;  %2994 = vmatprep.mubr.f32.mxu1 %v4508_v43 }
 0x33e   : > { %v2436_v56 = vpop.f32.mrb[14].mxu0  ;;  %v2746_v57 = vpop.f32.mrb[70].mxu1 }
 0x33f   : > { %v2787_v4 = vmax.f32 %v2436_v56, %v2746_v57  ;;  %v2438_v30 = vpop.f32.mrb[15].mxu0  ;;  %v2748_v25 = vpop.f32.mrb[71].mxu1 }
 0x340   : > { %v2788_v5 = vmax.f32 %v2438_v30, %v2748_v25 }
 0x342   : > { %v2442_v7 = vpop.f32.mrb[16].mxu0  ;;  %v2752_v62 = vpop.f32.mrb[72].mxu1 }
 0x343   : > { %v2789_v8 = vmax.f32 %v2442_v7, %v2752_v62  ;;  %v2444_v10 = vpop.f32.mrb[17].mxu0  ;;  %v2754_v52 = vpop.f32.mrb[73].mxu1 }
 0x344   : > { %v2790_v6 = vmax.f32 %v2444_v10, %v2754_v52 }
 0x345   : > { %v4242_v0 = vpack.c.bf16 %v2789_v8, %v2787_v4 }
 0x346   : > { %v4240_v14 = vpack.c.bf16 %v2790_v6, %v2788_v5  ;;  %v2448_v48 = vpop.f32.mrb[18].mxu0  ;;  %v2758_v16 = vpop.f32.mrb[74].mxu1 }
 0x347   : > { %v2791_v18 = vmax.f32 %v2448_v48, %v2758_v16  ;;  %v2450_v21 = vpop.f32.mrb[19].mxu0  ;;  %v2760_v24 = vpop.f32.mrb[75].mxu1 }
 0x348   : > { %v2792_v23 = vmax.f32 %v2450_v21, %v2760_v24  ;;  %4241 = vmatprep.subr.bf16.mxu0 %v4240_v14  ;;  %4253 = vmatprep.subr.bf16.mxu1 %v4240_v14 }
 0x349   : > { %4243 = vmatpush1.bf16.msra.mxu0 %v4242_v0  ;;  %4255 = vmatpush1.bf16.msra.mxu1 %v4242_v0 }
 0x34a   : > { %v2454_v9 = vpop.f32.mrb[20].mxu0  ;;  %v2764_v61 = vpop.f32.mrb[76].mxu1 }
 0x34b   : > { %v2793_v47 = vmax.f32 %v2454_v9, %v2764_v61  ;;  %v2456_v46 = vpop.f32.mrb[21].mxu0  ;;  %v2766_v13 = vpop.f32.mrb[77].mxu1 }
 0x34c   : > { %v2794_v31 = vmax.f32 %v2456_v46, %v2766_v13 }
 0x34d   : > { %v4246_v59 = vpack.c.bf16 %v2793_v47, %v2791_v18 }
 0x34e   : > { %v4244_v27 = vpack.c.bf16 %v2794_v31, %v2792_v23  ;;  %v2460_v37 = vpop.f32.mrb[22].mxu0  ;;  %v2770_v28 = vpop.f32.mrb[78].mxu1 }
 0x34f   : > { %v2795_v44 = vmax.f32 %v2460_v37, %v2770_v28  ;;  %v2462_v55 = vpop.f32.mrb[23].mxu0  ;;  %v2772_v36 = vpop.f32.mrb[79].mxu1 }
 0x350   : > { %v2796_v34 = vmax.f32 %v2462_v55, %v2772_v36  ;;  %4245 = vmatprep.subr.bf16.mxu0 %v4244_v27  ;;  %4257 = vmatprep.subr.bf16.mxu1 %v4244_v27 }
 0x351   : > { %4247 = vmatpush1.bf16.msra.mxu0 %v4246_v59  ;;  %4259 = vmatpush1.bf16.msra.mxu1 %v4246_v59 }
 0x352   : > { %v2466_v32 = vpop.f32.mrb[24].mxu0  ;;  %v2776_v33 = vpop.f32.mrb[80].mxu1 }
 0x353   : > { %v2797_v17 = vmax.f32 %v2466_v32, %v2776_v33  ;;  %v2468_v2 = vpop.f32.mrb[25].mxu0  ;;  %v2778_v35 = vpop.f32.mrb[81].mxu1 }
 0x354   : > { %v2798_v42 = vmax.f32 %v2468_v2, %v2778_v35 }
 0x355   : > { %v4250_v58 = vpack.c.bf16 %v2797_v17, %v2795_v44 }
 0x356   : > { %v4248_v60 = vpack.c.bf16 %v2798_v42, %v2796_v34  ;;  %v2472_v39 = vpop.f32.mrb[26].mxu0  ;;  %v2782_v40 = vpop.f32.mrb[82].mxu1 }
 0x357   : > { %v2799_v22 = vmax.f32 %v2472_v39, %v2782_v40  ;;  %v2474_v12 = vpop.f32.mrb[27].mxu0  ;;  %v2784_v3 = vpop.f32.mrb[83].mxu1 }
 0x358   : > { %v2800_v1 = vmax.f32 %v2474_v12, %v2784_v3  ;;  %4249 = vmatprep.subr.bf16.mxu0 %v4248_v60  ;;  %4261 = vmatprep.subr.bf16.mxu1 %v4248_v60 }
 0x359   : > { %4251 = vmatpush1.bf16.msra.mxu0 %v4250_v58  ;;  %4263 = vmatpush1.bf16.msra.mxu1 %v4250_v58 }
 0x35a   : > { %3543 = vmatprep.subr.msk.mxu0 %vm2818_vm5, %v2800_v1  ;;  %3549 = vmatprep.subr.msk.mxu1 %vm2818_vm5, %v2800_v1 }
 0x35d   : > { %3544 = vmatpush1.msk.msra.mxu0 %vm2818_vm5, %v2799_v22  ;;  %3550 = vmatpush1.msk.msra.mxu1 %vm2818_vm5, %v2799_v22 }
 0x35e   : > { %3545 = vmatmul.mubr.msk.f32.vlgmr.msra.gmra.mrb[28].mxu0 %vm2805_vm6, %v2801_v50  ;;  %3551 = vmatmul.mubr.msk.f32.vlgmr.msra.gmra.mrb[84].mxu1 %vm2805_vm6, %v2914_v41 }
 0x35f   : > { %2895 = vmatprep.mubr.f32.mxu0 %v4508_v43  ;;  %3000 = vmatprep.mubr.f32.mxu1 %v4508_v43 }
 0x362   : > { %3546 = vmatmul.mubr.msk.f32.gmra.mrb[30].mxu0 %vm2805_vm6, %v2802_v15  ;;  %3552 = vmatmul.mubr.msk.f32.gmra.mrb[86].mxu1 %vm2805_vm6, %v2915_v45 }
 0x363   : > { %2901 = vmatprep.mubr.f32.mxu0 %v4508_v43  ;;  %3006 = vmatprep.mubr.f32.mxu1 %v4508_v43 }
 0x366   : > { %3547 = vmatmul.mubr.msk.f32.gmra.mrb[32].mxu0 %vm2805_vm6, %v2803_v19  ;;  %3553 = vmatmul.mubr.msk.f32.gmra.mrb[88].mxu1 %vm2805_vm6, %v2916_v20 }
 0x367   : > { %2907 = vmatprep.mubr.f32.mxu0 %v4508_v43  ;;  %3012 = vmatprep.mubr.f32.mxu1 %v4508_v43 }
 0x36a   : > { %3548 = vmatmul.mubr.msk.f32.gmra.mrb[34].mxu0 %vm2805_vm6, %v2804_v49  ;;  %3554 = vmatmul.mubr.msk.f32.gmra.mrb[90].mxu1 %vm2805_vm6, %v2917_v51 }
 0x431   : > { %v2891_v63 = vpop.f32.mrb[28].mxu0  ;;  %v2996_v26 = vpop.f32.mrb[84].mxu1 }
 0x432   : > { %v3019_v11 = vmax.f32 %v2891_v63, %v2996_v26  ;;  %v2893_v43 = vpop.f32.mrb[29].mxu0  ;;  %v2998_v53 = vpop.f32.mrb[85].mxu1 }
 0x433   : > { %v3020_v29 = vmax.f32 %v2893_v43, %v2998_v53 }
 0x434   : > { %3027 = vst [vmem:[%s7007_s26] sm:$0xff] %v3019_v11 }
 0x435   : > { %3029 = vst.msk [vmem:[%s7007_s26 + $0x8] sm:$0xff] %vm3028_vm7, %v3020_v29  ;;  %v2897_v54 = vpop.f32.mrb[30].mxu0  ;;  %v3002_v38 = vpop.f32.mrb[86].mxu1 }
 0x436   : > { %v3021_v56 = vmax.f32 %v2897_v54, %v3002_v38  ;;  %v2899_v57 = vpop.f32.mrb[31].mxu0  ;;  %v3004_v4 = vpop.f32.mrb[87].mxu1 }
 0x437   : > { %v3022_v30 = vmax.f32 %v2899_v57, %v3004_v4 }
 0x438   : > { %3030 = vst [vmem:[%s7007_s26 + $0x10] sm:$0xff] %v3021_v56 }
 0x439   : > { %3031 = vst.msk [vmem:[%s7007_s26 + $0x18] sm:$0xff] %vm3028_vm7, %v3022_v30  ;;  %v2903_v25 = vpop.f32.mrb[32].mxu0  ;;  %v3008_v5 = vpop.f32.mrb[88].mxu1 }
 0x43a   : > { %v3023_v7 = vmax.f32 %v2903_v25, %v3008_v5  ;;  %v2905_v62 = vpop.f32.mrb[33].mxu0  ;;  %v3010_v8 = vpop.f32.mrb[89].mxu1 }
 0x43b   : > { %v3024_v10 = vmax.f32 %v2905_v62, %v3010_v8 }
 0x43c   : > { %3032 = vst [vmem:[%s7007_s26 + $0x20] sm:$0xff] %v3023_v7 }
 0x43d   : > { %3033 = vst.msk [vmem:[%s7007_s26 + $0x28] sm:$0xff] %vm3028_vm7, %v3024_v10  ;;  %v2909_v52 = vpop.f32.mrb[34].mxu0  ;;  %v3014_v6 = vpop.f32.mrb[90].mxu1 }
 0x43e   : > { %v3025_v0 = vmax.f32 %v2909_v52, %v3014_v6  ;;  %v2911_v14 = vpop.f32.mrb[35].mxu0  ;;  %v3016_v48 = vpop.f32.mrb[91].mxu1 }
 0x43f   : > { %v3026_v16 = vmax.f32 %v2911_v14, %v3016_v48 }
 0x440   : > { %3034 = vst [vmem:[%s7007_s26 + $0x30] sm:$0x1] %v3025_v0 }
 0x441   : > { %3036 = vst.msk [vmem:[%s7007_s26 + $0x38] sm:$0x1] %vm3035_vm8, %v3026_v16 }
 0x442 PF: > { %s19_s24 = sadd.s32 1, %s4500_s24  }
 0x443   : > { %p16_p3 = scmp.ge.s32.totalorder %s19_s24, 4  }
 0x445   :  { %18 = sbr.rel (!%p16_p3) target bundleno = 2 (0x2), region = 95 }
 0x44c   :  { %3058 = vsyncpa [#allocation3], 1 }
 0x44d   :  { %3060 = vsyncpa [#allocation3 + $0x1], 1 }
 0x44e   :  { %3061 = vsyncpa [#allocation5], 1 }

// kernel: eye_tracking_forward.5
= control target key start
LH: loop header
LB: loop body
LE: loop exit
PB: predicated region body
PF: predicated region fallthrough
CT: control target
= control target key end

     0   :  { %s8644_s0 = inlined_call_operand.vmem [shape: f32[2,4800], index: 0, kind: input, shape index: {}]   ;;  %s8645_s1 = inlined_call_operand.vmem [shape: f32[4800,256], index: 1, kind: input, shape index: {}]   ;;  %s8646_s2 = inlined_call_operand.vmem [shape: f32[1,256], index: 2, kind: input, shape index: {}]   ;;  %s8647_s3 = inlined_call_operand.vmem [shape: f32[256,128], index: 3, kind: input, shape index: {}]   ;;  %s8648_s4 = inlined_call_operand.vmem [shape: f32[1,128], index: 4, kind: input, shape index: {}]   ;;  %s8649_s5 = inlined_call_operand.vmem [shape: f32[128,64], index: 5, kind: input, shape index: {}]   ;;  %s8650_s6 = inlined_call_operand.vmem [shape: f32[1,64], index: 6, kind: input, shape index: {}]   ;;  %s8651_s7 = inlined_call_operand.vmem [shape: f32[64,2], index: 7, kind: input, shape index: {}]   ;;  %s8652_s8 = inlined_call_operand.vmem [shape: f32[1,2], index: 8, kind: input, shape index: {}]   ;;  %s8653_s9 = inlined_call_operand.hbm [shape: f32[2,2], index: 9, kind: output, shape index: {}]  }
   0x1   :  { %v44_v0 = vld [vmem:[%s8645_s1 + $0x8] sm:$0xff]  ;;  %v46_v1 = vld [vmem:[%s8645_s1 + $0x18] sm:$0xff]  ;;  %v43_v5 = vld [vmem:[%s8645_s1] sm:$0xff] }
   0x2   :  { %v556_v2 = vld [vmem:[%s8645_s1 + $0x1008] sm:$0xff]  ;;  %v3242_v3 = vpack.c.bf16 %v46_v1, %v44_v0  ;;  %v558_v4 = vld [vmem:[%s8645_s1 + $0x1018] sm:$0xff]  ;;  %v45_v6 = vld [vmem:[%s8645_s1 + $0x10] sm:$0xff] }
   0x3   :  { %v3754_v7 = vpack.c.bf16 %v558_v4, %v556_v2  ;;  %v3244_v8 = vpack.c.bf16 %v45_v6, %v43_v5  ;;  %v555_v9 = vld [vmem:[%s8645_s1 + $0x1000] sm:$0xff]  ;;  %v557_v10 = vld [vmem:[%s8645_s1 + $0x1010] sm:$0xff]  ;;  %v48_v11 = vld [vmem:[%s8645_s1 + $0x28] sm:$0xff] }
   0x4   :  { %3243 = vmatprep.subr.bf16.mxu1 %v3242_v3  ;;  %v3756_v12 = vpack.c.bf16 %v557_v10, %v555_v9  ;;  %v50_v13 = vld [vmem:[%s8645_s1 + $0x38] sm:$0xff]  ;;  %v560_v14 = vld [vmem:[%s8645_s1 + $0x1028] sm:$0xff]  ;;  %v47_v18 = vld [vmem:[%s8645_s1 + $0x20] sm:$0xff] }
   0x5   :  { %v562_v15 = vld [vmem:[%s8645_s1 + $0x1038] sm:$0xff]  ;;  %3755 = vmatprep.subr.bf16.mxu0 %v3754_v7  ;;  %3245 = vmatpush1.bf16.msra.mxu1 %v3244_v8  ;;  %v3246_v16 = vpack.c.bf16 %v50_v13, %v48_v11  ;;  %v49_v19 = vld [vmem:[%s8645_s1 + $0x30] sm:$0xff]  ;;  %v559_v20 = vld [vmem:[%s8645_s1 + $0x1020] sm:$0xff] }
   0x6   :  { %v3758_v17 = vpack.c.bf16 %v562_v15, %v560_v14  ;;  %3757 = vmatpush1.bf16.msra.mxu0 %v3756_v12  ;;  %v3248_v21 = vpack.c.bf16 %v49_v19, %v47_v18  ;;  %v561_v22 = vld [vmem:[%s8645_s1 + $0x1030] sm:$0xff]  ;;  %v52_v23 = vld [vmem:[%s8645_s1 + $0x48] sm:$0xff]  ;;  %v54_v24 = vld [vmem:[%s8645_s1 + $0x58] sm:$0xff] }
   0x7   :  { %3247 = vmatprep.subr.bf16.mxu1 %v3246_v16  ;;  %v3760_v25 = vpack.c.bf16 %v561_v22, %v559_v20  ;;  %v3250_v26 = vpack.c.bf16 %v54_v24, %v52_v23  ;;  %v564_v27 = vld [vmem:[%s8645_s1 + $0x1048] sm:$0xff]  ;;  %v566_v28 = vld [vmem:[%s8645_s1 + $0x1058] sm:$0xff]  ;;  %v51_v29 = vld [vmem:[%s8645_s1 + $0x40] sm:$0xff] }
   0x8   :  { %3759 = vmatprep.subr.bf16.mxu0 %v3758_v17  ;;  %v3762_v30 = vpack.c.bf16 %v566_v28, %v564_v27  ;;  %v53_v31 = vld [vmem:[%s8645_s1 + $0x50] sm:$0xff]  ;;  %v563_v32 = vld [vmem:[%s8645_s1 + $0x1040] sm:$0xff]  ;;  %v56_v35 = vld [vmem:[%s8645_s1 + $0x68] sm:$0xff] }
   0x9   :  { %v565_v33 = vld [vmem:[%s8645_s1 + $0x1050] sm:$0xff]  ;;  %3249 = vmatpush1.bf16.msra.mxu1 %v3248_v21  ;;  %v3252_v34 = vpack.c.bf16 %v53_v31, %v51_v29  ;;  %v58_v36 = vld [vmem:[%s8645_s1 + $0x78] sm:$0xff]  ;;  %v568_v37 = vld [vmem:[%s8645_s1 + $0x1068] sm:$0xff] }
   0xa   :  { %3761 = vmatpush1.bf16.msra.mxu0 %v3760_v25  ;;  %3251 = vmatprep.subr.bf16.mxu1 %v3250_v26  ;;  %v3764_v38 = vpack.c.bf16 %v565_v33, %v563_v32  ;;  %v3254_v39 = vpack.c.bf16 %v58_v36, %v56_v35  ;;  %v570_v40 = vld [vmem:[%s8645_s1 + $0x1078] sm:$0xff]  ;;  %v55_v41 = vld [vmem:[%s8645_s1 + $0x60] sm:$0xff]  ;;  %v57_v42 = vld [vmem:[%s8645_s1 + $0x70] sm:$0xff] }
   0xb   :  { %3763 = vmatprep.subr.bf16.mxu0 %v3762_v30  ;;  %v3766_v43 = vpack.c.bf16 %v570_v40, %v568_v37  ;;  %v567_v44 = vld [vmem:[%s8645_s1 + $0x1060] sm:$0xff]  ;;  %v569_v45 = vld [vmem:[%s8645_s1 + $0x1070] sm:$0xff]  ;;  %v60_v46 = vld [vmem:[%s8645_s1 + $0x88] sm:$0xff]  ;;  %v3256_v50 = vpack.c.bf16 %v57_v42, %v55_v41 }
   0xc   :  { %v62_v47 = vld [vmem:[%s8645_s1 + $0x98] sm:$0xff]  ;;  %v572_v48 = vld [vmem:[%s8645_s1 + $0x1088] sm:$0xff]  ;;  %v3768_v51 = vpack.c.bf16 %v569_v45, %v567_v44  ;;  %v59_v53 = vld [vmem:[%s8645_s1 + $0x80] sm:$0xff] }
   0xd   :  { %v574_v49 = vld [vmem:[%s8645_s1 + $0x1098] sm:$0xff]  ;;  %3253 = vmatpush1.bf16.msra.mxu1 %v3252_v34  ;;  %v3258_v52 = vpack.c.bf16 %v62_v47, %v60_v46  ;;  %v61_v54 = vld [vmem:[%s8645_s1 + $0x90] sm:$0xff]  ;;  %v571_v55 = vld [vmem:[%s8645_s1 + $0x1080] sm:$0xff]  ;;  %v1245_v46 = vlaneseq  ;;  %v4586_v47 = vmov 1983009808  }
   0xe   :  { %3765 = vmatpush1.bf16.msra.mxu0 %v3764_v38  ;;  %3255 = vmatprep.subr.bf16.mxu1 %v3254_v39  ;;  %v3770_v56 = vpack.c.bf16 %v574_v49, %v572_v48  ;;  %v573_v57 = vld [vmem:[%s8645_s1 + $0x1090] sm:$0xff]  ;;  %v64_v58 = vld [vmem:[%s8645_s1 + $0xa8] sm:$0xff]  ;;  %v66_v59 = vld [vmem:[%s8645_s1 + $0xb8] sm:$0xff]  ;;  %v3260_v62 = vpack.c.bf16 %v61_v54, %v59_v53  ;;  %v1267_v48 = vunpack.c.l.s4 %v4586_v47 }
   0xf   :  { %3767 = vmatprep.subr.bf16.mxu0 %v3766_v43  ;;  %v576_v60 = vld [vmem:[%s8645_s1 + $0x10a8] sm:$0xff]  ;;  %v578_v61 = vld [vmem:[%s8645_s1 + $0x10b8] sm:$0xff]  ;;  %v3772_v63 = vpack.c.bf16 %v573_v57, %v571_v55  ;;  %v3262_v0 = vpack.c.bf16 %v66_v59, %v64_v58  ;;  %v63_v1 = vld [vmem:[%s8645_s1 + $0xa0] sm:$0xff] }
  0x10   :  { %v65_v2 = vld [vmem:[%s8645_s1 + $0xb0] sm:$0xff]  ;;  %v575_v3 = vld [vmem:[%s8645_s1 + $0x10a0] sm:$0xff]  ;;  %v3774_v4 = vpack.c.bf16 %v578_v61, %v576_v60  ;;  %v68_v6 = vld [vmem:[%s8645_s1 + $0xc8] sm:$0xff]  ;;  %v4893_v61 = vshrl.u32 %v1245_v46, 7 }
  0x11   :  { %3257 = vmatpush1.bf16.msra.mxu1 %v3256_v50  ;;  %v577_v5 = vld [vmem:[%s8645_s1 + $0x10b0] sm:$0xff]  ;;  %v70_v7 = vld [vmem:[%s8645_s1 + $0xd8] sm:$0xff]  ;;  %v580_v8 = vld [vmem:[%s8645_s1 + $0x10c8] sm:$0xff]  ;;  %v3264_v10 = vpack.c.bf16 %v65_v2, %v63_v1 }
  0x12   :  { %3769 = vmatpush1.bf16.msra.mxu0 %v3768_v51  ;;  %3259 = vmatprep.subr.bf16.mxu1 %v3258_v52  ;;  %v582_v9 = vld [vmem:[%s8645_s1 + $0x10d8] sm:$0xff]  ;;  %v3776_v11 = vpack.c.bf16 %v577_v5, %v575_v3  ;;  %v3266_v12 = vpack.c.bf16 %v70_v7, %v68_v6  ;;  %v67_v13 = vld [vmem:[%s8645_s1 + $0xc0] sm:$0xff]  ;;  %v69_v14 = vld [vmem:[%s8645_s1 + $0xd0] sm:$0xff] }
  0x13   :  { %3771 = vmatprep.subr.bf16.mxu0 %v3770_v56  ;;  %v579_v15 = vld [vmem:[%s8645_s1 + $0x10c0] sm:$0xff]  ;;  %v3778_v16 = vpack.c.bf16 %v582_v9, %v580_v8  ;;  %v581_v17 = vld [vmem:[%s8645_s1 + $0x10d0] sm:$0xff]  ;;  %v72_v18 = vld [vmem:[%s8645_s1 + $0xe8] sm:$0xff]  ;;  %v3268_v22 = vpack.c.bf16 %v69_v14, %v67_v13 }
  0x14   :  { %v74_v19 = vld [vmem:[%s8645_s1 + $0xf8] sm:$0xff]  ;;  %v584_v20 = vld [vmem:[%s8645_s1 + $0x10e8] sm:$0xff]  ;;  %v3780_v23 = vpack.c.bf16 %v581_v17, %v579_v15  ;;  %v71_v25 = vld [vmem:[%s8645_s1 + $0xe0] sm:$0xff] }
  0x15   :  { %3261 = vmatpush1.bf16.msra.mxu1 %v3260_v62  ;;  %v586_v21 = vld [vmem:[%s8645_s1 + $0x10f8] sm:$0xff]  ;;  %v3270_v24 = vpack.c.bf16 %v74_v19, %v72_v18  ;;  %v73_v26 = vld [vmem:[%s8645_s1 + $0xf0] sm:$0xff]  ;;  %v583_v27 = vld [vmem:[%s8645_s1 + $0x10e0] sm:$0xff]  ;;  %v1268_v62 = vunpack.c.0.s8 %v1267_v48 }
  0x16   :  { %3773 = vmatpush1.bf16.msra.mxu0 %v3772_v63  ;;  %3263 = vmatprep.subr.bf16.mxu1 %v3262_v0  ;;  %v3782_v28 = vpack.c.bf16 %v586_v21, %v584_v20  ;;  %v585_v29 = vld [vmem:[%s8645_s1 + $0x10f0] sm:$0xff]  ;;  %v76_v30 = vld [vmem:[%s8645_s1 + $0x108] sm:$0xff]  ;;  %v78_v31 = vld [vmem:[%s8645_s1 + $0x118] sm:$0xff]  ;;  %v3272_v34 = vpack.c.bf16 %v73_v26, %v71_v25 }
  0x17   :  { %3775 = vmatprep.subr.bf16.mxu0 %v3774_v4  ;;  %v588_v32 = vld [vmem:[%s8645_s1 + $0x1108] sm:$0xff]  ;;  %v590_v33 = vld [vmem:[%s8645_s1 + $0x1118] sm:$0xff]  ;;  %v3784_v35 = vpack.c.bf16 %v585_v29, %v583_v27  ;;  %v3274_v36 = vpack.c.bf16 %v78_v31, %v76_v30  ;;  %v75_v37 = vld [vmem:[%s8645_s1 + $0x100] sm:$0xff] }
  0x18   :  { %v77_v38 = vld [vmem:[%s8645_s1 + $0x110] sm:$0xff]  ;;  %v587_v39 = vld [vmem:[%s8645_s1 + $0x1100] sm:$0xff]  ;;  %v3786_v40 = vpack.c.bf16 %v590_v33, %v588_v32  ;;  %v80_v42 = vld [vmem:[%s8645_s1 + $0x128] sm:$0xff] }
  0x19   :  { %3265 = vmatpush1.bf16.msra.mxu1 %v3264_v10  ;;  %v589_v41 = vld [vmem:[%s8645_s1 + $0x1110] sm:$0xff]  ;;  %v82_v43 = vld [vmem:[%s8645_s1 + $0x138] sm:$0xff]  ;;  %v592_v44 = vld [vmem:[%s8645_s1 + $0x1128] sm:$0xff]  ;;  %v3276_v49 = vpack.c.bf16 %v77_v38, %v75_v37 }
  0x1a   :  { %3777 = vmatpush1.bf16.msra.mxu0 %v3776_v11  ;;  %3267 = vmatprep.subr.bf16.mxu1 %v3266_v12  ;;  %v594_v45 = vld [vmem:[%s8645_s1 + $0x1138] sm:$0xff]  ;;  %v3788_v50 = vpack.c.bf16 %v589_v41, %v587_v39  ;;  %v3278_v51 = vpack.c.bf16 %v82_v43, %v80_v42  ;;  %v79_v52 = vld [vmem:[%s8645_s1 + $0x120] sm:$0xff]  ;;  %v81_v53 = vld [vmem:[%s8645_s1 + $0x130] sm:$0xff]  ;;  %v4920_v11 = vsub.s32 %v1268_v62, %v4893_v61 }
  0x1b   :  { %3779 = vmatprep.subr.bf16.mxu0 %v3778_v16  ;;  %v591_v54 = vld [vmem:[%s8645_s1 + $0x1120] sm:$0xff]  ;;  %v3790_v55 = vpack.c.bf16 %v594_v45, %v592_v44  ;;  %v593_v56 = vld [vmem:[%s8645_s1 + $0x1130] sm:$0xff]  ;;  %v84_v57 = vld [vmem:[%s8645_s1 + $0x148] sm:$0xff]  ;;  %v3280_v63 = vpack.c.bf16 %v81_v53, %v79_v52 }
  0x1c   :  { %v86_v58 = vld [vmem:[%s8645_s1 + $0x158] sm:$0xff]  ;;  %v596_v59 = vld [vmem:[%s8645_s1 + $0x1148] sm:$0xff]  ;;  %v3792_v0 = vpack.c.bf16 %v593_v56, %v591_v54  ;;  %v83_v2 = vld [vmem:[%s8645_s1 + $0x140] sm:$0xff] }
  0x1d   :  { %3269 = vmatpush1.bf16.msra.mxu1 %v3268_v22  ;;  %v598_v60 = vld [vmem:[%s8645_s1 + $0x1158] sm:$0xff]  ;;  %v3282_v1 = vpack.c.bf16 %v86_v58, %v84_v57  ;;  %v85_v3 = vld [vmem:[%s8645_s1 + $0x150] sm:$0xff]  ;;  %v595_v4 = vld [vmem:[%s8645_s1 + $0x1140] sm:$0xff] }
  0x1e   :  { %3781 = vmatpush1.bf16.msra.mxu0 %v3780_v23  ;;  %3271 = vmatprep.subr.bf16.mxu1 %v3270_v24  ;;  %v3794_v5 = vpack.c.bf16 %v598_v60, %v596_v59  ;;  %v597_v6 = vld [vmem:[%s8645_s1 + $0x1150] sm:$0xff]  ;;  %v88_v7 = vld [vmem:[%s8645_s1 + $0x168] sm:$0xff]  ;;  %v90_v8 = vld [vmem:[%s8645_s1 + $0x178] sm:$0xff]  ;;  %v3284_v12 = vpack.c.bf16 %v85_v3, %v83_v2 }
  0x1f   :  { %3783 = vmatprep.subr.bf16.mxu0 %v3782_v28  ;;  %v600_v9 = vld [vmem:[%s8645_s1 + $0x1168] sm:$0xff]  ;;  %v602_v10 = vld [vmem:[%s8645_s1 + $0x1178] sm:$0xff]  ;;  %v87_v13 = vld [vmem:[%s8645_s1 + $0x160] sm:$0xff]  ;;  %v3796_v14 = vpack.c.bf16 %v597_v6, %v595_v4  ;;  %v3286_v15 = vpack.c.bf16 %v90_v8, %v88_v7 }
  0x20   :  { %v89_v16 = vld [vmem:[%s8645_s1 + $0x170] sm:$0xff]  ;;  %v599_v17 = vld [vmem:[%s8645_s1 + $0x1160] sm:$0xff]  ;;  %v3798_v19 = vpack.c.bf16 %v602_v10, %v600_v9  ;;  %v92_v20 = vld [vmem:[%s8645_s1 + $0x188] sm:$0xff] }
  0x21   :  { %3273 = vmatpush1.bf16.msra.mxu1 %v3272_v34  ;;  %v601_v18 = vld [vmem:[%s8645_s1 + $0x1170] sm:$0xff]  ;;  %v94_v21 = vld [vmem:[%s8645_s1 + $0x198] sm:$0xff]  ;;  %v4943_v22 = vld [vmem:[%s8644_s0] sm:$0xff]  ;;  %v3288_v27 = vpack.c.bf16 %v89_v16, %v87_v13 }
  0x22   :  { %3785 = vmatpush1.bf16.msra.mxu0 %v3784_v35  ;;  %3275 = vmatprep.subr.bf16.mxu1 %v3274_v36  ;;  %v604_v23 = vld [vmem:[%s8645_s1 + $0x1188] sm:$0xff]  ;;  %v606_v24 = vld [vmem:[%s8645_s1 + $0x1198] sm:$0xff]  ;;  %v4953_v25 = vrot.slane %v4943_v22, %v4920_v11  ;;  %v4958_v26 = vld [vmem:[%s8644_s0 + $0x20] sm:$0xff]  ;;  %v3800_v29 = vpack.c.bf16 %v601_v18, %v599_v17  ;;  %v3290_v30 = vpack.c.bf16 %v94_v21, %v92_v20 }
  0x23   :  { %3787 = vmatprep.subr.bf16.mxu0 %v3786_v40  ;;  %v4962_v28 = vrot.slane %v4958_v26, %v4920_v11  ;;  %v91_v31 = vld [vmem:[%s8645_s1 + $0x180] sm:$0xff]  ;;  %v93_v32 = vld [vmem:[%s8645_s1 + $0x190] sm:$0xff]  ;;  %v3802_v35 = vpack.c.bf16 %v606_v24, %v604_v23  ;;  %v96_v37 = vld [vmem:[%s8645_s1 + $0x1a8] sm:$0xff] }
  0x24   :  { %v603_v33 = vld [vmem:[%s8645_s1 + $0x1180] sm:$0xff]  ;;  %v1280_v34 = vcombine.high %v4953_v25, %v4953_v25  ;;  %v605_v36 = vld [vmem:[%s8645_s1 + $0x1190] sm:$0xff]  ;;  %v98_v38 = vld [vmem:[%s8645_s1 + $0x1b8] sm:$0xff]  ;;  %v3292_v42 = vpack.c.bf16 %v93_v32, %v91_v31 }
  0x25   :  { %3277 = vmatpush1.bf16.msra.mxu1 %v3276_v49  ;;  %v1348_v39 = vcombine.high %v4962_v28, %v4962_v28  ;;  %v608_v40 = vld [vmem:[%s8645_s1 + $0x11a8] sm:$0xff]  ;;  %v610_v41 = vld [vmem:[%s8645_s1 + $0x11b8] sm:$0xff]  ;;  %v3804_v43 = vpack.c.bf16 %v605_v36, %v603_v33  ;;  %v3294_v44 = vpack.c.bf16 %v98_v38, %v96_v37  ;;  %v95_v45 = vld [vmem:[%s8645_s1 + $0x1a0] sm:$0xff] }
  0x26   :  { %3789 = vmatpush1.bf16.msra.mxu0 %v3788_v50  ;;  %3279 = vmatprep.subr.bf16.mxu1 %v3278_v51  ;;  %v97_v46 = vld [vmem:[%s8645_s1 + $0x1b0] sm:$0xff]  ;;  %v607_v47 = vld [vmem:[%s8645_s1 + $0x11a0] sm:$0xff]  ;;  %v3806_v48 = vpack.c.bf16 %v610_v41, %v608_v40  ;;  %v100_v50 = vld [vmem:[%s8645_s1 + $0x1c8] sm:$0xff] }
  0x27   :  { %3791 = vmatprep.subr.bf16.mxu0 %v3790_v55  ;;  %1530 = vmatprep.mubr.f32.mxu1 %v1280_v34  ;;  %v609_v49 = vld [vmem:[%s8645_s1 + $0x11b0] sm:$0xff]  ;;  %v102_v51 = vld [vmem:[%s8645_s1 + $0x1d8] sm:$0xff]  ;;  %v612_v52 = vld [vmem:[%s8645_s1 + $0x11c8] sm:$0xff]  ;;  %v3296_v54 = vpack.c.bf16 %v97_v46, %v95_v45 }
  0x28   :  { %2098 = vmatprep.mubr.f32.mxu0 %v1348_v39  ;;  %v614_v53 = vld [vmem:[%s8645_s1 + $0x11d8] sm:$0xff]  ;;  %v3808_v55 = vpack.c.bf16 %v609_v49, %v607_v47  ;;  %v3298_v56 = vpack.c.bf16 %v102_v51, %v100_v50  ;;  %v99_v57 = vld [vmem:[%s8645_s1 + $0x1c0] sm:$0xff]  ;;  %v101_v58 = vld [vmem:[%s8645_s1 + $0x1d0] sm:$0xff] }
  0x29   :  { %3281 = vmatpush1.bf16.msra.mxu1 %v3280_v63  ;;  %v611_v59 = vld [vmem:[%s8645_s1 + $0x11c0] sm:$0xff]  ;;  %v3810_v60 = vpack.c.bf16 %v614_v53, %v612_v52  ;;  %v613_v62 = vld [vmem:[%s8645_s1 + $0x11d0] sm:$0xff]  ;;  %v104_v63 = vld [vmem:[%s8645_s1 + $0x1e8] sm:$0xff]  ;;  %v3300_v3 = vpack.c.bf16 %v101_v58, %v99_v57 }
  0x2a   :  { %3793 = vmatpush1.bf16.msra.mxu0 %v3792_v0  ;;  %3283 = vmatprep.subr.bf16.mxu1 %v3282_v1  ;;  %v106_v0 = vld [vmem:[%s8645_s1 + $0x1f8] sm:$0xff]  ;;  %v616_v1 = vld [vmem:[%s8645_s1 + $0x11e8] sm:$0xff]  ;;  %v3812_v4 = vpack.c.bf16 %v613_v62, %v611_v59  ;;  %v103_v6 = vld [vmem:[%s8645_s1 + $0x1e0] sm:$0xff] }
  0x2b   :  { %3795 = vmatprep.subr.bf16.mxu0 %v3794_v5  ;;  %v618_v2 = vld [vmem:[%s8645_s1 + $0x11f8] sm:$0xff]  ;;  %v3302_v5 = vpack.c.bf16 %v106_v0, %v104_v63  ;;  %v105_v7 = vld [vmem:[%s8645_s1 + $0x1f0] sm:$0xff]  ;;  %v615_v8 = vld [vmem:[%s8645_s1 + $0x11e0] sm:$0xff] }
  0x2c   :  { %v3814_v9 = vpack.c.bf16 %v618_v2, %v616_v1  ;;  %v617_v10 = vld [vmem:[%s8645_s1 + $0x11f0] sm:$0xff]  ;;  %v108_v13 = vld [vmem:[%s8645_s1 + $0x208] sm:$0xff]  ;;  %v622_v17 = vld [vmem:[%s8645_s1 + $0x1218] sm:$0xff]  ;;  %v3304_v18 = vpack.c.bf16 %v105_v7, %v103_v6 }
  0x2d   :  { %3285 = vmatpush1.bf16.msra.mxu1 %v3284_v12  ;;  %v1265_v12 = vcombine.high %v4943_v22, %v4943_v22  ;;  %v620_v16 = vld [vmem:[%s8645_s1 + $0x1208] sm:$0xff]  ;;  %v107_v21 = vld [vmem:[%s8645_s1 + $0x200] sm:$0xff]  ;;  %v109_v22 = vld [vmem:[%s8645_s1 + $0x210] sm:$0xff] }
  0x2e   :  { %3797 = vmatpush1.bf16.msra.mxu0 %v3796_v14  ;;  %3287 = vmatprep.subr.bf16.mxu1 %v3286_v15  ;;  %v110_v14 = vld [vmem:[%s8645_s1 + $0x218] sm:$0xff]  ;;  %v1333_v15 = vcombine.high %v4958_v26, %v4958_v26  ;;  %v619_v23 = vld [vmem:[%s8645_s1 + $0x1200] sm:$0xff]  ;;  %v3818_v24 = vpack.c.bf16 %v622_v17, %v620_v16  ;;  %v621_v26 = vld [vmem:[%s8645_s1 + $0x1210] sm:$0xff]  ;;  %v3308_v34 = vpack.c.bf16 %v109_v22, %v107_v21 }
  0x2f   :  { %3799 = vmatprep.subr.bf16.mxu0 %v3798_v19  ;;  %v3816_v19 = vpack.c.bf16 %v617_v10, %v615_v8  ;;  %v3306_v20 = vpack.c.bf16 %v110_v14, %v108_v13  ;;  %v624_v31 = vld [vmem:[%s8645_s1 + $0x1228] sm:$0xff]  ;;  %v626_v32 = vld [vmem:[%s8645_s1 + $0x1238] sm:$0xff]  ;;  %v111_v37 = vld [vmem:[%s8645_s1 + $0x220] sm:$0xff] }
  0x30   :  { %v5096_v33 = vrot.slane %v1333_v15, %v4920_v11  ;;  %v113_v38 = vld [vmem:[%s8645_s1 + $0x230] sm:$0xff]  ;;  %v623_v39 = vld [vmem:[%s8645_s1 + $0x1220] sm:$0xff]  ;;  %v3822_v40 = vpack.c.bf16 %v626_v32, %v624_v31  ;;  %v628_v45 = vld [vmem:[%s8645_s1 + $0x1248] sm:$0xff] }
  0x31   :  { %3289 = vmatpush1.bf16.msra.mxu1 %v3288_v27  ;;  %v112_v27 = vld [vmem:[%s8645_s1 + $0x228] sm:$0xff]  ;;  %v625_v41 = vld [vmem:[%s8645_s1 + $0x1230] sm:$0xff]  ;;  %v630_v46 = vld [vmem:[%s8645_s1 + $0x1258] sm:$0xff] }
  0x32   :  { %3801 = vmatpush1.bf16.msra.mxu0 %v3800_v29  ;;  %3291 = vmatprep.subr.bf16.mxu1 %v3290_v30  ;;  %v114_v29 = vld [vmem:[%s8645_s1 + $0x238] sm:$0xff]  ;;  %v5087_v30 = vrot.slane %v1265_v12, %v4920_v11  ;;  %v1349_v47 = vcombine.high %v5096_v33, %v5096_v33  ;;  %v3824_v49 = vpack.c.bf16 %v625_v41, %v623_v39  ;;  %v117_v51 = vld [vmem:[%s8645_s1 + $0x250] sm:$0xff]  ;;  %v627_v52 = vld [vmem:[%s8645_s1 + $0x1240] sm:$0xff] }
  0x33   :  { %3803 = vmatprep.subr.bf16.mxu0 %v3802_v35  ;;  %v3820_v35 = vpack.c.bf16 %v621_v26, %v619_v23  ;;  %v3310_v36 = vpack.c.bf16 %v114_v29, %v112_v27  ;;  %v3826_v53 = vpack.c.bf16 %v630_v46, %v628_v45  ;;  %v634_v57 = vld [vmem:[%s8645_s1 + $0x1278] sm:$0xff]  ;;  %v119_v62 = vld [vmem:[%s8645_s1 + $0x260] sm:$0xff]  ;;  %v121_v63 = vld [vmem:[%s8645_s1 + $0x270] sm:$0xff] }
  0x34   :  { %v631_v0 = vld [vmem:[%s8645_s1 + $0x1260] sm:$0xff]  ;;  %v633_v2 = vld [vmem:[%s8645_s1 + $0x1270] sm:$0xff]  ;;  %v638_v6 = vld [vmem:[%s8645_s1 + $0x1298] sm:$0xff]  ;;  %v3320_v7 = vpack.c.bf16 %v121_v63, %v119_v62 }
  0x35   :  { %3293 = vmatpush1.bf16.msra.mxu1 %v3292_v42  ;;  %v116_v42 = vld [vmem:[%s8645_s1 + $0x248] sm:$0xff]  ;;  %v3832_v8 = vpack.c.bf16 %v633_v2, %v631_v0  ;;  %v123_v10 = vld [vmem:[%s8645_s1 + $0x280] sm:$0xff]  ;;  %v125_v12 = vld [vmem:[%s8645_s1 + $0x290] sm:$0xff] }
  0x36   :  { %3805 = vmatpush1.bf16.msra.mxu0 %v3804_v43  ;;  %3295 = vmatprep.subr.bf16.mxu1 %v3294_v44  ;;  %v118_v43 = vld [vmem:[%s8645_s1 + $0x258] sm:$0xff]  ;;  %v1281_v44 = vcombine.high %v5087_v30, %v5087_v30  ;;  %v635_v13 = vld [vmem:[%s8645_s1 + $0x1280] sm:$0xff]  ;;  %v637_v15 = vld [vmem:[%s8645_s1 + $0x1290] sm:$0xff] }
  0x37   :  { %3807 = vmatprep.subr.bf16.mxu0 %v3806_v48  ;;  %v3312_v48 = vpack.c.bf16 %v113_v38, %v111_v37  ;;  %v3314_v50 = vpack.c.bf16 %v118_v43, %v116_v42  ;;  %v128_v16 = vld [vmem:[%s8645_s1 + $0x2a8] sm:$0xff]  ;;  %v130_v17 = vld [vmem:[%s8645_s1 + $0x2b8] sm:$0xff]  ;;  %v3836_v21 = vpack.c.bf16 %v637_v15, %v635_v13  ;;  %v127_v23 = vld [vmem:[%s8645_s1 + $0x2a0] sm:$0xff] }
  0x38   :  { %v3326_v22 = vpack.c.bf16 %v130_v17, %v128_v16  ;;  %v639_v26 = vld [vmem:[%s8645_s1 + $0x12a0] sm:$0xff]  ;;  %v641_v29 = vld [vmem:[%s8645_s1 + $0x12b0] sm:$0xff]  ;;  %v132_v31 = vld [vmem:[%s8645_s1 + $0x2c8] sm:$0xff] }
  0x39   :  { %3297 = vmatpush1.bf16.msra.mxu1 %v3296_v54  ;;  %v120_v54 = vld [vmem:[%s8645_s1 + $0x268] sm:$0xff]  ;;  %v134_v32 = vld [vmem:[%s8645_s1 + $0x2d8] sm:$0xff]  ;;  %v3840_v37 = vpack.c.bf16 %v641_v29, %v639_v26  ;;  %v131_v39 = vld [vmem:[%s8645_s1 + $0x2c0] sm:$0xff] }
  0x3a   :  { %3809 = vmatpush1.bf16.msra.mxu0 %v3808_v55  ;;  %3299 = vmatprep.subr.bf16.mxu1 %v3298_v56  ;;  %v122_v55 = vld [vmem:[%s8645_s1 + $0x278] sm:$0xff]  ;;  %v632_v56 = vld [vmem:[%s8645_s1 + $0x1268] sm:$0xff]  ;;  %v3330_v38 = vpack.c.bf16 %v134_v32, %v132_v31  ;;  %v643_v41 = vld [vmem:[%s8645_s1 + $0x12c0] sm:$0xff] }
  0x3b   :  { %3811 = vmatprep.subr.bf16.mxu0 %v3810_v60  ;;  %v3318_v60 = vpack.c.bf16 %v122_v55, %v120_v54  ;;  %v3830_v1 = vpack.c.bf16 %v634_v57, %v632_v56  ;;  %v645_v43 = vld [vmem:[%s8645_s1 + $0x12d0] sm:$0xff]  ;;  %v138_v45 = vld [vmem:[%s8645_s1 + $0x2f8] sm:$0xff]  ;;  %v648_v46 = vld [vmem:[%s8645_s1 + $0x12e8] sm:$0xff] }
  0x3c   :  { %v140_v54 = vld [vmem:[%s8645_s1 + $0x308] sm:$0xff]  ;;  %v142_v55 = vld [vmem:[%s8645_s1 + $0x318] sm:$0xff]  ;;  %v139_v62 = vld [vmem:[%s8645_s1 + $0x300] sm:$0xff] }
  0x3d   :  { %3301 = vmatpush1.bf16.msra.mxu1 %v3300_v3  ;;  %v124_v3 = vld [vmem:[%s8645_s1 + $0x288] sm:$0xff]  ;;  %v654_v57 = vld [vmem:[%s8645_s1 + $0x1318] sm:$0xff]  ;;  %v141_v63 = vld [vmem:[%s8645_s1 + $0x310] sm:$0xff] }
  0x3e   :  { %3813 = vmatpush1.bf16.msra.mxu0 %v3812_v4  ;;  %3303 = vmatprep.subr.bf16.mxu1 %v3302_v5  ;;  %v126_v4 = vld [vmem:[%s8645_s1 + $0x298] sm:$0xff]  ;;  %v636_v5 = vld [vmem:[%s8645_s1 + $0x1288] sm:$0xff]  ;;  %v651_v0 = vld [vmem:[%s8645_s1 + $0x1300] sm:$0xff] }
  0x3f   :  { %3815 = vmatprep.subr.bf16.mxu0 %v3814_v9  ;;  %v3322_v9 = vpack.c.bf16 %v126_v4, %v124_v3  ;;  %v3834_v14 = vpack.c.bf16 %v638_v6, %v636_v5  ;;  %v652_v56 = vld [vmem:[%s8645_s1 + $0x1308] sm:$0xff]  ;;  %v653_v2 = vld [vmem:[%s8645_s1 + $0x1310] sm:$0xff]  ;;  %v146_v4 = vld [vmem:[%s8645_s1 + $0x338] sm:$0xff] }
  0x40   :  { %v144_v3 = vld [vmem:[%s8645_s1 + $0x328] sm:$0xff]  ;;  %v658_v6 = vld [vmem:[%s8645_s1 + $0x1338] sm:$0xff]  ;;  %v655_v13 = vld [vmem:[%s8645_s1 + $0x1320] sm:$0xff] }
  0x41   :  { %3305 = vmatpush1.bf16.msra.mxu1 %v3304_v18  ;;  %v640_v18 = vld [vmem:[%s8645_s1 + $0x12a8] sm:$0xff]  ;;  %v657_v15 = vld [vmem:[%s8645_s1 + $0x1330] sm:$0xff]  ;;  %v150_v17 = vld [vmem:[%s8645_s1 + $0x358] sm:$0xff] }
  0x42   :  { %3817 = vmatpush1.bf16.msra.mxu0 %v3816_v19  ;;  %3307 = vmatprep.subr.bf16.mxu1 %v3306_v20  ;;  %v642_v19 = vld [vmem:[%s8645_s1 + $0x12b8] sm:$0xff]  ;;  %v3324_v20 = vpack.c.bf16 %v125_v12, %v123_v10  ;;  %v656_v5 = vld [vmem:[%s8645_s1 + $0x1328] sm:$0xff]  ;;  %v143_v10 = vld [vmem:[%s8645_s1 + $0x320] sm:$0xff] }
  0x43   :  { %3819 = vmatprep.subr.bf16.mxu0 %v3818_v24  ;;  %v129_v24 = vld [vmem:[%s8645_s1 + $0x2b0] sm:$0xff]  ;;  %v3838_v27 = vpack.c.bf16 %v642_v19, %v640_v18  ;;  %v148_v16 = vld [vmem:[%s8645_s1 + $0x348] sm:$0xff]  ;;  %v662_v19 = vld [vmem:[%s8645_s1 + $0x1358] sm:$0xff] }
  0x44   :  { %1531 = vmatmul.mubr.f32.vlgmr.msra.gmra.mrb[0].mxu1 %v4953_v25  ;;  %v115_v25 = vld [vmem:[%s8645_s1 + $0x240] sm:$0xff]  ;;  %v145_v12 = vld [vmem:[%s8645_s1 + $0x330] sm:$0xff]  ;;  %v660_v18 = vld [vmem:[%s8645_s1 + $0x1348] sm:$0xff] }
  0x45   :  { %3309 = vmatpush1.bf16.msra.mxu1 %v3308_v34  ;;  %2099 = vmatmul.mubr.f32.vlgmr.msra.gmra.mrb[0].mxu0 %v4962_v28  ;;  %v629_v28 = vld [vmem:[%s8645_s1 + $0x1250] sm:$0xff]  ;;  %v3316_v58 = vpack.c.bf16 %v117_v51, %v115_v25  ;;  %v644_v34 = vld [vmem:[%s8645_s1 + $0x12c8] sm:$0xff]  ;;  %v135_v25 = vld [vmem:[%s8645_s1 + $0x2e0] sm:$0xff] }
  0x46   :  { %3821 = vmatpush1.bf16.msra.mxu0 %v3820_v35  ;;  %3311 = vmatprep.subr.bf16.mxu1 %v3310_v36  ;;  %v3828_v59 = vpack.c.bf16 %v629_v28, %v627_v52  ;;  %v646_v35 = vld [vmem:[%s8645_s1 + $0x12d8] sm:$0xff]  ;;  %v3328_v36 = vpack.c.bf16 %v129_v24, %v127_v23  ;;  %v137_v51 = vld [vmem:[%s8645_s1 + $0x2f0] sm:$0xff]  ;;  %v647_v52 = vld [vmem:[%s8645_s1 + $0x12e0] sm:$0xff] }
  0x47   :  { %3823 = vmatprep.subr.bf16.mxu0 %v3822_v40  ;;  %1601 = vmatprep.mubr.f32.mxu1 %v1281_v44  ;;  %v133_v40 = vld [vmem:[%s8645_s1 + $0x2d0] sm:$0xff]  ;;  %v3842_v42 = vpack.c.bf16 %v646_v35, %v644_v34  ;;  %v136_v44 = vld [vmem:[%s8645_s1 + $0x2e8] sm:$0xff]  ;;  %v147_v23 = vld [vmem:[%s8645_s1 + $0x340] sm:$0xff] }
  0x48   :  { %2169 = vmatprep.mubr.f32.mxu0 %v1349_v47  ;;  %v650_v47 = vld [vmem:[%s8645_s1 + $0x12f8] sm:$0xff]  ;;  %v649_v28 = vld [vmem:[%s8645_s1 + $0x12f0] sm:$0xff]  ;;  %v659_v26 = vld [vmem:[%s8645_s1 + $0x1340] sm:$0xff] }
  0x49   :  { %3313 = vmatpush1.bf16.msra.mxu1 %v3312_v48  ;;  %v3332_v48 = vpack.c.bf16 %v133_v40, %v131_v39  ;;  %v149_v24 = vld [vmem:[%s8645_s1 + $0x350] sm:$0xff]  ;;  %v152_v31 = vld [vmem:[%s8645_s1 + $0x368] sm:$0xff]  ;;  %v154_v32 = vld [vmem:[%s8645_s1 + $0x378] sm:$0xff] }
  0x4a   :  { %3825 = vmatpush1.bf16.msra.mxu0 %v3824_v49  ;;  %3315 = vmatprep.subr.bf16.mxu1 %v3314_v50  ;;  %v3844_v49 = vpack.c.bf16 %v645_v43, %v643_v41  ;;  %v3334_v50 = vpack.c.bf16 %v138_v45, %v136_v44  ;;  %v661_v29 = vld [vmem:[%s8645_s1 + $0x1350] sm:$0xff]  ;;  %v664_v34 = vld [vmem:[%s8645_s1 + $0x1368] sm:$0xff]  ;;  %v666_v35 = vld [vmem:[%s8645_s1 + $0x1378] sm:$0xff] }
  0x4b   :  { %3827 = vmatprep.subr.bf16.mxu0 %v3826_v53  ;;  %v3846_v53 = vpack.c.bf16 %v650_v47, %v648_v46  ;;  %v151_v39 = vld [vmem:[%s8645_s1 + $0x360] sm:$0xff]  ;;  %v153_v40 = vld [vmem:[%s8645_s1 + $0x370] sm:$0xff]  ;;  %v156_v44 = vld [vmem:[%s8645_s1 + $0x388] sm:$0xff] }
  0x4c   :  { %v663_v41 = vld [vmem:[%s8645_s1 + $0x1360] sm:$0xff]  ;;  %v665_v43 = vld [vmem:[%s8645_s1 + $0x1370] sm:$0xff]  ;;  %v158_v45 = vld [vmem:[%s8645_s1 + $0x398] sm:$0xff] }
  0x4d   :  { %3317 = vmatpush1.bf16.msra.mxu1 %v3316_v58  ;;  %v3336_v58 = vpack.c.bf16 %v137_v51, %v135_v25  ;;  %v668_v46 = vld [vmem:[%s8645_s1 + $0x1388] sm:$0xff]  ;;  %v670_v47 = vld [vmem:[%s8645_s1 + $0x1398] sm:$0xff]  ;;  %v155_v25 = vld [vmem:[%s8645_s1 + $0x380] sm:$0xff] }
  0x4e   :  { %3829 = vmatpush1.bf16.msra.mxu0 %v3828_v59  ;;  %3319 = vmatprep.subr.bf16.mxu1 %v3318_v60  ;;  %v3848_v59 = vpack.c.bf16 %v649_v28, %v647_v52  ;;  %v3338_v60 = vpack.c.bf16 %v142_v55, %v140_v54  ;;  %v157_v51 = vld [vmem:[%s8645_s1 + $0x390] sm:$0xff]  ;;  %v667_v52 = vld [vmem:[%s8645_s1 + $0x1380] sm:$0xff]  ;;  %v160_v54 = vld [vmem:[%s8645_s1 + $0x3a8] sm:$0xff] }
  0x4f   :  { %3831 = vmatprep.subr.bf16.mxu0 %v3830_v1  ;;  %v3850_v1 = vpack.c.bf16 %v654_v57, %v652_v56  ;;  %v669_v28 = vld [vmem:[%s8645_s1 + $0x1390] sm:$0xff]  ;;  %v162_v55 = vld [vmem:[%s8645_s1 + $0x3b8] sm:$0xff]  ;;  %v672_v56 = vld [vmem:[%s8645_s1 + $0x13a8] sm:$0xff] }
  0x50   :  { %v674_v57 = vld [vmem:[%s8645_s1 + $0x13b8] sm:$0xff] }
  0x51   :  { %3321 = vmatpush1.bf16.msra.mxu1 %v3320_v7  ;;  %v3340_v7 = vpack.c.bf16 %v141_v63, %v139_v62  ;;  %v159_v62 = vld [vmem:[%s8645_s1 + $0x3a0] sm:$0xff]  ;;  %v161_v63 = vld [vmem:[%s8645_s1 + $0x3b0] sm:$0xff] }
  0x52   :  { %3833 = vmatpush1.bf16.msra.mxu0 %v3832_v8  ;;  %3323 = vmatprep.subr.bf16.mxu1 %v3322_v9  ;;  %v3852_v8 = vpack.c.bf16 %v653_v2, %v651_v0  ;;  %v3342_v9 = vpack.c.bf16 %v146_v4, %v144_v3  ;;  %v671_v0 = vld [vmem:[%s8645_s1 + $0x13a0] sm:$0xff]  ;;  %v673_v2 = vld [vmem:[%s8645_s1 + $0x13b0] sm:$0xff]  ;;  %v164_v3 = vld [vmem:[%s8645_s1 + $0x3c8] sm:$0xff] }
  0x53   :  { %3835 = vmatprep.subr.bf16.mxu0 %v3834_v14  ;;  %v3854_v14 = vpack.c.bf16 %v658_v6, %v656_v5  ;;  %v166_v4 = vld [vmem:[%s8645_s1 + $0x3d8] sm:$0xff]  ;;  %v676_v5 = vld [vmem:[%s8645_s1 + $0x13c8] sm:$0xff] }
  0x54   :  { %v678_v6 = vld [vmem:[%s8645_s1 + $0x13d8] sm:$0xff] }
  0x55   :  { %3325 = vmatpush1.bf16.msra.mxu1 %v3324_v20  ;;  %v3344_v20 = vpack.c.bf16 %v145_v12, %v143_v10  ;;  %v163_v10 = vld [vmem:[%s8645_s1 + $0x3c0] sm:$0xff]  ;;  %v165_v12 = vld [vmem:[%s8645_s1 + $0x3d0] sm:$0xff] }
  0x56   :  { %3837 = vmatpush1.bf16.msra.mxu0 %v3836_v21  ;;  %3327 = vmatprep.subr.bf16.mxu1 %v3326_v22  ;;  %v3856_v21 = vpack.c.bf16 %v657_v15, %v655_v13  ;;  %v3346_v22 = vpack.c.bf16 %v150_v17, %v148_v16  ;;  %v675_v13 = vld [vmem:[%s8645_s1 + $0x13c0] sm:$0xff]  ;;  %v677_v15 = vld [vmem:[%s8645_s1 + $0x13d0] sm:$0xff]  ;;  %v168_v16 = vld [vmem:[%s8645_s1 + $0x3e8] sm:$0xff] }
  0x57   :  { %3839 = vmatprep.subr.bf16.mxu0 %v3838_v27  ;;  %v3858_v27 = vpack.c.bf16 %v662_v19, %v660_v18  ;;  %v170_v17 = vld [vmem:[%s8645_s1 + $0x3f8] sm:$0xff]  ;;  %v680_v18 = vld [vmem:[%s8645_s1 + $0x13e8] sm:$0xff] }
  0x58   :  { %v682_v19 = vld [vmem:[%s8645_s1 + $0x13f8] sm:$0xff] }
  0x59   :  { %3329 = vmatpush1.bf16.msra.mxu1 %v3328_v36  ;;  %v3348_v36 = vpack.c.bf16 %v149_v24, %v147_v23  ;;  %v167_v23 = vld [vmem:[%s8645_s1 + $0x3e0] sm:$0xff]  ;;  %v169_v24 = vld [vmem:[%s8645_s1 + $0x3f0] sm:$0xff] }
  0x5a   :  { %3841 = vmatpush1.bf16.msra.mxu0 %v3840_v37  ;;  %3331 = vmatprep.subr.bf16.mxu1 %v3330_v38  ;;  %v3860_v37 = vpack.c.bf16 %v661_v29, %v659_v26  ;;  %v3350_v38 = vpack.c.bf16 %v154_v32, %v152_v31  ;;  %v679_v26 = vld [vmem:[%s8645_s1 + $0x13e0] sm:$0xff]  ;;  %v681_v29 = vld [vmem:[%s8645_s1 + $0x13f0] sm:$0xff]  ;;  %v172_v31 = vld [vmem:[%s8645_s1 + $0x408] sm:$0xff] }
  0x5b   :  { %3843 = vmatprep.subr.bf16.mxu0 %v3842_v42  ;;  %v3862_v42 = vpack.c.bf16 %v666_v35, %v664_v34  ;;  %v174_v32 = vld [vmem:[%s8645_s1 + $0x418] sm:$0xff]  ;;  %v684_v34 = vld [vmem:[%s8645_s1 + $0x1408] sm:$0xff] }
  0x5c   :  { %v686_v35 = vld [vmem:[%s8645_s1 + $0x1418] sm:$0xff] }
  0x5d   :  { %3333 = vmatpush1.bf16.msra.mxu1 %v3332_v48  ;;  %v3352_v48 = vpack.c.bf16 %v153_v40, %v151_v39  ;;  %v171_v39 = vld [vmem:[%s8645_s1 + $0x400] sm:$0xff]  ;;  %v173_v40 = vld [vmem:[%s8645_s1 + $0x410] sm:$0xff] }
  0x5e   :  { %3845 = vmatpush1.bf16.msra.mxu0 %v3844_v49  ;;  %3335 = vmatprep.subr.bf16.mxu1 %v3334_v50  ;;  %v3864_v49 = vpack.c.bf16 %v665_v43, %v663_v41  ;;  %v3354_v50 = vpack.c.bf16 %v158_v45, %v156_v44  ;;  %v683_v41 = vld [vmem:[%s8645_s1 + $0x1400] sm:$0xff]  ;;  %v685_v43 = vld [vmem:[%s8645_s1 + $0x1410] sm:$0xff]  ;;  %v176_v44 = vld [vmem:[%s8645_s1 + $0x428] sm:$0xff] }
  0x5f   :  { %3847 = vmatprep.subr.bf16.mxu0 %v3846_v53  ;;  %v3866_v53 = vpack.c.bf16 %v670_v47, %v668_v46  ;;  %v178_v45 = vld [vmem:[%s8645_s1 + $0x438] sm:$0xff]  ;;  %v688_v46 = vld [vmem:[%s8645_s1 + $0x1428] sm:$0xff] }
  0x60   :  { %v690_v47 = vld [vmem:[%s8645_s1 + $0x1438] sm:$0xff] }
  0x61   :  { %3337 = vmatpush1.bf16.msra.mxu1 %v3336_v58  ;;  %v3356_v58 = vpack.c.bf16 %v157_v51, %v155_v25  ;;  %v3884_v25 = vpack.c.bf16 %v685_v43, %v683_v41  ;;  %v3374_v51 = vpack.c.bf16 %v178_v45, %v176_v44  ;;  %v191_v43 = vld [vmem:[%s8645_s1 + $0x4a0] sm:$0xff]  ;;  %v193_v44 = vld [vmem:[%s8645_s1 + $0x4b0] sm:$0xff] }
  0x62   :  { %3849 = vmatpush1.bf16.msra.mxu0 %v3848_v59  ;;  %3339 = vmatprep.subr.bf16.mxu1 %v3338_v60  ;;  %v3868_v59 = vpack.c.bf16 %v669_v28, %v667_v52  ;;  %v3358_v60 = vpack.c.bf16 %v162_v55, %v160_v54  ;;  %v177_v52 = vld [vmem:[%s8645_s1 + $0x430] sm:$0xff]  ;;  %v5509_v54 = vld [vmem:[%s8644_s0 + $0x28] sm:$0xff]  ;;  %v3886_v55 = vpack.c.bf16 %v690_v47, %v688_v46  ;;  %v703_v45 = vld [vmem:[%s8645_s1 + $0x14a0] sm:$0xff] }
  0x63   :  { %3851 = vmatprep.subr.bf16.mxu0 %v3850_v1  ;;  %v3870_v1 = vpack.c.bf16 %v674_v57, %v672_v56  ;;  %v689_v56 = vld [vmem:[%s8645_s1 + $0x1430] sm:$0xff]  ;;  %v180_v57 = vld [vmem:[%s8645_s1 + $0x448] sm:$0xff] }
  0x64   :  { %v705_v47 = vld [vmem:[%s8645_s1 + $0x14b0] sm:$0xff] }
  0x65   :  { %3341 = vmatpush1.bf16.msra.mxu1 %v3340_v7  ;;  %v3360_v7 = vpack.c.bf16 %v161_v63, %v159_v62  ;;  %v694_v62 = vld [vmem:[%s8645_s1 + $0x1458] sm:$0xff] }
  0x66   :  { %3853 = vmatpush1.bf16.msra.mxu0 %v3852_v8  ;;  %3343 = vmatprep.subr.bf16.mxu1 %v3342_v9  ;;  %v3872_v8 = vpack.c.bf16 %v673_v2, %v671_v0  ;;  %v3362_v9 = vpack.c.bf16 %v166_v4, %v164_v3  ;;  %v179_v3 = vld [vmem:[%s8645_s1 + $0x440] sm:$0xff]  ;;  %v181_v4 = vld [vmem:[%s8645_s1 + $0x450] sm:$0xff] }
  0x67   :  { %3855 = vmatprep.subr.bf16.mxu0 %v3854_v14  ;;  %v3874_v14 = vpack.c.bf16 %v678_v6, %v676_v5  ;;  %v693_v6 = vld [vmem:[%s8645_s1 + $0x1450] sm:$0xff] }
  0x69   :  { %3345 = vmatpush1.bf16.msra.mxu1 %v3344_v20  ;;  %v3364_v20 = vpack.c.bf16 %v165_v12, %v163_v10  ;;  %v698_v10 = vld [vmem:[%s8645_s1 + $0x1478] sm:$0xff]  ;;  %v3380_v12 = vpack.c.bf16 %v181_v4, %v179_v3 }
  0x6a   :  { %3857 = vmatpush1.bf16.msra.mxu0 %v3856_v21  ;;  %3347 = vmatprep.subr.bf16.mxu1 %v3346_v22  ;;  %v3876_v21 = vpack.c.bf16 %v677_v15, %v675_v13  ;;  %v3366_v22 = vpack.c.bf16 %v170_v17, %v168_v16  ;;  %v183_v15 = vld [vmem:[%s8645_s1 + $0x460] sm:$0xff]  ;;  %v185_v16 = vld [vmem:[%s8645_s1 + $0x470] sm:$0xff] }
  0x6b   :  { %3859 = vmatprep.subr.bf16.mxu0 %v3858_v27  ;;  %v3878_v27 = vpack.c.bf16 %v682_v19, %v680_v18  ;;  %v695_v17 = vld [vmem:[%s8645_s1 + $0x1460] sm:$0xff]  ;;  %v697_v19 = vld [vmem:[%s8645_s1 + $0x1470] sm:$0xff] }
  0x6d   :  { %3349 = vmatpush1.bf16.msra.mxu1 %v3348_v36  ;;  %v3368_v36 = vpack.c.bf16 %v169_v24, %v167_v23  ;;  %v702_v23 = vld [vmem:[%s8645_s1 + $0x1498] sm:$0xff]  ;;  %v3384_v24 = vpack.c.bf16 %v185_v16, %v183_v15 }
  0x6e   :  { %3861 = vmatpush1.bf16.msra.mxu0 %v3860_v37  ;;  %3351 = vmatprep.subr.bf16.mxu1 %v3350_v38  ;;  %v3880_v37 = vpack.c.bf16 %v681_v29, %v679_v26  ;;  %v3370_v38 = vpack.c.bf16 %v174_v32, %v172_v31  ;;  %v3896_v26 = vpack.c.bf16 %v697_v19, %v695_v17  ;;  %v187_v29 = vld [vmem:[%s8645_s1 + $0x480] sm:$0xff]  ;;  %v189_v31 = vld [vmem:[%s8645_s1 + $0x490] sm:$0xff] }
  0x6f   :  { %3863 = vmatprep.subr.bf16.mxu0 %v3862_v42  ;;  %v3882_v42 = vpack.c.bf16 %v686_v35, %v684_v34  ;;  %v699_v32 = vld [vmem:[%s8645_s1 + $0x1480] sm:$0xff]  ;;  %v701_v35 = vld [vmem:[%s8645_s1 + $0x1490] sm:$0xff] }
  0x70   :  { %v3900_v41 = vpack.c.bf16 %v701_v35, %v699_v32  ;;  %v203_v17 = vld [vmem:[%s8645_s1 + $0x500] sm:$0xff] }
  0x71   :  { %3353 = vmatpush1.bf16.msra.mxu1 %v3352_v48  ;;  %v3372_v48 = vpack.c.bf16 %v173_v40, %v171_v39  ;;  %v706_v39 = vld [vmem:[%s8645_s1 + $0x14b8] sm:$0xff]  ;;  %v3388_v40 = vpack.c.bf16 %v189_v31, %v187_v29  ;;  %v715_v19 = vld [vmem:[%s8645_s1 + $0x1500] sm:$0xff] }
  0x72   :  { %3865 = vmatpush1.bf16.msra.mxu0 %v3864_v49  ;;  %3355 = vmatprep.subr.bf16.mxu1 %v3354_v50  ;;  %v175_v49 = vld [vmem:[%s8645_s1 + $0x420] sm:$0xff]  ;;  %v5494_v50 = vld [vmem:[%s8644_s0 + $0x8] sm:$0xff] }
  0x73   :  { %3867 = vmatprep.subr.bf16.mxu0 %v3866_v53  ;;  %v687_v53 = vld [vmem:[%s8645_s1 + $0x1420] sm:$0xff]  ;;  %v5504_v28 = vrot.slane %v5494_v50, %v4920_v11  ;;  %v3376_v0 = vpack.c.bf16 %v177_v52, %v175_v49  ;;  %v198_v49 = vld [vmem:[%s8645_s1 + $0x4d8] sm:$0xff]  ;;  %v3392_v52 = vpack.c.bf16 %v193_v44, %v191_v43 }
  0x74   :  { %v207_v32 = vld [vmem:[%s8645_s1 + $0x520] sm:$0xff] }
  0x75   :  { %3357 = vmatpush1.bf16.msra.mxu1 %v3356_v58  ;;  %v182_v58 = vld [vmem:[%s8645_s1 + $0x458] sm:$0xff]  ;;  %v1297_v63 = vcombine.high %v5504_v28, %v5504_v28  ;;  %v719_v35 = vld [vmem:[%s8645_s1 + $0x1520] sm:$0xff] }
  0x76   :  { %3869 = vmatpush1.bf16.msra.mxu0 %v3868_v59  ;;  %3359 = vmatprep.subr.bf16.mxu1 %v3358_v60  ;;  %v5522_v59 = vrot.slane %v5509_v54, %v4920_v11  ;;  %v692_v60 = vld [vmem:[%s8645_s1 + $0x1448] sm:$0xff]  ;;  %v3378_v2 = vpack.c.bf16 %v182_v58, %v180_v57  ;;  %v197_v57 = vld [vmem:[%s8645_s1 + $0x4d0] sm:$0xff]  ;;  %v707_v58 = vld [vmem:[%s8645_s1 + $0x14c0] sm:$0xff] }
  0x77   :  { %3871 = vmatprep.subr.bf16.mxu0 %v3870_v1  ;;  %v3890_v5 = vpack.c.bf16 %v694_v62, %v692_v60  ;;  %v709_v62 = vld [vmem:[%s8645_s1 + $0x14d0] sm:$0xff] }
  0x78   :  { %v1365_v1 = vcombine.high %v5522_v59, %v5522_v59  ;;  %v3908_v3 = vpack.c.bf16 %v709_v62, %v707_v58  ;;  %v215_v58 = vld [vmem:[%s8645_s1 + $0x560] sm:$0xff] }
  0x79   :  { %3361 = vmatpush1.bf16.msra.mxu1 %v3360_v7  ;;  %v184_v7 = vld [vmem:[%s8645_s1 + $0x468] sm:$0xff]  ;;  %v727_v62 = vld [vmem:[%s8645_s1 + $0x1560] sm:$0xff] }
  0x7a   :  { %3873 = vmatpush1.bf16.msra.mxu0 %v3872_v8  ;;  %3363 = vmatprep.subr.bf16.mxu1 %v3362_v9  ;;  %v186_v8 = vld [vmem:[%s8645_s1 + $0x478] sm:$0xff]  ;;  %v696_v9 = vld [vmem:[%s8645_s1 + $0x1468] sm:$0xff] }
  0x7b   :  { %3875 = vmatprep.subr.bf16.mxu0 %v3874_v14  ;;  %v3382_v14 = vpack.c.bf16 %v186_v8, %v184_v7  ;;  %v3894_v18 = vpack.c.bf16 %v698_v10, %v696_v9  ;;  %v713_v8 = vld [vmem:[%s8645_s1 + $0x14f0] sm:$0xff]  ;;  %v204_v9 = vld [vmem:[%s8645_s1 + $0x508] sm:$0xff]  ;;  %v206_v10 = vld [vmem:[%s8645_s1 + $0x518] sm:$0xff] }
  0x7c   :  { %v3402_v16 = vpack.c.bf16 %v206_v10, %v204_v9  ;;  %v733_v10 = vld [vmem:[%s8645_s1 + $0x1590] sm:$0xff] }
  0x7d   :  { %3365 = vmatpush1.bf16.msra.mxu1 %v3364_v20  ;;  %v188_v20 = vld [vmem:[%s8645_s1 + $0x488] sm:$0xff] }
  0x7e   :  { %3877 = vmatpush1.bf16.msra.mxu0 %v3876_v21  ;;  %3367 = vmatprep.subr.bf16.mxu1 %v3366_v22  ;;  %v190_v21 = vld [vmem:[%s8645_s1 + $0x498] sm:$0xff]  ;;  %v700_v22 = vld [vmem:[%s8645_s1 + $0x1488] sm:$0xff] }
  0x7f   :  { %3879 = vmatprep.subr.bf16.mxu0 %v3878_v27  ;;  %v3386_v27 = vpack.c.bf16 %v190_v21, %v188_v20  ;;  %v3898_v34 = vpack.c.bf16 %v702_v23, %v700_v22  ;;  %v717_v21 = vld [vmem:[%s8645_s1 + $0x1510] sm:$0xff]  ;;  %v208_v22 = vld [vmem:[%s8645_s1 + $0x528] sm:$0xff]  ;;  %v210_v23 = vld [vmem:[%s8645_s1 + $0x538] sm:$0xff] }
  0x80   :  { %v3916_v29 = vpack.c.bf16 %v717_v21, %v715_v19  ;;  %v3406_v31 = vpack.c.bf16 %v210_v23, %v208_v22  ;;  %v223_v19 = vld [vmem:[%s8645_s1 + $0x5a0] sm:$0xff]  ;;  %v737_v23 = vld [vmem:[%s8645_s1 + $0x15b0] sm:$0xff] }
  0x81   :  { %3369 = vmatpush1.bf16.msra.mxu1 %v3368_v36  ;;  %v192_v36 = vld [vmem:[%s8645_s1 + $0x4a8] sm:$0xff]  ;;  %v735_v21 = vld [vmem:[%s8645_s1 + $0x15a0] sm:$0xff] }
  0x82   :  { %3881 = vmatpush1.bf16.msra.mxu0 %v3880_v37  ;;  %3371 = vmatprep.subr.bf16.mxu1 %v3370_v38  ;;  %v194_v37 = vld [vmem:[%s8645_s1 + $0x4b8] sm:$0xff]  ;;  %v704_v38 = vld [vmem:[%s8645_s1 + $0x14a8] sm:$0xff] }
  0x83   :  { %3883 = vmatprep.subr.bf16.mxu0 %v3882_v42  ;;  %v3390_v42 = vpack.c.bf16 %v194_v37, %v192_v36  ;;  %v3902_v46 = vpack.c.bf16 %v706_v39, %v704_v38  ;;  %v721_v37 = vld [vmem:[%s8645_s1 + $0x1530] sm:$0xff]  ;;  %v212_v38 = vld [vmem:[%s8645_s1 + $0x548] sm:$0xff]  ;;  %v214_v39 = vld [vmem:[%s8645_s1 + $0x558] sm:$0xff] }
  0x84   :  { %1602 = vmatmul.mubr.f32.vlgmr.msra.gmra.mrb[0].mxu1 %v5087_v30  ;;  %v3888_v30 = vpack.c.bf16 %v689_v56, %v687_v53  ;;  %v3904_v53 = vpack.c.bf16 %v705_v47, %v703_v45  ;;  %v195_v56 = vld [vmem:[%s8645_s1 + $0x4c0] sm:$0xff]  ;;  %v3920_v43 = vpack.c.bf16 %v721_v37, %v719_v35  ;;  %v3410_v44 = vpack.c.bf16 %v214_v39, %v212_v38  ;;  %v741_v39 = vld [vmem:[%s8645_s1 + $0x15d0] sm:$0xff] }
  0x85   :  { %3373 = vmatpush1.bf16.msra.mxu1 %v3372_v48  ;;  %2170 = vmatmul.mubr.f32.vlgmr.msra.gmra.mrb[0].mxu0 %v5096_v33  ;;  %v691_v33 = vld [vmem:[%s8645_s1 + $0x1440] sm:$0xff]  ;;  %v196_v48 = vld [vmem:[%s8645_s1 + $0x4c8] sm:$0xff] }
  0x86   :  { %3885 = vmatpush1.bf16.msra.mxu0 %v3884_v25  ;;  %3375 = vmatprep.subr.bf16.mxu1 %v3374_v51  ;;  %v3892_v13 = vpack.c.bf16 %v693_v6, %v691_v33  ;;  %v708_v25 = vld [vmem:[%s8645_s1 + $0x14c8] sm:$0xff]  ;;  %v710_v51 = vld [vmem:[%s8645_s1 + $0x14d8] sm:$0xff]  ;;  %v199_v33 = vld [vmem:[%s8645_s1 + $0x4e0] sm:$0xff] }
  0x87   :  { %3887 = vmatprep.subr.bf16.mxu0 %v3886_v55  ;;  %1672 = vmatprep.mubr.f32.mxu1 %v1297_v63  ;;  %v3394_v55 = vpack.c.bf16 %v198_v49, %v196_v48  ;;  %v3906_v60 = vpack.c.bf16 %v710_v51, %v708_v25  ;;  %v200_v63 = vld [vmem:[%s8645_s1 + $0x4e8] sm:$0xff]  ;;  %v711_v6 = vld [vmem:[%s8645_s1 + $0x14e0] sm:$0xff]  ;;  %v725_v49 = vld [vmem:[%s8645_s1 + $0x1550] sm:$0xff] }
  0x88   :  { %2240 = vmatprep.mubr.f32.mxu0 %v1365_v1  ;;  %v712_v1 = vld [vmem:[%s8645_s1 + $0x14e8] sm:$0xff]  ;;  %v3912_v15 = vpack.c.bf16 %v713_v8, %v711_v6  ;;  %v211_v45 = vld [vmem:[%s8645_s1 + $0x540] sm:$0xff]  ;;  %v218_v51 = vld [vmem:[%s8645_s1 + $0x578] sm:$0xff] }
  0x89   :  { %3377 = vmatpush1.bf16.msra.mxu1 %v3376_v0  ;;  %v202_v0 = vld [vmem:[%s8645_s1 + $0x4f8] sm:$0xff]  ;;  %v723_v47 = vld [vmem:[%s8645_s1 + $0x1540] sm:$0xff]  ;;  %v216_v25 = vld [vmem:[%s8645_s1 + $0x568] sm:$0xff] }
  0x8a   :  { %3889 = vmatpush1.bf16.msra.mxu0 %v3888_v30  ;;  %3379 = vmatprep.subr.bf16.mxu1 %v3378_v2  ;;  %v714_v30 = vld [vmem:[%s8645_s1 + $0x14f8] sm:$0xff]  ;;  %v3396_v2 = vpack.c.bf16 %v197_v57, %v195_v56  ;;  %v3398_v4 = vpack.c.bf16 %v202_v0, %v200_v63  ;;  %v3924_v56 = vpack.c.bf16 %v725_v49, %v723_v47  ;;  %v729_v0 = vld [vmem:[%s8645_s1 + $0x1570] sm:$0xff]  ;;  %v219_v6 = vld [vmem:[%s8645_s1 + $0x580] sm:$0xff] }
  0x8b   :  { %3891 = vmatprep.subr.bf16.mxu0 %v3890_v5  ;;  %v201_v5 = vld [vmem:[%s8645_s1 + $0x4f0] sm:$0xff]  ;;  %v3910_v7 = vpack.c.bf16 %v714_v30, %v712_v1  ;;  %v3414_v57 = vpack.c.bf16 %v218_v51, %v216_v25  ;;  %v220_v1 = vld [vmem:[%s8645_s1 + $0x588] sm:$0xff]  ;;  %v222_v30 = vld [vmem:[%s8645_s1 + $0x598] sm:$0xff] }
  0x8c   :  { %v731_v8 = vld [vmem:[%s8645_s1 + $0x1580] sm:$0xff]  ;;  %v745_v51 = vld [vmem:[%s8645_s1 + $0x15f0] sm:$0xff] }
  0x8d   :  { %3381 = vmatpush1.bf16.msra.mxu1 %v3380_v12  ;;  %v716_v12 = vld [vmem:[%s8645_s1 + $0x1508] sm:$0xff]  ;;  %v227_v35 = vld [vmem:[%s8645_s1 + $0x5c0] sm:$0xff] }
  0x8e   :  { %3893 = vmatpush1.bf16.msra.mxu0 %v3892_v13  ;;  %3383 = vmatprep.subr.bf16.mxu1 %v3382_v14  ;;  %v718_v13 = vld [vmem:[%s8645_s1 + $0x1518] sm:$0xff]  ;;  %v3400_v14 = vpack.c.bf16 %v201_v5, %v199_v33  ;;  %v3928_v33 = vpack.c.bf16 %v729_v0, %v727_v62  ;;  %v3418_v5 = vpack.c.bf16 %v222_v30, %v220_v1  ;;  %v739_v37 = vld [vmem:[%s8645_s1 + $0x15c0] sm:$0xff]  ;;  %v237_v0 = vld [vmem:[%s8645_s1 + $0x610] sm:$0xff] }
  0x8f   :  { %3895 = vmatprep.subr.bf16.mxu0 %v3894_v18  ;;  %v205_v18 = vld [vmem:[%s8645_s1 + $0x510] sm:$0xff]  ;;  %v3914_v20 = vpack.c.bf16 %v718_v13, %v716_v12  ;;  %v224_v12 = vld [vmem:[%s8645_s1 + $0x5a8] sm:$0xff]  ;;  %v226_v13 = vld [vmem:[%s8645_s1 + $0x5b8] sm:$0xff] }
  0x90   :  { %v231_v47 = vld [vmem:[%s8645_s1 + $0x5e0] sm:$0xff]  ;;  %v749_v30 = vld [vmem:[%s8645_s1 + $0x1610] sm:$0xff] }
  0x91   :  { %3385 = vmatpush1.bf16.msra.mxu1 %v3384_v24  ;;  %v720_v24 = vld [vmem:[%s8645_s1 + $0x1528] sm:$0xff]  ;;  %v743_v49 = vld [vmem:[%s8645_s1 + $0x15e0] sm:$0xff] }
  0x92   :  { %3897 = vmatpush1.bf16.msra.mxu0 %v3896_v26  ;;  %3387 = vmatprep.subr.bf16.mxu1 %v3386_v27  ;;  %v722_v26 = vld [vmem:[%s8645_s1 + $0x1538] sm:$0xff]  ;;  %v3404_v27 = vpack.c.bf16 %v205_v18, %v203_v17  ;;  %v3932_v17 = vpack.c.bf16 %v733_v10, %v731_v8  ;;  %v3422_v18 = vpack.c.bf16 %v226_v13, %v224_v12  ;;  %v747_v1 = vld [vmem:[%s8645_s1 + $0x1600] sm:$0xff]  ;;  %v241_v12 = vld [vmem:[%s8645_s1 + $0x630] sm:$0xff] }
  0x93   :  { %3899 = vmatprep.subr.bf16.mxu0 %v3898_v34  ;;  %v209_v34 = vld [vmem:[%s8645_s1 + $0x530] sm:$0xff]  ;;  %v3918_v36 = vpack.c.bf16 %v722_v26, %v720_v24  ;;  %v228_v24 = vld [vmem:[%s8645_s1 + $0x5c8] sm:$0xff]  ;;  %v230_v26 = vld [vmem:[%s8645_s1 + $0x5d8] sm:$0xff]  ;;  %v3944_v62 = vpack.c.bf16 %v745_v51, %v743_v49  ;;  %v3948_v8 = vpack.c.bf16 %v749_v30, %v747_v1 }
  0x94   :  { %v239_v10 = vld [vmem:[%s8645_s1 + $0x620] sm:$0xff] }
  0x95   :  { %3389 = vmatpush1.bf16.msra.mxu1 %v3388_v40  ;;  %v724_v40 = vld [vmem:[%s8645_s1 + $0x1548] sm:$0xff]  ;;  %v751_v13 = vld [vmem:[%s8645_s1 + $0x1620] sm:$0xff] }
  0x96   :  { %3901 = vmatpush1.bf16.msra.mxu0 %v3900_v41  ;;  %3391 = vmatprep.subr.bf16.mxu1 %v3390_v42  ;;  %v726_v41 = vld [vmem:[%s8645_s1 + $0x1558] sm:$0xff]  ;;  %v3408_v42 = vpack.c.bf16 %v209_v34, %v207_v32  ;;  %v3936_v32 = vpack.c.bf16 %v737_v23, %v735_v21  ;;  %v3426_v34 = vpack.c.bf16 %v230_v26, %v228_v24  ;;  %v245_v26 = vld [vmem:[%s8645_s1 + $0x650] sm:$0xff]  ;;  %v251_v51 = vld [vmem:[%s8645_s1 + $0x680] sm:$0xff] }
  0x97   :  { %3903 = vmatprep.subr.bf16.mxu0 %v3902_v46  ;;  %v213_v46 = vld [vmem:[%s8645_s1 + $0x550] sm:$0xff]  ;;  %v3922_v48 = vpack.c.bf16 %v726_v41, %v724_v40  ;;  %v232_v40 = vld [vmem:[%s8645_s1 + $0x5e8] sm:$0xff]  ;;  %v234_v41 = vld [vmem:[%s8645_s1 + $0x5f8] sm:$0xff] }
  0x98   :  { %v255_v1 = vld [vmem:[%s8645_s1 + $0x6a0] sm:$0xff] }
  0x99   :  { %3393 = vmatpush1.bf16.msra.mxu1 %v3392_v52  ;;  %v728_v52 = vld [vmem:[%s8645_s1 + $0x1568] sm:$0xff]  ;;  %v767_v30 = vld [vmem:[%s8645_s1 + $0x16a0] sm:$0xff] }
  0x9a   :  { %3905 = vmatpush1.bf16.msra.mxu0 %v3904_v53  ;;  %3395 = vmatprep.subr.bf16.mxu1 %v3394_v55  ;;  %v730_v53 = vld [vmem:[%s8645_s1 + $0x1578] sm:$0xff]  ;;  %v3412_v55 = vpack.c.bf16 %v213_v46, %v211_v45  ;;  %v3940_v45 = vpack.c.bf16 %v741_v39, %v739_v37  ;;  %v3430_v46 = vpack.c.bf16 %v234_v41, %v232_v40  ;;  %v247_v39 = vld [vmem:[%s8645_s1 + $0x660] sm:$0xff]  ;;  %v249_v40 = vld [vmem:[%s8645_s1 + $0x670] sm:$0xff] }
  0x9b   :  { %3907 = vmatprep.subr.bf16.mxu0 %v3906_v60  ;;  %v217_v60 = vld [vmem:[%s8645_s1 + $0x570] sm:$0xff]  ;;  %v3926_v63 = vpack.c.bf16 %v730_v53, %v728_v52  ;;  %v236_v52 = vld [vmem:[%s8645_s1 + $0x608] sm:$0xff]  ;;  %v238_v53 = vld [vmem:[%s8645_s1 + $0x618] sm:$0xff] }
  0x9c   :  { %v759_v41 = vld [vmem:[%s8645_s1 + $0x1660] sm:$0xff] }
  0x9d   :  { %3397 = vmatpush1.bf16.msra.mxu1 %v3396_v2  ;;  %v732_v2 = vld [vmem:[%s8645_s1 + $0x1588] sm:$0xff] }
  0x9e   :  { %3909 = vmatpush1.bf16.msra.mxu0 %v3908_v3  ;;  %3399 = vmatprep.subr.bf16.mxu1 %v3398_v4  ;;  %v734_v3 = vld [vmem:[%s8645_s1 + $0x1598] sm:$0xff]  ;;  %v3416_v4 = vpack.c.bf16 %v217_v60, %v215_v58  ;;  %v1350_v58 = vcombine.high %v5509_v54, %v5509_v54 }
  0x9f   :  { %3911 = vmatprep.subr.bf16.mxu0 %v3910_v7  ;;  %v221_v7 = vld [vmem:[%s8645_s1 + $0x590] sm:$0xff]  ;;  %v3930_v9 = vpack.c.bf16 %v734_v3, %v732_v2  ;;  %v240_v2 = vld [vmem:[%s8645_s1 + $0x628] sm:$0xff]  ;;  %v242_v3 = vld [vmem:[%s8645_s1 + $0x638] sm:$0xff] }
  0xa1   :  { %3401 = vmatpush1.bf16.msra.mxu1 %v3400_v14  ;;  %v736_v14 = vld [vmem:[%s8645_s1 + $0x15a8] sm:$0xff] }
  0xa2   :  { %3913 = vmatpush1.bf16.msra.mxu0 %v3912_v15  ;;  %3403 = vmatprep.subr.bf16.mxu1 %v3402_v16  ;;  %v738_v15 = vld [vmem:[%s8645_s1 + $0x15b8] sm:$0xff]  ;;  %v3420_v16 = vpack.c.bf16 %v221_v7, %v219_v6  ;;  %v5904_v6 = vrot.slane %v1350_v58, %v4920_v11 }
  0xa3   :  { %3915 = vmatprep.subr.bf16.mxu0 %v3914_v20  ;;  %v225_v20 = vld [vmem:[%s8645_s1 + $0x5b0] sm:$0xff]  ;;  %v3934_v22 = vpack.c.bf16 %v738_v15, %v736_v14  ;;  %v258_v58 = vld [vmem:[%s8645_s1 + $0x6b8] sm:$0xff] }
  0xa4   :  { %v753_v15 = vld [vmem:[%s8645_s1 + $0x1630] sm:$0xff]  ;;  %v1366_v21 = vcombine.high %v5904_v6, %v5904_v6 }
  0xa5   :  { %3405 = vmatpush1.bf16.msra.mxu1 %v3404_v27  ;;  %v740_v27 = vld [vmem:[%s8645_s1 + $0x15c8] sm:$0xff]  ;;  %v3952_v23 = vpack.c.bf16 %v753_v15, %v751_v13  ;;  %v259_v13 = vld [vmem:[%s8645_s1 + $0x6c0] sm:$0xff] }
  0xa6   :  { %3917 = vmatpush1.bf16.msra.mxu0 %v3916_v29  ;;  %3407 = vmatprep.subr.bf16.mxu1 %v3406_v31  ;;  %v742_v29 = vld [vmem:[%s8645_s1 + $0x15d8] sm:$0xff]  ;;  %v3424_v31 = vpack.c.bf16 %v225_v20, %v223_v19  ;;  %v756_v19 = vld [vmem:[%s8645_s1 + $0x1648] sm:$0xff]  ;;  %v771_v15 = vld [vmem:[%s8645_s1 + $0x16c0] sm:$0xff] }
  0xa7   :  { %3919 = vmatprep.subr.bf16.mxu0 %v3918_v36  ;;  %v229_v36 = vld [vmem:[%s8645_s1 + $0x5d0] sm:$0xff]  ;;  %v3938_v38 = vpack.c.bf16 %v742_v29, %v740_v27  ;;  %v758_v20 = vld [vmem:[%s8645_s1 + $0x1658] sm:$0xff]  ;;  %v755_v27 = vld [vmem:[%s8645_s1 + $0x1640] sm:$0xff] }
  0xa8   :  { %v3954_v29 = vpack.c.bf16 %v758_v20, %v756_v19  ;;  %v266_v19 = vld [vmem:[%s8645_s1 + $0x6f8] sm:$0xff]  ;;  %v776_v20 = vld [vmem:[%s8645_s1 + $0x16e8] sm:$0xff] }
  0xa9   :  { %3409 = vmatpush1.bf16.msra.mxu1 %v3408_v42  ;;  %v744_v42 = vld [vmem:[%s8645_s1 + $0x15e8] sm:$0xff] }
  0xaa   :  { %3921 = vmatpush1.bf16.msra.mxu0 %v3920_v43  ;;  %3411 = vmatprep.subr.bf16.mxu1 %v3410_v44  ;;  %v746_v43 = vld [vmem:[%s8645_s1 + $0x15f8] sm:$0xff]  ;;  %v3428_v44 = vpack.c.bf16 %v229_v36, %v227_v35 }
  0xab   :  { %3923 = vmatprep.subr.bf16.mxu0 %v3922_v48  ;;  %v233_v48 = vld [vmem:[%s8645_s1 + $0x5f0] sm:$0xff]  ;;  %v3942_v25 = vpack.c.bf16 %v746_v43, %v744_v42  ;;  %v762_v35 = vld [vmem:[%s8645_s1 + $0x1678] sm:$0xff] }
  0xac   :  { %v3432_v60 = vpack.c.bf16 %v233_v48, %v231_v47  ;;  %v761_v43 = vld [vmem:[%s8645_s1 + $0x1670] sm:$0xff]  ;;  %v766_v47 = vld [vmem:[%s8645_s1 + $0x1698] sm:$0xff]  ;;  %v3448_v48 = vpack.c.bf16 %v249_v40, %v247_v39  ;;  %v267_v39 = vld [vmem:[%s8645_s1 + $0x700] sm:$0xff] }
  0xad   :  { %3413 = vmatpush1.bf16.msra.mxu1 %v3412_v55  ;;  %v1282_v55 = vcombine.high %v5494_v50, %v5494_v50  ;;  %v235_v50 = vld [vmem:[%s8645_s1 + $0x600] sm:$0xff]  ;;  %v3960_v49 = vpack.c.bf16 %v761_v43, %v759_v41  ;;  %v269_v40 = vld [vmem:[%s8645_s1 + $0x710] sm:$0xff] }
  0xae   :  { %3925 = vmatpush1.bf16.msra.mxu0 %v3924_v56  ;;  %3415 = vmatprep.subr.bf16.mxu1 %v3414_v57  ;;  %v748_v56 = vld [vmem:[%s8645_s1 + $0x1608] sm:$0xff]  ;;  %v750_v57 = vld [vmem:[%s8645_s1 + $0x1618] sm:$0xff]  ;;  %v3436_v7 = vpack.c.bf16 %v237_v0, %v235_v50  ;;  %v779_v41 = vld [vmem:[%s8645_s1 + $0x1700] sm:$0xff] }
  0xaf   :  { %3927 = vmatprep.subr.bf16.mxu0 %v3926_v63  ;;  %v3434_v63 = vpack.c.bf16 %v238_v53, %v236_v52  ;;  %v3946_v54 = vpack.c.bf16 %v750_v57, %v748_v56  ;;  %v253_v52 = vld [vmem:[%s8645_s1 + $0x690] sm:$0xff]  ;;  %v763_v53 = vld [vmem:[%s8645_s1 + $0x1680] sm:$0xff]  ;;  %v256_v57 = vld [vmem:[%s8645_s1 + $0x6a8] sm:$0xff] }
  0xb0   :  { %v765_v56 = vld [vmem:[%s8645_s1 + $0x1690] sm:$0xff]  ;;  %v3454_v0 = vpack.c.bf16 %v258_v58, %v256_v57  ;;  %v276_v57 = vld [vmem:[%s8645_s1 + $0x748] sm:$0xff]  ;;  %v278_v58 = vld [vmem:[%s8645_s1 + $0x758] sm:$0xff] }
  0xb1   :  { %3417 = vmatpush1.bf16.msra.mxu1 %v3416_v4  ;;  %v5895_v4 = vrot.slane %v1282_v55, %v4920_v11  ;;  %v3964_v50 = vpack.c.bf16 %v765_v56, %v763_v53  ;;  %v781_v43 = vld [vmem:[%s8645_s1 + $0x1710] sm:$0xff]  ;;  %v783_v53 = vld [vmem:[%s8645_s1 + $0x1720] sm:$0xff] }
  0xb2   :  { %3929 = vmatpush1.bf16.msra.mxu0 %v3928_v33  ;;  %3419 = vmatprep.subr.bf16.mxu1 %v3418_v5  ;;  %v752_v33 = vld [vmem:[%s8645_s1 + $0x1628] sm:$0xff]  ;;  %v754_v5 = vld [vmem:[%s8645_s1 + $0x1638] sm:$0xff]  ;;  %v785_v56 = vld [vmem:[%s8645_s1 + $0x1730] sm:$0xff] }
  0xb3   :  { %3931 = vmatprep.subr.bf16.mxu0 %v3930_v9  ;;  %v3438_v9 = vpack.c.bf16 %v242_v3, %v240_v2  ;;  %v3950_v14 = vpack.c.bf16 %v754_v5, %v752_v33  ;;  %v769_v3 = vld [vmem:[%s8645_s1 + $0x16b0] sm:$0xff]  ;;  %v260_v33 = vld [vmem:[%s8645_s1 + $0x6c8] sm:$0xff]  ;;  %v262_v5 = vld [vmem:[%s8645_s1 + $0x6d8] sm:$0xff] }
  0xb5   :  { %3421 = vmatpush1.bf16.msra.mxu1 %v3420_v16  ;;  %v244_v16 = vld [vmem:[%s8645_s1 + $0x648] sm:$0xff] }
  0xb6   :  { %3933 = vmatpush1.bf16.msra.mxu0 %v3932_v17  ;;  %3423 = vmatprep.subr.bf16.mxu1 %v3422_v18  ;;  %v246_v17 = vld [vmem:[%s8645_s1 + $0x658] sm:$0xff]  ;;  %v1298_v18 = vcombine.high %v5895_v4, %v5895_v4 }
  0xb7   :  { %3935 = vmatprep.subr.bf16.mxu0 %v3934_v22  ;;  %v3440_v22 = vpack.c.bf16 %v241_v12, %v239_v10  ;;  %v3442_v24 = vpack.c.bf16 %v246_v17, %v244_v16  ;;  %v3968_v10 = vpack.c.bf16 %v769_v3, %v767_v30  ;;  %v3458_v12 = vpack.c.bf16 %v262_v5, %v260_v33  ;;  %v773_v17 = vld [vmem:[%s8645_s1 + $0x16d0] sm:$0xff]  ;;  %v787_v30 = vld [vmem:[%s8645_s1 + $0x1740] sm:$0xff]  ;;  %v280_v33 = vld [vmem:[%s8645_s1 + $0x768] sm:$0xff] }
  0xb8   :  { %v789_v3 = vld [vmem:[%s8645_s1 + $0x1750] sm:$0xff]  ;;  %v282_v5 = vld [vmem:[%s8645_s1 + $0x778] sm:$0xff] }
  0xb9   :  { %3425 = vmatpush1.bf16.msra.mxu1 %v3424_v31  ;;  %v248_v31 = vld [vmem:[%s8645_s1 + $0x668] sm:$0xff] }
  0xba   :  { %3937 = vmatpush1.bf16.msra.mxu0 %v3936_v32  ;;  %3427 = vmatprep.subr.bf16.mxu1 %v3426_v34  ;;  %v250_v32 = vld [vmem:[%s8645_s1 + $0x678] sm:$0xff]  ;;  %v760_v34 = vld [vmem:[%s8645_s1 + $0x1668] sm:$0xff] }
  0xbb   :  { %3939 = vmatprep.subr.bf16.mxu0 %v3938_v38  ;;  %v3446_v38 = vpack.c.bf16 %v250_v32, %v248_v31  ;;  %v3958_v42 = vpack.c.bf16 %v762_v35, %v760_v34  ;;  %v268_v31 = vld [vmem:[%s8645_s1 + $0x708] sm:$0xff]  ;;  %v270_v32 = vld [vmem:[%s8645_s1 + $0x718] sm:$0xff] }
  0xbc   :  { %v780_v34 = vld [vmem:[%s8645_s1 + $0x1708] sm:$0xff]  ;;  %v782_v35 = vld [vmem:[%s8645_s1 + $0x1718] sm:$0xff] }
  0xbd   :  { %3429 = vmatpush1.bf16.msra.mxu1 %v3428_v44  ;;  %v252_v44 = vld [vmem:[%s8645_s1 + $0x688] sm:$0xff] }
  0xbe   :  { %3941 = vmatpush1.bf16.msra.mxu0 %v3940_v45  ;;  %3431 = vmatprep.subr.bf16.mxu1 %v3430_v46  ;;  %v254_v45 = vld [vmem:[%s8645_s1 + $0x698] sm:$0xff]  ;;  %v764_v46 = vld [vmem:[%s8645_s1 + $0x1688] sm:$0xff] }
  0xbf   :  { %3943 = vmatprep.subr.bf16.mxu0 %v3942_v25  ;;  %v3450_v25 = vpack.c.bf16 %v254_v45, %v252_v44  ;;  %v3962_v55 = vpack.c.bf16 %v766_v47, %v764_v46  ;;  %v272_v44 = vld [vmem:[%s8645_s1 + $0x728] sm:$0xff]  ;;  %v274_v45 = vld [vmem:[%s8645_s1 + $0x738] sm:$0xff] }
  0xc0   :  { %v784_v46 = vld [vmem:[%s8645_s1 + $0x1728] sm:$0xff]  ;;  %v786_v47 = vld [vmem:[%s8645_s1 + $0x1738] sm:$0xff] }
  0xc1   :  { %3433 = vmatpush1.bf16.msra.mxu1 %v3432_v60  ;;  %v768_v60 = vld [vmem:[%s8645_s1 + $0x16a8] sm:$0xff] }
  0xc2   :  { %3945 = vmatpush1.bf16.msra.mxu0 %v3944_v62  ;;  %3435 = vmatprep.subr.bf16.mxu1 %v3434_v63  ;;  %v770_v62 = vld [vmem:[%s8645_s1 + $0x16b8] sm:$0xff]  ;;  %v3452_v63 = vpack.c.bf16 %v253_v52, %v251_v51  ;;  %v271_v51 = vld [vmem:[%s8645_s1 + $0x720] sm:$0xff]  ;;  %v273_v52 = vld [vmem:[%s8645_s1 + $0x730] sm:$0xff] }
  0xc3   :  { %3947 = vmatprep.subr.bf16.mxu0 %v3946_v54  ;;  %v257_v54 = vld [vmem:[%s8645_s1 + $0x6b0] sm:$0xff]  ;;  %v3966_v2 = vpack.c.bf16 %v770_v62, %v768_v60  ;;  %v788_v60 = vld [vmem:[%s8645_s1 + $0x1748] sm:$0xff]  ;;  %v790_v62 = vld [vmem:[%s8645_s1 + $0x1758] sm:$0xff] }
  0xc4   :  { %1673 = vmatmul.mubr.f32.vlgmr.msra.gmra.mrb[0].mxu1 %v5504_v28  ;;  %v243_v28 = vld [vmem:[%s8645_s1 + $0x640] sm:$0xff] }
  0xc5   :  { %3437 = vmatpush1.bf16.msra.mxu1 %v3436_v7  ;;  %2241 = vmatmul.mubr.f32.vlgmr.msra.gmra.mrb[0].mxu0 %v5522_v59  ;;  %v757_v59 = vld [vmem:[%s8645_s1 + $0x1650] sm:$0xff]  ;;  %v3444_v36 = vpack.c.bf16 %v245_v26, %v243_v28  ;;  %v772_v7 = vld [vmem:[%s8645_s1 + $0x16c8] sm:$0xff]  ;;  %v263_v28 = vld [vmem:[%s8645_s1 + $0x6e0] sm:$0xff] }
  0xc6   :  { %3949 = vmatpush1.bf16.msra.mxu0 %v3948_v8  ;;  %3439 = vmatprep.subr.bf16.mxu1 %v3438_v9  ;;  %v3956_v37 = vpack.c.bf16 %v757_v59, %v755_v27  ;;  %v774_v8 = vld [vmem:[%s8645_s1 + $0x16d8] sm:$0xff]  ;;  %v3456_v9 = vpack.c.bf16 %v257_v54, %v255_v1  ;;  %v265_v26 = vld [vmem:[%s8645_s1 + $0x6f0] sm:$0xff]  ;;  %v775_v27 = vld [vmem:[%s8645_s1 + $0x16e0] sm:$0xff] }
  0xc7   :  { %3951 = vmatprep.subr.bf16.mxu0 %v3950_v14  ;;  %1743 = vmatprep.mubr.f32.mxu1 %v1298_v18  ;;  %v261_v14 = vld [vmem:[%s8645_s1 + $0x6d0] sm:$0xff]  ;;  %v3970_v16 = vpack.c.bf16 %v774_v8, %v772_v7  ;;  %v264_v18 = vld [vmem:[%s8645_s1 + $0x6e8] sm:$0xff]  ;;  %v275_v1 = vld [vmem:[%s8645_s1 + $0x740] sm:$0xff] }
  0xc8   :  { %2311 = vmatprep.mubr.f32.mxu0 %v1366_v21  ;;  %v778_v21 = vld [vmem:[%s8645_s1 + $0x16f8] sm:$0xff]  ;;  %v777_v59 = vld [vmem:[%s8645_s1 + $0x16f0] sm:$0xff]  ;;  %v792_v7 = vld [vmem:[%s8645_s1 + $0x1768] sm:$0xff] }
  0xc9   :  { %3441 = vmatpush1.bf16.msra.mxu1 %v3440_v22  ;;  %v3460_v22 = vpack.c.bf16 %v261_v14, %v259_v13  ;;  %v277_v54 = vld [vmem:[%s8645_s1 + $0x750] sm:$0xff]  ;;  %v794_v8 = vld [vmem:[%s8645_s1 + $0x1778] sm:$0xff]  ;;  %v279_v13 = vld [vmem:[%s8645_s1 + $0x760] sm:$0xff] }
  0xca   :  { %3953 = vmatpush1.bf16.msra.mxu0 %v3952_v23  ;;  %3443 = vmatprep.subr.bf16.mxu1 %v3442_v24  ;;  %v3972_v23 = vpack.c.bf16 %v773_v17, %v771_v15  ;;  %v3462_v24 = vpack.c.bf16 %v266_v19, %v264_v18  ;;  %v281_v14 = vld [vmem:[%s8645_s1 + $0x770] sm:$0xff]  ;;  %v791_v15 = vld [vmem:[%s8645_s1 + $0x1760] sm:$0xff]  ;;  %v284_v18 = vld [vmem:[%s8645_s1 + $0x788] sm:$0xff] }
  0xcb   :  { %3955 = vmatprep.subr.bf16.mxu0 %v3954_v29  ;;  %v3974_v29 = vpack.c.bf16 %v778_v21, %v776_v20  ;;  %v793_v17 = vld [vmem:[%s8645_s1 + $0x1770] sm:$0xff]  ;;  %v286_v19 = vld [vmem:[%s8645_s1 + $0x798] sm:$0xff]  ;;  %v796_v20 = vld [vmem:[%s8645_s1 + $0x1788] sm:$0xff] }
  0xcc   :  { %v798_v21 = vld [vmem:[%s8645_s1 + $0x1798] sm:$0xff] }
  0xcd   :  { %3445 = vmatpush1.bf16.msra.mxu1 %v3444_v36  ;;  %v3464_v36 = vpack.c.bf16 %v265_v26, %v263_v28  ;;  %v283_v28 = vld [vmem:[%s8645_s1 + $0x780] sm:$0xff]  ;;  %v285_v26 = vld [vmem:[%s8645_s1 + $0x790] sm:$0xff] }
  0xce   :  { %3957 = vmatpush1.bf16.msra.mxu0 %v3956_v37  ;;  %3447 = vmatprep.subr.bf16.mxu1 %v3446_v38  ;;  %v3976_v37 = vpack.c.bf16 %v777_v59, %v775_v27  ;;  %v3466_v38 = vpack.c.bf16 %v270_v32, %v268_v31  ;;  %v795_v27 = vld [vmem:[%s8645_s1 + $0x1780] sm:$0xff]  ;;  %v797_v59 = vld [vmem:[%s8645_s1 + $0x1790] sm:$0xff]  ;;  %v288_v31 = vld [vmem:[%s8645_s1 + $0x7a8] sm:$0xff] }
  0xcf   :  { %3959 = vmatprep.subr.bf16.mxu0 %v3958_v42  ;;  %v3978_v42 = vpack.c.bf16 %v782_v35, %v780_v34  ;;  %v290_v32 = vld [vmem:[%s8645_s1 + $0x7b8] sm:$0xff]  ;;  %v800_v34 = vld [vmem:[%s8645_s1 + $0x17a8] sm:$0xff] }
  0xd0   :  { %v802_v35 = vld [vmem:[%s8645_s1 + $0x17b8] sm:$0xff] }
  0xd1   :  { %3449 = vmatpush1.bf16.msra.mxu1 %v3448_v48  ;;  %v3468_v48 = vpack.c.bf16 %v269_v40, %v267_v39  ;;  %v287_v39 = vld [vmem:[%s8645_s1 + $0x7a0] sm:$0xff]  ;;  %v289_v40 = vld [vmem:[%s8645_s1 + $0x7b0] sm:$0xff] }
  0xd2   :  { %3961 = vmatpush1.bf16.msra.mxu0 %v3960_v49  ;;  %3451 = vmatprep.subr.bf16.mxu1 %v3450_v25  ;;  %v3980_v49 = vpack.c.bf16 %v781_v43, %v779_v41  ;;  %v3470_v25 = vpack.c.bf16 %v274_v45, %v272_v44  ;;  %v799_v41 = vld [vmem:[%s8645_s1 + $0x17a0] sm:$0xff]  ;;  %v801_v43 = vld [vmem:[%s8645_s1 + $0x17b0] sm:$0xff]  ;;  %v292_v44 = vld [vmem:[%s8645_s1 + $0x7c8] sm:$0xff] }
  0xd3   :  { %3963 = vmatprep.subr.bf16.mxu0 %v3962_v55  ;;  %v3982_v55 = vpack.c.bf16 %v786_v47, %v784_v46  ;;  %v294_v45 = vld [vmem:[%s8645_s1 + $0x7d8] sm:$0xff]  ;;  %v804_v46 = vld [vmem:[%s8645_s1 + $0x17c8] sm:$0xff] }
  0xd4   :  { %v806_v47 = vld [vmem:[%s8645_s1 + $0x17d8] sm:$0xff] }
  0xd5   :  { %3453 = vmatpush1.bf16.msra.mxu1 %v3452_v63  ;;  %v3472_v63 = vpack.c.bf16 %v273_v52, %v271_v51  ;;  %v291_v51 = vld [vmem:[%s8645_s1 + $0x7c0] sm:$0xff]  ;;  %v293_v52 = vld [vmem:[%s8645_s1 + $0x7d0] sm:$0xff] }
  0xd6   :  { %3965 = vmatpush1.bf16.msra.mxu0 %v3964_v50  ;;  %3455 = vmatprep.subr.bf16.mxu1 %v3454_v0  ;;  %v3984_v50 = vpack.c.bf16 %v785_v56, %v783_v53  ;;  %v3474_v0 = vpack.c.bf16 %v278_v58, %v276_v57  ;;  %v803_v53 = vld [vmem:[%s8645_s1 + $0x17c0] sm:$0xff]  ;;  %v805_v56 = vld [vmem:[%s8645_s1 + $0x17d0] sm:$0xff]  ;;  %v296_v57 = vld [vmem:[%s8645_s1 + $0x7e8] sm:$0xff] }
  0xd7   :  { %3967 = vmatprep.subr.bf16.mxu0 %v3966_v2  ;;  %v3986_v2 = vpack.c.bf16 %v790_v62, %v788_v60  ;;  %v298_v58 = vld [vmem:[%s8645_s1 + $0x7f8] sm:$0xff]  ;;  %v808_v60 = vld [vmem:[%s8645_s1 + $0x17e8] sm:$0xff] }
  0xd8   :  { %v810_v62 = vld [vmem:[%s8645_s1 + $0x17f8] sm:$0xff] }
  0xd9   :  { %3457 = vmatpush1.bf16.msra.mxu1 %v3456_v9  ;;  %v3476_v9 = vpack.c.bf16 %v277_v54, %v275_v1  ;;  %v295_v1 = vld [vmem:[%s8645_s1 + $0x7e0] sm:$0xff]  ;;  %v297_v54 = vld [vmem:[%s8645_s1 + $0x7f0] sm:$0xff] }
  0xda   :  { %3969 = vmatpush1.bf16.msra.mxu0 %v3968_v10  ;;  %3459 = vmatprep.subr.bf16.mxu1 %v3458_v12  ;;  %v3988_v10 = vpack.c.bf16 %v789_v3, %v787_v30  ;;  %v3478_v12 = vpack.c.bf16 %v282_v5, %v280_v33  ;;  %v807_v30 = vld [vmem:[%s8645_s1 + $0x17e0] sm:$0xff]  ;;  %v809_v3 = vld [vmem:[%s8645_s1 + $0x17f0] sm:$0xff]  ;;  %v300_v33 = vld [vmem:[%s8645_s1 + $0x808] sm:$0xff] }
  0xdb   :  { %3971 = vmatprep.subr.bf16.mxu0 %v3970_v16  ;;  %v3990_v16 = vpack.c.bf16 %v794_v8, %v792_v7  ;;  %v302_v5 = vld [vmem:[%s8645_s1 + $0x818] sm:$0xff]  ;;  %v812_v7 = vld [vmem:[%s8645_s1 + $0x1808] sm:$0xff] }
  0xdc   :  { %v814_v8 = vld [vmem:[%s8645_s1 + $0x1818] sm:$0xff] }
  0xdd   :  { %3461 = vmatpush1.bf16.msra.mxu1 %v3460_v22  ;;  %v3480_v22 = vpack.c.bf16 %v281_v14, %v279_v13  ;;  %v4008_v13 = vpack.c.bf16 %v809_v3, %v807_v30  ;;  %v3498_v14 = vpack.c.bf16 %v302_v5, %v300_v33 }
  0xde   :  { %3973 = vmatpush1.bf16.msra.mxu0 %v3972_v23  ;;  %3463 = vmatprep.subr.bf16.mxu1 %v3462_v24  ;;  %v3992_v23 = vpack.c.bf16 %v793_v17, %v791_v15  ;;  %v3482_v24 = vpack.c.bf16 %v286_v19, %v284_v18  ;;  %v299_v15 = vld [vmem:[%s8645_s1 + $0x800] sm:$0xff]  ;;  %v4010_v18 = vpack.c.bf16 %v814_v8, %v812_v7  ;;  %v813_v19 = vld [vmem:[%s8645_s1 + $0x1810] sm:$0xff] }
  0xdf   :  { %3975 = vmatprep.subr.bf16.mxu0 %v3974_v29  ;;  %v3994_v29 = vpack.c.bf16 %v798_v21, %v796_v20  ;;  %v811_v17 = vld [vmem:[%s8645_s1 + $0x1800] sm:$0xff]  ;;  %v304_v20 = vld [vmem:[%s8645_s1 + $0x828] sm:$0xff]  ;;  %v306_v21 = vld [vmem:[%s8645_s1 + $0x838] sm:$0xff] }
  0xe1   :  { %3465 = vmatpush1.bf16.msra.mxu1 %v3464_v36  ;;  %v3484_v36 = vpack.c.bf16 %v285_v26, %v283_v28 }
  0xe2   :  { %3977 = vmatpush1.bf16.msra.mxu0 %v3976_v37  ;;  %3467 = vmatprep.subr.bf16.mxu1 %v3466_v38  ;;  %v3996_v37 = vpack.c.bf16 %v797_v59, %v795_v27  ;;  %v3486_v38 = vpack.c.bf16 %v290_v32, %v288_v31  ;;  %v4012_v27 = vpack.c.bf16 %v813_v19, %v811_v17  ;;  %v303_v59 = vld [vmem:[%s8645_s1 + $0x820] sm:$0xff]  ;;  %v305_v31 = vld [vmem:[%s8645_s1 + $0x830] sm:$0xff] }
  0xe3   :  { %3979 = vmatprep.subr.bf16.mxu0 %v3978_v42  ;;  %v3998_v42 = vpack.c.bf16 %v802_v35, %v800_v34  ;;  %v815_v32 = vld [vmem:[%s8645_s1 + $0x1820] sm:$0xff]  ;;  %v817_v35 = vld [vmem:[%s8645_s1 + $0x1830] sm:$0xff] }
  0xe5   :  { %3469 = vmatpush1.bf16.msra.mxu1 %v3468_v48  ;;  %v3488_v48 = vpack.c.bf16 %v289_v40, %v287_v39  ;;  %v820_v39 = vld [vmem:[%s8645_s1 + $0x1848] sm:$0xff]  ;;  %v822_v40 = vld [vmem:[%s8645_s1 + $0x1858] sm:$0xff] }
  0xe6   :  { %3981 = vmatpush1.bf16.msra.mxu0 %v3980_v49  ;;  %3471 = vmatprep.subr.bf16.mxu1 %v3470_v25  ;;  %v4000_v49 = vpack.c.bf16 %v801_v43, %v799_v41  ;;  %v3490_v25 = vpack.c.bf16 %v294_v45, %v292_v44 }
  0xe7   :  { %3983 = vmatprep.subr.bf16.mxu0 %v3982_v55  ;;  %v4002_v55 = vpack.c.bf16 %v806_v47, %v804_v46 }
  0xe9   :  { %3473 = vmatpush1.bf16.msra.mxu1 %v3472_v63  ;;  %v3492_v63 = vpack.c.bf16 %v293_v52, %v291_v51 }
  0xea   :  { %3985 = vmatpush1.bf16.msra.mxu0 %v3984_v50  ;;  %3475 = vmatprep.subr.bf16.mxu1 %v3474_v0  ;;  %v4004_v50 = vpack.c.bf16 %v805_v56, %v803_v53  ;;  %v3494_v0 = vpack.c.bf16 %v298_v58, %v296_v57 }
  0xeb   :  { %3987 = vmatprep.subr.bf16.mxu0 %v3986_v2  ;;  %v4006_v2 = vpack.c.bf16 %v810_v62, %v808_v60 }
  0xed   :  { %3477 = vmatpush1.bf16.msra.mxu1 %v3476_v9  ;;  %v6275_v9 = vld [vmem:[%s8644_s0 + $0x10] sm:$0xff] }
  0xee   :  { %3989 = vmatpush1.bf16.msra.mxu0 %v3988_v10  ;;  %3479 = vmatprep.subr.bf16.mxu1 %v3478_v12  ;;  %v3496_v10 = vpack.c.bf16 %v297_v54, %v295_v1  ;;  %v6280_v12 = vld [vmem:[%s8644_s0 + $0x30] sm:$0xff] }
  0xef   :  { %3991 = vmatprep.subr.bf16.mxu0 %v3990_v16  ;;  %v301_v16 = vld [vmem:[%s8645_s1 + $0x810] sm:$0xff]  ;;  %v6312_v28 = vrot.slane %v6280_v12, %v4920_v11 }
  0xf0   :  { %v3500_v26 = vpack.c.bf16 %v301_v16, %v299_v15 }
  0xf1   :  { %3481 = vmatpush1.bf16.msra.mxu1 %v3480_v22  ;;  %v6302_v22 = vrot.slane %v6275_v9, %v4920_v11  ;;  %v1382_v41 = vcombine.high %v6312_v28, %v6312_v28 }
  0xf2   :  { %3993 = vmatpush1.bf16.msra.mxu0 %v3992_v23  ;;  %3483 = vmatprep.subr.bf16.mxu1 %v3482_v24  ;;  %v816_v23 = vld [vmem:[%s8645_s1 + $0x1828] sm:$0xff]  ;;  %v818_v24 = vld [vmem:[%s8645_s1 + $0x1838] sm:$0xff] }
  0xf3   :  { %3995 = vmatprep.subr.bf16.mxu0 %v3994_v29  ;;  %v3502_v29 = vpack.c.bf16 %v306_v21, %v304_v20  ;;  %v4014_v34 = vpack.c.bf16 %v818_v24, %v816_v23 }
  0xf5   :  { %3485 = vmatpush1.bf16.msra.mxu1 %v3484_v36  ;;  %v308_v36 = vld [vmem:[%s8645_s1 + $0x848] sm:$0xff] }
  0xf6   :  { %3997 = vmatpush1.bf16.msra.mxu0 %v3996_v37  ;;  %3487 = vmatprep.subr.bf16.mxu1 %v3486_v38  ;;  %v310_v37 = vld [vmem:[%s8645_s1 + $0x858] sm:$0xff]  ;;  %v1314_v38 = vcombine.high %v6302_v22, %v6302_v22 }
  0xf7   :  { %3999 = vmatprep.subr.bf16.mxu0 %v3998_v42  ;;  %v3504_v42 = vpack.c.bf16 %v305_v31, %v303_v59 }
  0xf9   :  { %3489 = vmatpush1.bf16.msra.mxu1 %v3488_v48 }
  0xfa   :  { %4001 = vmatpush1.bf16.msra.mxu0 %v4000_v49  ;;  %3491 = vmatprep.subr.bf16.mxu1 %v3490_v25 }
  0xfb   :  { %4003 = vmatprep.subr.bf16.mxu0 %v4002_v55 }
  0xfd   :  { %3493 = vmatpush1.bf16.msra.mxu1 %v3492_v63 }
  0xfe   :  { %4005 = vmatpush1.bf16.msra.mxu0 %v4004_v50  ;;  %3495 = vmatprep.subr.bf16.mxu1 %v3494_v0 }
  0xff   :  { %4007 = vmatprep.subr.bf16.mxu0 %v4006_v2 }
 0x101   :  { %3497 = vmatpush1.bf16.msra.mxu1 %v3496_v10 }
 0x102   :  { %4009 = vmatpush1.bf16.msra.mxu0 %v4008_v13  ;;  %3499 = vmatprep.subr.bf16.mxu1 %v3498_v14 }
 0x103   :  { %4011 = vmatprep.subr.bf16.mxu0 %v4010_v18 }
 0x104   :  { %1744 = vmatmul.mubr.f32.vlgmr.msra.gmra.mrb[0].mxu1 %v5895_v4 }
 0x105   :  { %3501 = vmatpush1.bf16.msra.mxu1 %v3500_v26  ;;  %2312 = vmatmul.mubr.f32.vlgmr.msra.gmra.mrb[0].mxu0 %v5904_v6 }
 0x106   :  { %14 = vsyncpa [#allocation3], 0  ;;  %4013 = vmatpush1.bf16.msra.mxu0 %v4012_v27  ;;  %3503 = vmatprep.subr.bf16.mxu1 %v3502_v29  ;;  %v4016_v43 = vpack.c.bf16 %v817_v35, %v815_v32  ;;  %v3506_v4 = vpack.c.bf16 %v310_v37, %v308_v36  ;;  %v307_v44 = vld [vmem:[%s8645_s1 + $0x840] sm:$0xff]  ;;  %v309_v45 = vld [vmem:[%s8645_s1 + $0x850] sm:$0xff]  ;;  %v4018_v6 = vpack.c.bf16 %v822_v40, %v820_v39  ;;  %vm1463_vm0 = vcmask 523264   ;;  %s4590_s20 = smov [#allocation2]  }
 0x107   :  { %v819_v46 = vld [vmem:[%s8645_s1 + $0x1840] sm:$0xff]  ;;  %4015 = vmatprep.subr.bf16.mxu0 %v4014_v34  ;;  %v821_v47 = vld [vmem:[%s8645_s1 + $0x1850] sm:$0xff]  ;;  %v312_v48 = vld [vmem:[%s8645_s1 + $0x868] sm:$0xff]  ;;  %1814 = vmatprep.mubr.f32.mxu1 %v1314_v38  ;;  %v3508_v52 = vpack.c.bf16 %v309_v45, %v307_v44  ;;  %vm4588_vm1 = vmmov 0   ;;  %s3113_s21 = sshll.u32 %s4590_s20, 4  ;;  %vm3105_vm2 = vcmask 9216   ;;  %s3114_s21 = int_to_ptr.vmem [resolvable:$true] %s3113_s21 }
 0x108   :  { %v314_v49 = vld [vmem:[%s8645_s1 + $0x878] sm:$0xff]  ;;  %v824_v25 = vld [vmem:[%s8645_s1 + $0x1868] sm:$0xff]  ;;  %2382 = vmatprep.mubr.f32.mxu0 %v1382_v41  ;;  %v4020_v53 = vpack.c.bf16 %v821_v47, %v819_v46  ;;  %v311_v56 = vld [vmem:[%s8645_s1 + $0x860] sm:$0xff]  ;;  %p4567_p1 = scmp.lt.s32.totalorder %s3114_s21, %s3114_s21 }
 0x109   :  { %v826_v51 = vld [vmem:[%s8645_s1 + $0x1878] sm:$0xff]  ;;  %3505 = vmatpush1.bf16.msra.mxu1 %v3504_v42  ;;  %v3510_v55 = vpack.c.bf16 %v314_v49, %v312_v48  ;;  %v313_v57 = vld [vmem:[%s8645_s1 + $0x870] sm:$0xff]  ;;  %v823_v58 = vld [vmem:[%s8645_s1 + $0x1860] sm:$0xff] }
 0x10a   :  { %4017 = vmatpush1.bf16.msra.mxu0 %v4016_v43  ;;  %3507 = vmatprep.subr.bf16.mxu1 %v3506_v4  ;;  %v4022_v60 = vpack.c.bf16 %v826_v51, %v824_v25  ;;  %v825_v62 = vld [vmem:[%s8645_s1 + $0x1870] sm:$0xff]  ;;  %v316_v63 = vld [vmem:[%s8645_s1 + $0x888] sm:$0xff]  ;;  %v318_v50 = vld [vmem:[%s8645_s1 + $0x898] sm:$0xff]  ;;  %v3512_v54 = vpack.c.bf16 %v313_v57, %v311_v56 }
 0x10b   :  { %4019 = vmatprep.subr.bf16.mxu0 %v4018_v6  ;;  %v828_v0 = vld [vmem:[%s8645_s1 + $0x1888] sm:$0xff]  ;;  %v830_v1 = vld [vmem:[%s8645_s1 + $0x1898] sm:$0xff]  ;;  %v4024_v30 = vpack.c.bf16 %v825_v62, %v823_v58  ;;  %v3514_v2 = vpack.c.bf16 %v318_v50, %v316_v63  ;;  %v315_v3 = vld [vmem:[%s8645_s1 + $0x880] sm:$0xff] }
 0x10c   :  { %v317_v33 = vld [vmem:[%s8645_s1 + $0x890] sm:$0xff]  ;;  %v827_v5 = vld [vmem:[%s8645_s1 + $0x1880] sm:$0xff]  ;;  %v4026_v7 = vpack.c.bf16 %v830_v1, %v828_v0  ;;  %v320_v10 = vld [vmem:[%s8645_s1 + $0x8a8] sm:$0xff] }
 0x10d   :  { %3509 = vmatpush1.bf16.msra.mxu1 %v3508_v52  ;;  %v829_v8 = vld [vmem:[%s8645_s1 + $0x1890] sm:$0xff]  ;;  %v322_v13 = vld [vmem:[%s8645_s1 + $0x8b8] sm:$0xff]  ;;  %v832_v14 = vld [vmem:[%s8645_s1 + $0x18a8] sm:$0xff]  ;;  %v3516_v16 = vpack.c.bf16 %v317_v33, %v315_v3 }
 0x10e   :  { %4021 = vmatpush1.bf16.msra.mxu0 %v4020_v53  ;;  %3511 = vmatprep.subr.bf16.mxu1 %v3510_v55  ;;  %v834_v15 = vld [vmem:[%s8645_s1 + $0x18b8] sm:$0xff]  ;;  %v4028_v17 = vpack.c.bf16 %v829_v8, %v827_v5  ;;  %v3518_v18 = vpack.c.bf16 %v322_v13, %v320_v10  ;;  %v319_v19 = vld [vmem:[%s8645_s1 + $0x8a0] sm:$0xff]  ;;  %v321_v20 = vld [vmem:[%s8645_s1 + $0x8b0] sm:$0xff] }
 0x10f   :  { %4023 = vmatprep.subr.bf16.mxu0 %v4022_v60  ;;  %v831_v21 = vld [vmem:[%s8645_s1 + $0x18a0] sm:$0xff]  ;;  %v4030_v23 = vpack.c.bf16 %v834_v15, %v832_v14  ;;  %v833_v24 = vld [vmem:[%s8645_s1 + $0x18b0] sm:$0xff]  ;;  %v324_v26 = vld [vmem:[%s8645_s1 + $0x8c8] sm:$0xff]  ;;  %v3520_v31 = vpack.c.bf16 %v321_v20, %v319_v19 }
 0x110   :  { %v326_v27 = vld [vmem:[%s8645_s1 + $0x8d8] sm:$0xff]  ;;  %v836_v29 = vld [vmem:[%s8645_s1 + $0x18c8] sm:$0xff]  ;;  %v4032_v32 = vpack.c.bf16 %v833_v24, %v831_v21  ;;  %v323_v35 = vld [vmem:[%s8645_s1 + $0x8c0] sm:$0xff] }
 0x111   :  { %3513 = vmatpush1.bf16.msra.mxu1 %v3512_v54  ;;  %v838_v59 = vld [vmem:[%s8645_s1 + $0x18d8] sm:$0xff]  ;;  %v3522_v34 = vpack.c.bf16 %v326_v27, %v324_v26  ;;  %v325_v36 = vld [vmem:[%s8645_s1 + $0x8d0] sm:$0xff]  ;;  %v835_v37 = vld [vmem:[%s8645_s1 + $0x18c0] sm:$0xff] }
 0x112   :  { %4025 = vmatpush1.bf16.msra.mxu0 %v4024_v30  ;;  %3515 = vmatprep.subr.bf16.mxu1 %v3514_v2  ;;  %v4034_v38 = vpack.c.bf16 %v838_v59, %v836_v29  ;;  %v837_v39 = vld [vmem:[%s8645_s1 + $0x18d0] sm:$0xff]  ;;  %v328_v40 = vld [vmem:[%s8645_s1 + $0x8e8] sm:$0xff]  ;;  %v330_v41 = vld [vmem:[%s8645_s1 + $0x8f8] sm:$0xff]  ;;  %v3524_v4 = vpack.c.bf16 %v325_v36, %v323_v35 }
 0x113   :  { %4027 = vmatprep.subr.bf16.mxu0 %v4026_v7  ;;  %v840_v42 = vld [vmem:[%s8645_s1 + $0x18e8] sm:$0xff]  ;;  %v842_v43 = vld [vmem:[%s8645_s1 + $0x18f8] sm:$0xff]  ;;  %v4036_v44 = vpack.c.bf16 %v837_v39, %v835_v37  ;;  %v3526_v45 = vpack.c.bf16 %v330_v41, %v328_v40  ;;  %v327_v46 = vld [vmem:[%s8645_s1 + $0x8e0] sm:$0xff] }
 0x114   :  { %v329_v6 = vld [vmem:[%s8645_s1 + $0x8f0] sm:$0xff]  ;;  %v839_v47 = vld [vmem:[%s8645_s1 + $0x18e0] sm:$0xff]  ;;  %v4038_v48 = vpack.c.bf16 %v842_v43, %v840_v42  ;;  %v332_v25 = vld [vmem:[%s8645_s1 + $0x908] sm:$0xff] }
 0x115   :  { %3517 = vmatpush1.bf16.msra.mxu1 %v3516_v16  ;;  %v841_v49 = vld [vmem:[%s8645_s1 + $0x18f0] sm:$0xff]  ;;  %v334_v51 = vld [vmem:[%s8645_s1 + $0x918] sm:$0xff]  ;;  %v844_v52 = vld [vmem:[%s8645_s1 + $0x1908] sm:$0xff]  ;;  %v3528_v55 = vpack.c.bf16 %v329_v6, %v327_v46 }
 0x116   :  { %4029 = vmatpush1.bf16.msra.mxu0 %v4028_v17  ;;  %3519 = vmatprep.subr.bf16.mxu1 %v3518_v18  ;;  %v846_v53 = vld [vmem:[%s8645_s1 + $0x1918] sm:$0xff]  ;;  %v4040_v56 = vpack.c.bf16 %v841_v49, %v839_v47  ;;  %v3530_v57 = vpack.c.bf16 %v334_v51, %v332_v25  ;;  %v331_v58 = vld [vmem:[%s8645_s1 + $0x900] sm:$0xff]  ;;  %v333_v60 = vld [vmem:[%s8645_s1 + $0x910] sm:$0xff] }
 0x117   :  { %4031 = vmatprep.subr.bf16.mxu0 %v4030_v23  ;;  %v843_v62 = vld [vmem:[%s8645_s1 + $0x1900] sm:$0xff]  ;;  %v4042_v63 = vpack.c.bf16 %v846_v53, %v844_v52  ;;  %v845_v50 = vld [vmem:[%s8645_s1 + $0x1910] sm:$0xff]  ;;  %v336_v0 = vld [vmem:[%s8645_s1 + $0x928] sm:$0xff]  ;;  %v3532_v2 = vpack.c.bf16 %v333_v60, %v331_v58 }
 0x118   :  { %v338_v1 = vld [vmem:[%s8645_s1 + $0x938] sm:$0xff]  ;;  %v848_v54 = vld [vmem:[%s8645_s1 + $0x1928] sm:$0xff]  ;;  %v4044_v3 = vpack.c.bf16 %v845_v50, %v843_v62  ;;  %v335_v5 = vld [vmem:[%s8645_s1 + $0x920] sm:$0xff] }
 0x119   :  { %3521 = vmatpush1.bf16.msra.mxu1 %v3520_v31  ;;  %v850_v30 = vld [vmem:[%s8645_s1 + $0x1938] sm:$0xff]  ;;  %v3534_v33 = vpack.c.bf16 %v338_v1, %v336_v0  ;;  %v337_v7 = vld [vmem:[%s8645_s1 + $0x930] sm:$0xff]  ;;  %v847_v8 = vld [vmem:[%s8645_s1 + $0x1920] sm:$0xff] }
 0x11a   :  { %4033 = vmatpush1.bf16.msra.mxu0 %v4032_v32  ;;  %3523 = vmatprep.subr.bf16.mxu1 %v3522_v34  ;;  %v4046_v10 = vpack.c.bf16 %v850_v30, %v848_v54  ;;  %v849_v13 = vld [vmem:[%s8645_s1 + $0x1930] sm:$0xff]  ;;  %v340_v14 = vld [vmem:[%s8645_s1 + $0x948] sm:$0xff]  ;;  %v342_v15 = vld [vmem:[%s8645_s1 + $0x958] sm:$0xff]  ;;  %v3536_v18 = vpack.c.bf16 %v337_v7, %v335_v5 }
 0x11b   :  { %4035 = vmatprep.subr.bf16.mxu0 %v4034_v38  ;;  %v852_v16 = vld [vmem:[%s8645_s1 + $0x1948] sm:$0xff]  ;;  %v854_v17 = vld [vmem:[%s8645_s1 + $0x1958] sm:$0xff]  ;;  %v4048_v19 = vpack.c.bf16 %v849_v13, %v847_v8  ;;  %v3538_v20 = vpack.c.bf16 %v342_v15, %v340_v14  ;;  %v339_v21 = vld [vmem:[%s8645_s1 + $0x940] sm:$0xff] }
 0x11c   :  { %v341_v23 = vld [vmem:[%s8645_s1 + $0x950] sm:$0xff]  ;;  %v851_v24 = vld [vmem:[%s8645_s1 + $0x1940] sm:$0xff]  ;;  %v4050_v26 = vpack.c.bf16 %v854_v17, %v852_v16  ;;  %v344_v29 = vld [vmem:[%s8645_s1 + $0x968] sm:$0xff] }
 0x11d   :  { %3525 = vmatpush1.bf16.msra.mxu1 %v3524_v4  ;;  %v853_v27 = vld [vmem:[%s8645_s1 + $0x1950] sm:$0xff]  ;;  %v346_v59 = vld [vmem:[%s8645_s1 + $0x978] sm:$0xff]  ;;  %v856_v31 = vld [vmem:[%s8645_s1 + $0x1968] sm:$0xff]  ;;  %v3540_v34 = vpack.c.bf16 %v341_v23, %v339_v21 }
 0x11e   :  { %4037 = vmatpush1.bf16.msra.mxu0 %v4036_v44  ;;  %3527 = vmatprep.subr.bf16.mxu1 %v3526_v45  ;;  %v858_v32 = vld [vmem:[%s8645_s1 + $0x1978] sm:$0xff]  ;;  %v4052_v35 = vpack.c.bf16 %v853_v27, %v851_v24  ;;  %v3542_v36 = vpack.c.bf16 %v346_v59, %v344_v29  ;;  %v343_v37 = vld [vmem:[%s8645_s1 + $0x960] sm:$0xff]  ;;  %v345_v38 = vld [vmem:[%s8645_s1 + $0x970] sm:$0xff] }
 0x11f   :  { %4039 = vmatprep.subr.bf16.mxu0 %v4038_v48  ;;  %v855_v39 = vld [vmem:[%s8645_s1 + $0x1960] sm:$0xff]  ;;  %v4054_v40 = vpack.c.bf16 %v858_v32, %v856_v31  ;;  %v857_v41 = vld [vmem:[%s8645_s1 + $0x1970] sm:$0xff]  ;;  %v348_v42 = vld [vmem:[%s8645_s1 + $0x988] sm:$0xff]  ;;  %v3544_v45 = vpack.c.bf16 %v345_v38, %v343_v37  ;;  %v1367_v37 = vcombine.high %v6280_v12, %v6280_v12 }
 0x120   :  { %v350_v43 = vld [vmem:[%s8645_s1 + $0x998] sm:$0xff]  ;;  %v860_v4 = vld [vmem:[%s8645_s1 + $0x1988] sm:$0xff]  ;;  %v4056_v46 = vpack.c.bf16 %v857_v41, %v855_v39  ;;  %v347_v47 = vld [vmem:[%s8645_s1 + $0x980] sm:$0xff] }
 0x121   :  { %3529 = vmatpush1.bf16.msra.mxu1 %v3528_v55  ;;  %v862_v44 = vld [vmem:[%s8645_s1 + $0x1998] sm:$0xff]  ;;  %v3546_v6 = vpack.c.bf16 %v350_v43, %v348_v42  ;;  %v349_v48 = vld [vmem:[%s8645_s1 + $0x990] sm:$0xff]  ;;  %v859_v49 = vld [vmem:[%s8645_s1 + $0x1980] sm:$0xff] }
 0x122   :  { %4041 = vmatpush1.bf16.msra.mxu0 %v4040_v56  ;;  %3531 = vmatprep.subr.bf16.mxu1 %v3530_v57  ;;  %v4058_v25 = vpack.c.bf16 %v862_v44, %v860_v4  ;;  %v861_v51 = vld [vmem:[%s8645_s1 + $0x1990] sm:$0xff]  ;;  %v352_v52 = vld [vmem:[%s8645_s1 + $0x9a8] sm:$0xff]  ;;  %v354_v53 = vld [vmem:[%s8645_s1 + $0x9b8] sm:$0xff]  ;;  %v3548_v57 = vpack.c.bf16 %v349_v48, %v347_v47  ;;  %v6712_v47 = vrot.slane %v1367_v37, %v4920_v11 }
 0x123   :  { %4043 = vmatprep.subr.bf16.mxu0 %v4042_v63  ;;  %v864_v55 = vld [vmem:[%s8645_s1 + $0x19a8] sm:$0xff]  ;;  %v866_v56 = vld [vmem:[%s8645_s1 + $0x19b8] sm:$0xff]  ;;  %v4060_v58 = vpack.c.bf16 %v861_v51, %v859_v49  ;;  %v3550_v60 = vpack.c.bf16 %v354_v53, %v352_v52  ;;  %v351_v62 = vld [vmem:[%s8645_s1 + $0x9a0] sm:$0xff] }
 0x124   :  { %v353_v63 = vld [vmem:[%s8645_s1 + $0x9b0] sm:$0xff]  ;;  %v863_v50 = vld [vmem:[%s8645_s1 + $0x19a0] sm:$0xff]  ;;  %v4062_v0 = vpack.c.bf16 %v866_v56, %v864_v55  ;;  %v356_v54 = vld [vmem:[%s8645_s1 + $0x9c8] sm:$0xff] }
 0x125   :  { %3533 = vmatpush1.bf16.msra.mxu1 %v3532_v2  ;;  %v865_v1 = vld [vmem:[%s8645_s1 + $0x19b0] sm:$0xff]  ;;  %v358_v30 = vld [vmem:[%s8645_s1 + $0x9d8] sm:$0xff]  ;;  %v868_v2 = vld [vmem:[%s8645_s1 + $0x19c8] sm:$0xff] }
 0x126   :  { %4045 = vmatpush1.bf16.msra.mxu0 %v4044_v3  ;;  %3535 = vmatprep.subr.bf16.mxu1 %v3534_v33  ;;  %v870_v3 = vld [vmem:[%s8645_s1 + $0x19d8] sm:$0xff]  ;;  %v3552_v33 = vpack.c.bf16 %v353_v63, %v351_v62  ;;  %v4064_v5 = vpack.c.bf16 %v865_v1, %v863_v50  ;;  %v3554_v7 = vpack.c.bf16 %v358_v30, %v356_v54  ;;  %v355_v8 = vld [vmem:[%s8645_s1 + $0x9c0] sm:$0xff]  ;;  %v869_v15 = vld [vmem:[%s8645_s1 + $0x19d0] sm:$0xff] }
 0x127   :  { %4047 = vmatprep.subr.bf16.mxu0 %v4046_v10  ;;  %v357_v10 = vld [vmem:[%s8645_s1 + $0x9d0] sm:$0xff]  ;;  %v867_v13 = vld [vmem:[%s8645_s1 + $0x19c0] sm:$0xff]  ;;  %v4066_v14 = vpack.c.bf16 %v870_v3, %v868_v2  ;;  %v360_v16 = vld [vmem:[%s8645_s1 + $0x9e8] sm:$0xff]  ;;  %v1383_v50 = vcombine.high %v6712_v47, %v6712_v47 }
 0x128   :  { %v362_v17 = vld [vmem:[%s8645_s1 + $0x9f8] sm:$0xff]  ;;  %v4068_v21 = vpack.c.bf16 %v869_v15, %v867_v13  ;;  %v359_v24 = vld [vmem:[%s8645_s1 + $0x9e0] sm:$0xff]  ;;  %v873_v59 = vld [vmem:[%s8645_s1 + $0x19f0] sm:$0xff] }
 0x129   :  { %3537 = vmatpush1.bf16.msra.mxu1 %v3536_v18  ;;  %v872_v18 = vld [vmem:[%s8645_s1 + $0x19e8] sm:$0xff]  ;;  %v3558_v23 = vpack.c.bf16 %v362_v17, %v360_v16  ;;  %v871_v27 = vld [vmem:[%s8645_s1 + $0x19e0] sm:$0xff]  ;;  %v366_v32 = vld [vmem:[%s8645_s1 + $0xa18] sm:$0xff] }
 0x12a   :  { %4049 = vmatpush1.bf16.msra.mxu0 %v4048_v19  ;;  %3539 = vmatprep.subr.bf16.mxu1 %v3538_v20  ;;  %v874_v19 = vld [vmem:[%s8645_s1 + $0x19f8] sm:$0xff]  ;;  %v3556_v20 = vpack.c.bf16 %v357_v10, %v355_v8  ;;  %v364_v31 = vld [vmem:[%s8645_s1 + $0xa08] sm:$0xff]  ;;  %v4072_v39 = vpack.c.bf16 %v873_v59, %v871_v27  ;;  %v365_v41 = vld [vmem:[%s8645_s1 + $0xa10] sm:$0xff] }
 0x12b   :  { %4051 = vmatprep.subr.bf16.mxu0 %v4050_v26  ;;  %v361_v26 = vld [vmem:[%s8645_s1 + $0x9f0] sm:$0xff]  ;;  %v4070_v29 = vpack.c.bf16 %v874_v19, %v872_v18  ;;  %v875_v42 = vld [vmem:[%s8645_s1 + $0x1a00] sm:$0xff]  ;;  %v368_v4 = vld [vmem:[%s8645_s1 + $0xa28] sm:$0xff] }
 0x12c   :  { %v3560_v38 = vpack.c.bf16 %v361_v26, %v359_v24  ;;  %v877_v43 = vld [vmem:[%s8645_s1 + $0x1a10] sm:$0xff]  ;;  %v370_v44 = vld [vmem:[%s8645_s1 + $0xa38] sm:$0xff]  ;;  %v367_v51 = vld [vmem:[%s8645_s1 + $0xa20] sm:$0xff] }
 0x12d   :  { %3541 = vmatpush1.bf16.msra.mxu1 %v3540_v34  ;;  %v1299_v34 = vcombine.high %v6275_v9, %v6275_v9  ;;  %v363_v9 = vld [vmem:[%s8645_s1 + $0xa00] sm:$0xff]  ;;  %v4076_v49 = vpack.c.bf16 %v877_v43, %v875_v42  ;;  %v369_v52 = vld [vmem:[%s8645_s1 + $0xa30] sm:$0xff]  ;;  %v884_v62 = vld [vmem:[%s8645_s1 + $0x1a48] sm:$0xff] }
 0x12e   :  { %4053 = vmatpush1.bf16.msra.mxu0 %v4052_v35  ;;  %3543 = vmatprep.subr.bf16.mxu1 %v3542_v36  ;;  %v876_v35 = vld [vmem:[%s8645_s1 + $0x1a08] sm:$0xff]  ;;  %v878_v36 = vld [vmem:[%s8645_s1 + $0x1a18] sm:$0xff]  ;;  %v3564_v48 = vpack.c.bf16 %v365_v41, %v363_v9  ;;  %v879_v53 = vld [vmem:[%s8645_s1 + $0x1a20] sm:$0xff] }
 0x12f   :  { %4055 = vmatprep.subr.bf16.mxu0 %v4054_v40  ;;  %v3562_v40 = vpack.c.bf16 %v366_v32, %v364_v31  ;;  %v4074_v12 = vpack.c.bf16 %v878_v36, %v876_v35  ;;  %v881_v56 = vld [vmem:[%s8645_s1 + $0x1a30] sm:$0xff]  ;;  %v886_v63 = vld [vmem:[%s8645_s1 + $0x1a58] sm:$0xff]  ;;  %v883_v2 = vld [vmem:[%s8645_s1 + $0x1a40] sm:$0xff] }
 0x130   :  { %v4080_v1 = vpack.c.bf16 %v881_v56, %v879_v53  ;;  %v373_v30 = vld [vmem:[%s8645_s1 + $0xa50] sm:$0xff]  ;;  %v4082_v3 = vpack.c.bf16 %v886_v63, %v884_v62  ;;  %v890_v8 = vld [vmem:[%s8645_s1 + $0x1a78] sm:$0xff]  ;;  %v375_v15 = vld [vmem:[%s8645_s1 + $0xa60] sm:$0xff] }
 0x131   :  { %3545 = vmatpush1.bf16.msra.mxu1 %v3544_v45  ;;  %v6703_v45 = vrot.slane %v1299_v34, %v4920_v11  ;;  %v377_v16 = vld [vmem:[%s8645_s1 + $0xa70] sm:$0xff]  ;;  %v887_v17 = vld [vmem:[%s8645_s1 + $0x1a60] sm:$0xff]  ;;  %v894_v24 = vld [vmem:[%s8645_s1 + $0x1a98] sm:$0xff] }
 0x132   :  { %4057 = vmatpush1.bf16.msra.mxu0 %v4056_v46  ;;  %3547 = vmatprep.subr.bf16.mxu1 %v3546_v6  ;;  %v880_v46 = vld [vmem:[%s8645_s1 + $0x1a28] sm:$0xff]  ;;  %v882_v6 = vld [vmem:[%s8645_s1 + $0x1a38] sm:$0xff]  ;;  %v889_v19 = vld [vmem:[%s8645_s1 + $0x1a70] sm:$0xff]  ;;  %v3576_v26 = vpack.c.bf16 %v377_v16, %v375_v15 }
 0x133   :  { %4059 = vmatprep.subr.bf16.mxu0 %v4058_v25  ;;  %v3566_v25 = vpack.c.bf16 %v370_v44, %v368_v4  ;;  %v4078_v55 = vpack.c.bf16 %v882_v6, %v880_v46  ;;  %v4088_v27 = vpack.c.bf16 %v889_v19, %v887_v17  ;;  %v379_v59 = vld [vmem:[%s8645_s1 + $0xa80] sm:$0xff]  ;;  %v381_v31 = vld [vmem:[%s8645_s1 + $0xa90] sm:$0xff]  ;;  %v384_v36 = vld [vmem:[%s8645_s1 + $0xaa8] sm:$0xff] }
 0x134   :  { %v891_v32 = vld [vmem:[%s8645_s1 + $0x1a80] sm:$0xff]  ;;  %v893_v35 = vld [vmem:[%s8645_s1 + $0x1a90] sm:$0xff]  ;;  %v386_v37 = vld [vmem:[%s8645_s1 + $0xab8] sm:$0xff] }
 0x135   :  { %3549 = vmatpush1.bf16.msra.mxu1 %v3548_v57  ;;  %v372_v57 = vld [vmem:[%s8645_s1 + $0xa48] sm:$0xff]  ;;  %v4092_v9 = vpack.c.bf16 %v893_v35, %v891_v32  ;;  %v3582_v41 = vpack.c.bf16 %v386_v37, %v384_v36  ;;  %v383_v42 = vld [vmem:[%s8645_s1 + $0xaa0] sm:$0xff]  ;;  %v897_v44 = vld [vmem:[%s8645_s1 + $0x1ab0] sm:$0xff] }
 0x136   :  { %4061 = vmatpush1.bf16.msra.mxu0 %v4060_v58  ;;  %3551 = vmatprep.subr.bf16.mxu1 %v3550_v60  ;;  %v374_v58 = vld [vmem:[%s8645_s1 + $0xa58] sm:$0xff]  ;;  %v1315_v60 = vcombine.high %v6703_v45, %v6703_v45  ;;  %v895_v43 = vld [vmem:[%s8645_s1 + $0x1aa0] sm:$0xff]  ;;  %v388_v46 = vld [vmem:[%s8645_s1 + $0xac8] sm:$0xff] }
 0x137   :  { %4063 = vmatprep.subr.bf16.mxu0 %v4062_v0  ;;  %v3568_v0 = vpack.c.bf16 %v369_v52, %v367_v51  ;;  %v3570_v54 = vpack.c.bf16 %v374_v58, %v372_v57  ;;  %v390_v6 = vld [vmem:[%s8645_s1 + $0xad8] sm:$0xff]  ;;  %v4096_v51 = vpack.c.bf16 %v897_v44, %v895_v43  ;;  %v387_v53 = vld [vmem:[%s8645_s1 + $0xac0] sm:$0xff]  ;;  %v901_v58 = vld [vmem:[%s8645_s1 + $0x1ad0] sm:$0xff] }
 0x138   :  { %v3586_v52 = vpack.c.bf16 %v390_v6, %v388_v46  ;;  %v899_v56 = vld [vmem:[%s8645_s1 + $0x1ac0] sm:$0xff]  ;;  %v394_v62 = vld [vmem:[%s8645_s1 + $0xaf8] sm:$0xff]  ;;  %v904_v63 = vld [vmem:[%s8645_s1 + $0x1ae8] sm:$0xff] }
 0x139   :  { %3553 = vmatpush1.bf16.msra.mxu1 %v3552_v33  ;;  %v376_v33 = vld [vmem:[%s8645_s1 + $0xa68] sm:$0xff]  ;;  %v395_v15 = vld [vmem:[%s8645_s1 + $0xb00] sm:$0xff]  ;;  %v397_v16 = vld [vmem:[%s8645_s1 + $0xb10] sm:$0xff] }
 0x13a   :  { %4065 = vmatpush1.bf16.msra.mxu0 %v4064_v5  ;;  %3555 = vmatprep.subr.bf16.mxu1 %v3554_v7  ;;  %v378_v5 = vld [vmem:[%s8645_s1 + $0xa78] sm:$0xff]  ;;  %v888_v7 = vld [vmem:[%s8645_s1 + $0x1a68] sm:$0xff]  ;;  %v907_v17 = vld [vmem:[%s8645_s1 + $0x1b00] sm:$0xff] }
 0x13b   :  { %4067 = vmatprep.subr.bf16.mxu0 %v4066_v14  ;;  %v3574_v14 = vpack.c.bf16 %v378_v5, %v376_v33  ;;  %v4086_v18 = vpack.c.bf16 %v890_v8, %v888_v7  ;;  %v396_v33 = vld [vmem:[%s8645_s1 + $0xb08] sm:$0xff]  ;;  %v398_v5 = vld [vmem:[%s8645_s1 + $0xb18] sm:$0xff]  ;;  %v909_v19 = vld [vmem:[%s8645_s1 + $0x1b10] sm:$0xff] }
 0x13c   :  { %v908_v7 = vld [vmem:[%s8645_s1 + $0x1b08] sm:$0xff]  ;;  %v910_v8 = vld [vmem:[%s8645_s1 + $0x1b18] sm:$0xff]  ;;  %v911_v32 = vld [vmem:[%s8645_s1 + $0x1b20] sm:$0xff] }
 0x13d   :  { %3557 = vmatpush1.bf16.msra.mxu1 %v3556_v20  ;;  %v380_v20 = vld [vmem:[%s8645_s1 + $0xa88] sm:$0xff]  ;;  %v913_v35 = vld [vmem:[%s8645_s1 + $0x1b30] sm:$0xff]  ;;  %v406_v37 = vld [vmem:[%s8645_s1 + $0xb58] sm:$0xff] }
 0x13e   :  { %4069 = vmatpush1.bf16.msra.mxu0 %v4068_v21  ;;  %3559 = vmatprep.subr.bf16.mxu1 %v3558_v23  ;;  %v382_v21 = vld [vmem:[%s8645_s1 + $0xa98] sm:$0xff]  ;;  %v892_v23 = vld [vmem:[%s8645_s1 + $0x1a88] sm:$0xff]  ;;  %v915_v43 = vld [vmem:[%s8645_s1 + $0x1b40] sm:$0xff] }
 0x13f   :  { %4071 = vmatprep.subr.bf16.mxu0 %v4070_v29  ;;  %v3578_v29 = vpack.c.bf16 %v382_v21, %v380_v20  ;;  %v4090_v34 = vpack.c.bf16 %v894_v24, %v892_v23  ;;  %v400_v20 = vld [vmem:[%s8645_s1 + $0xb28] sm:$0xff]  ;;  %v402_v21 = vld [vmem:[%s8645_s1 + $0xb38] sm:$0xff]  ;;  %v917_v44 = vld [vmem:[%s8645_s1 + $0x1b50] sm:$0xff] }
 0x140   :  { %v912_v23 = vld [vmem:[%s8645_s1 + $0x1b28] sm:$0xff]  ;;  %v914_v24 = vld [vmem:[%s8645_s1 + $0x1b38] sm:$0xff] }
 0x141   :  { %3561 = vmatpush1.bf16.msra.mxu1 %v3560_v38  ;;  %v896_v38 = vld [vmem:[%s8645_s1 + $0x1aa8] sm:$0xff]  ;;  %v410_v6 = vld [vmem:[%s8645_s1 + $0xb78] sm:$0xff] }
 0x142   :  { %4073 = vmatpush1.bf16.msra.mxu0 %v4072_v39  ;;  %3563 = vmatprep.subr.bf16.mxu1 %v3562_v40  ;;  %v898_v39 = vld [vmem:[%s8645_s1 + $0x1ab8] sm:$0xff]  ;;  %v3580_v40 = vpack.c.bf16 %v381_v31, %v379_v59  ;;  %v399_v59 = vld [vmem:[%s8645_s1 + $0xb20] sm:$0xff]  ;;  %v401_v31 = vld [vmem:[%s8645_s1 + $0xb30] sm:$0xff] }
 0x143   :  { %4075 = vmatprep.subr.bf16.mxu0 %v4074_v12  ;;  %v385_v12 = vld [vmem:[%s8645_s1 + $0xab0] sm:$0xff]  ;;  %v4094_v4 = vpack.c.bf16 %v898_v39, %v896_v38  ;;  %v404_v36 = vld [vmem:[%s8645_s1 + $0xb48] sm:$0xff]  ;;  %v918_v39 = vld [vmem:[%s8645_s1 + $0x1b58] sm:$0xff] }
 0x144   :  { %1815 = vmatmul.mubr.f32.vlgmr.msra.gmra.mrb[0].mxu1 %v6302_v22  ;;  %v371_v22 = vld [vmem:[%s8645_s1 + $0xa40] sm:$0xff]  ;;  %v916_v38 = vld [vmem:[%s8645_s1 + $0x1b48] sm:$0xff] }
 0x145   :  { %3565 = vmatpush1.bf16.msra.mxu1 %v3564_v48  ;;  %2383 = vmatmul.mubr.f32.vlgmr.msra.gmra.mrb[0].mxu0 %v6312_v28  ;;  %v885_v28 = vld [vmem:[%s8645_s1 + $0x1a50] sm:$0xff]  ;;  %v3572_v10 = vpack.c.bf16 %v373_v30, %v371_v22  ;;  %v900_v48 = vld [vmem:[%s8645_s1 + $0x1ac8] sm:$0xff]  ;;  %v391_v22 = vld [vmem:[%s8645_s1 + $0xae0] sm:$0xff] }
 0x146   :  { %4077 = vmatpush1.bf16.msra.mxu0 %v4076_v49  ;;  %3567 = vmatprep.subr.bf16.mxu1 %v3566_v25  ;;  %v4084_v13 = vpack.c.bf16 %v885_v28, %v883_v2  ;;  %v902_v49 = vld [vmem:[%s8645_s1 + $0x1ad8] sm:$0xff]  ;;  %v3584_v25 = vpack.c.bf16 %v385_v12, %v383_v42  ;;  %v393_v30 = vld [vmem:[%s8645_s1 + $0xaf0] sm:$0xff]  ;;  %v903_v2 = vld [vmem:[%s8645_s1 + $0x1ae0] sm:$0xff] }
 0x147   :  { %4079 = vmatprep.subr.bf16.mxu0 %v4078_v55  ;;  %1885 = vmatprep.mubr.f32.mxu1 %v1315_v60  ;;  %v389_v55 = vld [vmem:[%s8645_s1 + $0xad0] sm:$0xff]  ;;  %v4098_v57 = vpack.c.bf16 %v902_v49, %v900_v48  ;;  %v392_v60 = vld [vmem:[%s8645_s1 + $0xae8] sm:$0xff]  ;;  %v403_v42 = vld [vmem:[%s8645_s1 + $0xb40] sm:$0xff] }
 0x148   :  { %2453 = vmatprep.mubr.f32.mxu0 %v1383_v50  ;;  %v906_v50 = vld [vmem:[%s8645_s1 + $0x1af8] sm:$0xff]  ;;  %v905_v28 = vld [vmem:[%s8645_s1 + $0x1af0] sm:$0xff]  ;;  %v408_v46 = vld [vmem:[%s8645_s1 + $0xb68] sm:$0xff] }
 0x149   :  { %3569 = vmatpush1.bf16.msra.mxu1 %v3568_v0  ;;  %v3588_v0 = vpack.c.bf16 %v389_v55, %v387_v53  ;;  %v405_v12 = vld [vmem:[%s8645_s1 + $0xb50] sm:$0xff]  ;;  %v920_v48 = vld [vmem:[%s8645_s1 + $0x1b68] sm:$0xff]  ;;  %v922_v49 = vld [vmem:[%s8645_s1 + $0x1b78] sm:$0xff] }
 0x14a   :  { %4081 = vmatpush1.bf16.msra.mxu0 %v4080_v1  ;;  %3571 = vmatprep.subr.bf16.mxu1 %v3570_v54  ;;  %v4100_v1 = vpack.c.bf16 %v901_v58, %v899_v56  ;;  %v3590_v54 = vpack.c.bf16 %v394_v62, %v392_v60  ;;  %v407_v53 = vld [vmem:[%s8645_s1 + $0xb60] sm:$0xff]  ;;  %v409_v55 = vld [vmem:[%s8645_s1 + $0xb70] sm:$0xff]  ;;  %v412_v60 = vld [vmem:[%s8645_s1 + $0xb88] sm:$0xff] }
 0x14b   :  { %4083 = vmatprep.subr.bf16.mxu0 %v4082_v3  ;;  %v4102_v3 = vpack.c.bf16 %v906_v50, %v904_v63  ;;  %v919_v56 = vld [vmem:[%s8645_s1 + $0x1b60] sm:$0xff]  ;;  %v921_v58 = vld [vmem:[%s8645_s1 + $0x1b70] sm:$0xff]  ;;  %v414_v62 = vld [vmem:[%s8645_s1 + $0xb98] sm:$0xff] }
 0x14c   :  { %v924_v63 = vld [vmem:[%s8645_s1 + $0x1b88] sm:$0xff]  ;;  %v926_v50 = vld [vmem:[%s8645_s1 + $0x1b98] sm:$0xff] }
 0x14d   :  { %3573 = vmatpush1.bf16.msra.mxu1 %v3572_v10  ;;  %v3592_v10 = vpack.c.bf16 %v393_v30, %v391_v22  ;;  %v411_v22 = vld [vmem:[%s8645_s1 + $0xb80] sm:$0xff]  ;;  %v413_v30 = vld [vmem:[%s8645_s1 + $0xb90] sm:$0xff] }
 0x14e   :  { %4085 = vmatpush1.bf16.msra.mxu0 %v4084_v13  ;;  %3575 = vmatprep.subr.bf16.mxu1 %v3574_v14  ;;  %v4104_v13 = vpack.c.bf16 %v905_v28, %v903_v2  ;;  %v3594_v14 = vpack.c.bf16 %v398_v5, %v396_v33  ;;  %v923_v2 = vld [vmem:[%s8645_s1 + $0x1b80] sm:$0xff]  ;;  %v925_v28 = vld [vmem:[%s8645_s1 + $0x1b90] sm:$0xff]  ;;  %v416_v33 = vld [vmem:[%s8645_s1 + $0xba8] sm:$0xff] }
 0x14f   :  { %4087 = vmatprep.subr.bf16.mxu0 %v4086_v18  ;;  %v4106_v18 = vpack.c.bf16 %v910_v8, %v908_v7  ;;  %v418_v5 = vld [vmem:[%s8645_s1 + $0xbb8] sm:$0xff]  ;;  %v928_v7 = vld [vmem:[%s8645_s1 + $0x1ba8] sm:$0xff] }
 0x150   :  { %v930_v8 = vld [vmem:[%s8645_s1 + $0x1bb8] sm:$0xff] }
 0x151   :  { %3577 = vmatpush1.bf16.msra.mxu1 %v3576_v26  ;;  %v3596_v26 = vpack.c.bf16 %v397_v16, %v395_v15  ;;  %v415_v15 = vld [vmem:[%s8645_s1 + $0xba0] sm:$0xff]  ;;  %v417_v16 = vld [vmem:[%s8645_s1 + $0xbb0] sm:$0xff] }
 0x152   :  { %4089 = vmatpush1.bf16.msra.mxu0 %v4088_v27  ;;  %3579 = vmatprep.subr.bf16.mxu1 %v3578_v29  ;;  %v4108_v27 = vpack.c.bf16 %v909_v19, %v907_v17  ;;  %v3598_v29 = vpack.c.bf16 %v402_v21, %v400_v20  ;;  %v927_v17 = vld [vmem:[%s8645_s1 + $0x1ba0] sm:$0xff]  ;;  %v929_v19 = vld [vmem:[%s8645_s1 + $0x1bb0] sm:$0xff]  ;;  %v420_v20 = vld [vmem:[%s8645_s1 + $0xbc8] sm:$0xff] }
 0x153   :  { %4091 = vmatprep.subr.bf16.mxu0 %v4090_v34  ;;  %v4110_v34 = vpack.c.bf16 %v914_v24, %v912_v23  ;;  %v422_v21 = vld [vmem:[%s8645_s1 + $0xbd8] sm:$0xff]  ;;  %v932_v23 = vld [vmem:[%s8645_s1 + $0x1bc8] sm:$0xff] }
 0x154   :  { %v934_v24 = vld [vmem:[%s8645_s1 + $0x1bd8] sm:$0xff] }
 0x155   :  { %3581 = vmatpush1.bf16.msra.mxu1 %v3580_v40  ;;  %v3600_v40 = vpack.c.bf16 %v401_v31, %v399_v59  ;;  %v419_v59 = vld [vmem:[%s8645_s1 + $0xbc0] sm:$0xff]  ;;  %v421_v31 = vld [vmem:[%s8645_s1 + $0xbd0] sm:$0xff] }
 0x156   :  { %4093 = vmatpush1.bf16.msra.mxu0 %v4092_v9  ;;  %3583 = vmatprep.subr.bf16.mxu1 %v3582_v41  ;;  %v4112_v9 = vpack.c.bf16 %v913_v35, %v911_v32  ;;  %v3602_v41 = vpack.c.bf16 %v406_v37, %v404_v36  ;;  %v931_v32 = vld [vmem:[%s8645_s1 + $0x1bc0] sm:$0xff]  ;;  %v933_v35 = vld [vmem:[%s8645_s1 + $0x1bd0] sm:$0xff]  ;;  %v424_v36 = vld [vmem:[%s8645_s1 + $0xbe8] sm:$0xff] }
 0x157   :  { %4095 = vmatprep.subr.bf16.mxu0 %v4094_v4  ;;  %v4114_v4 = vpack.c.bf16 %v918_v39, %v916_v38  ;;  %v426_v37 = vld [vmem:[%s8645_s1 + $0xbf8] sm:$0xff]  ;;  %v936_v38 = vld [vmem:[%s8645_s1 + $0x1be8] sm:$0xff] }
 0x158   :  { %v938_v39 = vld [vmem:[%s8645_s1 + $0x1bf8] sm:$0xff] }
 0x159   :  { %3585 = vmatpush1.bf16.msra.mxu1 %v3584_v25  ;;  %v3604_v25 = vpack.c.bf16 %v405_v12, %v403_v42  ;;  %v423_v42 = vld [vmem:[%s8645_s1 + $0xbe0] sm:$0xff]  ;;  %v425_v12 = vld [vmem:[%s8645_s1 + $0xbf0] sm:$0xff] }
 0x15a   :  { %4097 = vmatpush1.bf16.msra.mxu0 %v4096_v51  ;;  %3587 = vmatprep.subr.bf16.mxu1 %v3586_v52  ;;  %v4116_v51 = vpack.c.bf16 %v917_v44, %v915_v43  ;;  %v3606_v52 = vpack.c.bf16 %v410_v6, %v408_v46  ;;  %v935_v43 = vld [vmem:[%s8645_s1 + $0x1be0] sm:$0xff]  ;;  %v937_v44 = vld [vmem:[%s8645_s1 + $0x1bf0] sm:$0xff]  ;;  %v428_v46 = vld [vmem:[%s8645_s1 + $0xc08] sm:$0xff] }
 0x15b   :  { %4099 = vmatprep.subr.bf16.mxu0 %v4098_v57  ;;  %v4118_v57 = vpack.c.bf16 %v922_v49, %v920_v48  ;;  %v430_v6 = vld [vmem:[%s8645_s1 + $0xc18] sm:$0xff]  ;;  %v940_v48 = vld [vmem:[%s8645_s1 + $0x1c08] sm:$0xff] }
 0x15c   :  { %v942_v49 = vld [vmem:[%s8645_s1 + $0x1c18] sm:$0xff] }
 0x15d   :  { %3589 = vmatpush1.bf16.msra.mxu1 %v3588_v0  ;;  %v3608_v0 = vpack.c.bf16 %v409_v55, %v407_v53  ;;  %v4136_v53 = vpack.c.bf16 %v937_v44, %v935_v43  ;;  %v3626_v55 = vpack.c.bf16 %v430_v6, %v428_v46  ;;  %v443_v44 = vld [vmem:[%s8645_s1 + $0xc80] sm:$0xff]  ;;  %v445_v46 = vld [vmem:[%s8645_s1 + $0xc90] sm:$0xff] }
 0x15e   :  { %4101 = vmatpush1.bf16.msra.mxu0 %v4100_v1  ;;  %3591 = vmatprep.subr.bf16.mxu1 %v3590_v54  ;;  %v4120_v1 = vpack.c.bf16 %v921_v58, %v919_v56  ;;  %v3610_v54 = vpack.c.bf16 %v414_v62, %v412_v60  ;;  %v427_v56 = vld [vmem:[%s8645_s1 + $0xc00] sm:$0xff]  ;;  %v4138_v60 = vpack.c.bf16 %v942_v49, %v940_v48  ;;  %v941_v62 = vld [vmem:[%s8645_s1 + $0x1c10] sm:$0xff] }
 0x15f   :  { %4103 = vmatprep.subr.bf16.mxu0 %v4102_v3  ;;  %v4122_v3 = vpack.c.bf16 %v926_v50, %v924_v63  ;;  %v939_v58 = vld [vmem:[%s8645_s1 + $0x1c00] sm:$0xff]  ;;  %v432_v63 = vld [vmem:[%s8645_s1 + $0xc28] sm:$0xff]  ;;  %v434_v50 = vld [vmem:[%s8645_s1 + $0xc38] sm:$0xff] }
 0x160   :  { %v955_v6 = vld [vmem:[%s8645_s1 + $0x1c80] sm:$0xff]  ;;  %v957_v49 = vld [vmem:[%s8645_s1 + $0x1c90] sm:$0xff] }
 0x161   :  { %3593 = vmatpush1.bf16.msra.mxu1 %v3592_v10  ;;  %v3612_v10 = vpack.c.bf16 %v413_v30, %v411_v22 }
 0x162   :  { %4105 = vmatpush1.bf16.msra.mxu0 %v4104_v13  ;;  %3595 = vmatprep.subr.bf16.mxu1 %v3594_v14  ;;  %v4124_v13 = vpack.c.bf16 %v925_v28, %v923_v2  ;;  %v3614_v14 = vpack.c.bf16 %v418_v5, %v416_v33  ;;  %v4140_v2 = vpack.c.bf16 %v941_v62, %v939_v58  ;;  %v431_v28 = vld [vmem:[%s8645_s1 + $0xc20] sm:$0xff]  ;;  %v433_v33 = vld [vmem:[%s8645_s1 + $0xc30] sm:$0xff] }
 0x163   :  { %4107 = vmatprep.subr.bf16.mxu0 %v4106_v18  ;;  %v4126_v18 = vpack.c.bf16 %v930_v8, %v928_v7  ;;  %v943_v5 = vld [vmem:[%s8645_s1 + $0x1c20] sm:$0xff]  ;;  %v945_v8 = vld [vmem:[%s8645_s1 + $0x1c30] sm:$0xff]  ;;  %v4156_v58 = vpack.c.bf16 %v957_v49, %v955_v6 }
 0x164   :  { %v447_v62 = vld [vmem:[%s8645_s1 + $0xca0] sm:$0xff] }
 0x165   :  { %3597 = vmatpush1.bf16.msra.mxu1 %v3596_v26  ;;  %v3616_v26 = vpack.c.bf16 %v417_v16, %v415_v15  ;;  %v948_v15 = vld [vmem:[%s8645_s1 + $0x1c48] sm:$0xff]  ;;  %v950_v16 = vld [vmem:[%s8645_s1 + $0x1c58] sm:$0xff]  ;;  %v463_v6 = vld [vmem:[%s8645_s1 + $0xd20] sm:$0xff] }
 0x166   :  { %4109 = vmatpush1.bf16.msra.mxu0 %v4108_v27  ;;  %3599 = vmatprep.subr.bf16.mxu1 %v3598_v29  ;;  %v4128_v27 = vpack.c.bf16 %v929_v19, %v927_v17  ;;  %v3618_v29 = vpack.c.bf16 %v422_v21, %v420_v20  ;;  %v4144_v19 = vpack.c.bf16 %v945_v8, %v943_v5  ;;  %v437_v21 = vld [vmem:[%s8645_s1 + $0xc50] sm:$0xff]  ;;  %v451_v8 = vld [vmem:[%s8645_s1 + $0xcc0] sm:$0xff] }
 0x167   :  { %4111 = vmatprep.subr.bf16.mxu0 %v4110_v34  ;;  %v4130_v34 = vpack.c.bf16 %v934_v24, %v932_v23  ;;  %v947_v23 = vld [vmem:[%s8645_s1 + $0x1c40] sm:$0xff]  ;;  %v4146_v24 = vpack.c.bf16 %v950_v16, %v948_v15  ;;  %v965_v15 = vld [vmem:[%s8645_s1 + $0x1cd0] sm:$0xff]  ;;  %v456_v16 = vld [vmem:[%s8645_s1 + $0xce8] sm:$0xff] }
 0x168   :  { %v975_v49 = vld [vmem:[%s8645_s1 + $0x1d20] sm:$0xff] }
 0x169   :  { %3601 = vmatpush1.bf16.msra.mxu1 %v3600_v40  ;;  %v3620_v40 = vpack.c.bf16 %v421_v31, %v419_v59  ;;  %v954_v59 = vld [vmem:[%s8645_s1 + $0x1c78] sm:$0xff] }
 0x16a   :  { %4113 = vmatpush1.bf16.msra.mxu0 %v4112_v9  ;;  %3603 = vmatprep.subr.bf16.mxu1 %v3602_v41  ;;  %v4132_v9 = vpack.c.bf16 %v933_v35, %v931_v32  ;;  %v3622_v41 = vpack.c.bf16 %v426_v37, %v424_v36  ;;  %v439_v35 = vld [vmem:[%s8645_s1 + $0xc60] sm:$0xff]  ;;  %v441_v36 = vld [vmem:[%s8645_s1 + $0xc70] sm:$0xff] }
 0x16b   :  { %4115 = vmatprep.subr.bf16.mxu0 %v4114_v4  ;;  %v4134_v4 = vpack.c.bf16 %v938_v39, %v936_v38  ;;  %v951_v37 = vld [vmem:[%s8645_s1 + $0x1c60] sm:$0xff]  ;;  %v953_v39 = vld [vmem:[%s8645_s1 + $0x1c70] sm:$0xff] }
 0x16c   :  { %v4152_v43 = vpack.c.bf16 %v953_v39, %v951_v37  ;;  %v459_v37 = vld [vmem:[%s8645_s1 + $0xd00] sm:$0xff] }
 0x16d   :  { %3605 = vmatpush1.bf16.msra.mxu1 %v3604_v25  ;;  %v7083_v25 = vld [vmem:[%s8644_s0 + $0x18] sm:$0xff]  ;;  %v971_v39 = vld [vmem:[%s8645_s1 + $0x1d00] sm:$0xff] }
 0x16e   :  { %4117 = vmatpush1.bf16.msra.mxu0 %v4116_v51  ;;  %3607 = vmatprep.subr.bf16.mxu1 %v3606_v52  ;;  %v3624_v51 = vpack.c.bf16 %v425_v12, %v423_v42  ;;  %v7088_v52 = vld [vmem:[%s8644_s0 + $0x38] sm:$0xff]  ;;  %v3640_v12 = vpack.c.bf16 %v441_v36, %v439_v35 }
 0x16f   :  { %4119 = vmatprep.subr.bf16.mxu0 %v4118_v57  ;;  %v429_v57 = vld [vmem:[%s8645_s1 + $0xc10] sm:$0xff]  ;;  %v7120_v22 = vrot.slane %v7088_v52, %v4920_v11  ;;  %v958_v42 = vld [vmem:[%s8645_s1 + $0x1c98] sm:$0xff] }
 0x170   :  { %v3628_v30 = vpack.c.bf16 %v429_v57, %v427_v56  ;;  %v962_v56 = vld [vmem:[%s8645_s1 + $0x1cb8] sm:$0xff]  ;;  %v3644_v57 = vpack.c.bf16 %v445_v46, %v443_v44 }
 0x171   :  { %3609 = vmatpush1.bf16.msra.mxu1 %v3608_v0  ;;  %v7110_v0 = vrot.slane %v7083_v25, %v4920_v11  ;;  %v1399_v17 = vcombine.high %v7120_v22, %v7120_v22 }
 0x172   :  { %4121 = vmatpush1.bf16.msra.mxu0 %v4120_v1  ;;  %3611 = vmatprep.subr.bf16.mxu1 %v3610_v54  ;;  %v944_v1 = vld [vmem:[%s8645_s1 + $0x1c28] sm:$0xff]  ;;  %v946_v54 = vld [vmem:[%s8645_s1 + $0x1c38] sm:$0xff] }
 0x173   :  { %4123 = vmatprep.subr.bf16.mxu0 %v4122_v3  ;;  %v3630_v3 = vpack.c.bf16 %v434_v50, %v432_v63  ;;  %v4142_v7 = vpack.c.bf16 %v946_v54, %v944_v1  ;;  %v449_v63 = vld [vmem:[%s8645_s1 + $0xcb0] sm:$0xff]  ;;  %v959_v50 = vld [vmem:[%s8645_s1 + $0x1ca0] sm:$0xff] }
 0x174   :  { %v961_v54 = vld [vmem:[%s8645_s1 + $0x1cb0] sm:$0xff] }
 0x175   :  { %3613 = vmatpush1.bf16.msra.mxu1 %v3612_v10  ;;  %v436_v10 = vld [vmem:[%s8645_s1 + $0xc48] sm:$0xff]  ;;  %v4160_v5 = vpack.c.bf16 %v961_v54, %v959_v50  ;;  %v467_v50 = vld [vmem:[%s8645_s1 + $0xd40] sm:$0xff] }
 0x176   :  { %4125 = vmatpush1.bf16.msra.mxu0 %v4124_v13  ;;  %3615 = vmatprep.subr.bf16.mxu1 %v3614_v14  ;;  %v438_v13 = vld [vmem:[%s8645_s1 + $0xc58] sm:$0xff]  ;;  %v1331_v14 = vcombine.high %v7110_v0, %v7110_v0  ;;  %v979_v54 = vld [vmem:[%s8645_s1 + $0x1d40] sm:$0xff] }
 0x177   :  { %4127 = vmatprep.subr.bf16.mxu0 %v4126_v18  ;;  %v3632_v18 = vpack.c.bf16 %v433_v33, %v431_v28  ;;  %v3634_v20 = vpack.c.bf16 %v438_v13, %v436_v10  ;;  %v966_v28 = vld [vmem:[%s8645_s1 + $0x1cd8] sm:$0xff]  ;;  %v3648_v33 = vpack.c.bf16 %v449_v63, %v447_v62  ;;  %v453_v10 = vld [vmem:[%s8645_s1 + $0xcd0] sm:$0xff]  ;;  %v963_v13 = vld [vmem:[%s8645_s1 + $0x1cc0] sm:$0xff] }
 0x179   :  { %3617 = vmatpush1.bf16.msra.mxu1 %v3616_v26  ;;  %v440_v26 = vld [vmem:[%s8645_s1 + $0xc68] sm:$0xff] }
 0x17a   :  { %4129 = vmatpush1.bf16.msra.mxu0 %v4128_v27  ;;  %3619 = vmatprep.subr.bf16.mxu1 %v3618_v29  ;;  %v442_v27 = vld [vmem:[%s8645_s1 + $0xc78] sm:$0xff]  ;;  %v952_v29 = vld [vmem:[%s8645_s1 + $0x1c68] sm:$0xff] }
 0x17b   :  { %4131 = vmatprep.subr.bf16.mxu0 %v4130_v34  ;;  %v3638_v34 = vpack.c.bf16 %v442_v27, %v440_v26  ;;  %v4150_v38 = vpack.c.bf16 %v954_v59, %v952_v29  ;;  %v969_v27 = vld [vmem:[%s8645_s1 + $0x1cf0] sm:$0xff]  ;;  %v460_v29 = vld [vmem:[%s8645_s1 + $0xd08] sm:$0xff]  ;;  %v462_v59 = vld [vmem:[%s8645_s1 + $0xd18] sm:$0xff] }
 0x17c   :  { %v3658_v36 = vpack.c.bf16 %v462_v59, %v460_v29  ;;  %v989_v59 = vld [vmem:[%s8645_s1 + $0x1d90] sm:$0xff] }
 0x17d   :  { %3621 = vmatpush1.bf16.msra.mxu1 %v3620_v40  ;;  %v444_v40 = vld [vmem:[%s8645_s1 + $0xc88] sm:$0xff] }
 0x17e   :  { %4133 = vmatpush1.bf16.msra.mxu0 %v4132_v9  ;;  %3623 = vmatprep.subr.bf16.mxu1 %v3622_v41  ;;  %v446_v9 = vld [vmem:[%s8645_s1 + $0xc98] sm:$0xff]  ;;  %v956_v41 = vld [vmem:[%s8645_s1 + $0x1c88] sm:$0xff] }
 0x17f   :  { %4135 = vmatprep.subr.bf16.mxu0 %v4134_v4  ;;  %v3642_v4 = vpack.c.bf16 %v446_v9, %v444_v40  ;;  %v4154_v48 = vpack.c.bf16 %v958_v42, %v956_v41  ;;  %v973_v9 = vld [vmem:[%s8645_s1 + $0x1d10] sm:$0xff]  ;;  %v464_v41 = vld [vmem:[%s8645_s1 + $0xd28] sm:$0xff]  ;;  %v466_v42 = vld [vmem:[%s8645_s1 + $0xd38] sm:$0xff] }
 0x180   :  { %v4172_v44 = vpack.c.bf16 %v973_v9, %v971_v39  ;;  %v3662_v46 = vpack.c.bf16 %v466_v42, %v464_v41  ;;  %v479_v39 = vld [vmem:[%s8645_s1 + $0xda0] sm:$0xff]  ;;  %v993_v42 = vld [vmem:[%s8645_s1 + $0x1db0] sm:$0xff] }
 0x181   :  { %3625 = vmatpush1.bf16.msra.mxu1 %v3624_v51  ;;  %v448_v51 = vld [vmem:[%s8645_s1 + $0xca8] sm:$0xff]  ;;  %v991_v9 = vld [vmem:[%s8645_s1 + $0x1da0] sm:$0xff] }
 0x182   :  { %4137 = vmatpush1.bf16.msra.mxu0 %v4136_v53  ;;  %3627 = vmatprep.subr.bf16.mxu1 %v3626_v55  ;;  %v450_v53 = vld [vmem:[%s8645_s1 + $0xcb8] sm:$0xff]  ;;  %v960_v55 = vld [vmem:[%s8645_s1 + $0x1ca8] sm:$0xff] }
 0x183   :  { %4139 = vmatprep.subr.bf16.mxu0 %v4138_v60  ;;  %v3646_v60 = vpack.c.bf16 %v450_v53, %v448_v51  ;;  %v4158_v1 = vpack.c.bf16 %v962_v56, %v960_v55  ;;  %v977_v53 = vld [vmem:[%s8645_s1 + $0x1d30] sm:$0xff]  ;;  %v468_v55 = vld [vmem:[%s8645_s1 + $0xd48] sm:$0xff]  ;;  %v470_v56 = vld [vmem:[%s8645_s1 + $0xd58] sm:$0xff] }
 0x184   :  { %1886 = vmatmul.mubr.f32.vlgmr.msra.gmra.mrb[0].mxu1 %v6703_v45  ;;  %v435_v45 = vld [vmem:[%s8645_s1 + $0xc40] sm:$0xff]  ;;  %v4176_v62 = vpack.c.bf16 %v977_v53, %v975_v49  ;;  %v3666_v63 = vpack.c.bf16 %v470_v56, %v468_v55  ;;  %v997_v56 = vld [vmem:[%s8645_s1 + $0x1dd0] sm:$0xff] }
 0x185   :  { %3629 = vmatpush1.bf16.msra.mxu1 %v3628_v30  ;;  %2454 = vmatmul.mubr.f32.vlgmr.msra.gmra.mrb[0].mxu0 %v6712_v47  ;;  %v949_v47 = vld [vmem:[%s8645_s1 + $0x1c50] sm:$0xff]  ;;  %v3636_v31 = vpack.c.bf16 %v437_v21, %v435_v45  ;;  %v452_v30 = vld [vmem:[%s8645_s1 + $0xcc8] sm:$0xff]  ;;  %v4164_v45 = vpack.c.bf16 %v965_v15, %v963_v13  ;;  %v471_v13 = vld [vmem:[%s8645_s1 + $0xd60] sm:$0xff] }
 0x186   :  { %4141 = vmatpush1.bf16.msra.mxu0 %v4140_v2  ;;  %3631 = vmatprep.subr.bf16.mxu1 %v3630_v3  ;;  %v4148_v32 = vpack.c.bf16 %v949_v47, %v947_v23  ;;  %v454_v2 = vld [vmem:[%s8645_s1 + $0xcd8] sm:$0xff]  ;;  %v964_v3 = vld [vmem:[%s8645_s1 + $0x1cc8] sm:$0xff]  ;;  %v455_v23 = vld [vmem:[%s8645_s1 + $0xce0] sm:$0xff] }
 0x187   :  { %4143 = vmatprep.subr.bf16.mxu0 %v4142_v7  ;;  %1956 = vmatprep.mubr.f32.mxu1 %v1331_v14  ;;  %v3650_v7 = vpack.c.bf16 %v454_v2, %v452_v30  ;;  %v4162_v14 = vpack.c.bf16 %v966_v28, %v964_v3  ;;  %v967_v47 = vld [vmem:[%s8645_s1 + $0x1ce0] sm:$0xff]  ;;  %v981_v2 = vld [vmem:[%s8645_s1 + $0x1d50] sm:$0xff]  ;;  %v472_v3 = vld [vmem:[%s8645_s1 + $0xd68] sm:$0xff] }
 0x188   :  { %2524 = vmatprep.mubr.f32.mxu0 %v1399_v17  ;;  %v458_v17 = vld [vmem:[%s8645_s1 + $0xcf8] sm:$0xff]  ;;  %v4168_v35 = vpack.c.bf16 %v969_v27, %v967_v47  ;;  %v983_v15 = vld [vmem:[%s8645_s1 + $0x1d60] sm:$0xff] }
 0x189   :  { %3633 = vmatpush1.bf16.msra.mxu1 %v3632_v18  ;;  %v968_v18 = vld [vmem:[%s8645_s1 + $0x1ce8] sm:$0xff]  ;;  %v3654_v21 = vpack.c.bf16 %v458_v17, %v456_v16  ;;  %v474_v28 = vld [vmem:[%s8645_s1 + $0xd78] sm:$0xff]  ;;  %v985_v17 = vld [vmem:[%s8645_s1 + $0x1d70] sm:$0xff] }
 0x18a   :  { %4145 = vmatpush1.bf16.msra.mxu0 %v4144_v19  ;;  %3635 = vmatprep.subr.bf16.mxu1 %v3634_v20  ;;  %v970_v19 = vld [vmem:[%s8645_s1 + $0x1cf8] sm:$0xff]  ;;  %v3652_v20 = vpack.c.bf16 %v453_v10, %v451_v8  ;;  %v4180_v8 = vpack.c.bf16 %v981_v2, %v979_v54  ;;  %v3670_v10 = vpack.c.bf16 %v474_v28, %v472_v3  ;;  %v475_v47 = vld [vmem:[%s8645_s1 + $0xd80] sm:$0xff]  ;;  %v1001_v28 = vld [vmem:[%s8645_s1 + $0x1df0] sm:$0xff] }
 0x18b   :  { %4147 = vmatprep.subr.bf16.mxu0 %v4146_v24  ;;  %v457_v24 = vld [vmem:[%s8645_s1 + $0xcf0] sm:$0xff]  ;;  %v4166_v26 = vpack.c.bf16 %v970_v19, %v968_v18  ;;  %v476_v18 = vld [vmem:[%s8645_s1 + $0xd88] sm:$0xff]  ;;  %v478_v19 = vld [vmem:[%s8645_s1 + $0xd98] sm:$0xff] }
 0x18c   :  { %v987_v27 = vld [vmem:[%s8645_s1 + $0x1d80] sm:$0xff] }
 0x18d   :  { %3637 = vmatpush1.bf16.msra.mxu1 %v3636_v31  ;;  %v972_v31 = vld [vmem:[%s8645_s1 + $0x1d08] sm:$0xff]  ;;  %v483_v49 = vld [vmem:[%s8645_s1 + $0xdc0] sm:$0xff] }
 0x18e   :  { %4149 = vmatpush1.bf16.msra.mxu0 %v4148_v32  ;;  %3639 = vmatprep.subr.bf16.mxu1 %v3638_v34  ;;  %v974_v32 = vld [vmem:[%s8645_s1 + $0x1d18] sm:$0xff]  ;;  %v3656_v34 = vpack.c.bf16 %v457_v24, %v455_v23  ;;  %v4184_v23 = vpack.c.bf16 %v985_v17, %v983_v15  ;;  %v3674_v24 = vpack.c.bf16 %v478_v19, %v476_v18  ;;  %v995_v53 = vld [vmem:[%s8645_s1 + $0x1dc0] sm:$0xff]  ;;  %v493_v17 = vld [vmem:[%s8645_s1 + $0xe10] sm:$0xff] }
 0x18f   :  { %4151 = vmatprep.subr.bf16.mxu0 %v4150_v38  ;;  %v461_v38 = vld [vmem:[%s8645_s1 + $0xd10] sm:$0xff]  ;;  %v4170_v40 = vpack.c.bf16 %v974_v32, %v972_v31  ;;  %v480_v31 = vld [vmem:[%s8645_s1 + $0xda8] sm:$0xff]  ;;  %v482_v32 = vld [vmem:[%s8645_s1 + $0xdb8] sm:$0xff] }
 0x190   :  { %v487_v54 = vld [vmem:[%s8645_s1 + $0xde0] sm:$0xff]  ;;  %v1005_v19 = vld [vmem:[%s8645_s1 + $0x1e10] sm:$0xff] }
 0x191   :  { %3641 = vmatpush1.bf16.msra.mxu1 %v3640_v12  ;;  %v976_v12 = vld [vmem:[%s8645_s1 + $0x1d28] sm:$0xff]  ;;  %v999_v2 = vld [vmem:[%s8645_s1 + $0x1de0] sm:$0xff] }
 0x192   :  { %4153 = vmatpush1.bf16.msra.mxu0 %v4152_v43  ;;  %3643 = vmatprep.subr.bf16.mxu1 %v3642_v4  ;;  %v978_v43 = vld [vmem:[%s8645_s1 + $0x1d38] sm:$0xff]  ;;  %v3660_v4 = vpack.c.bf16 %v461_v38, %v459_v37  ;;  %v4188_v37 = vpack.c.bf16 %v989_v59, %v987_v27  ;;  %v3678_v38 = vpack.c.bf16 %v482_v32, %v480_v31  ;;  %v1003_v18 = vld [vmem:[%s8645_s1 + $0x1e00] sm:$0xff]  ;;  %v497_v31 = vld [vmem:[%s8645_s1 + $0xe30] sm:$0xff] }
 0x193   :  { %4155 = vmatprep.subr.bf16.mxu0 %v4154_v48  ;;  %v465_v48 = vld [vmem:[%s8645_s1 + $0xd30] sm:$0xff]  ;;  %v4174_v51 = vpack.c.bf16 %v978_v43, %v976_v12  ;;  %v484_v12 = vld [vmem:[%s8645_s1 + $0xdc8] sm:$0xff]  ;;  %v486_v43 = vld [vmem:[%s8645_s1 + $0xdd8] sm:$0xff]  ;;  %v4200_v15 = vpack.c.bf16 %v1001_v28, %v999_v2  ;;  %v4204_v27 = vpack.c.bf16 %v1005_v19, %v1003_v18 }
 0x194   :  { %v495_v59 = vld [vmem:[%s8645_s1 + $0xe20] sm:$0xff] }
 0x195   :  { %3645 = vmatpush1.bf16.msra.mxu1 %v3644_v57  ;;  %v980_v57 = vld [vmem:[%s8645_s1 + $0x1d48] sm:$0xff]  ;;  %v1007_v32 = vld [vmem:[%s8645_s1 + $0x1e20] sm:$0xff] }
 0x196   :  { %4157 = vmatpush1.bf16.msra.mxu0 %v4156_v58  ;;  %3647 = vmatprep.subr.bf16.mxu1 %v3646_v60  ;;  %v982_v58 = vld [vmem:[%s8645_s1 + $0x1d58] sm:$0xff]  ;;  %v3664_v60 = vpack.c.bf16 %v465_v48, %v463_v6  ;;  %v4192_v6 = vpack.c.bf16 %v993_v42, %v991_v9  ;;  %v3682_v48 = vpack.c.bf16 %v486_v43, %v484_v12  ;;  %v501_v43 = vld [vmem:[%s8645_s1 + $0xe50] sm:$0xff]  ;;  %v507_v28 = vld [vmem:[%s8645_s1 + $0xe80] sm:$0xff] }
 0x197   :  { %4159 = vmatprep.subr.bf16.mxu0 %v4158_v1  ;;  %v469_v1 = vld [vmem:[%s8645_s1 + $0xd50] sm:$0xff]  ;;  %v4178_v30 = vpack.c.bf16 %v982_v58, %v980_v57  ;;  %v488_v57 = vld [vmem:[%s8645_s1 + $0xde8] sm:$0xff]  ;;  %v490_v58 = vld [vmem:[%s8645_s1 + $0xdf8] sm:$0xff] }
 0x198   :  { %v511_v18 = vld [vmem:[%s8645_s1 + $0xea0] sm:$0xff] }
 0x199   :  { %3649 = vmatpush1.bf16.msra.mxu1 %v3648_v33  ;;  %v984_v33 = vld [vmem:[%s8645_s1 + $0x1d68] sm:$0xff]  ;;  %v1023_v19 = vld [vmem:[%s8645_s1 + $0x1ea0] sm:$0xff] }
 0x19a   :  { %4161 = vmatpush1.bf16.msra.mxu0 %v4160_v5  ;;  %3651 = vmatprep.subr.bf16.mxu1 %v3650_v7  ;;  %v986_v5 = vld [vmem:[%s8645_s1 + $0x1d78] sm:$0xff]  ;;  %v3668_v7 = vpack.c.bf16 %v469_v1, %v467_v50  ;;  %v4196_v50 = vpack.c.bf16 %v997_v56, %v995_v53  ;;  %v3686_v1 = vpack.c.bf16 %v490_v58, %v488_v57  ;;  %v503_v56 = vld [vmem:[%s8645_s1 + $0xe60] sm:$0xff]  ;;  %v505_v57 = vld [vmem:[%s8645_s1 + $0xe70] sm:$0xff] }
 0x19b   :  { %4163 = vmatprep.subr.bf16.mxu0 %v4162_v14  ;;  %v473_v14 = vld [vmem:[%s8645_s1 + $0xd70] sm:$0xff]  ;;  %v4182_v16 = vpack.c.bf16 %v986_v5, %v984_v33  ;;  %v492_v33 = vld [vmem:[%s8645_s1 + $0xe08] sm:$0xff]  ;;  %v494_v5 = vld [vmem:[%s8645_s1 + $0xe18] sm:$0xff] }
 0x19c   :  { %v1015_v58 = vld [vmem:[%s8645_s1 + $0x1e60] sm:$0xff] }
 0x19d   :  { %3653 = vmatpush1.bf16.msra.mxu1 %v3652_v20  ;;  %v988_v20 = vld [vmem:[%s8645_s1 + $0x1d88] sm:$0xff] }
 0x19e   :  { %4165 = vmatpush1.bf16.msra.mxu0 %v4164_v45  ;;  %3655 = vmatprep.subr.bf16.mxu1 %v3654_v21  ;;  %v990_v45 = vld [vmem:[%s8645_s1 + $0x1d98] sm:$0xff]  ;;  %v3672_v21 = vpack.c.bf16 %v473_v14, %v471_v13  ;;  %v1384_v13 = vcombine.high %v7088_v52, %v7088_v52 }
 0x19f   :  { %4167 = vmatprep.subr.bf16.mxu0 %v4166_v26  ;;  %v477_v26 = vld [vmem:[%s8645_s1 + $0xd90] sm:$0xff]  ;;  %v4186_v29 = vpack.c.bf16 %v990_v45, %v988_v20  ;;  %v496_v20 = vld [vmem:[%s8645_s1 + $0xe28] sm:$0xff]  ;;  %v498_v45 = vld [vmem:[%s8645_s1 + $0xe38] sm:$0xff] }
 0x1a1   :  { %3657 = vmatpush1.bf16.msra.mxu1 %v3656_v34  ;;  %v992_v34 = vld [vmem:[%s8645_s1 + $0x1da8] sm:$0xff] }
 0x1a2   :  { %4169 = vmatpush1.bf16.msra.mxu0 %v4168_v35  ;;  %3659 = vmatprep.subr.bf16.mxu1 %v3658_v36  ;;  %v994_v35 = vld [vmem:[%s8645_s1 + $0x1db8] sm:$0xff]  ;;  %v3676_v36 = vpack.c.bf16 %v477_v26, %v475_v47  ;;  %v7520_v47 = vrot.slane %v1384_v13, %v4920_v11 }
 0x1a3   :  { %4171 = vmatprep.subr.bf16.mxu0 %v4170_v40  ;;  %v481_v40 = vld [vmem:[%s8645_s1 + $0xdb0] sm:$0xff]  ;;  %v4190_v41 = vpack.c.bf16 %v994_v35, %v992_v34  ;;  %v514_v13 = vld [vmem:[%s8645_s1 + $0xeb8] sm:$0xff] }
 0x1a4   :  { %v1009_v35 = vld [vmem:[%s8645_s1 + $0x1e30] sm:$0xff]  ;;  %v1400_v9 = vcombine.high %v7520_v47, %v7520_v47 }
 0x1a5   :  { %3661 = vmatpush1.bf16.msra.mxu1 %v3660_v4  ;;  %v996_v4 = vld [vmem:[%s8645_s1 + $0x1dc8] sm:$0xff]  ;;  %v4208_v42 = vpack.c.bf16 %v1009_v35, %v1007_v32  ;;  %v515_v32 = vld [vmem:[%s8645_s1 + $0xec0] sm:$0xff] }
 0x1a6   :  { %4173 = vmatpush1.bf16.msra.mxu0 %v4172_v44  ;;  %3663 = vmatprep.subr.bf16.mxu1 %v3662_v46  ;;  %v998_v44 = vld [vmem:[%s8645_s1 + $0x1dd8] sm:$0xff]  ;;  %v3680_v46 = vpack.c.bf16 %v481_v40, %v479_v39  ;;  %v1012_v39 = vld [vmem:[%s8645_s1 + $0x1e48] sm:$0xff]  ;;  %v1027_v35 = vld [vmem:[%s8645_s1 + $0x1ec0] sm:$0xff] }
 0x1a7   :  { %4175 = vmatprep.subr.bf16.mxu0 %v4174_v51  ;;  %v485_v51 = vld [vmem:[%s8645_s1 + $0xdd0] sm:$0xff]  ;;  %v4194_v55 = vpack.c.bf16 %v998_v44, %v996_v4  ;;  %v1014_v40 = vld [vmem:[%s8645_s1 + $0x1e58] sm:$0xff]  ;;  %v1011_v4 = vld [vmem:[%s8645_s1 + $0x1e40] sm:$0xff] }
 0x1a8   :  { %v4210_v44 = vpack.c.bf16 %v1014_v40, %v1012_v39  ;;  %v522_v39 = vld [vmem:[%s8645_s1 + $0xef8] sm:$0xff]  ;;  %v1032_v40 = vld [vmem:[%s8645_s1 + $0x1ee8] sm:$0xff] }
 0x1a9   :  { %3665 = vmatpush1.bf16.msra.mxu1 %v3664_v60  ;;  %v1000_v60 = vld [vmem:[%s8645_s1 + $0x1de8] sm:$0xff] }
 0x1aa   :  { %4177 = vmatpush1.bf16.msra.mxu0 %v4176_v62  ;;  %3667 = vmatprep.subr.bf16.mxu1 %v3666_v63  ;;  %v1002_v62 = vld [vmem:[%s8645_s1 + $0x1df8] sm:$0xff]  ;;  %v3684_v63 = vpack.c.bf16 %v485_v51, %v483_v49 }
 0x1ab   :  { %4179 = vmatprep.subr.bf16.mxu0 %v4178_v30  ;;  %v489_v30 = vld [vmem:[%s8645_s1 + $0xdf0] sm:$0xff]  ;;  %v4198_v3 = vpack.c.bf16 %v1002_v62, %v1000_v60  ;;  %v1018_v49 = vld [vmem:[%s8645_s1 + $0x1e78] sm:$0xff] }
 0x1ac   :  { %v3688_v14 = vpack.c.bf16 %v489_v30, %v487_v54  ;;  %v1017_v62 = vld [vmem:[%s8645_s1 + $0x1e70] sm:$0xff]  ;;  %v1022_v54 = vld [vmem:[%s8645_s1 + $0x1e98] sm:$0xff]  ;;  %v3704_v30 = vpack.c.bf16 %v505_v57, %v503_v56  ;;  %v523_v56 = vld [vmem:[%s8645_s1 + $0xf00] sm:$0xff] }
 0x1ad   :  { %3669 = vmatpush1.bf16.msra.mxu1 %v3668_v7  ;;  %v1316_v7 = vcombine.high %v7083_v25, %v7083_v25  ;;  %v491_v25 = vld [vmem:[%s8645_s1 + $0xe00] sm:$0xff]  ;;  %v4216_v2 = vpack.c.bf16 %v1017_v62, %v1015_v58  ;;  %v525_v57 = vld [vmem:[%s8645_s1 + $0xf10] sm:$0xff] }
 0x1ae   :  { %4181 = vmatpush1.bf16.msra.mxu0 %v4180_v8  ;;  %3671 = vmatprep.subr.bf16.mxu1 %v3670_v10  ;;  %v1004_v8 = vld [vmem:[%s8645_s1 + $0x1e08] sm:$0xff]  ;;  %v1006_v10 = vld [vmem:[%s8645_s1 + $0x1e18] sm:$0xff]  ;;  %v3692_v26 = vpack.c.bf16 %v493_v17, %v491_v25  ;;  %v1035_v58 = vld [vmem:[%s8645_s1 + $0x1f00] sm:$0xff] }
 0x1af   :  { %4183 = vmatprep.subr.bf16.mxu0 %v4182_v16  ;;  %v3690_v16 = vpack.c.bf16 %v494_v5, %v492_v33  ;;  %v4202_v52 = vpack.c.bf16 %v1006_v10, %v1004_v8  ;;  %v509_v33 = vld [vmem:[%s8645_s1 + $0xe90] sm:$0xff]  ;;  %v1019_v5 = vld [vmem:[%s8645_s1 + $0x1e80] sm:$0xff]  ;;  %v512_v10 = vld [vmem:[%s8645_s1 + $0xea8] sm:$0xff] }
 0x1b0   :  { %v1021_v8 = vld [vmem:[%s8645_s1 + $0x1e90] sm:$0xff]  ;;  %v3710_v17 = vpack.c.bf16 %v514_v13, %v512_v10  ;;  %v532_v10 = vld [vmem:[%s8645_s1 + $0xf48] sm:$0xff]  ;;  %v534_v13 = vld [vmem:[%s8645_s1 + $0xf58] sm:$0xff] }
 0x1b1   :  { %3673 = vmatpush1.bf16.msra.mxu1 %v3672_v21  ;;  %v7511_v21 = vrot.slane %v1316_v7, %v4920_v11  ;;  %v4220_v25 = vpack.c.bf16 %v1021_v8, %v1019_v5  ;;  %v1037_v62 = vld [vmem:[%s8645_s1 + $0x1f10] sm:$0xff]  ;;  %v1039_v5 = vld [vmem:[%s8645_s1 + $0x1f20] sm:$0xff] }
 0x1b2   :  { %4185 = vmatpush1.bf16.msra.mxu0 %v4184_v23  ;;  %3675 = vmatprep.subr.bf16.mxu1 %v3674_v24  ;;  %v1008_v23 = vld [vmem:[%s8645_s1 + $0x1e28] sm:$0xff]  ;;  %v1010_v24 = vld [vmem:[%s8645_s1 + $0x1e38] sm:$0xff]  ;;  %v1041_v8 = vld [vmem:[%s8645_s1 + $0x1f30] sm:$0xff] }
 0x1b3   :  { %4187 = vmatprep.subr.bf16.mxu0 %v4186_v29  ;;  %v3694_v29 = vpack.c.bf16 %v498_v45, %v496_v20  ;;  %v4206_v34 = vpack.c.bf16 %v1010_v24, %v1008_v23  ;;  %v1025_v45 = vld [vmem:[%s8645_s1 + $0x1eb0] sm:$0xff]  ;;  %v516_v23 = vld [vmem:[%s8645_s1 + $0xec8] sm:$0xff]  ;;  %v518_v24 = vld [vmem:[%s8645_s1 + $0xed8] sm:$0xff] }
 0x1b5   :  { %3677 = vmatpush1.bf16.msra.mxu1 %v3676_v36  ;;  %v500_v36 = vld [vmem:[%s8645_s1 + $0xe48] sm:$0xff] }
 0x1b6   :  { %4189 = vmatpush1.bf16.msra.mxu0 %v4188_v37  ;;  %3679 = vmatprep.subr.bf16.mxu1 %v3678_v38  ;;  %v502_v37 = vld [vmem:[%s8645_s1 + $0xe58] sm:$0xff]  ;;  %v1332_v38 = vcombine.high %v7511_v21, %v7511_v21 }
 0x1b7   :  { %4191 = vmatprep.subr.bf16.mxu0 %v4190_v41  ;;  %v3696_v41 = vpack.c.bf16 %v497_v31, %v495_v59  ;;  %v3698_v12 = vpack.c.bf16 %v502_v37, %v500_v36  ;;  %v4224_v59 = vpack.c.bf16 %v1025_v45, %v1023_v19  ;;  %v3714_v31 = vpack.c.bf16 %v518_v24, %v516_v23  ;;  %v1029_v37 = vld [vmem:[%s8645_s1 + $0x1ed0] sm:$0xff]  ;;  %v1043_v19 = vld [vmem:[%s8645_s1 + $0x1f40] sm:$0xff]  ;;  %v536_v23 = vld [vmem:[%s8645_s1 + $0xf68] sm:$0xff] }
 0x1b8   :  { %v1045_v45 = vld [vmem:[%s8645_s1 + $0x1f50] sm:$0xff]  ;;  %v538_v24 = vld [vmem:[%s8645_s1 + $0xf78] sm:$0xff] }
 0x1b9   :  { %3681 = vmatpush1.bf16.msra.mxu1 %v3680_v46  ;;  %v504_v46 = vld [vmem:[%s8645_s1 + $0xe68] sm:$0xff] }
 0x1ba   :  { %4193 = vmatpush1.bf16.msra.mxu0 %v4192_v6  ;;  %3683 = vmatprep.subr.bf16.mxu1 %v3682_v48  ;;  %v506_v6 = vld [vmem:[%s8645_s1 + $0xe78] sm:$0xff]  ;;  %v1016_v48 = vld [vmem:[%s8645_s1 + $0x1e68] sm:$0xff] }
 0x1bb   :  { %4195 = vmatprep.subr.bf16.mxu0 %v4194_v55  ;;  %v3702_v55 = vpack.c.bf16 %v506_v6, %v504_v46  ;;  %v4214_v60 = vpack.c.bf16 %v1018_v49, %v1016_v48  ;;  %v524_v46 = vld [vmem:[%s8645_s1 + $0xf08] sm:$0xff]  ;;  %v526_v6 = vld [vmem:[%s8645_s1 + $0xf18] sm:$0xff] }
 0x1bc   :  { %v1036_v48 = vld [vmem:[%s8645_s1 + $0x1f08] sm:$0xff]  ;;  %v1038_v49 = vld [vmem:[%s8645_s1 + $0x1f18] sm:$0xff] }
 0x1bd   :  { %3685 = vmatpush1.bf16.msra.mxu1 %v3684_v63  ;;  %v508_v63 = vld [vmem:[%s8645_s1 + $0xe88] sm:$0xff] }
 0x1be   :  { %4197 = vmatpush1.bf16.msra.mxu0 %v4196_v50  ;;  %3687 = vmatprep.subr.bf16.mxu1 %v3686_v1  ;;  %v510_v50 = vld [vmem:[%s8645_s1 + $0xe98] sm:$0xff]  ;;  %v1020_v1 = vld [vmem:[%s8645_s1 + $0x1e88] sm:$0xff] }
 0x1bf   :  { %4199 = vmatprep.subr.bf16.mxu0 %v4198_v3  ;;  %v3706_v3 = vpack.c.bf16 %v510_v50, %v508_v63  ;;  %v4218_v7 = vpack.c.bf16 %v1022_v54, %v1020_v1  ;;  %v528_v63 = vld [vmem:[%s8645_s1 + $0xf28] sm:$0xff]  ;;  %v530_v50 = vld [vmem:[%s8645_s1 + $0xf38] sm:$0xff] }
 0x1c0   :  { %v1040_v1 = vld [vmem:[%s8645_s1 + $0x1f28] sm:$0xff]  ;;  %v1042_v54 = vld [vmem:[%s8645_s1 + $0x1f38] sm:$0xff] }
 0x1c1   :  { %3689 = vmatpush1.bf16.msra.mxu1 %v3688_v14  ;;  %v1024_v14 = vld [vmem:[%s8645_s1 + $0x1ea8] sm:$0xff] }
 0x1c2   :  { %4201 = vmatpush1.bf16.msra.mxu0 %v4200_v15  ;;  %3691 = vmatprep.subr.bf16.mxu1 %v3690_v16  ;;  %v1026_v15 = vld [vmem:[%s8645_s1 + $0x1eb8] sm:$0xff]  ;;  %v3708_v16 = vpack.c.bf16 %v509_v33, %v507_v28  ;;  %v527_v28 = vld [vmem:[%s8645_s1 + $0xf20] sm:$0xff]  ;;  %v529_v33 = vld [vmem:[%s8645_s1 + $0xf30] sm:$0xff] }
 0x1c3   :  { %4203 = vmatprep.subr.bf16.mxu0 %v4202_v52  ;;  %v513_v52 = vld [vmem:[%s8645_s1 + $0xeb0] sm:$0xff]  ;;  %v4222_v20 = vpack.c.bf16 %v1026_v15, %v1024_v14  ;;  %v1044_v14 = vld [vmem:[%s8645_s1 + $0x1f48] sm:$0xff]  ;;  %v1046_v15 = vld [vmem:[%s8645_s1 + $0x1f58] sm:$0xff] }
 0x1c4   :  { %1957 = vmatmul.mubr.f32.vlgmr.msra.gmra.mrb[0].mxu1 %v7110_v0  ;;  %v499_v0 = vld [vmem:[%s8645_s1 + $0xe40] sm:$0xff] }
 0x1c5   :  { %3693 = vmatpush1.bf16.msra.mxu1 %v3692_v26  ;;  %2525 = vmatmul.mubr.f32.vlgmr.msra.gmra.mrb[0].mxu0 %v7120_v22  ;;  %v1013_v22 = vld [vmem:[%s8645_s1 + $0x1e50] sm:$0xff]  ;;  %v3700_v51 = vpack.c.bf16 %v501_v43, %v499_v0  ;;  %v1028_v26 = vld [vmem:[%s8645_s1 + $0x1ec8] sm:$0xff]  ;;  %v519_v0 = vld [vmem:[%s8645_s1 + $0xee0] sm:$0xff] }
 0x1c6   :  { %4205 = vmatpush1.bf16.msra.mxu0 %v4204_v27  ;;  %3695 = vmatprep.subr.bf16.mxu1 %v3694_v29  ;;  %v4212_v53 = vpack.c.bf16 %v1013_v22, %v1011_v4  ;;  %v1030_v27 = vld [vmem:[%s8645_s1 + $0x1ed8] sm:$0xff]  ;;  %v3712_v29 = vpack.c.bf16 %v513_v52, %v511_v18  ;;  %v521_v43 = vld [vmem:[%s8645_s1 + $0xef0] sm:$0xff]  ;;  %v1031_v4 = vld [vmem:[%s8645_s1 + $0x1ee0] sm:$0xff] }
 0x1c7   :  { %4207 = vmatprep.subr.bf16.mxu0 %v4206_v34  ;;  %2027 = vmatprep.mubr.f32.mxu1 %v1332_v38  ;;  %v517_v34 = vld [vmem:[%s8645_s1 + $0xed0] sm:$0xff]  ;;  %v4226_v36 = vpack.c.bf16 %v1030_v27, %v1028_v26  ;;  %v520_v38 = vld [vmem:[%s8645_s1 + $0xee8] sm:$0xff]  ;;  %v531_v18 = vld [vmem:[%s8645_s1 + $0xf40] sm:$0xff] }
 0x1c8   :  { %2595 = vmatprep.mubr.f32.mxu0 %v1400_v9  ;;  %v1034_v9 = vld [vmem:[%s8645_s1 + $0x1ef8] sm:$0xff]  ;;  %v1033_v22 = vld [vmem:[%s8645_s1 + $0x1ef0] sm:$0xff]  ;;  %v1048_v26 = vld [vmem:[%s8645_s1 + $0x1f68] sm:$0xff] }
 0x1c9   :  { %3697 = vmatpush1.bf16.msra.mxu1 %v3696_v41  ;;  %v3716_v41 = vpack.c.bf16 %v517_v34, %v515_v32  ;;  %v533_v52 = vld [vmem:[%s8645_s1 + $0xf50] sm:$0xff]  ;;  %v1050_v27 = vld [vmem:[%s8645_s1 + $0x1f78] sm:$0xff]  ;;  %v535_v32 = vld [vmem:[%s8645_s1 + $0xf60] sm:$0xff] }
 0x1ca   :  { %4209 = vmatpush1.bf16.msra.mxu0 %v4208_v42  ;;  %3699 = vmatprep.subr.bf16.mxu1 %v3698_v12  ;;  %v4228_v42 = vpack.c.bf16 %v1029_v37, %v1027_v35  ;;  %v3718_v12 = vpack.c.bf16 %v522_v39, %v520_v38  ;;  %v537_v34 = vld [vmem:[%s8645_s1 + $0xf70] sm:$0xff]  ;;  %v1047_v35 = vld [vmem:[%s8645_s1 + $0x1f60] sm:$0xff]  ;;  %v540_v38 = vld [vmem:[%s8645_s1 + $0xf88] sm:$0xff] }
 0x1cb   :  { %4211 = vmatprep.subr.bf16.mxu0 %v4210_v44  ;;  %v4230_v44 = vpack.c.bf16 %v1034_v9, %v1032_v40  ;;  %v1049_v37 = vld [vmem:[%s8645_s1 + $0x1f70] sm:$0xff]  ;;  %v542_v39 = vld [vmem:[%s8645_s1 + $0xf98] sm:$0xff]  ;;  %v1052_v40 = vld [vmem:[%s8645_s1 + $0x1f88] sm:$0xff] }
 0x1cc   :  { %v1054_v9 = vld [vmem:[%s8645_s1 + $0x1f98] sm:$0xff] }
 0x1cd   :  { %3701 = vmatpush1.bf16.msra.mxu1 %v3700_v51  ;;  %v3720_v51 = vpack.c.bf16 %v521_v43, %v519_v0  ;;  %v539_v0 = vld [vmem:[%s8645_s1 + $0xf80] sm:$0xff]  ;;  %v541_v43 = vld [vmem:[%s8645_s1 + $0xf90] sm:$0xff] }
 0x1ce   :  { %4213 = vmatpush1.bf16.msra.mxu0 %v4212_v53  ;;  %3703 = vmatprep.subr.bf16.mxu1 %v3702_v55  ;;  %v4232_v53 = vpack.c.bf16 %v1033_v22, %v1031_v4  ;;  %v3722_v55 = vpack.c.bf16 %v526_v6, %v524_v46  ;;  %v1051_v4 = vld [vmem:[%s8645_s1 + $0x1f80] sm:$0xff]  ;;  %v1053_v22 = vld [vmem:[%s8645_s1 + $0x1f90] sm:$0xff]  ;;  %v544_v46 = vld [vmem:[%s8645_s1 + $0xfa8] sm:$0xff] }
 0x1cf   :  { %4215 = vmatprep.subr.bf16.mxu0 %v4214_v60  ;;  %v4234_v60 = vpack.c.bf16 %v1038_v49, %v1036_v48  ;;  %v546_v6 = vld [vmem:[%s8645_s1 + $0xfb8] sm:$0xff]  ;;  %v1056_v48 = vld [vmem:[%s8645_s1 + $0x1fa8] sm:$0xff] }
 0x1d0   :  { %v1058_v49 = vld [vmem:[%s8645_s1 + $0x1fb8] sm:$0xff] }
 0x1d1   :  { %3705 = vmatpush1.bf16.msra.mxu1 %v3704_v30  ;;  %v3724_v30 = vpack.c.bf16 %v525_v57, %v523_v56  ;;  %v543_v56 = vld [vmem:[%s8645_s1 + $0xfa0] sm:$0xff]  ;;  %v545_v57 = vld [vmem:[%s8645_s1 + $0xfb0] sm:$0xff] }
 0x1d2   :  { %4217 = vmatpush1.bf16.msra.mxu0 %v4216_v2  ;;  %3707 = vmatprep.subr.bf16.mxu1 %v3706_v3  ;;  %v4236_v2 = vpack.c.bf16 %v1037_v62, %v1035_v58  ;;  %v3726_v3 = vpack.c.bf16 %v530_v50, %v528_v63  ;;  %v1055_v58 = vld [vmem:[%s8645_s1 + $0x1fa0] sm:$0xff]  ;;  %v1057_v62 = vld [vmem:[%s8645_s1 + $0x1fb0] sm:$0xff]  ;;  %v548_v63 = vld [vmem:[%s8645_s1 + $0xfc8] sm:$0xff] }
 0x1d3   :  { %4219 = vmatprep.subr.bf16.mxu0 %v4218_v7  ;;  %v4238_v7 = vpack.c.bf16 %v1042_v54, %v1040_v1  ;;  %v550_v50 = vld [vmem:[%s8645_s1 + $0xfd8] sm:$0xff]  ;;  %v1060_v1 = vld [vmem:[%s8645_s1 + $0x1fc8] sm:$0xff] }
 0x1d4   :  { %v1062_v54 = vld [vmem:[%s8645_s1 + $0x1fd8] sm:$0xff] }
 0x1d5   :  { %3709 = vmatpush1.bf16.msra.mxu1 %v3708_v16  ;;  %v3728_v16 = vpack.c.bf16 %v529_v33, %v527_v28  ;;  %v547_v28 = vld [vmem:[%s8645_s1 + $0xfc0] sm:$0xff]  ;;  %v549_v33 = vld [vmem:[%s8645_s1 + $0xfd0] sm:$0xff] }
 0x1d6   :  { %4221 = vmatpush1.bf16.msra.mxu0 %v4220_v25  ;;  %3711 = vmatprep.subr.bf16.mxu1 %v3710_v17  ;;  %v4240_v25 = vpack.c.bf16 %v1041_v8, %v1039_v5  ;;  %v3730_v17 = vpack.c.bf16 %v534_v13, %v532_v10  ;;  %v1059_v5 = vld [vmem:[%s8645_s1 + $0x1fc0] sm:$0xff]  ;;  %v1061_v8 = vld [vmem:[%s8645_s1 + $0x1fd0] sm:$0xff]  ;;  %v552_v10 = vld [vmem:[%s8645_s1 + $0xfe8] sm:$0xff] }
 0x1d7   :  { %4223 = vmatprep.subr.bf16.mxu0 %v4222_v20  ;;  %v4242_v20 = vpack.c.bf16 %v1046_v15, %v1044_v14  ;;  %v554_v13 = vld [vmem:[%s8645_s1 + $0xff8] sm:$0xff]  ;;  %v1064_v14 = vld [vmem:[%s8645_s1 + $0x1fe8] sm:$0xff] }
 0x1d8   :  { %v1066_v15 = vld [vmem:[%s8645_s1 + $0x1ff8] sm:$0xff] }
 0x1d9   :  { %3713 = vmatpush1.bf16.msra.mxu1 %v3712_v29  ;;  %v3732_v29 = vpack.c.bf16 %v533_v52, %v531_v18  ;;  %v3750_v18 = vpack.c.bf16 %v554_v13, %v552_v10  ;;  %v553_v52 = vld [vmem:[%s8645_s1 + $0xff0] sm:$0xff] }
 0x1da   :  { %4225 = vmatpush1.bf16.msra.mxu0 %v4224_v59  ;;  %3715 = vmatprep.subr.bf16.mxu1 %v3714_v31  ;;  %v4244_v59 = vpack.c.bf16 %v1045_v45, %v1043_v19  ;;  %v3734_v31 = vpack.c.bf16 %v538_v24, %v536_v23  ;;  %v1063_v19 = vld [vmem:[%s8645_s1 + $0x1fe0] sm:$0xff]  ;;  %v4262_v45 = vpack.c.bf16 %v1066_v15, %v1064_v14  ;;  %v1196_v24 = vld [vmem:[%s8645_s1 + $0x2408] sm:$0xff]  ;;  %v1209_v10 = vld [vmem:[%s8645_s1 + $0x2470] sm:$0xff] }
 0x1db   :  { %4227 = vmatprep.subr.bf16.mxu0 %v4226_v36  ;;  %v4246_v36 = vpack.c.bf16 %v1050_v27, %v1048_v26  ;;  %v7879_v23 = vld [vmem:[%s8644_s0 + $0x40] sm:$0xff]  ;;  %v1198_v26 = vld [vmem:[%s8645_s1 + $0x2418] sm:$0xff]  ;;  %v1068_v27 = vld [vmem:[%s8645_s1 + $0x2008] sm:$0xff] }
 0x1dc   :  { %v1081_v14 = vld [vmem:[%s8645_s1 + $0x2070] sm:$0xff]  ;;  %v1212_v15 = vld [vmem:[%s8645_s1 + $0x2488] sm:$0xff] }
 0x1dd   :  { %3717 = vmatpush1.bf16.msra.mxu1 %v3716_v41  ;;  %v3736_v41 = vpack.c.bf16 %v537_v34, %v535_v32  ;;  %v7895_v32 = vrot.slane %v7879_v23, %v4920_v11  ;;  %v4394_v34 = vpack.c.bf16 %v1198_v26, %v1196_v24  ;;  %v1213_v24 = vld [vmem:[%s8645_s1 + $0x2490] sm:$0xff] }
 0x1de   :  { %4229 = vmatpush1.bf16.msra.mxu0 %v4228_v42  ;;  %3719 = vmatprep.subr.bf16.mxu1 %v3718_v12  ;;  %v4248_v42 = vpack.c.bf16 %v1049_v37, %v1047_v35  ;;  %v3738_v12 = vpack.c.bf16 %v542_v39, %v540_v38  ;;  %v1195_v35 = vld [vmem:[%s8645_s1 + $0x2400] sm:$0xff]  ;;  %v1069_v39 = vld [vmem:[%s8645_s1 + $0x2010] sm:$0xff] }
 0x1df   :  { %4231 = vmatprep.subr.bf16.mxu0 %v4230_v44  ;;  %v4250_v44 = vpack.c.bf16 %v1054_v9, %v1052_v40  ;;  %v1067_v38 = vld [vmem:[%s8645_s1 + $0x2000] sm:$0xff]  ;;  %v1072_v40 = vld [vmem:[%s8645_s1 + $0x2028] sm:$0xff]  ;;  %v1074_v9 = vld [vmem:[%s8645_s1 + $0x2038] sm:$0xff] }
 0x1e1   :  { %3721 = vmatpush1.bf16.msra.mxu1 %v3720_v51  ;;  %v3740_v51 = vpack.c.bf16 %v541_v43, %v539_v0  ;;  %v4268_v43 = vpack.c.bf16 %v1069_v39, %v1067_v38  ;;  %v1215_v39 = vld [vmem:[%s8645_s1 + $0x24a0] sm:$0xff] }
 0x1e2   :  { %4233 = vmatpush1.bf16.msra.mxu0 %v4232_v53  ;;  %3723 = vmatprep.subr.bf16.mxu1 %v3722_v55  ;;  %v4252_v53 = vpack.c.bf16 %v1053_v22, %v1051_v4  ;;  %v3742_v55 = vpack.c.bf16 %v546_v6, %v544_v46  ;;  %v1416_v4 = vcombine.high %v7895_v32, %v7895_v32  ;;  %v1201_v22 = vld [vmem:[%s8645_s1 + $0x2430] sm:$0xff]  ;;  %v7935_v46 = vld.sshfl [vmem:[%s8644_s0 + $0x48] sm:$0x33 pattern:$0x76325410] }
 0x1e3   :  { %4235 = vmatprep.subr.bf16.mxu0 %v4234_v60  ;;  %v4254_v60 = vpack.c.bf16 %v1058_v49, %v1056_v48  ;;  %v4270_v6 = vpack.c.bf16 %v1074_v9, %v1072_v40  ;;  %v1073_v48 = vld [vmem:[%s8645_s1 + $0x2030] sm:$0xff] }
 0x1e4   :  { %v1217_v40 = vld [vmem:[%s8645_s1 + $0x24b0] sm:$0xff] }
 0x1e5   :  { %3725 = vmatpush1.bf16.msra.mxu1 %v3724_v30  ;;  %v3744_v30 = vpack.c.bf16 %v545_v57, %v543_v56  ;;  %v1078_v56 = vld [vmem:[%s8645_s1 + $0x2058] sm:$0xff]  ;;  %v1425_v57 = vcombine.high %v7935_v46, %v7935_v46 }
 0x1e6   :  { %4237 = vmatpush1.bf16.msra.mxu0 %v4236_v2  ;;  %3727 = vmatprep.subr.bf16.mxu1 %v3726_v3  ;;  %v4256_v2 = vpack.c.bf16 %v1057_v62, %v1055_v58  ;;  %v3746_v3 = vpack.c.bf16 %v550_v50, %v548_v63  ;;  %v1203_v63 = vld [vmem:[%s8645_s1 + $0x2440] sm:$0xff]  ;;  %v1205_v50 = vld [vmem:[%s8645_s1 + $0x2450] sm:$0xff] }
 0x1e7   :  { %4239 = vmatprep.subr.bf16.mxu0 %v4238_v7  ;;  %v4258_v7 = vpack.c.bf16 %v1062_v54, %v1060_v1  ;;  %v1077_v1 = vld [vmem:[%s8645_s1 + $0x2050] sm:$0xff]  ;;  %v1208_v54 = vld [vmem:[%s8645_s1 + $0x2468] sm:$0xff] }
 0x1e9   :  { %3729 = vmatpush1.bf16.msra.mxu1 %v3728_v16  ;;  %v3748_v16 = vpack.c.bf16 %v549_v33, %v547_v28  ;;  %v4404_v28 = vpack.c.bf16 %v1205_v50, %v1203_v63  ;;  %v1223_v50 = vld [vmem:[%s8645_s1 + $0x24e0] sm:$0xff] }
 0x1ea   :  { %4241 = vmatpush1.bf16.msra.mxu0 %v4240_v25  ;;  %3731 = vmatprep.subr.bf16.mxu1 %v3730_v17  ;;  %v551_v25 = vld [vmem:[%s8645_s1 + $0xfe0] sm:$0xff]  ;;  %v4260_v17 = vpack.c.bf16 %v1061_v8, %v1059_v5 }
 0x1eb   :  { %4243 = vmatprep.subr.bf16.mxu0 %v4242_v20  ;;  %v1065_v20 = vld [vmem:[%s8645_s1 + $0x1ff0] sm:$0xff]  ;;  %v1079_v5 = vld [vmem:[%s8645_s1 + $0x2060] sm:$0xff] }
 0x1ec   :  { %v1207_v8 = vld [vmem:[%s8645_s1 + $0x2460] sm:$0xff] }
 0x1ed   :  { %3733 = vmatpush1.bf16.msra.mxu1 %v3732_v29  ;;  %v1070_v29 = vld [vmem:[%s8645_s1 + $0x2018] sm:$0xff] }
 0x1ee   :  { %4245 = vmatpush1.bf16.msra.mxu0 %v4244_v59  ;;  %3735 = vmatprep.subr.bf16.mxu1 %v3734_v31  ;;  %v3752_v59 = vpack.c.bf16 %v553_v52, %v551_v25  ;;  %v4264_v31 = vpack.c.bf16 %v1065_v20, %v1063_v19  ;;  %v4266_v37 = vpack.c.bf16 %v1070_v29, %v1068_v27  ;;  %v1084_v25 = vld [vmem:[%s8645_s1 + $0x2088] sm:$0xff]  ;;  %v1083_v19 = vld [vmem:[%s8645_s1 + $0x2080] sm:$0xff]  ;;  %v1085_v27 = vld [vmem:[%s8645_s1 + $0x2090] sm:$0xff] }
 0x1ef   :  { %4247 = vmatprep.subr.bf16.mxu0 %v4246_v36  ;;  %v1197_v36 = vld [vmem:[%s8645_s1 + $0x2410] sm:$0xff]  ;;  %v4280_v52 = vpack.c.bf16 %v1081_v14, %v1079_v5  ;;  %v1216_v29 = vld [vmem:[%s8645_s1 + $0x24a8] sm:$0xff] }
 0x1f0   :  { %v4396_v0 = vpack.c.bf16 %v1197_v36, %v1195_v35  ;;  %v4284_v36 = vpack.c.bf16 %v1085_v27, %v1083_v19 }
 0x1f1   :  { %3737 = vmatpush1.bf16.msra.mxu1 %v3736_v41  ;;  %v1200_v41 = vld [vmem:[%s8645_s1 + $0x2428] sm:$0xff] }
 0x1f2   :  { %4249 = vmatpush1.bf16.msra.mxu0 %v4248_v42  ;;  %3739 = vmatprep.subr.bf16.mxu1 %v3738_v12  ;;  %v1202_v42 = vld [vmem:[%s8645_s1 + $0x2438] sm:$0xff]  ;;  %v1071_v12 = vld [vmem:[%s8645_s1 + $0x2020] sm:$0xff] }
 0x1f3   :  { %4251 = vmatprep.subr.bf16.mxu0 %v4250_v44  ;;  %v1199_v44 = vld [vmem:[%s8645_s1 + $0x2420] sm:$0xff]  ;;  %v4398_v49 = vpack.c.bf16 %v1202_v42, %v1200_v41  ;;  %v1089_v41 = vld [vmem:[%s8645_s1 + $0x20b0] sm:$0xff]  ;;  %v1220_v42 = vld [vmem:[%s8645_s1 + $0x24c8] sm:$0xff] }
 0x1f4   :  { %v4400_v58 = vpack.c.bf16 %v1201_v22, %v1199_v44  ;;  %v1091_v22 = vld [vmem:[%s8645_s1 + $0x20c0] sm:$0xff] }
 0x1f5   :  { %3741 = vmatpush1.bf16.msra.mxu1 %v3740_v51  ;;  %v1204_v51 = vld [vmem:[%s8645_s1 + $0x2448] sm:$0xff] }
 0x1f6   :  { %4253 = vmatpush1.bf16.msra.mxu0 %v4252_v53  ;;  %3743 = vmatprep.subr.bf16.mxu1 %v3742_v55  ;;  %v1206_v53 = vld [vmem:[%s8645_s1 + $0x2458] sm:$0xff]  ;;  %v1076_v55 = vld [vmem:[%s8645_s1 + $0x2048] sm:$0xff] }
 0x1f7   :  { %4255 = vmatprep.subr.bf16.mxu0 %v4254_v60  ;;  %v4272_v60 = vpack.c.bf16 %v1073_v48, %v1071_v12  ;;  %v4402_v62 = vpack.c.bf16 %v1206_v53, %v1204_v51  ;;  %v1222_v12 = vld [vmem:[%s8645_s1 + $0x24d8] sm:$0xff]  ;;  %v1219_v48 = vld [vmem:[%s8645_s1 + $0x24c0] sm:$0xff]  ;;  %v1093_v53 = vld [vmem:[%s8645_s1 + $0x20d0] sm:$0xff] }
 0x1f9   :  { %3745 = vmatpush1.bf16.msra.mxu1 %v3744_v30  ;;  %v1210_v30 = vld [vmem:[%s8645_s1 + $0x2478] sm:$0xff] }
 0x1fa   :  { %4257 = vmatpush1.bf16.msra.mxu0 %v4256_v2  ;;  %3747 = vmatprep.subr.bf16.mxu1 %v3746_v3  ;;  %v1080_v2 = vld [vmem:[%s8645_s1 + $0x2068] sm:$0xff]  ;;  %v1082_v3 = vld [vmem:[%s8645_s1 + $0x2078] sm:$0xff] }
 0x1fb   :  { %4259 = vmatprep.subr.bf16.mxu0 %v4258_v7  ;;  %v4406_v7 = vpack.c.bf16 %v1210_v30, %v1208_v54  ;;  %v4278_v13 = vpack.c.bf16 %v1082_v3, %v1080_v2  ;;  %v1097_v54 = vld [vmem:[%s8645_s1 + $0x20f0] sm:$0xff]  ;;  %v1228_v30 = vld [vmem:[%s8645_s1 + $0x2508] sm:$0xff]  ;;  %v1230_v2 = vld [vmem:[%s8645_s1 + $0x2518] sm:$0xff] }
 0x1fc   :  { %v1100_v3 = vld [vmem:[%s8645_s1 + $0x2108] sm:$0xff] }
 0x1fd   :  { %3749 = vmatpush1.bf16.msra.mxu1 %v3748_v16  ;;  %v1214_v16 = vld [vmem:[%s8645_s1 + $0x2498] sm:$0xff] }
 0x1fe   :  { %4261 = vmatpush1.bf16.msra.mxu0 %v4260_v17  ;;  %3751 = vmatprep.subr.bf16.mxu1 %v3750_v18  ;;  %v1086_v17 = vld [vmem:[%s8645_s1 + $0x2098] sm:$0xff]  ;;  %v4408_v18 = vpack.c.bf16 %v1209_v10, %v1207_v8  ;;  %v4410_v20 = vpack.c.bf16 %v1214_v16, %v1212_v15  ;;  %v4426_v8 = vpack.c.bf16 %v1230_v2, %v1228_v30  ;;  %v1227_v10 = vld [vmem:[%s8645_s1 + $0x2500] sm:$0xff]  ;;  %v1101_v15 = vld [vmem:[%s8645_s1 + $0x2110] sm:$0xff] }
 0x1ff   :  { %4263 = vmatprep.subr.bf16.mxu0 %v4262_v45  ;;  %v1211_v45 = vld [vmem:[%s8645_s1 + $0x2480] sm:$0xff]  ;;  %v4282_v26 = vpack.c.bf16 %v1086_v17, %v1084_v25  ;;  %v1232_v16 = vld [vmem:[%s8645_s1 + $0x2528] sm:$0xff]  ;;  %v1234_v25 = vld [vmem:[%s8645_s1 + $0x2538] sm:$0xff] }
 0x200   :  { %v4412_v35 = vpack.c.bf16 %v1213_v24, %v1211_v45  ;;  %v1104_v17 = vld [vmem:[%s8645_s1 + $0x2128] sm:$0xff]  ;;  %v4430_v45 = vpack.c.bf16 %v1234_v25, %v1232_v16  ;;  %v1231_v24 = vld [vmem:[%s8645_s1 + $0x2520] sm:$0xff]  ;;  %v1121_v2 = vld [vmem:[%s8645_s1 + $0x21b0] sm:$0xff] }
 0x201   :  { %3753 = vmatpush1.bf16.msra.mxu1 %v3752_v59  ;;  %v1218_v59 = vld [vmem:[%s8645_s1 + $0x24b8] sm:$0xff]  ;;  %v1119_v30 = vld [vmem:[%s8645_s1 + $0x21a0] sm:$0xff]  ;;  %v1129_v25 = vld [vmem:[%s8645_s1 + $0x21f0] sm:$0xff] }
 0x202   :  { %4265 = vmatpush1.bf16.msra.mxu0 %v4264_v31  ;;  %4395 = vmatprep.subr.bf16.mxu1 %v4394_v34  ;;  %v1088_v31 = vld [vmem:[%s8645_s1 + $0x20a8] sm:$0xff]  ;;  %v1090_v34 = vld [vmem:[%s8645_s1 + $0x20b8] sm:$0xff]  ;;  %v4414_v38 = vpack.c.bf16 %v1218_v59, %v1216_v29  ;;  %v1105_v29 = vld [vmem:[%s8645_s1 + $0x2130] sm:$0xff] }
 0x203   :  { %4267 = vmatprep.subr.bf16.mxu0 %v4266_v37  ;;  %v1087_v37 = vld [vmem:[%s8645_s1 + $0x20a0] sm:$0xff]  ;;  %v4286_v9 = vpack.c.bf16 %v1090_v34, %v1088_v31  ;;  %v1236_v59 = vld [vmem:[%s8645_s1 + $0x2548] sm:$0xff]  ;;  %v1238_v31 = vld [vmem:[%s8645_s1 + $0x2558] sm:$0xff] }
 0x204   :  { %2028 = vmatmul.mubr.f32.vlgmr.msra.gmra.mrb[0].mxu1 %v7511_v21  ;;  %v1075_v21 = vld [vmem:[%s8645_s1 + $0x2040] sm:$0xff]  ;;  %v4288_v44 = vpack.c.bf16 %v1089_v41, %v1087_v37  ;;  %v1108_v34 = vld [vmem:[%s8645_s1 + $0x2148] sm:$0xff] }
 0x205   :  { %2596 = vmatmul.mubr.f32.vlgmr.msra.gmra.mrb[0].mxu0 %v7520_v47  ;;  %4397 = vmatpush1.bf16.msra.mxu1 %v4396_v0  ;;  %v4274_v47 = vpack.c.bf16 %v1078_v56, %v1076_v55  ;;  %v4276_v33 = vpack.c.bf16 %v1077_v1, %v1075_v21  ;;  %v1092_v0 = vld [vmem:[%s8645_s1 + $0x20c8] sm:$0xff]  ;;  %v1226_v56 = vld [vmem:[%s8645_s1 + $0x24f8] sm:$0xff]  ;;  %v4292_v21 = vpack.c.bf16 %v1093_v53, %v1091_v22  ;;  %v1111_v53 = vld [vmem:[%s8645_s1 + $0x2160] sm:$0xff] }
 0x206   :  { %4269 = vmatpush1.bf16.msra.mxu0 %v4268_v43  ;;  %2666 = vmatprep.mubr.f32.mxu0 %v1416_v4  ;;  %v1094_v43 = vld [vmem:[%s8645_s1 + $0x20d8] sm:$0xff]  ;;  %v4416_v4 = vpack.c.bf16 %v1217_v40, %v1215_v39  ;;  %v1224_v55 = vld [vmem:[%s8645_s1 + $0x24e8] sm:$0xff]  ;;  %v4434_v39 = vpack.c.bf16 %v1238_v31, %v1236_v59  ;;  %v1235_v40 = vld [vmem:[%s8645_s1 + $0x2540] sm:$0xff] }
 0x207   :  { %4271 = vmatprep.subr.bf16.mxu0 %v4270_v6  ;;  %4399 = vmatprep.subr.bf16.mxu1 %v4398_v49  ;;  %v4418_v6 = vpack.c.bf16 %v1222_v12, %v1220_v42  ;;  %v1221_v49 = vld [vmem:[%s8645_s1 + $0x24d0] sm:$0xff]  ;;  %v4290_v51 = vpack.c.bf16 %v1094_v43, %v1092_v0  ;;  %v4422_v63 = vpack.c.bf16 %v1226_v56, %v1224_v55  ;;  %v1240_v12 = vld [vmem:[%s8645_s1 + $0x2568] sm:$0xff]  ;;  %v1242_v0 = vld [vmem:[%s8645_s1 + $0x2578] sm:$0xff] }
 0x208   :  { %3122 = vmatprep.mubr.msk.f32.mxu1 %vm1463_vm0, %v1425_v57  ;;  %v1096_v57 = vld [vmem:[%s8645_s1 + $0x20e8] sm:$0xff]  ;;  %v1109_v42 = vld [vmem:[%s8645_s1 + $0x2150] sm:$0xff]  ;;  %v1127_v16 = vld [vmem:[%s8645_s1 + $0x21e0] sm:$0xff] }
 0x209   :  { %4401 = vmatpush1.bf16.msra.mxu1 %v4400_v58  ;;  %v1098_v58 = vld [vmem:[%s8645_s1 + $0x20f8] sm:$0xff]  ;;  %v1112_v43 = vld [vmem:[%s8645_s1 + $0x2168] sm:$0xff]  ;;  %v1113_v55 = vld [vmem:[%s8645_s1 + $0x2170] sm:$0xff] }
 0x20a   :  { %4273 = vmatpush1.bf16.msra.mxu0 %v4272_v60  ;;  %4403 = vmatprep.subr.bf16.mxu1 %v4402_v62  ;;  %v4420_v60 = vpack.c.bf16 %v1221_v49, %v1219_v48  ;;  %v1095_v62 = vld [vmem:[%s8645_s1 + $0x20e0] sm:$0xff]  ;;  %v4294_v1 = vpack.c.bf16 %v1098_v58, %v1096_v57  ;;  %v1241_v49 = vld [vmem:[%s8645_s1 + $0x2570] sm:$0xff]  ;;  %v1116_v56 = vld [vmem:[%s8645_s1 + $0x2188] sm:$0xff] }
 0x20b   :  { %4275 = vmatprep.subr.bf16.mxu0 %v4274_v47  ;;  %v1225_v47 = vld [vmem:[%s8645_s1 + $0x24f0] sm:$0xff]  ;;  %v4296_v5 = vpack.c.bf16 %v1097_v54, %v1095_v62  ;;  %v1239_v48 = vld [vmem:[%s8645_s1 + $0x2560] sm:$0xff]  ;;  %v1118_v57 = vld [vmem:[%s8645_s1 + $0x2198] sm:$0xff] }
 0x20c   :  { %v4440_v58 = vpack.c.bf16 %v1241_v49, %v1239_v48  ;;  %v1115_v62 = vld [vmem:[%s8645_s1 + $0x2180] sm:$0xff]  ;;  %v1137_v31 = vld [vmem:[%s8645_s1 + $0x2230] sm:$0xff]  ;;  %v1152_v48 = vld [vmem:[%s8645_s1 + $0x22a8] sm:$0xff] }
 0x20d   :  { %4405 = vmatpush1.bf16.msra.mxu1 %v4404_v28  ;;  %v1102_v28 = vld [vmem:[%s8645_s1 + $0x2118] sm:$0xff]  ;;  %v1135_v59 = vld [vmem:[%s8645_s1 + $0x2220] sm:$0xff] }
 0x20e   :  { %4277 = vmatpush1.bf16.msra.mxu0 %v4276_v33  ;;  %4407 = vmatprep.subr.bf16.mxu1 %v4406_v7  ;;  %v4424_v33 = vpack.c.bf16 %v1225_v47, %v1223_v50  ;;  %v1099_v7 = vld [vmem:[%s8645_s1 + $0x2100] sm:$0xff]  ;;  %v4298_v14 = vpack.c.bf16 %v1102_v28, %v1100_v3  ;;  %v1120_v50 = vld [vmem:[%s8645_s1 + $0x21a8] sm:$0xff]  ;;  %v1122_v47 = vld [vmem:[%s8645_s1 + $0x21b8] sm:$0xff] }
 0x20f   :  { %4279 = vmatprep.subr.bf16.mxu0 %v4278_v13  ;;  %v1229_v13 = vld [vmem:[%s8645_s1 + $0x2510] sm:$0xff]  ;;  %v4300_v19 = vpack.c.bf16 %v1101_v15, %v1099_v7  ;;  %v4318_v54 = vpack.c.bf16 %v1122_v47, %v1120_v50  ;;  %v1124_v3 = vld [vmem:[%s8645_s1 + $0x21c8] sm:$0xff]  ;;  %v1126_v28 = vld [vmem:[%s8645_s1 + $0x21d8] sm:$0xff] }
 0x210   :  { %v1123_v7 = vld [vmem:[%s8645_s1 + $0x21c0] sm:$0xff]  ;;  %v1154_v49 = vld [vmem:[%s8645_s1 + $0x22b8] sm:$0xff]  ;;  %v1160_v50 = vld [vmem:[%s8645_s1 + $0x22e8] sm:$0xff] }
 0x211   :  { %4409 = vmatpush1.bf16.msra.mxu1 %v4408_v18  ;;  %v1106_v18 = vld [vmem:[%s8645_s1 + $0x2138] sm:$0xff] }
 0x212   :  { %4281 = vmatpush1.bf16.msra.mxu0 %v4280_v52  ;;  %4411 = vmatprep.subr.bf16.mxu1 %v4410_v20  ;;  %v4428_v52 = vpack.c.bf16 %v1229_v13, %v1227_v10  ;;  %v1103_v20 = vld [vmem:[%s8645_s1 + $0x2120] sm:$0xff]  ;;  %v4302_v27 = vpack.c.bf16 %v1106_v18, %v1104_v17  ;;  %v1128_v10 = vld [vmem:[%s8645_s1 + $0x21e8] sm:$0xff]  ;;  %v1134_v18 = vld [vmem:[%s8645_s1 + $0x2218] sm:$0xff] }
 0x213   :  { %4283 = vmatprep.subr.bf16.mxu0 %v4282_v26  ;;  %v1233_v26 = vld [vmem:[%s8645_s1 + $0x2530] sm:$0xff]  ;;  %v4304_v37 = vpack.c.bf16 %v1105_v29, %v1103_v20  ;;  %v1132_v17 = vld [vmem:[%s8645_s1 + $0x2208] sm:$0xff]  ;;  %v1131_v20 = vld [vmem:[%s8645_s1 + $0x2200] sm:$0xff] }
 0x214   :  { %v1162_v47 = vld [vmem:[%s8645_s1 + $0x22f8] sm:$0xff] }
 0x215   :  { %4413 = vmatpush1.bf16.msra.mxu1 %v4412_v35  ;;  %v1110_v35 = vld [vmem:[%s8645_s1 + $0x2158] sm:$0xff] }
 0x216   :  { %4285 = vmatpush1.bf16.msra.mxu0 %v4284_v36  ;;  %4415 = vmatprep.subr.bf16.mxu1 %v4414_v38  ;;  %v4432_v36 = vpack.c.bf16 %v1233_v26, %v1231_v24  ;;  %v1107_v38 = vld [vmem:[%s8645_s1 + $0x2140] sm:$0xff]  ;;  %v4306_v41 = vpack.c.bf16 %v1110_v35, %v1108_v34  ;;  %v1136_v24 = vld [vmem:[%s8645_s1 + $0x2228] sm:$0xff]  ;;  %v1138_v26 = vld [vmem:[%s8645_s1 + $0x2238] sm:$0xff] }
 0x217   :  { %4287 = vmatprep.subr.bf16.mxu0 %v4286_v9  ;;  %v1237_v9 = vld [vmem:[%s8645_s1 + $0x2550] sm:$0xff]  ;;  %v4308_v22 = vpack.c.bf16 %v1109_v42, %v1107_v38  ;;  %v4334_v29 = vpack.c.bf16 %v1138_v26, %v1136_v24  ;;  %v1140_v34 = vld [vmem:[%s8645_s1 + $0x2248] sm:$0xff]  ;;  %v1142_v35 = vld [vmem:[%s8645_s1 + $0x2258] sm:$0xff] }
 0x218   :  { %v1139_v38 = vld [vmem:[%s8645_s1 + $0x2240] sm:$0xff]  ;;  %v2820_v26 = vld [vmem:[%s8647_s3 + $0x28] sm:$0xff] }
 0x219   :  { %4417 = vmatpush1.bf16.msra.mxu1 %v4416_v4  ;;  %v1114_v4 = vld [vmem:[%s8645_s1 + $0x2178] sm:$0xff]  ;;  %v1143_v42 = vld [vmem:[%s8645_s1 + $0x2260] sm:$0xff] }
 0x21a   :  { %4289 = vmatpush1.bf16.msra.mxu0 %v4288_v44  ;;  %4419 = vmatprep.subr.bf16.mxu1 %v4418_v6  ;;  %v4436_v44 = vpack.c.bf16 %v1237_v9, %v1235_v40  ;;  %v4438_v6 = vpack.c.bf16 %v1242_v0, %v1240_v12  ;;  %v1144_v40 = vld [vmem:[%s8645_s1 + $0x2268] sm:$0xff]  ;;  %v1145_v12 = vld [vmem:[%s8645_s1 + $0x2270] sm:$0xff]  ;;  %v2819_v24 = vld [vmem:[%s8647_s3 + $0x20] sm:$0xff] }
 0x21b   :  { %4291 = vmatprep.subr.bf16.mxu0 %v4290_v51  ;;  %v4310_v51 = vpack.c.bf16 %v1114_v4, %v1112_v43  ;;  %v1148_v0 = vld [vmem:[%s8645_s1 + $0x2288] sm:$0xff]  ;;  %v1150_v43 = vld [vmem:[%s8645_s1 + $0x2298] sm:$0xff]  ;;  %v4344_v4 = vpack.c.bf16 %v1145_v12, %v1143_v42 }
 0x21c   :  { %v2840_v42 = vld [vmem:[%s8647_s3 + $0xc8] sm:$0xff] }
 0x21d   :  { %4421 = vmatpush1.bf16.msra.mxu1 %v4420_v60  ;;  %v4312_v60 = vpack.c.bf16 %v1113_v55, %v1111_v53  ;;  %v4350_v53 = vpack.c.bf16 %v1154_v49, %v1152_v48  ;;  %v1151_v55 = vld [vmem:[%s8645_s1 + $0x22a0] sm:$0xff]  ;;  %v1172_v12 = vld [vmem:[%s8645_s1 + $0x2348] sm:$0xff] }
 0x21e   :  { %4293 = vmatpush1.bf16.msra.mxu0 %v4292_v21  ;;  %4423 = vmatprep.subr.bf16.mxu1 %v4422_v63  ;;  %v4314_v21 = vpack.c.bf16 %v1118_v57, %v1116_v56  ;;  %v1117_v63 = vld [vmem:[%s8645_s1 + $0x2190] sm:$0xff]  ;;  %v1156_v57 = vld [vmem:[%s8645_s1 + $0x22c8] sm:$0xff] }
 0x21f   :  { %4295 = vmatprep.subr.bf16.mxu0 %v4294_v1  ;;  %v4316_v1 = vpack.c.bf16 %v1117_v63, %v1115_v62  ;;  %v1153_v56 = vld [vmem:[%s8645_s1 + $0x22b0] sm:$0xff]  ;;  %v1155_v62 = vld [vmem:[%s8645_s1 + $0x22c0] sm:$0xff]  ;;  %v2824_v48 = vld [vmem:[%s8647_s3 + $0x48] sm:$0xff] }
 0x220   :  { %v1157_v63 = vld [vmem:[%s8645_s1 + $0x22d0] sm:$0xff] }
 0x221   :  { %4425 = vmatpush1.bf16.msra.mxu1 %v4424_v33  ;;  %v4320_v33 = vpack.c.bf16 %v1121_v2, %v1119_v30  ;;  %v2831_v30 = vld [vmem:[%s8647_s3 + $0x80] sm:$0xff]  ;;  %v2832_v2 = vld [vmem:[%s8647_s3 + $0x88] sm:$0xff] }
 0x222   :  { %4297 = vmatpush1.bf16.msra.mxu0 %v4296_v5  ;;  %4427 = vmatprep.subr.bf16.mxu1 %v4426_v8  ;;  %v4322_v5 = vpack.c.bf16 %v1126_v28, %v1124_v3  ;;  %v1125_v8 = vld [vmem:[%s8645_s1 + $0x21d0] sm:$0xff]  ;;  %v2815_v3 = vld [vmem:[%s8647_s3] sm:$0xff]  ;;  %v4356_v28 = vpack.c.bf16 %v1157_v63, %v1155_v62 }
 0x223   :  { %4299 = vmatprep.subr.bf16.mxu0 %v4298_v14  ;;  %v4324_v13 = vpack.c.bf16 %v1125_v8, %v1123_v7  ;;  %v1401_v14 = vcombine.high %v7879_v23, %v7879_v23  ;;  %v4328_v23 = vpack.c.bf16 %v1129_v25, %v1127_v16  ;;  %v2833_v7 = vld [vmem:[%s8647_s3 + $0x90] sm:$0xff]  ;;  %v2834_v8 = vld [vmem:[%s8647_s3 + $0x98] sm:$0xff]  ;;  %v2835_v16 = vld [vmem:[%s8647_s3 + $0xa0] sm:$0xff] }
 0x224   :  { %v1164_v25 = vld [vmem:[%s8645_s1 + $0x2308] sm:$0xff]  ;;  %v2825_v63 = vld [vmem:[%s8647_s3 + $0x50] sm:$0xff] }
 0x225   :  { %4429 = vmatpush1.bf16.msra.mxu1 %v4428_v52  ;;  %v8243_v52 = vrot.slane %v1401_v14, %v4920_v11  ;;  %v2817_v14 = vld [vmem:[%s8647_s3 + $0x10] sm:$0xff] }
 0x226   :  { %4301 = vmatpush1.bf16.msra.mxu0 %v4300_v19  ;;  %4431 = vmatprep.subr.bf16.mxu1 %v4430_v45  ;;  %v4330_v19 = vpack.c.bf16 %v1134_v18, %v1132_v17  ;;  %v1133_v45 = vld [vmem:[%s8645_s1 + $0x2210] sm:$0xff]  ;;  %v1166_v17 = vld [vmem:[%s8645_s1 + $0x2318] sm:$0xff]  ;;  %v2836_v18 = vld [vmem:[%s8647_s3 + $0xa8] sm:$0xff] }
 0x227   :  { %4303 = vmatprep.subr.bf16.mxu0 %v4302_v27  ;;  %v4332_v11 = vpack.c.bf16 %v1133_v45, %v1131_v20  ;;  %v1417_v27 = vcombine.high %v8243_v52, %v8243_v52  ;;  %v1163_v20 = vld [vmem:[%s8645_s1 + $0x2300] sm:$0xff]  ;;  %v4450_v45 = vpack.c.bf16 %v2836_v18, %v2835_v16  ;;  %v1190_v18 = vld [vmem:[%s8645_s1 + $0x23d8] sm:$0xff] }
 0x228   :  { %v1183_v16 = vld [vmem:[%s8645_s1 + $0x23a0] sm:$0xff] }
 0x229   :  { %4433 = vmatpush1.bf16.msra.mxu1 %v4432_v36  ;;  %v4336_v36 = vpack.c.bf16 %v1137_v31, %v1135_v59  ;;  %v2838_v59 = vld [vmem:[%s8647_s3 + $0xb8] sm:$0xff]  ;;  %v1168_v31 = vld [vmem:[%s8645_s1 + $0x2328] sm:$0xff] }
 0x22a   :  { %4305 = vmatpush1.bf16.msra.mxu0 %v4304_v37  ;;  %4435 = vmatprep.subr.bf16.mxu1 %v4434_v39  ;;  %v4338_v37 = vpack.c.bf16 %v1142_v35, %v1140_v34  ;;  %v1141_v39 = vld [vmem:[%s8645_s1 + $0x2250] sm:$0xff]  ;;  %v1170_v34 = vld [vmem:[%s8645_s1 + $0x2338] sm:$0xff]  ;;  %v4452_v35 = vpack.c.bf16 %v2820_v26, %v2819_v24  ;;  %v1192_v24 = vld [vmem:[%s8645_s1 + $0x23e8] sm:$0xff] }
 0x22b   :  { %4307 = vmatprep.subr.bf16.mxu0 %v4306_v41  ;;  %v4340_v9 = vpack.c.bf16 %v1141_v39, %v1139_v38  ;;  %v2821_v39 = vld [vmem:[%s8647_s3 + $0x30] sm:$0xff]  ;;  %v1194_v26 = vld [vmem:[%s8645_s1 + $0x23f8] sm:$0xff] }
 0x22d   :  { %4437 = vmatpush1.bf16.msra.mxu1 %v4436_v44  ;;  %v4346_v44 = vpack.c.bf16 %v1150_v43, %v1148_v0  ;;  %v1174_v0 = vld [vmem:[%s8645_s1 + $0x2358] sm:$0xff] }
 0x22e   :  { %4309 = vmatpush1.bf16.msra.mxu0 %v4308_v22  ;;  %4439 = vmatprep.subr.bf16.mxu1 %v4438_v6  ;;  %v1147_v22 = vld [vmem:[%s8645_s1 + $0x2280] sm:$0xff]  ;;  %v1149_v6 = vld [vmem:[%s8645_s1 + $0x2290] sm:$0xff]  ;;  %v4370_v49 = vpack.c.bf16 %v1174_v0, %v1172_v12 }
 0x22f   :  { %4311 = vmatprep.subr.bf16.mxu0 %v4310_v51  ;;  %v4348_v51 = vpack.c.bf16 %v1149_v6, %v1147_v22  ;;  %v2823_v6 = vld [vmem:[%s8647_s3 + $0x40] sm:$0xff] }
 0x231   :  { %4441 = vmatpush1.bf16.msra.mxu1 %v4440_v58  ;;  %v1158_v58 = vld [vmem:[%s8645_s1 + $0x22d8] sm:$0xff] }
 0x232   :  { %4313 = vmatpush1.bf16.msra.mxu0 %v4312_v60  ;;  %v4352_v60 = vpack.c.bf16 %v1153_v56, %v1151_v55  ;;  %v2842_v55 = vld [vmem:[%s8647_s3 + $0xd8] sm:$0xff]  ;;  %v1176_v56 = vld [vmem:[%s8645_s1 + $0x2368] sm:$0xff] }
 0x233   :  { %4315 = vmatprep.subr.bf16.mxu0 %v4314_v21  ;;  %v4354_v21 = vpack.c.bf16 %v1158_v58, %v1156_v57  ;;  %v1178_v57 = vld [vmem:[%s8645_s1 + $0x2378] sm:$0xff]  ;;  %v4460_v58 = vpack.c.bf16 %v2824_v48, %v2823_v6 }
 0x234   :  { %2809 = vmatmul.mubr.f32.vlgmr.msra.gmra.mrb[2].mxu1 %v7935_v46  ;;  %v1130_v46 = vld [vmem:[%s8645_s1 + $0x21f8] sm:$0xff] }
 0x235   :  { %v4326_v15 = vpack.c.bf16 %v1130_v46, %v1128_v10  ;;  %v4358_v10 = vpack.c.bf16 %v1162_v47, %v1160_v50  ;;  %v2826_v50 = vld [vmem:[%s8647_s3 + $0x58] sm:$0xff]  ;;  %v4374_v47 = vpack.c.bf16 %v1178_v57, %v1176_v56  ;;  %v2924_v56 = vld [vmem:[%s8649_s5] sm:$0xff]  ;;  %v2925_v57 = vld [vmem:[%s8649_s5 + $0x8] sm:$0xff] }
 0x236   :  { %4317 = vmatpush1.bf16.msra.mxu0 %v4316_v1  ;;  %v1159_v1 = vld [vmem:[%s8645_s1 + $0x22e0] sm:$0xff] }
 0x237   :  { %4319 = vmatprep.subr.bf16.mxu0 %v4318_v54  ;;  %v1161_v54 = vld [vmem:[%s8645_s1 + $0x22f0] sm:$0xff] }
 0x23a   :  { %4321 = vmatpush1.bf16.msra.mxu0 %v4320_v33  ;;  %v4442_v33 = vpack.c.bf16 %v2832_v2, %v2831_v30  ;;  %v2844_v30 = vld [vmem:[%s8647_s3 + $0xe8] sm:$0xff] }
 0x23b   :  { %4323 = vmatprep.subr.bf16.mxu0 %v4322_v5  ;;  %v2816_v5 = vld [vmem:[%s8647_s3 + $0x8] sm:$0xff] }
 0x23c   :  { %v4444_v46 = vpack.c.bf16 %v2816_v5, %v2815_v3  ;;  %4443 = vmatprep.subr.bf16.mxu1 %v4442_v33  ;;  %v1180_v2 = vld [vmem:[%s8645_s1 + $0x2388] sm:$0xff]  ;;  %v1182_v3 = vld [vmem:[%s8645_s1 + $0x2398] sm:$0xff] }
 0x23e   :  { %4325 = vmatpush1.bf16.msra.mxu0 %v4324_v13  ;;  %v4446_v13 = vpack.c.bf16 %v2834_v8, %v2833_v7  ;;  %4445 = vmatpush3.bf16.msra.mxu1 %v4444_v46  ;;  %v4378_v7 = vpack.c.bf16 %v1182_v3, %v1180_v2  ;;  %v1179_v8 = vld [vmem:[%s8645_s1 + $0x2380] sm:$0xff]  ;;  %v1184_v46 = vld [vmem:[%s8645_s1 + $0x23a8] sm:$0xff]  ;;  %v2931_v2 = vld [vmem:[%s8649_s5 + $0x38] sm:$0xff] }
 0x23f   :  { %4327 = vmatprep.subr.bf16.mxu0 %v4326_v15  ;;  %v2818_v15 = vld [vmem:[%s8647_s3 + $0x18] sm:$0xff] }
 0x240   :  { %4447 = vmatprep.subr.bf16.mxu1 %v4446_v13  ;;  %v1186_v13 = vld [vmem:[%s8645_s1 + $0x23b8] sm:$0xff] }
 0x242   :  { %4329 = vmatpush1.bf16.msra.mxu0 %v4328_v23  ;;  %v4448_v23 = vpack.c.bf16 %v2818_v15, %v2817_v14  ;;  %v4382_v15 = vpack.c.bf16 %v1186_v13, %v1184_v46  ;;  %v2936_v46 = vld [vmem:[%s8649_s5 + $0x60] sm:$0xff]  ;;  %v2937_v13 = vld [vmem:[%s8649_s5 + $0x68] sm:$0xff] }
 0x243   :  { %4331 = vmatprep.subr.bf16.mxu0 %v4330_v19  ;;  %v4360_v19 = vpack.c.bf16 %v1161_v54, %v1159_v1  ;;  %v1177_v1 = vld [vmem:[%s8645_s1 + $0x2370] sm:$0xff]  ;;  %v2843_v54 = vld [vmem:[%s8647_s3 + $0xe0] sm:$0xff] }
 0x244   :  { %4449 = vmatpush3.bf16.msra.mxu1 %v4448_v23  ;;  %v4466_v5 = vpack.c.bf16 %v2844_v30, %v2843_v54  ;;  %v2930_v30 = vld [vmem:[%s8649_s5 + $0x30] sm:$0xff] }
 0x245   :  { %2667 = vmatmul.mubr.f32.vlgmr.msra.gmra.mrb[0].mxu0 %v7895_v32  ;;  %v1146_v32 = vld [vmem:[%s8645_s1 + $0x2278] sm:$0xff]  ;;  %4451 = vmatprep.subr.bf16.mxu1 %v4450_v45  ;;  %v1189_v45 = vld [vmem:[%s8645_s1 + $0x23d0] sm:$0xff]  ;;  %v4484_v3 = vpack.c.bf16 %v2931_v2, %v2930_v30 }
 0x246   :  { %4333 = vmatpush1.bf16.msra.mxu0 %v4332_v11  ;;  %2737 = vmatprep.mubr.f32.mxu0 %v1417_v27  ;;  %v4342_v41 = vpack.c.bf16 %v1146_v32, %v1144_v40  ;;  %v4362_v11 = vpack.c.bf16 %v1166_v17, %v1164_v25  ;;  %v1165_v27 = vld [vmem:[%s8645_s1 + $0x2310] sm:$0xff]  ;;  %v2822_v40 = vld [vmem:[%s8647_s3 + $0x38] sm:$0xff]  ;;  %v4366_v32 = vpack.c.bf16 %v1170_v34, %v1168_v31  ;;  %v1188_v17 = vld [vmem:[%s8645_s1 + $0x23c8] sm:$0xff] }
 0x247   :  { %4335 = vmatprep.subr.bf16.mxu0 %v4334_v29  ;;  %v2837_v29 = vld [vmem:[%s8647_s3 + $0xb0] sm:$0xff]  ;;  %v4456_v43 = vpack.c.bf16 %v2822_v40, %v2821_v39  ;;  %v2827_v34 = vld [vmem:[%s8647_s3 + $0x60] sm:$0xff] }
 0x248   :  { %v4454_v38 = vpack.c.bf16 %v2838_v59, %v2837_v29  ;;  %4453 = vmatpush3.bf16.msra.mxu1 %v4452_v35  ;;  %v1185_v25 = vld [vmem:[%s8645_s1 + $0x23b0] sm:$0xff]  ;;  %v1191_v29 = vld [vmem:[%s8645_s1 + $0x23e0] sm:$0xff]  ;;  %v2828_v35 = vld [vmem:[%s8647_s3 + $0x68] sm:$0xff] }
 0x249   :  { %v4384_v23 = vpack.c.bf16 %v1185_v25, %v1183_v16  ;;  %v1193_v59 = vld [vmem:[%s8645_s1 + $0x23f0] sm:$0xff]  ;;  %v2939_v16 = vld [vmem:[%s8649_s5 + $0x78] sm:$0xff] }
 0x24a   :  { %4337 = vmatpush1.bf16.msra.mxu0 %v4336_v36  ;;  %v4364_v36 = vpack.c.bf16 %v1165_v27, %v1163_v20  ;;  %4455 = vmatprep.subr.bf16.mxu1 %v4454_v38  ;;  %v1187_v20 = vld [vmem:[%s8645_s1 + $0x23c0] sm:$0xff]  ;;  %v4390_v27 = vpack.c.bf16 %v1194_v26, %v1192_v24  ;;  %v4392_v31 = vpack.c.bf16 %v1193_v59, %v1191_v29  ;;  %v2845_v39 = vld [vmem:[%s8647_s3 + $0xf0] sm:$0xff]  ;;  %v3020_v29 = vld [vmem:[%s8651_s7 + $0x18] sm:$0xff] }
 0x24b   :  { %4339 = vmatprep.subr.bf16.mxu0 %v4338_v37  ;;  %v1167_v37 = vld [vmem:[%s8645_s1 + $0x2320] sm:$0xff] }
 0x24c   :  { %4457 = vmatpush3.bf16.msra.mxu1 %v4456_v43  ;;  %v1247_v43 = vsub.s32 0, %v4893_v61 }
 0x24e   :  { %4341 = vmatpush1.bf16.msra.mxu0 %v4340_v9  ;;  %v1169_v9 = vld [vmem:[%s8645_s1 + $0x2330] sm:$0xff] }
 0x24f   :  { %4343 = vmatprep.subr.bf16.mxu0 %v4342_v41  ;;  %v2839_v41 = vld [vmem:[%s8647_s3 + $0xc0] sm:$0xff] }
 0x250   :  { %v4458_v22 = vpack.c.bf16 %v2840_v42, %v2839_v41  ;;  %v4587_v42 = vmov 0.0|0.0  }
 0x252   :  { %4345 = vmatpush1.bf16.msra.mxu0 %v4344_v4  ;;  %v4368_v4 = vpack.c.bf16 %v1169_v9, %v1167_v37  ;;  %4459 = vmatprep.subr.bf16.mxu1 %v4458_v22  ;;  %v2830_v9 = vld [vmem:[%s8647_s3 + $0x78] sm:$0xff] }
 0x253   :  { %4347 = vmatprep.subr.bf16.mxu0 %v4346_v44  ;;  %v1171_v44 = vld [vmem:[%s8645_s1 + $0x2340] sm:$0xff]  ;;  %4461 = vmatpush3.bf16.msra.mxu1 %v4460_v58 }
 0x256   :  { %4349 = vmatpush1.bf16.msra.mxu0 %v4348_v51  ;;  %v1173_v51 = vld [vmem:[%s8645_s1 + $0x2350] sm:$0xff] }
 0x257   :  { %4351 = vmatprep.subr.bf16.mxu0 %v4350_v53  ;;  %v2841_v53 = vld [vmem:[%s8647_s3 + $0xd0] sm:$0xff] }
 0x258   :  { %v4462_v62 = vpack.c.bf16 %v2842_v55, %v2841_v53 }
 0x25a   :  { %4353 = vmatpush1.bf16.msra.mxu0 %v4352_v60  ;;  %v4372_v60 = vpack.c.bf16 %v1173_v51, %v1171_v44  ;;  %4463 = vmatprep.subr.bf16.mxu1 %v4462_v62  ;;  %v1251_v44 = vsub.s32 1, %v4893_v61  ;;  %v4475_v62 = vpack.c.bf16 %v2925_v57, %v2924_v56  ;;  %v2926_v61 = vld [vmem:[%s8649_s5 + $0x10] sm:$0xff] }
 0x25b   :  { %4355 = vmatprep.subr.bf16.mxu0 %v4354_v21  ;;  %v1175_v21 = vld [vmem:[%s8645_s1 + $0x2360] sm:$0xff] }
 0x25c   :  { %v4376_v33 = vpack.c.bf16 %v1177_v1, %v1175_v21  ;;  %v2929_v1 = vld [vmem:[%s8649_s5 + $0x28] sm:$0xff] }
 0x25e   :  { %4357 = vmatpush1.bf16.msra.mxu0 %v4356_v28  ;;  %v4464_v28 = vpack.c.bf16 %v2826_v50, %v2825_v63  ;;  %v2927_v63 = vld [vmem:[%s8649_s5 + $0x18] sm:$0xff] }
 0x25f   :  { %4359 = vmatprep.subr.bf16.mxu0 %v4358_v10  ;;  %v1181_v10 = vld [vmem:[%s8645_s1 + $0x2390] sm:$0xff]  ;;  %v4478_v50 = vpack.c.bf16 %v2927_v63, %v2926_v61 }
 0x260   :  { %4465 = vmatpush3.bf16.msra.mxu1 %v4464_v28  ;;  %v4380_v14 = vpack.c.bf16 %v1181_v10, %v1179_v8  ;;  %v2932_v28 = vld [vmem:[%s8649_s5 + $0x40] sm:$0xff]  ;;  %v2935_v8 = vld [vmem:[%s8649_s5 + $0x58] sm:$0xff] }
 0x261   :  { %4467 = vmatprep.subr.bf16.mxu1 %v4466_v5 }
 0x262   :  { %4361 = vmatpush1.bf16.msra.mxu0 %v4360_v19  ;;  %v4386_v19 = vpack.c.bf16 %v1190_v18, %v1188_v17  ;;  %v4589_v17 = vmov 0.0  }
 0x263   :  { %4363 = vmatprep.subr.bf16.mxu0 %v4362_v11  ;;  %v4388_v11 = vpack.c.bf16 %v1189_v45, %v1187_v20  ;;  %v3123_v20 = vld [vmem:[%s8648_s4] ss:$0 sm:$0xff] }
 0x266   :  { %4365 = vmatpush1.bf16.msra.mxu0 %v4364_v36  ;;  %v4468_v36 = vpack.c.bf16 %v2828_v35, %v2827_v34  ;;  %v3022_v34 = vld [vmem:[%s8651_s7 + $0x28] sm:$0xff] }
 0x267   :  { %4367 = vmatprep.subr.bf16.mxu0 %v4366_v32  ;;  %v2829_v32 = vld [vmem:[%s8647_s3 + $0x70] sm:$0xff] }
 0x268   :  { %4469 = vmatpush3.bf16.msra.mxu1 %v4468_v36  ;;  %v4472_v41 = vpack.c.bf16 %v2830_v9, %v2829_v32  ;;  %v3023_v36 = vld [vmem:[%s8651_s7 + $0x30] sm:$0xff]  ;;  %v3125_v9 = vld [vmem:[%s8652_s8] ss:$0 sm:$0xff] }
 0x26a   :  { %4369 = vmatpush1.bf16.msra.mxu0 %v4368_v4  ;;  %v1243_v4 = vld [vmem:[%s8646_s2] sm:$0x3] }
 0x26b   :  { %4371 = vmatprep.subr.bf16.mxu0 %v4370_v49  ;;  %v1248_v22 = vrot.slane %v1243_v4, %v1247_v43  ;;  %v1252_v6 = vrot.slane %v1243_v4, %v1251_v44 }
 0x26e   :  { %4373 = vmatpush1.bf16.msra.mxu0 %v4372_v60 }
 0x26f   :  { %4375 = vmatprep.subr.bf16.mxu0 %v4374_v47  ;;  %v2928_v47 = vld [vmem:[%s8649_s5 + $0x20] sm:$0xff] }
 0x270   :  { %v4481_v54 = vpack.c.bf16 %v2929_v1, %v2928_v47 }
 0x272   :  { %4377 = vmatpush1.bf16.msra.mxu0 %v4376_v33  ;;  %v2933_v33 = vld [vmem:[%s8649_s5 + $0x48] sm:$0xff] }
 0x273   :  { %4379 = vmatprep.subr.bf16.mxu0 %v4378_v7  ;;  %v4487_v5 = vpack.c.bf16 %v2933_v33, %v2932_v28  ;;  %v2934_v7 = vld [vmem:[%s8649_s5 + $0x50] sm:$0xff] }
 0x274   :  { %v4490_v10 = vpack.c.bf16 %v2935_v8, %v2934_v7 }
 0x276   :  { %4381 = vmatpush1.bf16.msra.mxu0 %v4380_v14  ;;  %v4493_v14 = vpack.c.bf16 %v2937_v13, %v2936_v46 }
 0x277   :  { %4383 = vmatprep.subr.bf16.mxu0 %v4382_v15  ;;  %v2938_v15 = vld [vmem:[%s8649_s5 + $0x70] sm:$0xff] }
 0x278   :  { %v4496_v25 = vpack.c.bf16 %v2939_v16, %v2938_v15 }
 0x27a   :  { %4385 = vmatpush1.bf16.msra.mxu0 %v4384_v23  ;;  %v3017_v23 = vld [vmem:[%s8651_s7] sm:$0xff] }
 0x27b   :  { %4387 = vmatprep.subr.bf16.mxu0 %v4386_v19  ;;  %v3018_v19 = vld [vmem:[%s8651_s7 + $0x8] sm:$0xff] }
 0x27c   :  { %v4499_v26 = vpack.c.bf16 %v3018_v19, %v3017_v23 }
 0x27e   :  { %4389 = vmatpush1.bf16.msra.mxu0 %v4388_v11 }
 0x27f   :  { %4391 = vmatprep.subr.bf16.mxu0 %v4390_v27  ;;  %v3019_v27 = vld [vmem:[%s8651_s7 + $0x10] sm:$0xff] }
 0x280   :  { %v4502_v59 = vpack.c.bf16 %v3020_v29, %v3019_v27 }
 0x282   :  { %4393 = vmatpush1.bf16.msra.mxu0 %v4392_v31  ;;  %v3021_v31 = vld [vmem:[%s8651_s7 + $0x20] sm:$0xff] }
 0x283   :  { %v4505_v35 = vpack.c.bf16 %v3022_v34, %v3021_v31 }
 0x285   :  { %2738 = vmatmul.mubr.f32.vlgmr.msra.gmra.mrb[0].mxu0 %v8243_v52  ;;  %v2846_v52 = vld [vmem:[%s8647_s3 + $0xf8] sm:$0xff] }
 0x286   :  { %v4470_v40 = vpack.c.bf16 %v2846_v52, %v2845_v39  ;;  %v3124_v39 = vld [vmem:[%s8650_s6] ss:$0 sm:$0xff] }
 0x288   :  { %4471 = vmatprep.subr.bf16.mxu1 %v4470_v40 }
 0x289   :  { %4473 = vmatpush3.bf16.msra.mxu1 %v4472_v41 }
 0x28a   :  { %4474 = vmatprep.subr.bf16.mxu1 %v4587_v42 }
 0x2d7   :  { %v2029_v37 = vpop.f32.mrb[0].mxu1 }
 0x2d8   :  { %v2031_v38 = vpop.f32.mrb[1].mxu1  ;;  %v4510_v48 = vadd.f32 %v2029_v37, %v1248_v22  ;;  %v3024_v37 = vld [vmem:[%s8651_s7 + $0x38] sm:$0xff]  ;;  %s4562_s7 = scalar_lea.vmem %s3114_s21, 32 }
 0x2d9   :  { %v4513_v49 = vadd.f32 %v2031_v38, %v1252_v6  ;;  %v4508_v38 = vpack.c.bf16 %v3024_v37, %v3023_v36  ;;  %p4563_p0 = scmp.ne.s32.totalorder %s3114_s21, %s4562_s7  ;;  %p4568_p2 = scmp.lt.s32.totalorder %s4562_s7, %s4562_s7 }
 0x2db   :  { %p4569_p3 = por %p4568_p2, %p4567_p1 }
 0x2dd   :  { %p4570_p4 = pnand %p4569_p3, %p4563_p0 }
 0x307   :  { %v2810_v12 = vpop.f32.mrb[2].mxu1 }
 0x308   :  { %v2812_v0 = vpop.f32.mrb[3].mxu1 }
 0x358   :  { %v2739_v51 = vpop.f32.mrb[0].mxu0 }
 0x359   :  { %v4511_v53 = vadd.f32 %v4510_v48, %v2739_v51  ;;  %v2741_v55 = vpop.f32.mrb[1].mxu0 }
 0x35a   :  { %v4514_v58 = vadd.f32 %v4513_v49, %v2741_v55 }
 0x35b   :  { %v4512_v60 = vadd.f32 %v4511_v53, %v2810_v12 }
 0x35c   :  { %v4515_v21 = vadd.f32 %v4514_v58, %v2812_v0 }
 0x35e   :  { %2918 = vmatprep.mubr.f32.mxu1 %v4515_v21 }
 0x35f   :  { %2919 = vmatmul.mubr.f32.vlgmr.msra.gmra.mrb[4].mxu1 %v4512_v60 }
 0x360   :  { %4476 = vmatpush3.bf16.msra.mxu1 %v4475_v62  ;;  %3220 = vmatprep.mubr.msk.f32.mxu1 %vm4588_vm1, %v4589_v17 }
 0x361   :  { %4477 = vmatprep.subr.bf16.mxu1 %v4587_v42 }
 0x364   :  { %4479 = vmatpush3.bf16.msra.mxu1 %v4478_v50 }
 0x365   :  { %4480 = vmatprep.subr.bf16.mxu1 %v4587_v42 }
 0x368   :  { %4482 = vmatpush3.bf16.msra.mxu1 %v4481_v54 }
 0x369   :  { %4483 = vmatprep.subr.bf16.mxu1 %v4587_v42 }
 0x36c   :  { %4485 = vmatpush3.bf16.msra.mxu1 %v4484_v3 }
 0x36d   :  { %4486 = vmatprep.subr.bf16.mxu1 %v4587_v42 }
 0x370   :  { %4488 = vmatpush3.bf16.msra.mxu1 %v4487_v5 }
 0x371   :  { %4489 = vmatprep.subr.bf16.mxu1 %v4587_v42 }
 0x374   :  { %4491 = vmatpush3.bf16.msra.mxu1 %v4490_v10 }
 0x375   :  { %4492 = vmatprep.subr.bf16.mxu1 %v4587_v42 }
 0x378   :  { %4494 = vmatpush3.bf16.msra.mxu1 %v4493_v14 }
 0x379   :  { %4495 = vmatprep.subr.bf16.mxu1 %v4587_v42 }
 0x37c   :  { %4497 = vmatpush3.bf16.msra.mxu1 %v4496_v25 }
 0x37d   :  { %4498 = vmatprep.subr.bf16.mxu1 %v4587_v42 }
 0x432   :  { %v3159_v18 = vpop.f32.mrb[4].mxu1 }
 0x433   :  { %v3160_v45 = vpop.f32.mrb[5].mxu1 }
 0x434   :  { %v3161_v24 = vadd.f32 %v3160_v45, %v3159_v18 }
 0x436   :  { %v2921_v11 = vadd.f32 %v3161_v24, %v3123_v20 }
 0x438   :  { %3221 = vmatmul.mubr.f32.vlgmr.msra.gmra.mrb[6].mxu1 %v2921_v11 }
 0x439   :  { %4500 = vmatpush3.bf16.msra.mxu1 %v4499_v26  ;;  %3239 = vmatprep.mubr.msk.f32.mxu1 %vm4588_vm1, %v4589_v17 }
 0x43a   :  { %4501 = vmatprep.subr.bf16.mxu1 %v4587_v42 }
 0x43d   :  { %4503 = vmatpush3.bf16.msra.mxu1 %v4502_v59 }
 0x43e   :  { %4504 = vmatprep.subr.bf16.mxu1 %v4587_v42 }
 0x441   :  { %4506 = vmatpush3.bf16.msra.mxu1 %v4505_v35 }
 0x442   :  { %4507 = vmatprep.subr.bf16.mxu1 %v4587_v42 }
 0x445   :  { %4509 = vmatpush3.bf16.msra.mxu1 %v4508_v38 }
 0x50b   :  { %v3013_v52 = vpop.f32.mrb[6].mxu1 }
 0x50c   :  { %v3014_v40 = vadd.f32 %v3124_v39, %v3013_v52  ;;  %v3222_v32 = vpop.f32.mrb[7].mxu1 }
 0x50e   :  { %3240 = vmatmul.mubr.msk.f32.vlgmr.msra.gmra.mrb[8].mxu1 %vm1463_vm0, %v3014_v40 }
 0x5e1   :  { %v3101_v41 = vpop.f32.mrb[8].mxu1 }
 0x5e2   :  { %v3102_v42 = vadd.f32 %v3125_v9, %v3101_v41  ;;  %v3241_v12 = vpop.f32.mrb[9].mxu1 }
 0x5e4   :  { %3106 = vst.msk [vmem:[#allocation2] sm:$0x3] %vm3105_vm2, %v3102_v42 }
 0x5e5   :  { %4573 = shalt.err (!%p4570_p4)
}
 0x5e6   :  { %s4574_s22 = scalar_lea.hbm %s8653_s9, 32 }
 0x5e7   :  { %p4575_p5 = scmp.ne.s32.totalorder %s8653_s9, %s4574_s22  ;;  %p4578_p6 = scmp.lt.u32.totalorder %s4574_s22, %s8653_s9 }
 0x5e9   :  { %p4580_p7 = pnand %p4578_p6, %p4575_p5 }
 0x5eb   :  { %4583 = shalt.err (!%p4580_p7)
}
 0x5ec   :  { %3116 = dma.vmem_to_hbm [thread:$0]  %s3114_s21, 32, %s8653_s9, [#allocation3]  }
 0x5ed   :  { %4584 = dma.done.wait [#allocation3], 32  }
 0x5ee   :  { %4585 = vsyncadd [#allocation3], 4294967264 }
 0x5ef   :  { %3120 = vsyncpa [#allocation3], 1 }

</bundles_post_ra>
